<compile_context>
chip_gen: v5e
topology: v5e:2x2
jax: 0.10.0
libtpu: 0.0.40
codegen_flags: <defaults>
</compile_context>

<pallas_src>
import functools
import math

import numpy as np

import jax
import jax.numpy as jnp
from jax.experimental import pallas as pl
from jax.experimental.pallas import tpu as pltpu

_LANES = 128
_SMALL_CUTOFF = 1 << 15    # below this many output elements, pure JAX is faster
_TB_MAX = 32768            # pos values per tile (lane-dense out tile = TB*E*4 B)


# --------------------------------------------------------------------------- #
# Kernels
# --------------------------------------------------------------------------- #
def _pe_kernel_flat(pos_ref, expand_ref, freq_ref, phase_ref, out_ref):
    """Lane-dense path (E divides 128).

    pos_ref:    [R, G]    f32  G = 128 // E pos values per 128-lane output row
    expand_ref: [G, 128]  f32  one-hot: expand[g, l] = (l // E == g)
    freq_ref:   [1, 128]  f32  freq table tiled G times across lanes
    phase_ref:  [1, 128]  f32  phase table (0 or pi/2) tiled G times
    out_ref:    [R, 128]  f32  row-major flattened view of the [B, E] output
    """
    # Expand each pos value across its E lanes via the (idle) MXU.
    pos_full = jnp.dot(pos_ref[...], expand_ref[...],
                       preferred_element_type=jnp.float32)        # [R, 128]
    # Single transcendental per element: sin(x + pi/2) == cos(x).
    out_ref[...] = jnp.sin(pos_full * freq_ref[...] + phase_ref[...])


def _pe_kernel_rows(pos_ref, freq_ref, phase_ref, out_ref):
    """Fallback path (E does not divide 128): natural [TB, E] layout.

    pos_ref:   [TB, 1]  f32
    freq_ref:  [1, E]   f32
    phase_ref: [1, E]   f32
    out_ref:   [TB, E]  f32
    """
    out_ref[...] = jnp.sin(pos_ref[...] * freq_ref[...] + phase_ref[...])


# --------------------------------------------------------------------------- #
# Table construction (hoisted + cached per pe_embed)
# --------------------------------------------------------------------------- #
def _freq_phase_np(lbase, levels):
    E = 2 * levels
    j = np.arange(E)
    freq = (np.float64(lbase) ** (j // 2)) * np.pi          # lbase**i * pi
    phase = np.where(j % 2 == 1, np.pi / 2.0, 0.0)          # sin slot / cos slot
    return freq.astype(np.float32), phase.astype(np.float32)


@functools.lru_cache(maxsize=None)
def _row_tables(lbase, levels):
    E = 2 * levels
    freq, phase = _freq_phase_np(lbase, levels)
    return (jnp.asarray(freq.reshape(1, E)),
            jnp.asarray(phase.reshape(1, E)))


@functools.lru_cache(maxsize=None)
def _lane_tables(lbase, levels):
    E = 2 * levels
    G = _LANES // E
    freq, phase = _freq_phase_np(lbase, levels)
    freq128 = np.tile(freq, G).reshape(1, _LANES)
    phase128 = np.tile(phase, G).reshape(1, _LANES)
    expand = (np.arange(_LANES)[None, :] // E ==
              np.arange(G)[:, None]).astype(np.float32)      # [G, 128]
    return (jnp.asarray(freq128), jnp.asarray(phase128), jnp.asarray(expand))


def _round_up(x, m):
    return (x + m - 1) // m * m


# --------------------------------------------------------------------------- #
# Kernel drivers
# --------------------------------------------------------------------------- #
def _pe_lane_dense(pos, lbase, levels):
    E = 2 * levels
    G = _LANES // E                         # pos values per 128-lane row
    B = pos.shape[0]
    align = 8 * G                           # keeps sublane block dim % 8 == 0

    tb = min(_TB_MAX, _round_up(B, align))  # pos values per grid step
    tb = _round_up(tb, align)
    b_pad = _round_up(B, tb)
    grid = b_pad // tb
    rows_per_tile = tb // G
    rows_total = b_pad // G

    freq128, phase128, expand = _lane_tables(lbase, levels)

    pos_p = pos if b_pad == B else jnp.pad(pos, (0, b_pad - B))
    pos2 = pos_p.reshape(rows_total, G)

    out_flat = pl.pallas_call(
        _pe_kernel_flat,
        out_shape=jax.ShapeDtypeStruct((rows_total, _LANES), jnp.float32),
        grid=(grid,),
        in_specs=[
            pl.BlockSpec((rows_per_tile, G), lambda i: (i, 0)),
            pl.BlockSpec((G, _LANES), lambda i: (0, 0)),       # VMEM-resident
            pl.BlockSpec((1, _LANES), lambda i: (0, 0)),
            pl.BlockSpec((1, _LANES), lambda i: (0, 0)),
        ],
        out_specs=pl.BlockSpec((rows_per_tile, _LANES), lambda i: (i, 0)),
        compiler_params=pltpu.CompilerParams(
            dimension_semantics=("parallel",),
        ),
    )(pos2, expand, freq128, phase128)

    out = out_flat.reshape(b_pad, E)        # free: contiguous row-major view
    return out if b_pad == B else out[:B]


def _pe_rows(pos, lbase, levels):
    E = 2 * levels
    B = pos.shape[0]
    freq_e, phase_e = _row_tables(lbase, levels)

    tb_cap = max(8, ((2 << 20) // (4 * E)) // 8 * 8)   # ~2 MiB output tile
    tb = min(tb_cap, _round_up(B, 8))
    b_pad = _round_up(B, tb)
    grid = b_pad // tb

    pos_p = pos if b_pad == B else jnp.pad(pos, (0, b_pad - B))
    pos2 = pos_p.reshape(b_pad, 1)

    out = pl.pallas_call(
        _pe_kernel_rows,
        out_shape=jax.ShapeDtypeStruct((b_pad, E), jnp.float32),
        grid=(grid,),
        in_specs=[
            pl.BlockSpec((tb, 1), lambda i: (i, 0)),
            pl.BlockSpec((1, E), lambda i: (0, 0)),
            pl.BlockSpec((1, E), lambda i: (0, 0)),
        ],
        out_specs=pl.BlockSpec((tb, E), lambda i: (i, 0)),
        compiler_params=pltpu.CompilerParams(
            dimension_semantics=("parallel",),
        ),
    )(pos2, freq_e, phase_e)
    return out if b_pad == B else out[:B]


# --------------------------------------------------------------------------- #
# Public entry point (mirrors PositionalEncoding.forward)
# --------------------------------------------------------------------------- #
def positional_encoding(pos, pe_embed, *, use_kernel=None):
    pe_embed = pe_embed.lower()
    pos = jnp.asarray(pos, dtype=jnp.float32)

    if pe_embed == "none":
        return pos[:, None]                    # trivial; no kernel needed

    lbase_s, levels_s = pe_embed.split("_")
    lbase, levels = float(lbase_s), int(levels_s)
    E = 2 * levels
    B = pos.shape[0]

    if use_kernel is None:
        use_kernel = B * E >= _SMALL_CUTOFF

    if not use_kernel:
        # Tiny problem: launch overhead dominates; vectorized pure JAX.
        i = jnp.arange(levels, dtype=jnp.float32)
        freq = (lbase ** i) * math.pi
        t = pos[:, None] * freq[None, :]                         # [B, levels]
        return jnp.stack([jnp.sin(t), jnp.cos(t)], axis=2).reshape(B, E)

    if _LANES % E == 0:
        return _pe_lane_dense(pos, lbase, levels)
    return _pe_rows(pos, lbase, levels)


# --------------------------------------------------------------------------- #
# Pure-JAX reference mirroring the PyTorch forward loop
# --------------------------------------------------------------------------- #
def _reference(pos, pe_embed):
    pe_embed = pe_embed.lower()
    pos = pos.astype(jnp.float32)
    if pe_embed == "none":
        return pos[:, None]
    lbase_s, levels_s = pe_embed.split("_")
    lbase, levels = float(lbase_s), int(levels_s)
    pe_list = []
    for i in range(levels):
        temp = pos * (lbase ** i) * math.pi
        pe_list += [jnp.sin(temp), jnp.cos(temp)]
    return jnp.stack(pe_list, axis=1)


if __name__ == "__main__":
    # 1) Lane-dense kernel path: E = 32 divides 128 (B deliberately unaligned
    #    to exercise the pad/slice handling).
    B1, pe1 = 1000, "1.25_16"
    pos1 = jax.random.uniform(jax.random.PRNGKey(0), (B1,), dtype=jnp.float32)
    out1 = jax.block_until_ready(positional_encoding(pos1, pe1, use_kernel=True))
    ref1 = _reference(pos1, pe1)
    assert out1.shape == (B1, 32), out1.shape
    assert jnp.allclose(out1, ref1, atol=5e-5, rtol=1e-5), "lane-dense mismatch"

    # 2) Row-layout fallback kernel path: E = 20 does not divide 128.
    B2, pe2 = 518, "1.25_10"
    pos2 = jax.random.uniform(jax.random.PRNGKey(1), (B2,), dtype=jnp.float32)
    out2 = jax.block_until_ready(positional_encoding(pos2, pe2, use_kernel=True))
    ref2 = _reference(pos2, pe2)
    assert out2.shape == (B2, 20), out2.shape
    assert jnp.allclose(out2, ref2, atol=5e-5, rtol=1e-5), "row-layout mismatch"

    # 3) 'none' path and small-input auto (pure-JAX) path.
    pos3 = jax.random.uniform(jax.random.PRNGKey(2), (8,), dtype=jnp.float32)
    out_none = jax.block_until_ready(positional_encoding(pos3, "none"))
    assert out_none.shape == (8, 1)
    assert jnp.allclose(out_none, pos3[:, None])
    out_small = jax.block_until_ready(positional_encoding(pos3, "1.25_16"))
    assert jnp.allclose(out_small, _reference(pos3, "1.25_16"),
                        atol=5e-5, rtol=1e-5), "small-path mismatch"

    print("KERNEL_OK")
</pallas_src>

<mosaic_0001>
module attributes {stable_mosaic.version = 11 : i64} {
  func.func @_pe_kernel_flat(%arg0: i32, %arg1: memref<256x4xf32, #tpu.memory_space<vmem>>, %arg2: memref<4x128xf32, #tpu.memory_space<vmem>>, %arg3: memref<1x128xf32, #tpu.memory_space<vmem>>, %arg4: memref<1x128xf32, #tpu.memory_space<vmem>>, %arg5: memref<256x128xf32, #tpu.memory_space<vmem>>) attributes {dimension_semantics = [#tpu.dimension_semantics<parallel>], iteration_bounds = array<i64: 1>, scalar_prefetch = 0 : i64, scratch_operands = 0 : i64, tpu.core_type = #tpu.core_type<tc>, window_params = [{transform_indices = @transform_0, window_bounds = array<i64: 256, 4>}, {pipeline_mode = #tpu.pipeline_mode<synchronous>, transform_indices = @transform_1, window_bounds = array<i64: 4, 128>}, {pipeline_mode = #tpu.pipeline_mode<synchronous>, transform_indices = @transform_2, window_bounds = array<i64: 1, 128>}, {pipeline_mode = #tpu.pipeline_mode<synchronous>, transform_indices = @transform_3, window_bounds = array<i64: 1, 128>}, {transform_indices = @transform_4, window_bounds = array<i64: 256, 128>}]} {
    %c0 = arith.constant 0 : index
    %c0_0 = arith.constant 0 : index
    %0 = vector.load %arg1[%c0, %c0_0] : memref<256x4xf32, #tpu.memory_space<vmem>>, vector<256x4xf32>
    %c0_1 = arith.constant 0 : index
    %c0_2 = arith.constant 0 : index
    %1 = vector.load %arg2[%c0_1, %c0_2] : memref<4x128xf32, #tpu.memory_space<vmem>>, vector<4x128xf32>
    %cst = arith.constant dense<0.000000e+00> : vector<256x128xf32>
    %2 = tpu.matmul %0, %1, %cst {dimension_numbers = #tpu.dot_dimension_numbers<[1], [0], [0], [1], [0, 0, 1, 1], [], []>} : vector<256x4xf32>, vector<4x128xf32>, vector<256x128xf32> -> vector<256x128xf32>
    %c0_3 = arith.constant 0 : index
    %c0_4 = arith.constant 0 : index
    %3 = vector.load %arg3[%c0_3, %c0_4] : memref<1x128xf32, #tpu.memory_space<vmem>>, vector<1x128xf32>
    %4 = vector.broadcast %3 : vector<1x128xf32> to vector<256x128xf32>
    %5 = arith.mulf %2, %4 : vector<256x128xf32>
    %c0_5 = arith.constant 0 : index
    %c0_6 = arith.constant 0 : index
    %6 = vector.load %arg4[%c0_5, %c0_6] : memref<1x128xf32, #tpu.memory_space<vmem>>, vector<1x128xf32>
    %7 = vector.broadcast %6 : vector<1x128xf32> to vector<256x128xf32>
    %8 = arith.addf %5, %7 : vector<256x128xf32>
    %9 = math.sin %8 : vector<256x128xf32>
    %c0_7 = arith.constant 0 : index
    %c0_8 = arith.constant 0 : index
    %10 = vector.load %arg5[%c0_7, %c0_8] : memref<256x128xf32, #tpu.memory_space<vmem>>, vector<256x128xf32>
    tpu.vector_store %arg5[%c0_7, %c0_8], %9 {strides = array<i32>} : memref<256x128xf32, #tpu.memory_space<vmem>>, vector<256x128xf32>,
    return
  }
  func.func @transform_0(%arg0: i32) -> (i32, i32) {
    %c0_i32 = arith.constant 0 : i32
    %c0_i32_0 = arith.constant 0 : i32
    return %arg0, %c0_i32 : i32, i32
  }
  func.func @transform_1(%arg0: i32) -> (i32, i32) {
    %c0_i32 = arith.constant 0 : i32
    %c0_i32_0 = arith.constant 0 : i32
    %c0_i32_1 = arith.constant 0 : i32
    return %c0_i32, %c0_i32_0 : i32, i32
  }
  func.func @transform_2(%arg0: i32) -> (i32, i32) {
    %c0_i32 = arith.constant 0 : i32
    %c0_i32_0 = arith.constant 0 : i32
    %c0_i32_1 = arith.constant 0 : i32
    return %c0_i32, %c0_i32_0 : i32, i32
  }
  func.func @transform_3(%arg0: i32) -> (i32, i32) {
    %c0_i32 = arith.constant 0 : i32
    %c0_i32_0 = arith.constant 0 : i32
    %c0_i32_1 = arith.constant 0 : i32
    return %c0_i32, %c0_i32_0 : i32, i32
  }
  func.func @transform_4(%arg0: i32) -> (i32, i32) {
    %c0_i32 = arith.constant 0 : i32
    %c0_i32_0 = arith.constant 0 : i32
    return %arg0, %c0_i32 : i32, i32
  }
}

</mosaic_0001>

<bundles_post_ra>
// kernel: tpu_custom_call.1
= control target key start
LH: loop header
LB: loop body
LE: loop exit
PB: predicated region body
PF: predicated region fallthrough
CT: control target
= control target key end

     0   :  { %9 = vsyncpa [#allocation3], 0  ;;  %vm148_vm0 = vcmask 1043456   ;;  %vm51_vm1 = vcmask 31744   ;;  %s5524_s30 = smov [#allocation2]   ;;  %s5525_s6 = smov 128   ;;  %s9419_s0 = inlined_call_operand.vmem [shape: f32[256,4], index: 0, kind: input, shape index: {}]   ;;  %s9420_s1 = inlined_call_operand.vmem [shape: f32[4,128], index: 1, kind: input, shape index: {}]   ;;  %s9421_s2 = inlined_call_operand.vmem [shape: f32[1,128], index: 2, kind: input, shape index: {}]   ;;  %s9422_s3 = inlined_call_operand.vmem [shape: f32[1,128], index: 3, kind: input, shape index: {}]   ;;  %s9423_s4 = inlined_call_operand.hbm [shape: f32[256,128], index: 4, kind: output, shape index: {}]  }
   0x1   :  { %v18_v0 = vld [vmem:[%s9419_s0] sm:$0xff]  ;;  %v19_v5 = vld [vmem:[%s9419_s0 + $0x8] sm:$0xff]  ;;  %v20_v9 = vld [vmem:[%s9419_s0 + $0x10] sm:$0xff]  ;;  %s5333_s5 = sshll.u32 %s5524_s30, 4  ;;  %s5526_s7 = smov 8   ;;  %s5334_s5 = int_to_ptr.vmem [resolvable:$true] %s5333_s5 }
   0x2   :  { %v26_v1 = vld [vmem:[%s9419_s0 + $0x40] sm:$0xff]  ;;  %v27_v6 = vld [vmem:[%s9419_s0 + $0x48] sm:$0xff]  ;;  %v28_v10 = vld [vmem:[%s9419_s0 + $0x50] sm:$0xff] }
   0x3   :  { %v50_v2 = vld [vmem:[%s9420_s1] sm:$0xf]  ;;  %v35_v7 = vld [vmem:[%s9419_s0 + $0x88] sm:$0xff]  ;;  %v36_v11 = vld [vmem:[%s9419_s0 + $0x90] sm:$0xff] }
   0x4   :  { %v34_v3 = vld [vmem:[%s9419_s0 + $0x80] sm:$0xff]  ;;  %5347 = vmatpush.msk.msra.mxu0 %vm148_vm0, %v50_v2  ;;  %5476 = vmatpush.msk.msra.mxu1 %vm148_vm0, %v50_v2  ;;  %v43_v8 = vld [vmem:[%s9419_s0 + $0xc8] sm:$0xff]  ;;  %v44_v12 = vld [vmem:[%s9419_s0 + $0xd0] sm:$0xff] }
   0x5   :  { %v42_v4 = vld [vmem:[%s9419_s0 + $0xc0] sm:$0xff]  ;;  %5477 = vmatpush.msk.msra.mxu2 %vm148_vm0, %v50_v2  ;;  %5478 = vmatpush.msk.msra.mxu3 %vm148_vm0, %v50_v2  ;;  %v21_v13 = vld [vmem:[%s9419_s0 + $0x18] sm:$0xff]  ;;  %v23_v21 = vld [vmem:[%s9419_s0 + $0x28] sm:$0xff] }
   0x6   :  { %5348 = vmatmul.msk.f32.vlgmr.msra.gmra.mxu0 %vm51_vm1, %v18_v0  ;;  %5356 = vmatmul.msk.f32.vlgmr.msra.gmra.mxu1 %vm51_vm1, %v26_v1  ;;  %v29_v14 = vld [vmem:[%s9419_s0 + $0x58] sm:$0xff]  ;;  %v22_v17 = vld [vmem:[%s9419_s0 + $0x20] sm:$0xff]  ;;  %v31_v22 = vld [vmem:[%s9419_s0 + $0x68] sm:$0xff] }
   0x7   :  { %5364 = vmatmul.msk.f32.vlgmr.msra.gmra.mxu2 %vm51_vm1, %v34_v3  ;;  %5372 = vmatmul.msk.f32.vlgmr.msra.gmra.mxu3 %vm51_vm1, %v42_v4  ;;  %v37_v15 = vld [vmem:[%s9419_s0 + $0x98] sm:$0xff]  ;;  %v30_v18 = vld [vmem:[%s9419_s0 + $0x60] sm:$0xff]  ;;  %v39_v23 = vld [vmem:[%s9419_s0 + $0xa8] sm:$0xff] }
   0x8   :  { %v45_v16 = vld [vmem:[%s9419_s0 + $0xd8] sm:$0xff]  ;;  %v38_v19 = vld [vmem:[%s9419_s0 + $0xa0] sm:$0xff]  ;;  %v47_v24 = vld [vmem:[%s9419_s0 + $0xe8] sm:$0xff] }
   0x9   :  { %v46_v20 = vld [vmem:[%s9419_s0 + $0xe0] sm:$0xff]  ;;  %v24_v25 = vld [vmem:[%s9419_s0 + $0x30] sm:$0xff]  ;;  %v25_v29 = vld [vmem:[%s9419_s0 + $0x38] sm:$0xff] }
   0xa   :  { %v32_v26 = vld [vmem:[%s9419_s0 + $0x70] sm:$0xff]  ;;  %v33_v30 = vld [vmem:[%s9419_s0 + $0x78] sm:$0xff]  ;;  %v5686_v33 = vld [vmem:[%s9421_s2] ss:$0 sm:$0xff] }
   0xb   :  { %v40_v27 = vld [vmem:[%s9419_s0 + $0xb0] sm:$0xff]  ;;  %v41_v31 = vld [vmem:[%s9419_s0 + $0xb8] sm:$0xff]  ;;  %v5691_v34 = vld [vmem:[%s9422_s3] ss:$0 sm:$0xff]  ;;  %s5335_s3 = sshll.u32 %s9423_s4, 4  ;;  %s5336_s3 = int_to_ptr.hbm [resolvable:$true] %s5335_s3 }
   0xc   :  { %v48_v28 = vld [vmem:[%s9419_s0 + $0xf0] sm:$0xff]  ;;  %v49_v32 = vld [vmem:[%s9419_s0 + $0xf8] sm:$0xff] }
   0xe   :  { %5349 = vmatmul.msk.f32.gmra.mxu0 %vm51_vm1, %v19_v5  ;;  %5357 = vmatmul.msk.f32.gmra.mxu1 %vm51_vm1, %v27_v6 }
   0xf   :  { %5365 = vmatmul.msk.f32.gmra.mxu2 %vm51_vm1, %v35_v7  ;;  %5373 = vmatmul.msk.f32.gmra.mxu3 %vm51_vm1, %v43_v8 }
  0x16   :  { %5350 = vmatmul.msk.f32.gmra.mxu0 %vm51_vm1, %v20_v9  ;;  %5358 = vmatmul.msk.f32.gmra.mxu1 %vm51_vm1, %v28_v10  ;;  %v9441_v10 = vmov 683565275  }
  0x17   :  { %5366 = vmatmul.msk.f32.gmra.mxu2 %vm51_vm1, %v36_v11  ;;  %5374 = vmatmul.msk.f32.gmra.mxu3 %vm51_vm1, %v44_v12 }
  0x1e   :  { %5351 = vmatmul.msk.f32.gmra.mxu0 %vm51_vm1, %v21_v13  ;;  %5359 = vmatmul.msk.f32.gmra.mxu1 %vm51_vm1, %v29_v14  ;;  %v9433_v14 = vmov 2475754826  }
  0x1f   :  { %5367 = vmatmul.msk.f32.gmra.mxu2 %vm51_vm1, %v37_v15  ;;  %5375 = vmatmul.msk.f32.gmra.mxu3 %vm51_vm1, %v45_v16  ;;  %v9431_v16 = vmov 2131351028  }
  0x26   :  { %5352 = vmatmul.msk.f32.gmra.mxu0 %vm51_vm1, %v22_v17  ;;  %5360 = vmatmul.msk.f32.gmra.mxu1 %vm51_vm1, %v30_v18 }
  0x27   :  { %5368 = vmatmul.msk.f32.gmra.mxu2 %vm51_vm1, %v38_v19  ;;  %5376 = vmatmul.msk.f32.gmra.mxu3 %vm51_vm1, %v46_v20 }
  0x2e   :  { %5353 = vmatmul.msk.f32.gmra.mxu0 %vm51_vm1, %v23_v21  ;;  %5361 = vmatmul.msk.f32.gmra.mxu1 %vm51_vm1, %v31_v22 }
  0x2f   :  { %5369 = vmatmul.msk.f32.gmra.mxu2 %vm51_vm1, %v39_v23  ;;  %5377 = vmatmul.msk.f32.gmra.mxu3 %vm51_vm1, %v47_v24  ;;  %v9429_v23 = vmov 2102212464  }
  0x36   :  { %5354 = vmatmul.msk.f32.gmra.mxu0 %vm51_vm1, %v24_v25  ;;  %5362 = vmatmul.msk.f32.gmra.mxu1 %vm51_vm1, %v32_v26  ;;  %v9427_v26 = vmov 920167782  }
  0x37   :  { %5370 = vmatmul.msk.f32.gmra.mxu2 %vm51_vm1, %v40_v27  ;;  %5378 = vmatmul.msk.f32.gmra.mxu3 %vm51_vm1, %v48_v28 }
  0x3e   :  { %5355 = vmatmul.msk.f32.gmra.mxu0 %vm51_vm1, %v25_v29  ;;  %5363 = vmatmul.msk.f32.gmra.mxu1 %vm51_vm1, %v33_v30  ;;  %v9424_v30 = vmov 1326507024  }
  0x3f   :  { %5371 = vmatmul.msk.f32.gmra.mxu2 %vm51_vm1, %v41_v31  ;;  %5379 = vmatmul.msk.f32.gmra.mxu3 %vm51_vm1, %v49_v32 }
  0x83   :  { %v169_v35 = vpop.f32.mrf.mxu0  ;;  %v193_v36 = vpop.f32.mrf.mxu1 }
  0x84   :  { %v269_v37 = vmul.f32 %v5686_v33, %v169_v35  ;;  %v277_v38 = vmul.f32 %v5686_v33, %v193_v36 }
  0x86   :  { %v5696_v39 = vadd.f32 %v5691_v34, %v269_v37  ;;  %v5699_v40 = vadd.f32 %v5691_v34, %v277_v38 }
  0x88   :  { %v9435_v41 = vand.u32 2147483647, %v5696_v39  ;;  %v340_v42 = vand.u32 2139095040, %v5696_v39 }
  0x8a   :  { %v217_v43 = vpop.f32.mrf.mxu2  ;;  %v241_v44 = vpop.f32.mrf.mxu3  ;;  %v341_v45 = vshrl.u32 %v340_v42, 23  ;;  %v344_v46 = vand.u32 8388607, %v9435_v41 }
  0x8b   :  { %v172_v47 = vpop.f32.mrf.mxu0  ;;  %v196_v48 = vpop.f32.mrf.mxu1  ;;  %v285_v49 = vmul.f32 %v5686_v33, %v217_v43  ;;  %v293_v50 = vmul.f32 %v5686_v33, %v241_v44 }
  0x8c   :  { %v278_v51 = vmul.f32 %v5686_v33, %v196_v48  ;;  %v5380_v52 = vadd.s32 4294967169, %v341_v45  ;;  %v345_v53 = vor.u32 8388608, %v344_v46  ;;  %v270_v56 = vmul.f32 %v5686_v33, %v172_v47 }
  0x8d   :  { %v5709_v54 = vadd.f32 %v5691_v34, %v285_v49  ;;  %v5712_v55 = vadd.f32 %v5691_v34, %v293_v50 }
  0x8e   :  { %v5716_v57 = vadd.f32 %v5691_v34, %v278_v51  ;;  %v347_v58 = vadd.s32 1, %v5380_v52  ;;  %v5718_v59 = vshll.u32 %v345_v53, 8  ;;  %v5721_v63 = vadd.f32 %v5691_v34, %v270_v56 }
  0x8f   :  { %9456 = vst [vmem:[#allocation5_spill] sm:$0xff] %v5712_v55 }
  0x90   :  { %vm348_vm2 = vcmp.gt.s32.totalorder %v347_v58, 0  ;;  %v5728_v6 = vand.u32 65535, %v5718_v59  ;;  %v495_v21 = vand.u32 2139095040, %v5721_v63 }
  0x91   :  { %v349_v60 = vsel %vm348_vm2, %v347_v58, 0  ;;  %vm339_vm2 = vcmp.lt.s32.totalorder %v5696_v39, 0 }
  0x92   :  { %v220_v61 = vpop.f32.mrf.mxu2  ;;  %v244_v62 = vpop.f32.mrf.mxu3  ;;  %v351_v0 = vand.u32 31, %v349_v60  ;;  %v5725_v5 = vshrl.u32 %v349_v60, 5  ;;  %v496_v43 = vshrl.u32 %v495_v21, 23 }
  0x93   :  { %v175_v1 = vpop.f32.mrf.mxu0  ;;  %v199_v2 = vpop.f32.mrf.mxu1  ;;  %v286_v3 = vmul.f32 %v5686_v33, %v220_v61  ;;  %v294_v4 = vmul.f32 %v5686_v33, %v244_v62 }
  0x94   :  { %v271_v7 = vmul.f32 %v5686_v33, %v175_v1  ;;  %v279_v8 = vmul.f32 %v5686_v33, %v199_v2  ;;  %v352_v9 = vsub.s32 32, %v351_v0  ;;  %v354_v11 = vshll.u32 %v9441_v10, %v351_v0 }
  0x95   :  { %v5734_v12 = vadd.f32 %v5691_v34, %v286_v3  ;;  %v5737_v13 = vadd.f32 %v5691_v34, %v294_v4  ;;  %v357_v15 = vshll.u32 %v9433_v14, %v351_v0  ;;  %v360_v17 = vshll.u32 %v9431_v16, %v351_v0 }
  0x96   :  { %v5742_v18 = vadd.f32 %v5691_v34, %v271_v7  ;;  %v5745_v19 = vadd.f32 %v5691_v34, %v279_v8  ;;  %v355_v20 = vshrl.u32 %v9433_v14, %v352_v9  ;;  %v358_v22 = vshrl.u32 %v9431_v16, %v352_v9 }
  0x97   :  { %9457 = vst [vmem:[#allocation6_spill] sm:$0xff] %v5737_v13  ;;  %v361_v24 = vshrl.u32 %v9429_v23, %v352_v9  ;;  %v363_v25 = vshll.u32 %v9429_v23, %v351_v0  ;;  %v364_v27 = vshrl.u32 %v9427_v26, %v352_v9  ;;  %v366_v29 = vshll.u32 %v9427_v26, %v351_v0 }
  0x98   :  { %v356_v28 = vor.u32 %v355_v20, %v354_v11  ;;  %v367_v31 = vshrl.u32 %v9424_v30, %v352_v9  ;;  %vm369_vm3 = vcmp.lt.s32.totalorder %v5725_v5, 1  ;;  %v353_v32 = vshrl.u32 %v9441_v10, %v352_v9 }
  0x99   :  { %v359_v35 = vor.u32 %v358_v22, %v357_v15  ;;  %v362_v36 = vor.u32 %v361_v24, %v360_v17  ;;  %v365_v37 = vor.u32 %v364_v27, %v363_v25  ;;  %vm370_vm4 = vcmp.lt.s32.totalorder %v5725_v5, 2 }
  0x9a   :  { %v223_v38 = vpop.f32.mrf.mxu2  ;;  %v247_v42 = vpop.f32.mrf.mxu3  ;;  %vm371_vm5 = vcmp.lt.s32.totalorder %v5725_v5, 3  ;;  %vm372_vm6 = vcmp.lt.s32.totalorder %v5725_v5, 4  ;;  %v368_v48 = vor.u32 %v367_v31, %v366_v29  ;;  %v373_v60 = vsel %vm369_vm3, %v353_v32, %v356_v28 }
  0x9b   :  { %v178_v44 = vpop.f32.mrf.mxu0  ;;  %v202_v45 = vpop.f32.mrf.mxu1  ;;  %v287_v46 = vmul.f32 %v5686_v33, %v223_v38  ;;  %v295_v47 = vmul.f32 %v5686_v33, %v247_v42  ;;  %v377_v49 = vsel %vm369_vm3, %v356_v28, %v359_v35  ;;  %v374_v52 = vsel %vm372_vm6, %v362_v36, 2102212464 }
  0x9c   :  { %v272_v50 = vmul.f32 %v5686_v33, %v178_v44  ;;  %v280_v51 = vmul.f32 %v5686_v33, %v202_v45  ;;  %v378_v53 = vsel %vm372_vm6, %v365_v37, 920167782  ;;  %v381_v2 = vsel %vm369_vm3, %v359_v35, %v362_v36 }
  0x9d   :  { %v5771_v56 = vadd.f32 %v5691_v34, %v287_v46  ;;  %v5774_v58 = vadd.f32 %v5691_v34, %v295_v47  ;;  %v379_v61 = vsel %vm371_vm5, %v362_v36, %v378_v53  ;;  %v375_v3 = vsel %vm371_vm5, %v359_v35, %v374_v52 }
  0x9e   :  { %v5781_v62 = vadd.f32 %v5691_v34, %v272_v50  ;;  %v5784_v0 = vadd.f32 %v5691_v34, %v280_v51  ;;  %v380_v1 = vsel %vm370_vm4, %v377_v49, %v379_v61  ;;  %v382_v4 = vsel %vm372_vm6, %v368_v48, 1326507024 }
  0x9f   :  { %9458 = vst [vmem:[#allocation7_spill] sm:$0xff] %v5774_v58  ;;  %v410_v7 = vand.u32 65535, %v380_v1  ;;  %v411_v8 = vshrl.u32 %v380_v1, 16  ;;  %v383_v9 = vsel %vm371_vm5, %v365_v37, %v382_v4  ;;  %v387_v15 = vshrl.u32 %v5718_v59, 16 }
  0xa0   :  { %v384_v11 = vsel %vm370_vm4, %v381_v2, %v383_v9  ;;  %v5383_v20 = vadd.s32 4294967169, %v496_v43  ;;  %v5804_v24 = vsel %vm370_vm4, %v373_v60, %v375_v3  ;;  %v9426_v28 = vand.u32 2147483647, %v5721_v63 }
  0xa1   :  { %v5800_v17 = vmul.u32 %v411_v8, %v5728_v6  ;;  %v388_v25 = vand.u32 65535, %v384_v11  ;;  %v389_v27 = vshrl.u32 %v384_v11, 16  ;;  %v412_v36 = vmul.u32 %v410_v7, %v5728_v6 }
  0xa2   :  { %v226_v21 = vpop.f32.mrf.mxu2  ;;  %v250_v22 = vpop.f32.mrf.mxu3  ;;  %v414_v37 = vmul.u32 %v410_v7, %v387_v15  ;;  %v502_v47 = vadd.s32 1, %v5383_v20  ;;  %v415_v60 = vmul.u32 %v411_v8, %v387_v15  ;;  %v9436_v3 = vmov 0  }
  0xa3   :  { %v181_v29 = vpop.f32.mrf.mxu0  ;;  %v205_v31 = vpop.f32.mrf.mxu1  ;;  %v288_v32 = vmul.f32 %v5686_v33, %v226_v21  ;;  %v296_v35 = vmul.f32 %v5686_v33, %v250_v22  ;;  %v391_v5 = vmul.u32 %v389_v27, %v5728_v6  ;;  %v416_v43 = vshll.u32 %v5800_v17, 16 }
  0xa4   :  { %v273_v38 = vmul.f32 %v5686_v33, %v181_v29  ;;  %v281_v42 = vmul.f32 %v5686_v33, %v205_v31  ;;  %v392_v46 = vmul.u32 %v388_v25, %v387_v15  ;;  %v390_v50 = vmul.u32 %v388_v25, %v5728_v6 }
  0xa5   :  { %v5815_v44 = vadd.f32 %v5691_v34, %v288_v32  ;;  %v5818_v45 = vadd.f32 %v5691_v34, %v296_v35  ;;  %v394_v51 = vshll.u32 %v391_v5, 16  ;;  %v393_v52 = vmul.u32 %v389_v27, %v387_v15 }
  0xa6   :  { %v5821_v48 = vadd.f32 %v5691_v34, %v273_v38  ;;  %v5824_v49 = vadd.f32 %v5691_v34, %v281_v42  ;;  %v396_v53 = vshll.u32 %v392_v46, 16  ;;  %v418_v61 = vshll.u32 %v414_v37, 16 }
  0xa7   :  { %9459 = vst [vmem:[#allocation8_spill] sm:$0xff] %v5815_v44  ;;  %vm398_vm7 = vc.u32 %v390_v50, %v394_v51  ;;  %v400_v1 = vadd.s32 %v394_v51, %v390_v50  ;;  %vm420_vm8 = vc.u32 %v412_v36, %v416_v43  ;;  %v422_v2 = vadd.s32 %v416_v43, %v412_v36 }
  0xa8   :  { %9460 = vst [vmem:[#allocation9_spill] sm:$0xff] %v5818_v45  ;;  %v399_v4 = vsel %vm398_vm7, 1, %v9436_v3  ;;  %v417_v7 = vshrl.u32 %v5800_v17, 16  ;;  %v421_v9 = vsel %vm420_vm8, 1, %v9436_v3  ;;  %vm503_vm9 = vcmp.gt.s32.totalorder %v502_v47, 0 }
  0xa9   :  { %v401_v6 = vadd.s32 %v399_v4, %v393_v52  ;;  %vm402_vm10 = vc.u32 %v400_v1, %v396_v53  ;;  %v423_v21 = vadd.s32 %v421_v9, %v415_v60  ;;  %vm424_vm11 = vc.u32 %v422_v2, %v418_v61 }
  0xaa   :  { %v229_v11 = vpop.f32.mrf.mxu2  ;;  %v253_v20 = vpop.f32.mrf.mxu3  ;;  %v403_v27 = vsel %vm402_vm10, 1, %v9436_v3  ;;  %v425_v29 = vsel %vm424_vm11, 1, %v9436_v3  ;;  %v395_v32 = vshrl.u32 %v391_v5, 16  ;;  %v504_v43 = vsel %vm503_vm9, %v502_v47, 0 }
  0xab   :  { %v184_v8 = vpop.f32.mrf.mxu0  ;;  %v208_v15 = vpop.f32.mrf.mxu1  ;;  %v289_v22 = vmul.f32 %v5686_v33, %v229_v11  ;;  %v297_v25 = vmul.f32 %v5686_v33, %v253_v20  ;;  %v405_v35 = vadd.s32 %v403_v27, %v401_v6  ;;  %v427_v42 = vadd.s32 %v425_v29, %v423_v21 }
  0xac   :  { %v274_v17 = vmul.f32 %v5686_v33, %v184_v8  ;;  %v282_v31 = vmul.f32 %v5686_v33, %v208_v15  ;;  %v397_v52 = vshrl.u32 %v392_v46, 16  ;;  %v419_v60 = vshrl.u32 %v414_v37, 16 }
  0xad   :  { %v5837_v36 = vadd.f32 %v5691_v34, %v289_v22  ;;  %v5840_v38 = vadd.f32 %v5691_v34, %v297_v25  ;;  %v406_v53 = vadd.s32 %v405_v35, %v395_v32  ;;  %v428_v5 = vadd.s32 %v427_v42, %v417_v7 }
  0xae   :  { %v5844_v50 = vadd.f32 %v5691_v34, %v274_v17  ;;  %v5847_v51 = vadd.f32 %v5691_v34, %v282_v31  ;;  %v506_v1 = vand.u32 31, %v504_v43  ;;  %v5851_v9 = vadd.s32 %v422_v2, %v418_v61 }
  0xaf   :  { %9461 = vst [vmem:[#allocation10_spill] sm:$0xff] %v5837_v36  ;;  %v5849_v4 = vadd.s32 %v406_v53, %v397_v52  ;;  %v499_v11 = vand.u32 8388607, %v9426_v28  ;;  %v429_v20 = vadd.s32 %v428_v5, %v419_v60  ;;  %v430_v47 = vmul.u32 %v5718_v59, %v5804_v24 }
  0xb0   :  { %9462 = vst [vmem:[#allocation11_spill] sm:$0xff] %v5840_v38  ;;  %v5857_v6 = vshrl.u32 %v504_v43, 5  ;;  %v5859_v21 = vsub.s32 32, %v506_v1  ;;  %v509_v37 = vshll.u32 %v9441_v10, %v506_v1  ;;  %v512_v61 = vshll.u32 %v9433_v14, %v506_v1 }
  0xb1   :  { %vm432_vm12 = vc.u32 %v5849_v4, %v5851_v9  ;;  %v515_v2 = vshll.u32 %v9431_v16, %v506_v1  ;;  %v433_v24 = vadd.s32 1, %v429_v20  ;;  %v518_v25 = vshll.u32 %v9429_v23, %v506_v1 }
  0xb2   :  { %v232_v46 = vpop.f32.mrf.mxu2  ;;  %v256_v8 = vpop.f32.mrf.mxu3  ;;  %v510_v17 = vshrl.u32 %v9433_v14, %v5859_v21  ;;  %v513_v31 = vshrl.u32 %v9431_v16, %v5859_v21  ;;  %v516_v43 = vshrl.u32 %v9429_v23, %v5859_v21  ;;  %vm524_vm13 = vcmp.lt.s32.totalorder %v5857_v6, 1 }
  0xb3   :  { %v187_v7 = vpop.f32.mrf.mxu0  ;;  %v211_v15 = vpop.f32.mrf.mxu1  ;;  %v290_v22 = vmul.f32 %v5686_v33, %v232_v46  ;;  %v298_v59 = vmul.f32 %v5686_v33, %v256_v8  ;;  %v434_v42 = vsel %vm432_vm12, %v433_v24, %v429_v20  ;;  %v519_v8 = vshrl.u32 %v9427_v26, %v5859_v21 }
  0xb4   :  { %v275_v27 = vmul.f32 %v5686_v33, %v187_v7  ;;  %v283_v29 = vmul.f32 %v5686_v33, %v211_v15  ;;  %v435_v60 = vadd.s32 %v434_v42, %v430_v47  ;;  %v5893_v5 = vor.u32 %v510_v17, %v509_v37 }
  0xb5   :  { %v5876_v32 = vadd.f32 %v5691_v34, %v290_v22  ;;  %v5879_v35 = vadd.f32 %v5691_v34, %v298_v59  ;;  %v5895_v46 = vor.u32 %v513_v31, %v512_v61  ;;  %v521_v20 = vshll.u32 %v9427_v26, %v506_v1 }
  0xb6   :  { %v5887_v52 = vadd.f32 %v5691_v34, %v275_v27  ;;  %v5890_v53 = vadd.f32 %v5691_v34, %v283_v29  ;;  %v436_v7 = vadd.s32 536870912, %v435_v60  ;;  %v5900_v15 = vor.u32 %v516_v43, %v515_v2 }
  0xb7   :  { %9463 = vst [vmem:[#allocation12_spill] sm:$0xff] %v5876_v32  ;;  %v522_v22 = vshrl.u32 %v9424_v30, %v5859_v21  ;;  %vm527_vm14 = vcmp.lt.s32.totalorder %v5857_v6, 4  ;;  %v520_v47 = vor.u32 %v519_v8, %v518_v25  ;;  %v500_v61 = vor.u32 8388608, %v499_v11 }
  0xb8   :  { %9464 = vst [vmem:[#allocation13_spill] sm:$0xff] %v5879_v35  ;;  %v5905_v37 = vshrl.u32 %v436_v7, 30  ;;  %vm526_vm15 = vcmp.lt.s32.totalorder %v5857_v6, 3  ;;  %v532_v31 = vsel %vm524_vm13, %v5893_v5, %v5895_v46  ;;  %v536_v8 = vsel %vm524_vm13, %v5895_v46, %v5900_v15 }
  0xb9   :  { %v523_v27 = vor.u32 %v522_v22, %v521_v20  ;;  %v533_v25 = vsel %vm527_vm14, %v520_v47, 920167782  ;;  %v5940_v30 = vshll.u32 %v500_v61, 8  ;;  %vm525_vm0 = vcmp.lt.s32.totalorder %v5857_v6, 2 }
  0xba   :  { %v235_v59 = vpop.f32.mrf.mxu2  ;;  %v259_v24 = vpop.f32.mrf.mxu3  ;;  %v438_v43 = vshll.u32 %v5905_v37, 30  ;;  %v534_v22 = vsel %vm526_vm15, %v5900_v15, %v533_v25  ;;  %v461_v41 = vsub.s32 4, %v5905_v37  ;;  %v9470_v35 = vand.u32 2147483647, %v5696_v39 }
  0xbb   :  { %v190_v29 = vpop.f32.mrf.mxu0  ;;  %v214_v17 = vpop.f32.mrf.mxu1  ;;  %v291_v1 = vmul.f32 %v5686_v33, %v235_v59  ;;  %v299_v2 = vmul.f32 %v5686_v33, %v259_v24  ;;  %v537_v59 = vsel %vm527_vm14, %v523_v27, 1326507024  ;;  %v535_v25 = vsel %vm525_vm0, %v532_v31, %v534_v22 }
  0xbc   :  { %v276_v42 = vmul.f32 %v5686_v33, %v190_v29  ;;  %v284_v11 = vmul.f32 %v5686_v33, %v214_v17  ;;  %v439_v17 = vsub.s32 %v435_v60, %v438_v43  ;;  %v541_v61 = vand.u32 65535, %v5940_v30 }
  0xbd   :  { %v5924_v20 = vadd.f32 %v5691_v34, %v291_v1  ;;  %v5927_v7 = vadd.f32 %v5691_v34, %v299_v2  ;;  %v538_v1 = vsel %vm526_vm15, %v520_v47, %v537_v59  ;;  %v542_v43 = vshrl.u32 %v5940_v30, 16 }
  0xbe   :  { %v5935_v24 = vadd.f32 %v5691_v34, %v276_v42  ;;  %v5938_v29 = vadd.f32 %v5691_v34, %v284_v11  ;;  %vm440_vm1 = vcmp.lt.s32.totalorder %v439_v17, 0  ;;  %v441_v2 = vsub.s32 0, %v439_v17 }
  0xbf   :  { %9465 = vst [vmem:[#allocation14_spill] sm:$0xff] %v5924_v20  ;;  %v539_v27 = vsel %vm525_vm0, %v536_v8, %v538_v1  ;;  %v566_v16 = vshrl.u32 %v535_v25, 16  ;;  %v431_v31 = vadd.s32 %v5851_v9, %v5849_v4  ;;  %v565_v8 = vand.u32 65535, %v535_v25 }
  0xc0   :  { %9466 = vst [vmem:[#allocation15_spill] sm:$0xff] %v5927_v7  ;;  %v543_v42 = vand.u32 65535, %v539_v27  ;;  %v544_v28 = vshrl.u32 %v539_v27, 16  ;;  %v442_v60 = vsel %vm440_vm1, %v441_v2, %v439_v17  ;;  %vm5968_vm5 = vcmp.le.f32.partialorder %v9470_v35, 0.7853982 }
  0xc1   :  { %v443_v59 = vclz %v442_v60  ;;  %v568_v25 = vmul.u32 %v566_v16, %v541_v61  ;;  %v570_v58 = vmul.u32 %v566_v16, %v542_v43  ;;  %v529_v16 = vsel %vm527_vm14, %v5900_v15, 2102212464 }
  0xc2   :  { %v238_v11 = vpop.f32.mrf.mxu2  ;;  %v262_v26 = vpop.f32.mrf.mxu3  ;;  %v546_v22 = vmul.u32 %v544_v28, %v541_v61  ;;  %v547_v14 = vmul.u32 %v543_v42, %v542_v43  ;;  %v548_v4 = vmul.u32 %v544_v28, %v542_v43  ;;  %v567_v28 = vmul.u32 %v565_v8, %v541_v61 }
  0xc3   :  { %v292_v23 = vmul.f32 %v5686_v33, %v238_v11  ;;  %v300_v47 = vmul.f32 %v5686_v33, %v262_v26  ;;  %v5381_v27 = vadd.s32 4294967294, %v443_v59  ;;  %v508_v33 = vshrl.u32 %v9441_v10, %v5859_v21 }
  0xc4   :  { %v545_v26 = vmul.u32 %v543_v42, %v541_v61  ;;  %v549_v11 = vshll.u32 %v546_v22, 16  ;;  %v551_v9 = vshll.u32 %v547_v14, 16  ;;  %v550_v3 = vshrl.u32 %v546_v22, 16 }
  0xc5   :  { %v5956_v1 = vadd.f32 %v5691_v34, %v292_v23  ;;  %v5959_v2 = vadd.f32 %v5691_v34, %v300_v47  ;;  %vm5382_vm3 = vcmp.lt.s32.totalorder %v5381_v27, 0  ;;  %v569_v34 = vmul.u32 %v565_v8, %v542_v43 }
  0xc6   :  { %v446_v23 = vsel %vm5382_vm3, 0, %v5381_v27  ;;  %vm553_vm4 = vc.u32 %v545_v26, %v549_v11  ;;  %v555_v60 = vadd.s32 %v549_v11, %v545_v26  ;;  %v571_v10 = vshll.u32 %v568_v25, 16 }
  0xc7   :  { %9467 = vst [vmem:[#allocation16_spill] sm:$0xff] %v5956_v1  ;;  %v447_v47 = vsub.s32 32, %v446_v23  ;;  %v451_v59 = vsub.s32 4294967266, %v446_v23  ;;  %v448_v38 = vshll.u32 %v439_v17, %v446_v23  ;;  %v573_v22 = vshll.u32 %v569_v34, 16 }
  0xc8   :  { %9468 = vst [vmem:[#allocation17_spill] sm:$0xff] %v5959_v2  ;;  %v9469_v2 = vmov 0   ;;  %vm557_vm6 = vc.u32 %v555_v60, %v551_v9  ;;  %vm575_vm7 = vc.u32 %v567_v28, %v571_v10  ;;  %v577_v1 = vadd.s32 %v571_v10, %v567_v28 }
  0xc9   :  { %v554_v7 = vsel %vm553_vm4, 1, %v9469_v2  ;;  %v449_v27 = vshrl.u32 %v431_v31, %v447_v47  ;;  %v452_v45 = vadd.s32 127, %v451_v59  ;;  %v558_v26 = vsel %vm557_vm6, 1, %v9469_v2 }
  0xca   :  { %v556_v42 = vadd.s32 %v554_v7, %v548_v4  ;;  %v576_v35 = vsel %vm575_vm7, 1, %v9469_v2  ;;  %v9452_v7 = vand.u32 2147483647, %v5742_v18  ;;  %v650_v61 = vand.u32 2139095040, %v5742_v18 }
  0xcb   :  { %v450_v13 = vor.u32 %v449_v27, %v448_v38  ;;  %v453_v55 = vshll.u32 %v452_v45, 23  ;;  %v578_v32 = vadd.s32 %v576_v35, %v570_v58  ;;  %v528_v31 = vsel %vm524_vm13, %v508_v33, %v5893_v5 }
  0xcc   :  { %v560_v11 = vadd.s32 %v558_v26, %v556_v42  ;;  %vm579_vm8 = vc.u32 %v577_v1, %v573_v22  ;;  %v462_v10 = vsel %vm339_vm2, %v461_v41, %v5905_v37  ;;  %v552_v45 = vshrl.u32 %v547_v14, 16 }
  0xcd   :  { %v454_v17 = vor.u32 4788187, %v453_v55  ;;  %v580_v58 = vsel %vm579_vm8, 1, %v9469_v2  ;;  %v457_v43 = vcvt.s32.f32 %v450_v13  ;;  %v572_v55 = vshrl.u32 %v568_v25, 16 }
  0xce   :  { %v561_v20 = vadd.s32 %v560_v11, %v550_v3  ;;  %v651_v3 = vshrl.u32 %v650_v61, 23  ;;  %v582_v8 = vadd.s32 %v580_v58, %v578_v32  ;;  %v530_v5 = vsel %vm526_vm15, %v5895_v46, %v529_v16 }
  0xcf   :  { %v455_v38 = vand.u32 2147483647, %v454_v17  ;;  %v654_v15 = vand.u32 8388607, %v9452_v7  ;;  %v464_v41 = vsel %vm5968_vm5, 0, %v462_v10  ;;  %v574_v14 = vshrl.u32 %v569_v34, 16 }
  0xd0   :  { %v562_v33 = vadd.s32 %v561_v20, %v552_v45  ;;  %v5386_v4 = vadd.s32 4294967169, %v651_v3  ;;  %v583_v37 = vadd.s32 %v582_v8, %v572_v55  ;;  %v581_v23 = vadd.s32 %v577_v1, %v573_v22 }
  0xd1   :  { %v458_v9 = vmul.f32 %v457_v43, %v455_v38  ;;  %v531_v32 = vsel %vm525_vm0, %v528_v31, %v530_v5  ;;  %v481_v47 = vadd.s32 3, %v464_v41  ;;  %v655_v46 = vor.u32 8388608, %v654_v15 }
  0xd2   :  { %v657_v60 = vadd.s32 1, %v5386_v4  ;;  %v584_v25 = vadd.s32 %v583_v37, %v574_v14  ;;  %vm587_vm9 = vc.u32 %v562_v33, %v581_v23  ;;  %v585_v1 = vmul.u32 %v5940_v30, %v531_v32 }
  0xd3   :  { %v459_v13 = vxor.u32 2147483648, %v458_v9  ;;  %v6005_v26 = vand.u32 3, %v481_v47  ;;  %v6007_v35 = vshll.u32 %v655_v46, 8  ;;  %v9473_v31 = vmov 683565275  }
  0xd4   :  { %vm658_vm10 = vcmp.gt.s32.totalorder %v657_v60, 0  ;;  %v588_v59 = vadd.s32 1, %v584_v25  ;;  %v9451_v21 = vand.u32 2147483647, %v5781_v62  ;;  %v9474_v45 = vmov 2475754826  }
  0xd5   :  { %v460_v20 = vsel %vm339_vm2, %v459_v13, %v458_v9  ;;  %v659_v42 = vsel %vm658_vm10, %v657_v60, 0  ;;  %v9475_v3 = vmov 2131351028   ;;  %vm494_vm11 = vcmp.lt.s32.totalorder %v5721_v63, 0 }
  0xd6   :  { %v6000_v34 = vsel %vm5968_vm5, %v5696_v39, %v460_v20  ;;  %v661_v28 = vand.u32 31, %v659_v42  ;;  %v589_v27 = vsel %vm587_vm9, %v588_v59, %v584_v25  ;;  %v9476_v8 = vmov 2102212464  }
  0xd7   :  { %v465_v6 = vmul.f32 %v6000_v34, %v6000_v34  ;;  %v590_v11 = vadd.s32 %v589_v27, %v585_v1  ;;  %v9477_v4 = vmov 920167782   ;;  %v6017_v9 = vadd.s32 %v581_v23, %v562_v33 }
  0xd8   :  { %v662_v22 = vsub.s32 32, %v661_v28  ;;  %v664_v16 = vshll.u32 %v9473_v31, %v661_v28  ;;  %v667_v58 = vshll.u32 %v9474_v45, %v661_v28  ;;  %v673_v5 = vshll.u32 %v9476_v8, %v661_v28 }
  0xd9   :  { %v466_v61 = vmul.f32 -0.001358992, %v465_v6  ;;  %v473_v17 = vmul.f32 -0.00019511016, %v465_v6  ;;  %v591_v10 = vadd.s32 536870912, %v590_v11  ;;  %v6019_v14 = vshrl.u32 %v659_v42, 5 }
  0xda   :  { %v665_v30 = vshrl.u32 %v9474_v45, %v662_v22  ;;  %v668_v38 = vshrl.u32 %v9475_v3, %v662_v22  ;;  %v674_v15 = vshrl.u32 %v9477_v4, %v662_v22  ;;  %v6022_v37 = vand.u32 65535, %v6007_v35 }
  0xdb   :  { %v467_v43 = vadd.f32 0.041655596, %v466_v61  ;;  %v474_v55 = vadd.f32 0.008332121, %v473_v17  ;;  %v592_v41 = vshrl.u32 %v591_v10, 30  ;;  %v670_v32 = vshll.u32 %v9475_v3, %v661_v28 }
  0xdc   :  { %v671_v25 = vshrl.u32 %v9476_v8, %v662_v22  ;;  %v666_v46 = vor.u32 %v665_v30, %v664_v16  ;;  %v6026_v20 = vor.u32 %v668_v38, %v667_v58  ;;  %v805_v59 = vand.u32 2139095040, %v5781_v62 }
  0xdd   :  { %v468_v60 = vmul.f32 %v467_v43, %v465_v6  ;;  %v475_v13 = vmul.f32 %v474_v55, %v465_v6  ;;  %v593_v47 = vshll.u32 %v592_v41, 30  ;;  %vm487_vm12 = vcmp.eq.s32.totalorder %v6005_v26, 2 }
  0xde   :  { %v9478_v42 = vand.u32 2147483647, %v5721_v63  ;;  %v675_v27 = vor.u32 %v674_v15, %v673_v5  ;;  %v676_v61 = vshll.u32 %v9477_v4, %v661_v28  ;;  %vm484_vm14 = vcmp.eq.s32.totalorder %v6005_v26, 0 }
  0xdf   :  { %v469_v33 = vadd.f32 -0.4999988, %v468_v60  ;;  %v476_v23 = vadd.f32 -0.16666654, %v475_v13  ;;  %v6038_v17 = vsub.s32 %v590_v11, %v593_v47  ;;  %v616_v16 = vsub.s32 4, %v592_v41 }
  0xe0   :  { %vm6032_vm13 = vcmp.le.f32.partialorder %v9478_v42, 0.7853982  ;;  %v9481_v10 = vmov 1326507024   ;;  %vm679_vm15 = vcmp.lt.s32.totalorder %v6019_v14, 1  ;;  %vm483_vm0 = vcmp.lt.s32.totalorder %v6005_v26, 2 }
  0xe1   :  { %v677_v30 = vshrl.u32 %v9481_v10, %v662_v22  ;;  %v470_v58 = vmul.f32 %v469_v33, %v465_v6  ;;  %v477_v38 = vmul.f32 %v476_v23, %v465_v6  ;;  %v672_v43 = vor.u32 %v671_v25, %v670_v32 }
  0xe2   :  { %vm682_vm1 = vcmp.lt.s32.totalorder %v6019_v14, 4  ;;  %vm480_vm2 = vweird.f32 %v5696_v39  ;;  %vm595_vm3 = vcmp.lt.s32.totalorder %v6038_v17, 0  ;;  %v596_v28 = vsub.s32 0, %v6038_v17 }
  0xe3   :  { %vm681_vm4 = vcmp.lt.s32.totalorder %v6019_v14, 3  ;;  %v806_v11 = vshrl.u32 %v805_v59, 23  ;;  %v471_v55 = vadd.f32 1.0, %v470_v58  ;;  %v478_v5 = vadd.f32 1.0, %v477_v38 }
  0xe4   :  { %vm680_vm5 = vcmp.lt.s32.totalorder %v6019_v14, 2  ;;  %v687_v6 = vsel %vm679_vm15, %v666_v46, %v6026_v20  ;;  %v597_v15 = vsel %vm595_vm3, %v596_v28, %v6038_v17  ;;  %v6055_v60 = vsel %vm494_vm11, %v616_v16, %v592_v41 }
  0xe5   :  { %v678_v13 = vor.u32 %v677_v30, %v676_v61  ;;  %v688_v32 = vsel %vm682_vm1, %v675_v27, 920167782  ;;  %v479_v25 = vmul.f32 %v478_v5, %v6000_v34  ;;  %v488_v47 = vxor.u32 2147483648, %v471_v55 }
  0xe6   :  { %v598_v59 = vclz %v597_v15  ;;  %v689_v33 = vsel %vm681_vm4, %v672_v43, %v688_v32  ;;  %v663_v23 = vshrl.u32 %v9473_v31, %v662_v22  ;;  %v697_v58 = vshrl.u32 %v6007_v35, 16 }
  0xe7   :  { %v690_v42 = vsel %vm680_vm5, %v687_v6, %v689_v33  ;;  %v6068_v41 = vand.u32 8388607, %v9451_v21  ;;  %v485_v61 = vxor.u32 2147483648, %v479_v25  ;;  %v691_v34 = vsel %vm679_vm15, %v6026_v20, %v672_v43 }
  0xe8   :  { %v5384_v16 = vadd.s32 4294967294, %v598_v59  ;;  %v5389_v30 = vadd.s32 4294967169, %v806_v11  ;;  %v489_v38 = vsel %vm487_vm12, %v488_v47, %v479_v25  ;;  %v619_v22 = vsel %vm6032_vm13, 0, %v6055_v60 }
  0xe9   :  { %v692_v28 = vsel %vm682_vm1, %v678_v13, 1326507024  ;;  %v721_v5 = vshrl.u32 %v690_v42, 16  ;;  %v486_v6 = vsel %vm484_vm14, %v471_v55, %v485_v61  ;;  %v720_v32 = vand.u32 65535, %v690_v42 }
  0xea   :  { %vm5385_vm6 = vcmp.lt.s32.totalorder %v5384_v16, 0  ;;  %v693_v15 = vsel %vm681_vm4, %v675_v27, %v692_v28  ;;  %v490_v11 = vsel %vm483_vm0, %v486_v6, %v489_v38  ;;  %v683_v47 = vsel %vm679_vm15, %v663_v23, %v666_v46 }
  0xeb   :  { %v601_v25 = vsel %vm5385_vm6, 0, %v5384_v16  ;;  %v694_v59 = vsel %vm680_vm5, %v691_v34, %v693_v15  ;;  %v491_v13 = vsel %vm480_vm2, nan, %v490_v11  ;;  %v684_v61 = vsel %vm682_vm1, %v672_v43, 2102212464 }
  0xec   :  { %v602_v33 = vsub.s32 32, %v601_v25  ;;  %v606_v55 = vsub.s32 4294967266, %v601_v25  ;;  %v698_v27 = vand.u32 65535, %v694_v59  ;;  %v699_v42 = vshrl.u32 %v694_v59, 16  ;;  %5297 = vst [vmem:[#allocation2] sm:$0xff] %v491_v13 }
  0xed   :  { %v723_v26 = vmul.u32 %v721_v5, %v6022_v37  ;;  %v812_v38 = vadd.s32 1, %v5389_v30  ;;  %v603_v16 = vshll.u32 %v6038_v17, %v601_v25  ;;  %v724_v34 = vmul.u32 %v720_v32, %v697_v58 }
  0xee   :  { %v604_v46 = vshrl.u32 %v6017_v9, %v602_v33  ;;  %v607_v23 = vadd.s32 127, %v606_v55  ;;  %v685_v39 = vsel %vm681_vm4, %v6026_v20, %v684_v61  ;;  %v701_v28 = vmul.u32 %v699_v42, %v6022_v37 }
  0xef   :  { %v702_v6 = vmul.u32 %v698_v27, %v697_v58  ;;  %v722_v43 = vmul.u32 %v720_v32, %v6022_v37  ;;  %v725_v59 = vmul.u32 %v721_v5, %v697_v58  ;;  %v726_v30 = vshll.u32 %v723_v26, 16 }
  0xf0   :  { %v605_v15 = vor.u32 %v604_v46, %v603_v16  ;;  %v608_v11 = vshll.u32 %v607_v23, 23  ;;  %v700_v13 = vmul.u32 %v698_v27, %v6022_v37  ;;  %v703_v17 = vmul.u32 %v699_v42, %v697_v58 }
  0xf1   :  { %v704_v25 = vshll.u32 %v701_v28, 16  ;;  %vm813_vm7 = vcmp.gt.s32.totalorder %v812_v38, 0  ;;  %v706_v55 = vshll.u32 %v702_v6, 16  ;;  %v728_v21 = vshll.u32 %v724_v34, 16 }
  0xf2   :  { %v609_v9 = vor.u32 4788187, %v608_v11  ;;  %v612_v33 = vcvt.s32.f32 %v605_v15  ;;  %vm730_vm9 = vc.u32 %v722_v43, %v726_v30  ;;  %v732_v61 = vadd.s32 %v726_v30, %v722_v43 }
  0xf3   :  { %vm708_vm8 = vc.u32 %v700_v13, %v704_v25  ;;  %v710_v20 = vadd.s32 %v704_v25, %v700_v13  ;;  %v731_v16 = vsel %vm730_vm9, 1, %v9469_v2  ;;  %v814_v5 = vsel %vm813_vm7, %v812_v38, 0 }
  0xf4   :  { %v610_v7 = vand.u32 2147483647, %v609_v9  ;;  %v709_v32 = vsel %vm708_vm8, 1, %v9469_v2  ;;  %v733_v37 = vadd.s32 %v731_v16, %v725_v59  ;;  %vm734_vm12 = vc.u32 %v732_v61, %v728_v21 }
  0xf5   :  { %v711_v46 = vadd.s32 %v709_v32, %v703_v17  ;;  %vm712_vm10 = vc.u32 %v710_v20, %v706_v55  ;;  %v727_v42 = vshrl.u32 %v723_v26, 16  ;;  %v735_v23 = vsel %vm734_vm12, 1, %v9469_v2 }
  0xf6   :  { %v613_v58 = vmul.f32 %v612_v33, %v610_v7  ;;  %v713_v27 = vsel %vm712_vm10, 1, %v9469_v2  ;;  %v705_v15 = vshrl.u32 %v701_v28, 16  ;;  %v737_v13 = vadd.s32 %v735_v23, %v733_v37 }
  0xf7   :  { %v715_v11 = vadd.s32 %v713_v27, %v711_v46  ;;  %v816_v43 = vand.u32 31, %v814_v5  ;;  %v686_v25 = vsel %vm680_vm5, %v683_v47, %v685_v39  ;;  %v707_v9 = vshrl.u32 %v702_v6, 16 }
  0xf8   :  { %v614_v30 = vxor.u32 2147483648, %v613_v58  ;;  %v729_v38 = vshrl.u32 %v724_v34, 16  ;;  %v6109_v55 = vadd.s32 %v732_v61, %v728_v21  ;;  %v738_v59 = vadd.s32 %v737_v13, %v727_v42 }
  0xf9   :  { %v716_v17 = vadd.s32 %v715_v11, %v705_v15  ;;  %v6111_v7 = vsub.s32 32, %v816_v43  ;;  %v6115_v33 = vshrl.u32 %v814_v5, 5  ;;  %v819_v28 = vshll.u32 %v9473_v31, %v816_v43 }
  0xfa   :  { %v615_v26 = vsel %vm494_vm11, %v614_v30, %v613_v58  ;;  %v822_v20 = vshll.u32 %v9474_v45, %v816_v43  ;;  %v739_v21 = vadd.s32 %v738_v59, %v729_v38  ;;  %v828_v34 = vshll.u32 %v9476_v8, %v816_v43 }
  0xfb   :  { %v618_v14 = vsel %vm6032_vm13, %v5721_v63, %v615_v26  ;;  %v6122_v47 = vadd.s32 %v716_v17, %v707_v9  ;;  %v820_v6 = vshrl.u32 %v9474_v45, %v6111_v7  ;;  %v823_v61 = vshrl.u32 %v9475_v3, %v6111_v7 }
  0xfc   :  { %v620_v39 = vmul.f32 %v618_v14, %v618_v14  ;;  %v825_v32 = vshll.u32 %v9475_v3, %v816_v43  ;;  %v743_v16 = vadd.s32 1, %v739_v21  ;;  %v826_v5 = vshrl.u32 %v9476_v8, %v6111_v7 }
  0xfd   :  { %vm742_vm11 = vc.u32 %v6122_v47, %v6109_v55  ;;  %v829_v46 = vshrl.u32 %v9477_v4, %v6111_v7  ;;  %v740_v27 = vmul.u32 %v6007_v35, %v686_v25  ;;  %v6137_v42 = vor.u32 %v820_v6, %v819_v28 }
  0xfe   :  { %v621_v37 = vmul.f32 -0.001358992, %v620_v39  ;;  %v628_v58 = vmul.f32 -0.00019511016, %v620_v39  ;;  %v744_v23 = vsel %vm742_vm11, %v743_v16, %v739_v21  ;;  %v6139_v15 = vor.u32 %v823_v61, %v822_v20 }
  0xff   :  { %v830_v11 = vor.u32 %v829_v46, %v828_v34  ;;  %v831_v13 = vshll.u32 %v9477_v4, %v816_v43  ;;  %v745_v38 = vadd.s32 %v744_v23, %v740_v27  ;;  %v832_v17 = vshrl.u32 %v9481_v10, %v6111_v7 }
 0x100   :  { %v622_v30 = vadd.f32 0.041655596, %v621_v37  ;;  %v629_v9 = vadd.f32 0.008332121, %v628_v58  ;;  %v827_v59 = vor.u32 %v826_v5, %v825_v32  ;;  %vm834_vm14 = vcmp.lt.s32.totalorder %v6115_v33, 1 }
 0x101   :  { %vm836_vm15 = vcmp.lt.s32.totalorder %v6115_v33, 3  ;;  %vm837_vm0 = vcmp.lt.s32.totalorder %v6115_v33, 4  ;;  %v746_v26 = vadd.s32 536870912, %v745_v38  ;;  %v833_v28 = vor.u32 %v832_v17, %v831_v13 }
 0x102   :  { %v623_v35 = vmul.f32 %v622_v30, %v620_v39  ;;  %v630_v25 = vmul.f32 %v629_v9, %v620_v39  ;;  %v636_v43 = vadd.s32 3, %v619_v22  ;;  %v810_v20 = vor.u32 8388608, %v6068_v41 }
 0x103   :  { %v843_v21 = vsel %vm837_vm0, %v830_v11, 920167782  ;;  %v6154_v61 = vshrl.u32 %v746_v26, 30  ;;  %v842_v32 = vsel %vm834_vm14, %v6137_v42, %v6139_v15  ;;  %vm835_vm1 = vcmp.lt.s32.totalorder %v6115_v33, 2 }
 0x104   :  { %v624_v34 = vadd.f32 -0.4999988, %v623_v35  ;;  %v631_v6 = vadd.f32 -0.16666654, %v630_v25  ;;  %v844_v1 = vsel %vm836_vm15, %v827_v59, %v843_v21  ;;  %v847_v60 = vsel %vm837_vm0, %v833_v28, 1326507024 }
 0x105   :  { %v748_v16 = vshll.u32 %v6154_v61, 30  ;;  %v846_v5 = vsel %vm834_vm14, %v6139_v15, %v827_v59  ;;  %v637_v46 = vand.u32 3, %v636_v43  ;;  %v845_v37 = vsel %vm835_vm1, %v842_v32, %v844_v1 }
 0x106   :  { %v625_v41 = vmul.f32 %v624_v34, %v620_v39  ;;  %v632_v22 = vmul.f32 %v631_v6, %v620_v39  ;;  %v848_v58 = vsel %vm836_vm15, %v830_v11, %v847_v60  ;;  %v6173_v27 = vshll.u32 %v810_v20, 8 }
 0x107   :  { %v749_v30 = vsub.s32 %v745_v38, %v748_v16  ;;  %vm635_vm13 = vweird.f32 %v5721_v63  ;;  %v849_v39 = vsel %vm835_vm1, %v846_v5, %v848_v58  ;;  %v876_v9 = vshrl.u32 %v845_v37, 16 }
 0x108   :  { %v626_v23 = vadd.f32 1.0, %v625_v41  ;;  %v633_v13 = vadd.f32 1.0, %v632_v22  ;;  %vm638_vm3 = vcmp.lt.s32.totalorder %v637_v46, 2  ;;  %v851_v26 = vand.u32 65535, %v6173_v27 }
 0x109   :  { %vm750_vm2 = vcmp.lt.s32.totalorder %v749_v30, 0  ;;  %v751_v25 = vsub.s32 0, %v749_v30  ;;  %v853_v28 = vand.u32 65535, %v849_v39  ;;  %v854_v11 = vshrl.u32 %v849_v39, 16 }
 0x10a   :  { %v634_v17 = vmul.f32 %v633_v13, %v618_v14  ;;  %v643_v35 = vxor.u32 2147483648, %v626_v23  ;;  %vm639_vm4 = vcmp.eq.s32.totalorder %v637_v46, 0  ;;  %v852_v38 = vshrl.u32 %v6173_v27, 16 }
 0x10b   :  { %v752_v20 = vsel %vm750_vm2, %v751_v25, %v749_v30  ;;  %vm642_vm5 = vcmp.eq.s32.totalorder %v637_v46, 2  ;;  %v856_v34 = vmul.u32 %v854_v11, %v851_v26  ;;  %v875_v6 = vand.u32 65535, %v845_v37 }
 0x10c   :  { %v640_v43 = vxor.u32 2147483648, %v634_v17  ;;  %v753_v21 = vclz %v752_v20  ;;  %v644_v1 = vsel %vm642_vm5, %v643_v35, %v634_v17  ;;  %v857_v14 = vmul.u32 %v853_v28, %v852_v38 }
 0x10d   :  { %v878_v60 = vmul.u32 %v876_v9, %v851_v26  ;;  %v741_v22 = vadd.s32 %v6109_v55, %v6122_v47  ;;  %v818_v5 = vshrl.u32 %v9473_v31, %v6111_v7  ;;  %v839_v13 = vsel %vm837_vm0, %v827_v59, 2102212464 }
 0x10e   :  { %v641_v32 = vsel %vm639_vm4, %v626_v23, %v640_v43  ;;  %v5387_v16 = vadd.s32 4294967294, %v753_v21  ;;  %v855_v37 = vmul.u32 %v853_v28, %v851_v26  ;;  %v859_v23 = vshll.u32 %v856_v34, 16 }
 0x10f   :  { %v645_v41 = vsel %vm638_vm3, %v641_v32, %v644_v1  ;;  %v858_v39 = vmul.u32 %v854_v11, %v852_v38  ;;  %v861_v17 = vshll.u32 %v857_v14, 16  ;;  %v879_v46 = vmul.u32 %v875_v6, %v852_v38 }
 0x110   :  { %v646_v58 = vsel %vm635_vm13, nan, %v645_v41  ;;  %vm5388_vm6 = vcmp.lt.s32.totalorder %v5387_v16, 0  ;;  %vm649_vm7 = vcmp.lt.s32.totalorder %v5742_v18, 0  ;;  %vm863_vm8 = vc.u32 %v855_v37, %v859_v23 }
 0x111   :  { %5298 = vst [vmem:[#allocation2 + $0x8] sm:$0xff] %v646_v58  ;;  %v756_v55 = vsel %vm5388_vm6, 0, %v5387_v16  ;;  %v865_v47 = vadd.s32 %v859_v23, %v855_v37  ;;  %v881_v35 = vshll.u32 %v878_v60, 16  ;;  %v864_v63 = vsel %vm863_vm8, 1, %v9469_v2 }
 0x112   :  { %v757_v7 = vsub.s32 32, %v756_v55  ;;  %v761_v25 = vsub.s32 4294967266, %v756_v55  ;;  %v877_v43 = vmul.u32 %v875_v6, %v851_v26  ;;  %v860_v20 = vshrl.u32 %v856_v34, 16 }
 0x113   :  { %v866_v59 = vadd.s32 %v864_v63, %v858_v39  ;;  %vm867_vm9 = vc.u32 %v865_v47, %v861_v17  ;;  %v880_v28 = vmul.u32 %v876_v9, %v852_v38  ;;  %v758_v21 = vshll.u32 %v749_v30, %v756_v55 }
 0x114   :  { %v759_v11 = vshrl.u32 %v741_v22, %v757_v7  ;;  %v762_v32 = vadd.s32 127, %v761_v25  ;;  %v868_v1 = vsel %vm867_vm9, 1, %v9469_v2  ;;  %v883_v58 = vshll.u32 %v879_v46, 16 }
 0x115   :  { %v870_v41 = vadd.s32 %v868_v1, %v866_v59  ;;  %vm885_vm10 = vc.u32 %v877_v43, %v881_v35  ;;  %v887_v16 = vadd.s32 %v881_v35, %v877_v43  ;;  %v771_v36 = vsub.s32 4, %v6154_v61 }
 0x116   :  { %v760_v37 = vor.u32 %v759_v11, %v758_v21  ;;  %v763_v23 = vshll.u32 %v762_v32, 23  ;;  %v886_v44 = vsel %vm885_vm10, 1, %v9469_v2  ;;  %v957_v9 = vand.u32 2147483647, %v5821_v48 }
 0x117   :  { %v871_v26 = vadd.s32 %v870_v41, %v860_v20  ;;  %v888_v34 = vadd.s32 %v886_v44, %v880_v28  ;;  %vm889_vm12 = vc.u32 %v887_v16, %v883_v58  ;;  %v838_v38 = vsel %vm834_vm14, %v818_v5, %v6137_v42 }
 0x118   :  { %v764_v30 = vor.u32 4788187, %v763_v23  ;;  %v862_v6 = vshrl.u32 %v857_v14, 16  ;;  %v890_v22 = vsel %vm889_vm12, 1, %v9469_v2  ;;  %v840_v39 = vsel %vm836_vm15, %v6139_v15, %v839_v13 }
 0x119   :  { %v882_v17 = vshrl.u32 %v878_v60, 16  ;;  %v892_v55 = vadd.s32 %v890_v22, %v888_v34  ;;  %v960_v47 = vand.u32 2139095040, %v5821_v48  ;;  %v767_v35 = vcvt.s32.f32 %v760_v37 }
 0x11a   :  { %v765_v44 = vand.u32 2147483647, %v764_v30  ;;  %v772_v7 = vsel %vm649_vm7, %v771_v36, %v6154_v61  ;;  %v872_v25 = vadd.s32 %v871_v26, %v862_v6  ;;  %v884_v63 = vshrl.u32 %v879_v46, 16 }
 0x11b   :  { %v893_v42 = vadd.s32 %v892_v55, %v882_v17  ;;  %v961_v14 = vshrl.u32 %v960_v47, 23  ;;  %v964_v5 = vand.u32 8388607, %v957_v9  ;;  %v9482_v43 = vand.u32 2147483647, %v5742_v18 }
 0x11c   :  { %v768_v15 = vmul.f32 %v767_v35, %v765_v44  ;;  %v891_v60 = vadd.s32 %v887_v16, %v883_v58  ;;  %v841_v20 = vsel %vm835_vm1, %v838_v38, %v840_v39  ;;  %v9455_v33 = vand.u32 2147483647, %v5844_v50 }
 0x11d   :  { %vm648_vm11 = vcmp.le.f32.partialorder %v9482_v43, 0.7853982  ;;  %v894_v59 = vadd.s32 %v893_v42, %v884_v63  ;;  %v5392_v28 = vadd.s32 4294967169, %v961_v14  ;;  %v965_v61 = vor.u32 8388608, %v964_v5 }
 0x11e   :  { %v774_v13 = vsel %vm648_vm11, 0, %v772_v7  ;;  %v769_v21 = vxor.u32 2147483648, %v768_v15  ;;  %vm897_vm14 = vc.u32 %v872_v25, %v891_v60  ;;  %v895_v1 = vmul.u32 %v6173_v27, %v841_v20 }
 0x11f   :  { %v898_v36 = vadd.s32 1, %v894_v59  ;;  %v967_v46 = vadd.s32 1, %v5392_v28  ;;  %v791_v32 = vadd.s32 3, %v774_v13  ;;  %v1115_v26 = vand.u32 2139095040, %v5844_v50 }
 0x120   :  { %v770_v11 = vsel %vm649_vm7, %v769_v21, %v768_v15  ;;  %v6222_v30 = vshll.u32 %v965_v61, 8  ;;  %v6226_v39 = vadd.s32 %v891_v60, %v872_v25  ;;  %v6230_v55 = vand.u32 8388607, %v9455_v33 }
 0x121   :  { %v6216_v41 = vsel %vm648_vm11, %v5742_v18, %v770_v11  ;;  %v899_v58 = vsel %vm897_vm14, %v898_v36, %v894_v59  ;;  %vm968_vm15 = vcmp.gt.s32.totalorder %v967_v46, 0  ;;  %v6224_v22 = vand.u32 3, %v791_v32 }
 0x122   :  { %v775_v16 = vmul.f32 %v6216_v41, %v6216_v41  ;;  %v900_v37 = vadd.s32 %v899_v58, %v895_v1  ;;  %v969_v23 = vsel %vm968_vm15, %v967_v46, 0  ;;  %vm804_vm0 = vcmp.lt.s32.totalorder %v5781_v62, 0 }
 0x123   :  { %v971_v34 = vand.u32 31, %v969_v23  ;;  %v1116_v7 = vshrl.u32 %v1115_v26, 23  ;;  %v6233_v63 = vshrl.u32 %v969_v23, 5  ;;  %v6237_v14 = vand.u32 65535, %v6222_v30 }
 0x124   :  { %v776_v38 = vmul.f32 -0.001358992, %v775_v16  ;;  %v783_v6 = vmul.f32 -0.00019511016, %v775_v16  ;;  %v901_v27 = vadd.s32 536870912, %v900_v37  ;;  %v6240_v25 = vshrl.u32 %v6222_v30, 16 }
 0x125   :  { %v972_v17 = vsub.s32 32, %v971_v34  ;;  %v974_v42 = vshll.u32 %v9473_v31, %v971_v34  ;;  %v977_v60 = vshll.u32 %v9474_v45, %v971_v34  ;;  %v9483_v13 = vand.u32 2147483647, %v5781_v62 }
 0x126   :  { %v777_v47 = vadd.f32 0.041655596, %v776_v38  ;;  %v784_v44 = vadd.f32 0.008332121, %v783_v6  ;;  %v902_v35 = vshrl.u32 %v901_v27, 30  ;;  %v983_v21 = vshll.u32 %v9476_v8, %v971_v34 }
 0x127   :  { %vm6245_vm1 = vcmp.le.f32.partialorder %v9483_v13, 0.7853982  ;;  %v975_v59 = vshrl.u32 %v9474_v45, %v972_v17  ;;  %v978_v28 = vshrl.u32 %v9475_v3, %v972_v17  ;;  %v984_v36 = vshrl.u32 %v9477_v4, %v972_v17 }
 0x128   :  { %v778_v5 = vmul.f32 %v777_v47, %v775_v16  ;;  %v785_v43 = vmul.f32 %v784_v44, %v775_v16  ;;  %v903_v15 = vshll.u32 %v902_v35, 30  ;;  %vm797_vm13 = vcmp.eq.s32.totalorder %v6224_v22, 2 }
 0x129   :  { %v980_v32 = vshll.u32 %v9475_v3, %v971_v34  ;;  %vm794_vm2 = vcmp.eq.s32.totalorder %v6224_v22, 0  ;;  %v926_v1 = vsub.s32 4, %v902_v35  ;;  %v981_v58 = vshrl.u32 %v9476_v8, %v972_v17 }
 0x12a   :  { %v779_v61 = vadd.f32 -0.4999988, %v778_v5  ;;  %v786_v46 = vadd.f32 -0.16666654, %v785_v43  ;;  %v6254_v11 = vsub.s32 %v900_v37, %v903_v15  ;;  %v986_v23 = vshll.u32 %v9477_v4, %v971_v34 }
 0x12b   :  { %v987_v26 = vshrl.u32 %v9481_v10, %v972_v17  ;;  %vm793_vm3 = vcmp.lt.s32.totalorder %v6224_v22, 2  ;;  %vm790_vm5 = vweird.f32 %v5742_v18  ;;  %v976_v27 = vor.u32 %v975_v59, %v974_v42 }
 0x12c   :  { %v780_v38 = vmul.f32 %v779_v61, %v775_v16  ;;  %v787_v6 = vmul.f32 %v786_v46, %v775_v16  ;;  %vm905_vm4 = vcmp.lt.s32.totalorder %v6254_v11, 0  ;;  %v906_v37 = vsub.s32 0, %v6254_v11 }
 0x12d   :  { %v979_v47 = vor.u32 %v978_v28, %v977_v60  ;;  %v985_v44 = vor.u32 %v984_v36, %v983_v21  ;;  %v5395_v5 = vadd.s32 4294967169, %v1116_v7  ;;  %vm989_vm6 = vcmp.lt.s32.totalorder %v6233_v63, 1 }
 0x12e   :  { %v781_v43 = vadd.f32 1.0, %v780_v38  ;;  %v788_v15 = vadd.f32 1.0, %v787_v6  ;;  %v907_v34 = vsel %vm905_vm4, %v906_v37, %v6254_v11  ;;  %v927_v16 = vsel %vm804_vm0, %v926_v1, %v902_v35 }
 0x12f   :  { %v908_v13 = vclz %v907_v34  ;;  %v982_v61 = vor.u32 %v981_v58, %v980_v32  ;;  %vm992_vm7 = vcmp.lt.s32.totalorder %v6233_v63, 4  ;;  %v988_v42 = vor.u32 %v987_v26, %v986_v23 }
 0x130   :  { %v789_v46 = vmul.f32 %v788_v15, %v6216_v41  ;;  %v798_v33 = vxor.u32 2147483648, %v781_v43  ;;  %vm991_vm8 = vcmp.lt.s32.totalorder %v6233_v63, 3  ;;  %v973_v60 = vshrl.u32 %v9473_v31, %v972_v17 }
 0x131   :  { %v5390_v7 = vadd.s32 4294967294, %v908_v13  ;;  %v997_v59 = vsel %vm989_vm6, %v976_v27, %v979_v47  ;;  %v1122_v28 = vadd.s32 1, %v5395_v5  ;;  %v929_v35 = vsel %vm6245_vm1, 0, %v927_v16 }
 0x132   :  { %v795_v21 = vxor.u32 2147483648, %v789_v46  ;;  %vm990_vm9 = vcmp.lt.s32.totalorder %v6233_v63, 2  ;;  %v998_v41 = vsel %vm992_vm7, %v985_v44, 920167782  ;;  %v799_v36 = vsel %vm797_vm13, %v798_v33, %v789_v46 }
 0x133   :  { %vm5391_vm10 = vcmp.lt.s32.totalorder %v5390_v7, 0  ;;  %v999_v17 = vsel %vm991_vm8, %v982_v61, %v998_v41  ;;  %v1001_v32 = vsel %vm989_vm6, %v979_v47, %v982_v61  ;;  %v1002_v26 = vsel %vm992_vm7, %v988_v42, 1326507024 }
 0x134   :  { %v796_v1 = vsel %vm794_vm2, %v781_v43, %v795_v21  ;;  %v911_v58 = vsel %vm5391_vm10, 0, %v5390_v7  ;;  %v1000_v23 = vsel %vm990_vm9, %v997_v59, %v999_v17  ;;  %v994_v37 = vsel %vm992_vm7, %v982_v61, 2102212464 }
 0x135   :  { %v800_v33 = vsel %vm793_vm3, %v796_v1, %v799_v36  ;;  %v912_v38 = vsub.s32 32, %v911_v58  ;;  %v916_v6 = vsub.s32 4294967266, %v911_v58  ;;  %v1003_v43 = vsel %vm991_vm8, %v985_v44, %v1002_v26 }
 0x136   :  { %v801_v5 = vsel %vm790_vm5, nan, %v800_v33  ;;  %v1030_v15 = vand.u32 65535, %v1000_v23  ;;  %v1031_v34 = vshrl.u32 %v1000_v23, 16  ;;  %v913_v13 = vshll.u32 %v6254_v11, %v911_v58 }
 0x137   :  { %v914_v16 = vshrl.u32 %v6226_v39, %v912_v38  ;;  %v917_v46 = vadd.s32 127, %v916_v6  ;;  %v1004_v22 = vsel %vm990_vm9, %v1001_v32, %v1003_v43  ;;  %5299 = vst [vmem:[#allocation2 + $0x10] sm:$0xff] %v801_v5  ;;  %vm1123_vm12 = vcmp.gt.s32.totalorder %v1122_v28, 0 }
 0x138   :  { %v1008_v42 = vand.u32 65535, %v1004_v22  ;;  %v1009_v7 = vshrl.u32 %v1004_v22, 16  ;;  %v1033_v61 = vmul.u32 %v1031_v34, %v6237_v14  ;;  %v6305_v21 = vadd.s32 3, %v929_v35 }
 0x139   :  { %v915_v18 = vor.u32 %v914_v16, %v913_v13  ;;  %v918_v59 = vshll.u32 %v917_v46, 23  ;;  %v1034_v44 = vmul.u32 %v1030_v15, %v6240_v25  ;;  %v993_v11 = vsel %vm989_vm6, %v973_v60, %v976_v27 }
 0x13a   :  { %v995_v39 = vsel %vm991_vm8, %v979_v47, %v994_v37  ;;  %v1011_v41 = vmul.u32 %v1009_v7, %v6237_v14  ;;  %v1012_v36 = vmul.u32 %v1008_v42, %v6240_v25  ;;  %v1032_v32 = vmul.u32 %v1030_v15, %v6237_v14 }
 0x13b   :  { %v919_v17 = vor.u32 4788187, %v918_v59  ;;  %v1035_v1 = vmul.u32 %v1031_v34, %v6240_v25  ;;  %v1036_v58 = vshll.u32 %v1033_v61, 16  ;;  %v922_v35 = vcvt.s32.f32 %v915_v18 }
 0x13c   :  { %v1010_v23 = vmul.u32 %v1008_v42, %v6237_v14  ;;  %v1013_v26 = vmul.u32 %v1009_v7, %v6240_v25  ;;  %v1014_v33 = vshll.u32 %v1011_v41, 16  ;;  %v1016_v60 = vshll.u32 %v1012_v36, 16 }
 0x13d   :  { %v920_v27 = vand.u32 2147483647, %v919_v17  ;;  %v1038_v38 = vshll.u32 %v1034_v44, 16  ;;  %vm1040_vm11 = vc.u32 %v1032_v32, %v1036_v58  ;;  %v1042_v37 = vadd.s32 %v1036_v58, %v1032_v32 }
 0x13e   :  { %vm1018_vm14 = vc.u32 %v1010_v23, %v1014_v33  ;;  %v1020_v47 = vadd.s32 %v1014_v33, %v1010_v23  ;;  %v1041_v6 = vsel %vm1040_vm11, 1, %v9469_v2  ;;  %v1124_v34 = vsel %vm1123_vm12, %v1122_v28, 0 }
 0x13f   :  { %v923_v5 = vmul.f32 %v922_v35, %v920_v27  ;;  %v1019_v43 = vsel %vm1018_vm14, 1, %v9469_v2  ;;  %v1043_v15 = vadd.s32 %v1041_v6, %v1035_v1  ;;  %v996_v14 = vsel %vm990_vm9, %v993_v11, %v995_v39 }
 0x140   :  { %v1021_v25 = vadd.s32 %v1019_v43, %v1013_v26  ;;  %vm1022_vm15 = vc.u32 %v1020_v47, %v1016_v60  ;;  %vm1044_vm13 = vc.u32 %v1042_v37, %v1038_v38  ;;  %v1037_v46 = vshrl.u32 %v1033_v61, 16 }
 0x141   :  { %v924_v13 = vxor.u32 2147483648, %v923_v5  ;;  %v1023_v16 = vsel %vm1022_vm15, 1, %v9469_v2  ;;  %v1045_v22 = vsel %vm1044_vm13, 1, %v9469_v2  ;;  %v1015_v42 = vshrl.u32 %v1011_v41, 16 }
 0x142   :  { %v1025_v7 = vadd.s32 %v1023_v16, %v1021_v25  ;;  %v1047_v18 = vadd.s32 %v1045_v22, %v1043_v15  ;;  %v1126_v59 = vand.u32 31, %v1124_v34  ;;  %v1017_v28 = vshrl.u32 %v1012_v36, 16 }
 0x143   :  { %v925_v17 = vsel %vm804_vm0, %v924_v13, %v923_v5  ;;  %v1039_v32 = vshrl.u32 %v1034_v44, 16  ;;  %v6327_v63 = vshrl.u32 %v1124_v34, 5  ;;  %v1050_v41 = vmul.u32 %v6222_v30, %v996_v14 }
 0x144   :  { %v928_v11 = vsel %vm6245_vm1, %v5781_v62, %v925_v17  ;;  %v1026_v39 = vadd.s32 %v1025_v7, %v1015_v42  ;;  %v1048_v1 = vadd.s32 %v1047_v18, %v1037_v46  ;;  %v6332_v61 = vsub.s32 32, %v1126_v59 }
 0x145   :  { %v930_v58 = vmul.f32 %v928_v11, %v928_v11  ;;  %v1129_v35 = vshll.u32 %v9473_v31, %v1126_v59  ;;  %v1132_v23 = vshll.u32 %v9474_v45, %v1126_v59  ;;  %v6339_v44 = vadd.s32 %v1042_v37, %v1038_v38 }
 0x146   :  { %v6337_v26 = vadd.s32 %v1026_v39, %v1017_v28  ;;  %v1049_v36 = vadd.s32 %v1048_v1, %v1039_v32  ;;  %v1130_v20 = vshrl.u32 %v9474_v45, %v6332_v61  ;;  %v1133_v60 = vshrl.u32 %v9475_v3, %v6332_v61 }
 0x147   :  { %v931_v33 = vmul.f32 -0.001358992, %v930_v58  ;;  %v938_v27 = vmul.f32 -0.00019511016, %v930_v58  ;;  %vm1144_vm0 = vcmp.lt.s32.totalorder %v6327_v63, 1  ;;  %v1135_v47 = vshll.u32 %v9475_v3, %v1126_v59 }
 0x148   :  { %vm1052_vm1 = vc.u32 %v6337_v26, %v6339_v44  ;;  %v1053_v30 = vadd.s32 1, %v1049_v36  ;;  %v1136_v38 = vshrl.u32 %v9476_v8, %v6332_v61  ;;  %v6351_v5 = vor.u32 %v1130_v20, %v1129_v35 }
 0x149   :  { %v932_v6 = vadd.f32 0.041655596, %v931_v33  ;;  %v939_v37 = vadd.f32 0.008332121, %v938_v27  ;;  %v6353_v43 = vor.u32 %v1133_v60, %v1132_v23  ;;  %v1138_v34 = vshll.u32 %v9476_v8, %v1126_v59 }
 0x14a   :  { %v1054_v15 = vsel %vm1052_vm1, %v1053_v30, %v1049_v36  ;;  %v1139_v14 = vshrl.u32 %v9477_v4, %v6332_v61  ;;  %v1141_v25 = vshll.u32 %v9477_v4, %v1126_v59  ;;  %v1142_v22 = vshrl.u32 %v9481_v10, %v6332_v61 }
 0x14b   :  { %v933_v13 = vmul.f32 %v932_v6, %v930_v58  ;;  %v940_v16 = vmul.f32 %v939_v37, %v930_v58  ;;  %v1055_v46 = vadd.s32 %v1054_v15, %v1050_v41  ;;  %v1137_v42 = vor.u32 %v1136_v38, %v1135_v47 }
 0x14c   :  { %v1140_v7 = vor.u32 %v1139_v14, %v1138_v34  ;;  %vm1146_vm2 = vcmp.lt.s32.totalorder %v6327_v63, 3  ;;  %vm1147_vm3 = vcmp.lt.s32.totalorder %v6327_v63, 4  ;;  %v1143_v32 = vor.u32 %v1142_v22, %v1141_v25 }
 0x14d   :  { %v934_v18 = vadd.f32 -0.4999988, %v933_v13  ;;  %v941_v17 = vadd.f32 -0.16666654, %v940_v16  ;;  %v1056_v28 = vadd.s32 536870912, %v1055_v46  ;;  %v1120_v39 = vor.u32 8388608, %v6230_v55 }
 0x14e   :  { %v1153_v59 = vsel %vm1147_vm3, %v1140_v7, 920167782  ;;  %v1152_v23 = vsel %vm1144_vm0, %v6351_v5, %v6353_v43  ;;  %v947_v36 = vand.u32 3, %v6305_v21  ;;  %vm1145_vm4 = vcmp.lt.s32.totalorder %v6327_v63, 2 }
 0x14f   :  { %v935_v1 = vmul.f32 %v934_v18, %v930_v58  ;;  %v942_v41 = vmul.f32 %v941_v17, %v930_v58  ;;  %v6366_v35 = vshrl.u32 %v1056_v28, 30  ;;  %v1154_v20 = vsel %vm1146_vm2, %v1137_v42, %v1153_v59 }
 0x150   :  { %v1157_v55 = vsel %vm1147_vm3, %v1143_v32, 1326507024  ;;  %v1156_v60 = vsel %vm1144_vm0, %v6353_v43, %v1137_v42  ;;  %v1155_v30 = vsel %vm1145_vm4, %v1152_v23, %v1154_v20  ;;  %v6386_v47 = vshll.u32 %v1120_v39, 8 }
 0x151   :  { %v936_v33 = vadd.f32 1.0, %v935_v1  ;;  %v943_v27 = vadd.f32 1.0, %v942_v41  ;;  %v1058_v58 = vshll.u32 %v6366_v35, 30  ;;  %v1158_v21 = vsel %vm1146_vm2, %v1140_v7, %v1157_v55 }
 0x152   :  { %vm948_vm5 = vcmp.lt.s32.totalorder %v947_v36, 2  ;;  %vm949_vm6 = vcmp.eq.s32.totalorder %v947_v36, 0  ;;  %v1159_v15 = vsel %vm1145_vm4, %v1156_v60, %v1158_v21  ;;  %v1186_v34 = vshrl.u32 %v1155_v30, 16 }
 0x153   :  { %v944_v38 = vmul.f32 %v943_v27, %v928_v11  ;;  %v953_v6 = vxor.u32 2147483648, %v936_v33  ;;  %v1059_v37 = vsub.s32 %v1055_v46, %v1058_v58  ;;  %vm952_vm7 = vcmp.eq.s32.totalorder %v947_v36, 2 }
 0x154   :  { %v1161_v13 = vand.u32 65535, %v6386_v47  ;;  %v1162_v16 = vshrl.u32 %v6386_v47, 16  ;;  %v1163_v22 = vand.u32 65535, %v1159_v15  ;;  %v1164_v7 = vshrl.u32 %v1159_v15, 16 }
 0x155   :  { %v950_v14 = vxor.u32 2147483648, %v944_v38  ;;  %vm1060_vm8 = vcmp.lt.s32.totalorder %v1059_v37, 0  ;;  %v1061_v25 = vsub.s32 0, %v1059_v37  ;;  %v954_v11 = vsel %vm952_vm7, %v953_v6, %v944_v38 }
 0x156   :  { %v1185_v46 = vand.u32 65535, %v1155_v30  ;;  %vm945_vm9 = vweird.f32 %v5781_v62  ;;  %v1188_v39 = vmul.u32 %v1186_v34, %v1161_v13  ;;  %vm959_vm10 = vcmp.lt.s32.totalorder %v5821_v48, 0 }
 0x157   :  { %v951_v18 = vsel %vm949_vm6, %v936_v33, %v950_v14  ;;  %v1062_v17 = vsel %vm1060_vm8, %v1061_v25, %v1059_v37  ;;  %v1128_v1 = vshrl.u32 %v9473_v31, %v6332_v61  ;;  %v1166_v41 = vmul.u32 %v1164_v7, %v1161_v13 }
 0x158   :  { %v955_v28 = vsel %vm948_vm5, %v951_v18, %v954_v11  ;;  %v1063_v32 = vclz %v1062_v17  ;;  %v1167_v23 = vmul.u32 %v1163_v22, %v1162_v16  ;;  %v1051_v20 = vadd.s32 %v6339_v44, %v6337_v26 }
 0x159   :  { %v956_v59 = vsel %vm945_vm9, nan, %v955_v28  ;;  %v1081_v33 = vsub.s32 4, %v6366_v35  ;;  %v1149_v62 = vsel %vm1147_vm3, %v1137_v42, 2102212464  ;;  %v1165_v36 = vmul.u32 %v1163_v22, %v1161_v13 }
 0x15a   :  { %v5393_v55 = vadd.s32 4294967294, %v1063_v32  ;;  %5300 = vst [vmem:[#allocation2 + $0x18] sm:$0xff] %v956_v59  ;;  %v1169_v27 = vshll.u32 %v1166_v41, 16  ;;  %v1187_v58 = vmul.u32 %v1185_v46, %v1161_v13  ;;  %v1189_v60 = vmul.u32 %v1185_v46, %v1162_v16 }
 0x15b   :  { %vm6404_vm12 = vcmp.le.f32.partialorder %v957_v9, 0.7853982  ;;  %v1168_v30 = vmul.u32 %v1164_v7, %v1162_v16  ;;  %v1170_v26 = vshrl.u32 %v1166_v41, 16  ;;  %v1191_v44 = vshll.u32 %v1188_v39, 16 }
 0x15c   :  { %vm5394_vm11 = vcmp.lt.s32.totalorder %v5393_v55, 0  ;;  %v1171_v38 = vshll.u32 %v1167_v23, 16  ;;  %vm1173_vm14 = vc.u32 %v1165_v36, %v1169_v27  ;;  %v1175_v6 = vadd.s32 %v1169_v27, %v1165_v36 }
 0x15d   :  { %v1066_v21 = vsel %vm5394_vm11, 0, %v5393_v55  ;;  %v1174_v14 = vsel %vm1173_vm14, 1, %v9469_v2  ;;  %v1190_v25 = vmul.u32 %v1186_v34, %v1162_v16  ;;  %vm1195_vm13 = vc.u32 %v1187_v58, %v1191_v44 }
 0x15e   :  { %v1067_v42 = vsub.s32 32, %v1066_v21  ;;  %v1071_v15 = vsub.s32 4294967266, %v1066_v21  ;;  %v1068_v13 = vshll.u32 %v1059_v37, %v1066_v21  ;;  %v1176_v22 = vadd.s32 %v1174_v14, %v1168_v30 }
 0x15f   :  { %vm1177_vm15 = vc.u32 %v1175_v6, %v1171_v38  ;;  %v1196_v7 = vsel %vm1195_vm13, 1, %v9469_v2  ;;  %v1193_v46 = vshll.u32 %v1189_v60, 16  ;;  %v1197_v28 = vadd.s32 %v1191_v44, %v1187_v58 }
 0x160   :  { %v1069_v9 = vshrl.u32 %v1051_v20, %v1067_v42  ;;  %v1072_v18 = vadd.s32 127, %v1071_v15  ;;  %v1178_v11 = vsel %vm1177_vm15, 1, %v9469_v2  ;;  %v1198_v32 = vadd.s32 %v1196_v7, %v1190_v25 }
 0x161   :  { %v1180_v17 = vadd.s32 %v1178_v11, %v1176_v22  ;;  %v1082_v34 = vsel %vm959_vm10, %v1081_v33, %v6366_v35  ;;  %v1270_v37 = vand.u32 2139095040, %v5887_v52  ;;  %v1148_v16 = vsel %vm1144_vm0, %v1128_v1, %v6351_v5 }
 0x162   :  { %v1070_v59 = vor.u32 %v1069_v9, %v1068_v13  ;;  %v1073_v41 = vshll.u32 %v1072_v18, 23  ;;  %v1150_v20 = vsel %vm1146_vm2, %v6353_v43, %v1149_v62  ;;  %vm1199_vm1 = vc.u32 %v1197_v28, %v1193_v46 }
 0x163   :  { %v1181_v55 = vadd.s32 %v1180_v17, %v1170_v26  ;;  %v1172_v27 = vshrl.u32 %v1167_v23, 16  ;;  %v1200_v58 = vsel %vm1199_vm1, 1, %v9469_v2  ;;  %v1271_v30 = vshrl.u32 %v1270_v37, 23 }
 0x164   :  { %v1074_v36 = vor.u32 4788187, %v1073_v41  ;;  %v1084_v35 = vsel %vm6404_vm12, 0, %v1082_v34  ;;  %v1192_v33 = vshrl.u32 %v1188_v39, 16  ;;  %v1202_v44 = vadd.s32 %v1200_v58, %v1198_v32 }
 0x165   :  { %v1267_v21 = vand.u32 2147483647, %v5887_v52  ;;  %v1077_v5 = vcvt.s32.f32 %v1070_v59  ;;  %v1182_v1 = vadd.s32 %v1181_v55, %v1172_v27  ;;  %v5398_v6 = vadd.s32 4294967169, %v1271_v30 }
 0x166   :  { %v1075_v38 = vand.u32 2147483647, %v1074_v36  ;;  %v1194_v42 = vshrl.u32 %v1189_v60, 16  ;;  %v1203_v43 = vadd.s32 %v1202_v44, %v1192_v33  ;;  %v1101_v26 = vadd.s32 3, %v1084_v35 }
 0x167   :  { %v1201_v15 = vadd.s32 %v1197_v28, %v1193_v46  ;;  %v1277_v23 = vadd.s32 1, %v5398_v6  ;;  %v1151_v14 = vsel %vm1145_vm4, %v1148_v16, %v1150_v20  ;;  %v1274_v39 = vand.u32 8388607, %v1267_v21 }
 0x168   :  { %v1078_v62 = vmul.f32 %v1077_v5, %v1075_v38  ;;  %v1204_v25 = vadd.s32 %v1203_v43, %v1194_v42  ;;  %v6431_v18 = vand.u32 3, %v1101_v26  ;;  %v1205_v11 = vmul.u32 %v6386_v47, %v1151_v14 }
 0x169   :  { %vm1207_vm0 = vc.u32 %v1182_v1, %v1201_v15  ;;  %vm1278_vm2 = vcmp.gt.s32.totalorder %v1277_v23, 0  ;;  %v6439_v17 = vadd.s32 %v1201_v15, %v1182_v1  ;;  %v1422_v28 = vand.u32 2147483647, %v5935_v24 }
 0x16a   :  { %v1079_v13 = vxor.u32 2147483648, %v1078_v62  ;;  %v1208_v22 = vadd.s32 1, %v1204_v25  ;;  %v1279_v9 = vsel %vm1278_vm2, %v1277_v23, 0  ;;  %v1275_v41 = vor.u32 8388608, %v1274_v39 }
 0x16b   :  { %v1281_v7 = vand.u32 31, %v1279_v9  ;;  %v1425_v16 = vand.u32 2139095040, %v5935_v24  ;;  %vm1114_vm3 = vcmp.lt.s32.totalorder %v5844_v50, 0  ;;  %v6460_v1 = vshrl.u32 %v1279_v9, 5 }
 0x16c   :  { %v1080_v60 = vsel %vm959_vm10, %v1079_v13, %v1078_v62  ;;  %v1209_v46 = vsel %vm1207_vm0, %v1208_v22, %v1204_v25  ;;  %v6465_v43 = vshll.u32 %v1275_v41, 8  ;;  %v6469_v62 = vand.u32 8388607, %v1422_v28 }
 0x16d   :  { %v6437_v63 = vsel %vm6404_vm12, %v5821_v48, %v1080_v60  ;;  %v1210_v59 = vadd.s32 %v1209_v46, %v1205_v11  ;;  %v6444_v34 = vsub.s32 32, %v1281_v7  ;;  %v1284_v47 = vshll.u32 %v9473_v31, %v1281_v7 }
 0x16e   :  { %v1085_v32 = vmul.f32 %v6437_v63, %v6437_v63  ;;  %v1287_v37 = vshll.u32 %v9474_v45, %v1281_v7  ;;  %v1290_v61 = vshll.u32 %v9475_v3, %v1281_v7  ;;  %v1293_v27 = vshll.u32 %v9476_v8, %v1281_v7 }
 0x16f   :  { %v1211_v36 = vadd.s32 536870912, %v1210_v59  ;;  %v1285_v58 = vshrl.u32 %v9474_v45, %v6444_v34  ;;  %v1288_v30 = vshrl.u32 %v9475_v3, %v6444_v34  ;;  %v1291_v35 = vshrl.u32 %v9476_v8, %v6444_v34 }
 0x170   :  { %v1086_v20 = vmul.f32 -0.001358992, %v1085_v32  ;;  %v1093_v55 = vmul.f32 -0.00019511016, %v1085_v32  ;;  %v1294_v33 = vshrl.u32 %v9477_v4, %v6444_v34  ;;  %v1296_v6 = vshll.u32 %v9477_v4, %v1281_v7 }
 0x171   :  { %v1212_v5 = vshrl.u32 %v1211_v36, 30  ;;  %v1297_v42 = vshrl.u32 %v9481_v10, %v6444_v34  ;;  %v1426_v14 = vshrl.u32 %v1425_v16, 23  ;;  %v9488_v25 = vand.u32 2147483647, %v5844_v50 }
 0x172   :  { %v1087_v44 = vadd.f32 0.041655596, %v1086_v20  ;;  %v1094_v38 = vadd.f32 0.008332121, %v1093_v55  ;;  %v1286_v39 = vor.u32 %v1285_v58, %v1284_v47  ;;  %v6477_v22 = vor.u32 %v1288_v30, %v1287_v37 }
 0x173   :  { %v1213_v23 = vshll.u32 %v1212_v5, 30  ;;  %vm6473_vm4 = vcmp.le.f32.partialorder %v9488_v25, 0.7853982  ;;  %v1292_v9 = vor.u32 %v1291_v35, %v1290_v61  ;;  %v1295_v60 = vor.u32 %v1294_v33, %v1293_v27 }
 0x174   :  { %v1088_v26 = vmul.f32 %v1087_v44, %v1085_v32  ;;  %v1095_v15 = vmul.f32 %v1094_v38, %v1085_v32  ;;  %vm1107_vm5 = vcmp.eq.s32.totalorder %v6431_v18, 2  ;;  %vm1299_vm6 = vcmp.lt.s32.totalorder %v6460_v1, 1 }
 0x175   :  { %v6480_v46 = vsub.s32 %v1210_v59, %v1213_v23  ;;  %vm1104_vm7 = vcmp.eq.s32.totalorder %v6431_v18, 0  ;;  %v1236_v41 = vsub.s32 4, %v1212_v5  ;;  %v1298_v16 = vor.u32 %v1297_v42, %v1296_v6 }
 0x176   :  { %v1089_v11 = vadd.f32 -0.4999988, %v1088_v26  ;;  %v1096_v7 = vadd.f32 -0.16666654, %v1095_v15  ;;  %vm1301_vm8 = vcmp.lt.s32.totalorder %v6460_v1, 3  ;;  %vm1302_vm9 = vcmp.lt.s32.totalorder %v6460_v1, 4 }
 0x177   :  { %vm1103_vm10 = vcmp.lt.s32.totalorder %v6431_v18, 2  ;;  %vm1215_vm12 = vcmp.lt.s32.totalorder %v6480_v46, 0  ;;  %v1216_v61 = vsub.s32 0, %v6480_v46  ;;  %vm1100_vm11 = vweird.f32 %v5821_v48 }
 0x178   :  { %v1090_v47 = vmul.f32 %v1089_v11, %v1085_v32  ;;  %v1097_v37 = vmul.f32 %v1096_v7, %v1085_v32  ;;  %v1307_v59 = vsel %vm1299_vm6, %v1286_v39, %v6477_v22  ;;  %v1308_v20 = vsel %vm1302_vm9, %v1295_v60, 920167782 }
 0x179   :  { %v1316_v55 = vand.u32 65535, %v6465_v43  ;;  %v1317_v36 = vshrl.u32 %v6465_v43, 16  ;;  %v1217_v58 = vsel %vm1215_vm12, %v1216_v61, %v6480_v46  ;;  %vm1300_vm14 = vcmp.lt.s32.totalorder %v6460_v1, 2 }
 0x17a   :  { %v1091_v32 = vadd.f32 1.0, %v1090_v47  ;;  %v1098_v27 = vadd.f32 1.0, %v1097_v37  ;;  %v1218_v30 = vclz %v1217_v58  ;;  %v6501_v35 = vsel %vm1114_vm3, %v1236_v41, %v1212_v5 }
 0x17b   :  { %v1309_v33 = vsel %vm1301_vm8, %v1292_v9, %v1308_v20  ;;  %v1311_v44 = vsel %vm1299_vm6, %v6477_v22, %v1292_v9  ;;  %v1312_v26 = vsel %vm1302_vm9, %v1298_v16, 1326507024  ;;  %v1283_v5 = vshrl.u32 %v9473_v31, %v6444_v34 }
 0x17c   :  { %v1099_v38 = vmul.f32 %v1098_v27, %v6437_v63  ;;  %v1108_v6 = vxor.u32 2147483648, %v1091_v32  ;;  %v1310_v42 = vsel %vm1300_vm14, %v1307_v59, %v1309_v33  ;;  %v5396_v15 = vadd.s32 4294967294, %v1218_v30 }
 0x17d   :  { %v5401_v23 = vadd.s32 4294967169, %v1426_v14  ;;  %v1430_v25 = vor.u32 8388608, %v6469_v62  ;;  %v1239_v7 = vsel %vm6473_vm4, 0, %v6501_v35  ;;  %v1304_v63 = vsel %vm1302_vm9, %v1292_v9, 2102212464 }
 0x17e   :  { %v1105_v11 = vxor.u32 2147483648, %v1099_v38  ;;  %v1313_v41 = vsel %vm1301_vm8, %v1295_v60, %v1312_v26  ;;  %v1109_v16 = vsel %vm1107_vm5, %v1108_v6, %v1099_v38  ;;  %vm5397_vm15 = vcmp.lt.s32.totalorder %v5396_v15, 0 }
 0x17f   :  { %v1314_v34 = vsel %vm1300_vm14, %v1311_v44, %v1313_v41  ;;  %v1340_v14 = vand.u32 65535, %v1310_v42  ;;  %v1221_v37 = vsel %vm5397_vm15, 0, %v5396_v15  ;;  %v1341_v60 = vshrl.u32 %v1310_v42, 16 }
 0x180   :  { %v1106_v47 = vsel %vm1104_vm7, %v1091_v32, %v1105_v11  ;;  %v1318_v61 = vand.u32 65535, %v1314_v34  ;;  %v1319_v59 = vshrl.u32 %v1314_v34, 16  ;;  %v1222_v20 = vsub.s32 32, %v1221_v37 }
 0x181   :  { %v1110_v9 = vsel %vm1103_vm10, %v1106_v47, %v1109_v16  ;;  %v1226_v27 = vsub.s32 4294967266, %v1221_v37  ;;  %v1303_v30 = vsel %vm1299_vm6, %v1283_v5, %v1286_v39  ;;  %v1223_v44 = vshll.u32 %v6480_v46, %v1221_v37 }
 0x182   :  { %v1111_v58 = vsel %vm1100_vm11, nan, %v1110_v9  ;;  %v1321_v35 = vmul.u32 %v1319_v59, %v1316_v55  ;;  %v1322_v33 = vmul.u32 %v1318_v61, %v1317_v36  ;;  %v1224_v32 = vshrl.u32 %v6439_v17, %v1222_v20 }
 0x183   :  { %v1227_v38 = vadd.s32 127, %v1226_v27  ;;  %v1305_v18 = vsel %vm1301_vm8, %v6477_v22, %v1304_v63  ;;  %5301 = vst [vmem:[#allocation2 + $0x20] sm:$0xff] %v1111_v58  ;;  %v1320_v6 = vmul.u32 %v1318_v61, %v1316_v55  ;;  %v1323_v42 = vmul.u32 %v1319_v59, %v1317_v36 }
 0x184   :  { %v1324_v26 = vshll.u32 %v1321_v35, 16  ;;  %v1342_v48 = vmul.u32 %v1340_v14, %v1316_v55  ;;  %v1225_v15 = vor.u32 %v1224_v32, %v1223_v44  ;;  %v1343_v41 = vmul.u32 %v1341_v60, %v1316_v55 }
 0x185   :  { %v1228_v11 = vshll.u32 %v1227_v38, 23  ;;  %v1344_v39 = vmul.u32 %v1340_v14, %v1317_v36  ;;  %v1326_v5 = vshll.u32 %v1322_v33, 16  ;;  %v1432_v46 = vadd.s32 1, %v5401_v23 }
 0x186   :  { %vm1328_vm13 = vc.u32 %v1320_v6, %v1324_v26  ;;  %v1330_v16 = vadd.s32 %v1324_v26, %v1320_v6  ;;  %v1325_v17 = vshrl.u32 %v1321_v35, 16  ;;  %v1346_v37 = vshll.u32 %v1343_v41, 16 }
 0x187   :  { %v1229_v34 = vor.u32 4788187, %v1228_v11  ;;  %v1329_v47 = vsel %vm1328_vm13, 1, %v9469_v2  ;;  %v1232_v9 = vcvt.s32.f32 %v1225_v15  ;;  %v1345_v63 = vmul.u32 %v1341_v60, %v1317_v36 }
 0x188   :  { %v1331_v22 = vadd.s32 %v1329_v47, %v1323_v42  ;;  %vm1332_vm1 = vc.u32 %v1330_v16, %v1326_v5  ;;  %v1348_v20 = vshll.u32 %v1344_v39, 16  ;;  %vm1350_vm0 = vc.u32 %v1342_v48, %v1346_v37 }
 0x189   :  { %v1230_v61 = vand.u32 2147483647, %v1229_v34  ;;  %v1333_v59 = vsel %vm1332_vm1, 1, %v9469_v2  ;;  %v1351_v14 = vsel %vm1350_vm0, 1, %v9469_v2  ;;  %v1352_v27 = vadd.s32 %v1346_v37, %v1342_v48 }
 0x18a   :  { %v1335_v55 = vadd.s32 %v1333_v59, %v1331_v22  ;;  %vm1433_vm2 = vcmp.gt.s32.totalorder %v1432_v46, 0  ;;  %v1306_v58 = vsel %vm1300_vm14, %v1303_v30, %v1305_v18  ;;  %v1353_v35 = vadd.s32 %v1351_v14, %v1345_v63 }
 0x18b   :  { %v1233_v23 = vmul.f32 %v1232_v9, %v1230_v61  ;;  %v1434_v44 = vsel %vm1433_vm2, %v1432_v46, 0  ;;  %v1256_v32 = vadd.s32 3, %v1239_v7  ;;  %v1327_v38 = vshrl.u32 %v1322_v33, 16 }
 0x18c   :  { %v1336_v6 = vadd.s32 %v1335_v55, %v1325_v17  ;;  %vm1354_vm5 = vc.u32 %v1352_v27, %v1348_v20  ;;  %v6546_v42 = vshrl.u32 %v1434_v44, 5  ;;  %v1436_v26 = vand.u32 31, %v1434_v44 }
 0x18d   :  { %v1234_v36 = vxor.u32 2147483648, %v1233_v23  ;;  %v1355_v60 = vsel %vm1354_vm5, 1, %v9469_v2  ;;  %v1347_v15 = vshrl.u32 %v1343_v41, 16  ;;  %v1349_v11 = vshrl.u32 %v1344_v39, 16 }
 0x18e   :  { %v1357_v48 = vadd.s32 %v1355_v60, %v1353_v35  ;;  %v1360_v5 = vmul.u32 %v6465_v43, %v1306_v58  ;;  %v6551_v30 = vadd.s32 %v1336_v6, %v1327_v38  ;;  %v6553_v7 = vsub.s32 32, %v1436_v26 }
 0x18f   :  { %v1235_v1 = vsel %vm1114_vm3, %v1234_v36, %v1233_v23  ;;  %v1439_v33 = vshll.u32 %v9473_v31, %v1436_v26  ;;  %v6559_v16 = vadd.s32 %v1352_v27, %v1348_v20  ;;  %v1442_v39 = vshll.u32 %v9474_v45, %v1436_v26 }
 0x190   :  { %v1238_v18 = vsel %vm6473_vm4, %v5844_v50, %v1235_v1  ;;  %v1358_v41 = vadd.s32 %v1357_v48, %v1347_v15  ;;  %v1440_v43 = vshrl.u32 %v9474_v45, %v6553_v7  ;;  %v1443_v34 = vshrl.u32 %v9475_v3, %v6553_v7 }
 0x191   :  { %v1240_v46 = vmul.f32 %v1238_v18, %v1238_v18  ;;  %vm1454_vm3 = vcmp.lt.s32.totalorder %v6546_v42, 1  ;;  %v1445_v47 = vshll.u32 %v9475_v3, %v1436_v26  ;;  %v1446_v13 = vshrl.u32 %v9476_v8, %v6553_v7 }
 0x192   :  { %v1359_v17 = vadd.s32 %v1358_v41, %v1349_v11  ;;  %v1448_v37 = vshll.u32 %v9476_v8, %v1436_v26  ;;  %vm1362_vm4 = vc.u32 %v6551_v30, %v6559_v16  ;;  %v6573_v63 = vor.u32 %v1440_v43, %v1439_v33 }
 0x193   :  { %v1241_v9 = vmul.f32 -0.001358992, %v1240_v46  ;;  %v1248_v22 = vmul.f32 -0.00019511016, %v1240_v46  ;;  %v6575_v59 = vor.u32 %v1443_v34, %v1442_v39  ;;  %v1449_v20 = vshrl.u32 %v9477_v4, %v6553_v7 }
 0x194   :  { %v1363_v61 = vadd.s32 1, %v1359_v17  ;;  %v1451_v55 = vshll.u32 %v9477_v4, %v1436_v26  ;;  %v1447_v23 = vor.u32 %v1446_v13, %v1445_v47  ;;  %v1452_v58 = vshrl.u32 %v9481_v10, %v6553_v7 }
 0x195   :  { %v1242_v14 = vadd.f32 0.041655596, %v1241_v9  ;;  %v1249_v27 = vadd.f32 0.008332121, %v1248_v22  ;;  %v1450_v44 = vor.u32 %v1449_v20, %v1448_v37  ;;  %vm1456_vm6 = vcmp.lt.s32.totalorder %v6546_v42, 3 }
 0x196   :  { %v1364_v35 = vsel %vm1362_vm4, %v1363_v61, %v1359_v17  ;;  %vm1457_vm7 = vcmp.lt.s32.totalorder %v6546_v42, 4  ;;  %v1453_v60 = vor.u32 %v1452_v58, %v1451_v55  ;;  %v1257_v15 = vand.u32 3, %v1256_v32 }
 0x197   :  { %v1243_v38 = vmul.f32 %v1242_v14, %v1240_v46  ;;  %v1250_v6 = vmul.f32 %v1249_v27, %v1240_v46  ;;  %v1365_v36 = vadd.s32 %v1364_v35, %v1360_v5  ;;  %v1462_v26 = vsel %vm1454_vm3, %v6573_v63, %v6575_v59 }
 0x198   :  { %v1463_v11 = vsel %vm1457_vm7, %v1450_v44, 920167782  ;;  %v6592_v41 = vshll.u32 %v1430_v25, 8  ;;  %vm1455_vm8 = vcmp.lt.s32.totalorder %v6546_v42, 2  ;;  %v1466_v5 = vsel %vm1454_vm3, %v6575_v59, %v1447_v23 }
 0x199   :  { %v1244_v48 = vadd.f32 -0.4999988, %v1243_v38  ;;  %v1251_v1 = vadd.f32 -0.16666654, %v1250_v6  ;;  %v1366_v33 = vadd.s32 536870912, %v1365_v36  ;;  %v1464_v32 = vsel %vm1456_vm6, %v1447_v23, %v1463_v11 }
 0x19a   :  { %v1467_v39 = vsel %vm1457_vm7, %v1453_v60, 1326507024  ;;  %v1465_v62 = vsel %vm1455_vm8, %v1462_v26, %v1464_v32  ;;  %vm1255_vm9 = vweird.f32 %v5844_v50  ;;  %v1577_v61 = vand.u32 2147483647, %v5699_v40 }
 0x19b   :  { %v1245_v43 = vmul.f32 %v1244_v48, %v1240_v46  ;;  %v1252_v34 = vmul.f32 %v1251_v1, %v1240_v46  ;;  %v6602_v17 = vshrl.u32 %v1366_v33, 30  ;;  %v1468_v25 = vsel %vm1456_vm6, %v1450_v44, %v1467_v39 }
 0x19c   :  { %v1496_v47 = vshrl.u32 %v1465_v62, 16  ;;  %v1469_v22 = vsel %vm1455_vm8, %v1466_v5, %v1468_v25  ;;  %v1471_v46 = vand.u32 65535, %v6592_v41  ;;  %vm1258_vm10 = vcmp.lt.s32.totalorder %v1257_v15, 2 }
 0x19d   :  { %v1246_v13 = vadd.f32 1.0, %v1245_v43  ;;  %v1253_v37 = vadd.f32 1.0, %v1252_v34  ;;  %v1368_v9 = vshll.u32 %v6602_v17, 30  ;;  %vm1259_vm12 = vcmp.eq.s32.totalorder %v1257_v15, 0 }
 0x19e   :  { %v1473_v27 = vand.u32 65535, %v1469_v22  ;;  %v1474_v58 = vshrl.u32 %v1469_v22, 16  ;;  %v6614_v35 = vmul.u32 %v1496_v47, %v1471_v46  ;;  %v1472_v6 = vshrl.u32 %v6592_v41, 16 }
 0x19f   :  { %v1254_v20 = vmul.f32 %v1253_v37, %v1238_v18  ;;  %v1263_v55 = vxor.u32 2147483648, %v1246_v13  ;;  %v1369_v14 = vsub.s32 %v1365_v36, %v1368_v9  ;;  %vm1262_vm14 = vcmp.eq.s32.totalorder %v1257_v15, 2 }
 0x1a0   :  { %v1361_v60 = vadd.s32 %v6559_v16, %v6551_v30  ;;  %v1476_v26 = vmul.u32 %v1474_v58, %v1471_v46  ;;  %v1495_v11 = vand.u32 65535, %v1465_v62  ;;  %v1477_v36 = vmul.u32 %v1473_v27, %v1472_v6 }
 0x1a1   :  { %v1260_v44 = vxor.u32 2147483648, %v1254_v20  ;;  %vm1370_vm11 = vcmp.lt.s32.totalorder %v1369_v14, 0  ;;  %v1371_v38 = vsub.s32 0, %v1369_v14  ;;  %v1264_v48 = vsel %vm1262_vm14, %v1263_v55, %v1254_v20 }
 0x1a2   :  { %vm1269_vm15 = vcmp.lt.s32.totalorder %v5887_v52, 0  ;;  %v1479_v5 = vshll.u32 %v1476_v26, 16  ;;  %v1501_v39 = vshll.u32 %v6614_v35, 16  ;;  %v1438_v30 = vshrl.u32 %v9473_v31, %v6553_v7 }
 0x1a3   :  { %v1261_v18 = vsel %vm1259_vm12, %v1246_v13, %v1260_v44  ;;  %v1372_v1 = vsel %vm1370_vm11, %v1371_v38, %v1369_v14  ;;  %v1459_v16 = vsel %vm1457_vm7, %v1447_v23, 2102212464  ;;  %v1475_v34 = vmul.u32 %v1473_v27, %v1471_v46 }
 0x1a4   :  { %v1265_v33 = vsel %vm1258_vm10, %v1261_v18, %v1264_v48  ;;  %v1373_v32 = vclz %v1372_v1  ;;  %v1391_v15 = vsub.s32 4, %v6602_v17  ;;  %v1497_v25 = vmul.u32 %v1495_v11, %v1471_v46 }
 0x1a5   :  { %v1266_v43 = vsel %vm1255_vm9, nan, %v1265_v33  ;;  %v1499_v13 = vmul.u32 %v1495_v11, %v1472_v6  ;;  %vm6631_vm13 = vcmp.le.f32.partialorder %v1267_v21, 0.7853982  ;;  %v1478_v50 = vmul.u32 %v1474_v58, %v1472_v6 }
 0x1a6   :  { %v5399_v62 = vadd.s32 4294967294, %v1373_v32  ;;  %5302 = vst [vmem:[#allocation2 + $0x28] sm:$0xff] %v1266_v43  ;;  %v1481_v9 = vshll.u32 %v1477_v36, 16  ;;  %vm1483_vm1 = vc.u32 %v1475_v34, %v1479_v5  ;;  %v1485_v7 = vadd.s32 %v1479_v5, %v1475_v34 }
 0x1a7   :  { %v1484_v23 = vsel %vm1483_vm1, 1, %v9469_v2  ;;  %v1500_v22 = vmul.u32 %v1496_v47, %v1472_v6  ;;  %vm1505_vm2 = vc.u32 %v1497_v25, %v1501_v39  ;;  %v1480_v21 = vshrl.u32 %v1476_v26, 16 }
 0x1a8   :  { %vm5400_vm0 = vcmp.lt.s32.totalorder %v5399_v62, 0  ;;  %v1486_v55 = vadd.s32 %v1484_v23, %v1478_v50  ;;  %vm1487_vm5 = vc.u32 %v1485_v7, %v1481_v9  ;;  %v1506_v46 = vsel %vm1505_vm2, 1, %v9469_v2 }
 0x1a9   :  { %v1376_v20 = vsel %vm5400_vm0, 0, %v5399_v62  ;;  %v1488_v38 = vsel %vm1487_vm5, 1, %v9469_v2  ;;  %v1503_v58 = vshll.u32 %v1499_v13, 16  ;;  %v1507_v18 = vadd.s32 %v1501_v39, %v1497_v25 }
 0x1aa   :  { %v1377_v27 = vsub.s32 32, %v1376_v20  ;;  %v1381_v44 = vsub.s32 4294967266, %v1376_v20  ;;  %v1490_v11 = vadd.s32 %v1488_v38, %v1486_v55  ;;  %v1508_v48 = vadd.s32 %v1506_v46, %v1500_v22 }
 0x1ab   :  { %v1378_v1 = vshll.u32 %v1369_v14, %v1376_v20  ;;  %v1580_v47 = vand.u32 2139095040, %v5699_v40  ;;  %v1392_v6 = vsel %vm1269_vm15, %v1391_v15, %v6602_v17  ;;  %v1482_v5 = vshrl.u32 %v1477_v36, 16 }
 0x1ac   :  { %v1379_v33 = vshrl.u32 %v1361_v60, %v1377_v27  ;;  %v1382_v32 = vadd.s32 127, %v1381_v44  ;;  %v1491_v43 = vadd.s32 %v1490_v11, %v1480_v21  ;;  %vm1509_vm4 = vc.u32 %v1507_v18, %v1503_v58 }
 0x1ad   :  { %v1510_v62 = vsel %vm1509_vm4, 1, %v9469_v2  ;;  %v1581_v50 = vshrl.u32 %v1580_v47, 23  ;;  %v1458_v14 = vsel %vm1454_vm3, %v1438_v30, %v6573_v63  ;;  %v1460_v60 = vsel %vm1456_vm6, %v6575_v59, %v1459_v16 }
 0x1ae   :  { %v1380_v34 = vor.u32 %v1379_v33, %v1378_v1  ;;  %v1383_v26 = vshll.u32 %v1382_v32, 23  ;;  %v1502_v39 = vshrl.u32 %v6614_v35, 16  ;;  %v1512_v25 = vadd.s32 %v1510_v62, %v1508_v48 }
 0x1af   :  { %v1394_v36 = vsel %vm6631_vm13, 0, %v1392_v6  ;;  %v1492_v15 = vadd.s32 %v1491_v43, %v1482_v5  ;;  %v5404_v9 = vadd.s32 4294967169, %v1581_v50  ;;  %v1504_v7 = vshrl.u32 %v1499_v13, 16 }
 0x1b0   :  { %v1384_v17 = vor.u32 4788187, %v1383_v26  ;;  %v1513_v23 = vadd.s32 %v1512_v25, %v1502_v39  ;;  %v1584_v22 = vand.u32 8388607, %v1577_v61  ;;  %v1387_v63 = vcvt.s32.f32 %v1380_v34 }
 0x1b1   :  { %v1511_v30 = vadd.s32 %v1507_v18, %v1503_v58  ;;  %v1587_v55 = vadd.s32 1, %v5404_v9  ;;  %v1411_v46 = vadd.s32 3, %v1394_v36  ;;  %v1461_v59 = vsel %vm1455_vm8, %v1458_v14, %v1460_v60 }
 0x1b2   :  { %v1385_v20 = vand.u32 2147483647, %v1384_v17  ;;  %v1514_v35 = vadd.s32 %v1513_v23, %v1504_v7  ;;  %v1585_v44 = vor.u32 8388608, %v1584_v22  ;;  %v1515_v38 = vmul.u32 %v6592_v41, %v1461_v59 }
 0x1b3   :  { %vm1517_vm3 = vc.u32 %v1492_v15, %v1511_v30  ;;  %vm1588_vm6 = vcmp.gt.s32.totalorder %v1587_v55, 0  ;;  %v6657_v48 = vand.u32 3, %v1411_v46  ;;  %v1732_v58 = vand.u32 2147483647, %v5716_v57 }
 0x1b4   :  { %v1388_v16 = vmul.f32 %v1387_v63, %v1385_v20  ;;  %v1518_v27 = vadd.s32 1, %v1514_v35  ;;  %v1589_v21 = vsel %vm1588_vm6, %v1587_v55, 0  ;;  %vm1424_vm7 = vcmp.lt.s32.totalorder %v5935_v24, 0 }
 0x1b5   :  { %v1591_v11 = vand.u32 31, %v1589_v21  ;;  %v6663_v18 = vadd.s32 %v1511_v30, %v1492_v15  ;;  %v6672_v5 = vshll.u32 %v1585_v44, 8  ;;  %vm6684_vm8 = vcmp.le.f32.partialorder %v1422_v28, 0.7853982 }
 0x1b6   :  { %v1389_v13 = vxor.u32 2147483648, %v1388_v16  ;;  %v1519_v1 = vsel %vm1517_vm3, %v1518_v27, %v1514_v35  ;;  %v6689_v9 = vshrl.u32 %v1589_v21, 5  ;;  %v1735_v22 = vand.u32 2139095040, %v5716_v57 }
 0x1b7   :  { %v1520_v33 = vadd.s32 %v1519_v1, %v1515_v38  ;;  %v1592_v32 = vsub.s32 32, %v1591_v11  ;;  %v1594_v41 = vshll.u32 %v9473_v31, %v1591_v11  ;;  %v1597_v6 = vshll.u32 %v9474_v45, %v1591_v11 }
 0x1b8   :  { %v1390_v42 = vsel %vm1269_vm15, %v1389_v13, %v1388_v16  ;;  %v1600_v26 = vshll.u32 %v9475_v3, %v1591_v11  ;;  %v1603_v62 = vshll.u32 %v9476_v8, %v1591_v11  ;;  %v1606_v15 = vshll.u32 %v9477_v4, %v1591_v11 }
 0x1b9   :  { %v6668_v47 = vsel %vm6631_vm13, %v5887_v52, %v1390_v42  ;;  %v1521_v34 = vadd.s32 536870912, %v1520_v33  ;;  %v1595_v50 = vshrl.u32 %v9474_v45, %v1592_v32  ;;  %v1598_v37 = vshrl.u32 %v9475_v3, %v1592_v32 }
 0x1ba   :  { %v1395_v43 = vmul.f32 %v6668_v47, %v6668_v47  ;;  %v1601_v14 = vshrl.u32 %v9476_v8, %v1592_v32  ;;  %v1604_v60 = vshrl.u32 %v9477_v4, %v1592_v32  ;;  %v1607_v7 = vshrl.u32 %v9481_v10, %v1592_v32 }
 0x1bb   :  { %v1522_v36 = vshrl.u32 %v1521_v34, 30  ;;  %v6693_v23 = vand.u32 65535, %v6672_v5  ;;  %v1596_v28 = vor.u32 %v1595_v50, %v1594_v41  ;;  %v6696_v46 = vor.u32 %v1598_v37, %v1597_v6 }
 0x1bc   :  { %v1396_v39 = vmul.f32 -0.001358992, %v1395_v43  ;;  %v1403_v25 = vmul.f32 -0.00019511016, %v1395_v43  ;;  %v1602_v59 = vor.u32 %v1601_v14, %v1600_v26  ;;  %v1605_v35 = vor.u32 %v1604_v60, %v1603_v62 }
 0x1bd   :  { %v1523_v30 = vshll.u32 %v1522_v36, 30  ;;  %v1546_v55 = vsub.s32 4, %v1522_v36  ;;  %v1608_v21 = vor.u32 %v1607_v7, %v1606_v15  ;;  %vm1609_vm9 = vcmp.lt.s32.totalorder %v6689_v9, 1 }
 0x1be   :  { %v1397_v20 = vadd.f32 0.041655596, %v1396_v39  ;;  %v1404_v63 = vadd.f32 0.008332121, %v1403_v25  ;;  %vm1611_vm10 = vcmp.lt.s32.totalorder %v6689_v9, 3  ;;  %vm1612_vm12 = vcmp.lt.s32.totalorder %v6689_v9, 4 }
 0x1bf   :  { %v6698_v44 = vsub.s32 %v1520_v33, %v1523_v30  ;;  %v1547_v13 = vsel %vm1424_vm7, %v1546_v55, %v1522_v36  ;;  %vm1414_vm14 = vcmp.eq.s32.totalorder %v6657_v48, 0  ;;  %vm1417_vm15 = vcmp.eq.s32.totalorder %v6657_v48, 2 }
 0x1c0   :  { %v1398_v16 = vmul.f32 %v1397_v20, %v1395_v43  ;;  %v1405_v27 = vmul.f32 %v1404_v63, %v1395_v43  ;;  %v1593_v42 = vshrl.u32 %v9473_v31, %v1592_v32  ;;  %v1618_v33 = vsel %vm1612_vm12, %v1605_v35, 920167782 }
 0x1c1   :  { %vm1525_vm11 = vcmp.lt.s32.totalorder %v6698_v44, 0  ;;  %v1526_v1 = vsub.s32 0, %v6698_v44  ;;  %v6713_v41 = vshrl.u32 %v6672_v5, 16  ;;  %v1736_v6 = vshrl.u32 %v1735_v22, 23 }
 0x1c2   :  { %v1399_v38 = vadd.f32 -0.4999988, %v1398_v16  ;;  %v1406_v11 = vadd.f32 -0.16666654, %v1405_v27  ;;  %vm1413_vm13 = vcmp.lt.s32.totalorder %v6657_v48, 2  ;;  %v1617_v50 = vsel %vm1609_vm9, %v1596_v28, %v6696_v46 }
 0x1c3   :  { %v1527_v62 = vsel %vm1525_vm11, %v1526_v1, %v6698_v44  ;;  %vm1410_vm1 = vweird.f32 %v5887_v52  ;;  %v1549_v37 = vsel %vm6684_vm8, 0, %v1547_v13  ;;  %vm1610_vm0 = vcmp.lt.s32.totalorder %v6689_v9, 2 }
 0x1c4   :  { %v1400_v34 = vmul.f32 %v1399_v38, %v1395_v43  ;;  %v1407_v26 = vmul.f32 %v1406_v11, %v1395_v43  ;;  %v1528_v32 = vclz %v1527_v62  ;;  %v1619_v14 = vsel %vm1611_vm10, %v1602_v59, %v1618_v33 }
 0x1c5   :  { %v1621_v39 = vsel %vm1609_vm9, %v6696_v46, %v1602_v59  ;;  %v1622_v25 = vsel %vm1612_vm12, %v1608_v21, 1326507024  ;;  %v1620_v15 = vsel %vm1610_vm0, %v1617_v50, %v1619_v14  ;;  %v5407_v7 = vadd.s32 4294967169, %v1736_v6 }
 0x1c6   :  { %v1401_v43 = vadd.f32 1.0, %v1400_v34  ;;  %v1408_v60 = vadd.f32 1.0, %v1407_v26  ;;  %v5402_v36 = vadd.s32 4294967294, %v1528_v32  ;;  %v6735_v22 = vand.u32 8388607, %v1732_v58 }
 0x1c7   :  { %v1613_v30 = vsel %vm1609_vm9, %v1593_v42, %v1596_v28  ;;  %v1623_v55 = vsel %vm1611_vm10, %v1605_v35, %v1622_v25  ;;  %v6742_v16 = vadd.s32 3, %v1549_v37  ;;  %v1614_v27 = vsel %vm1612_vm12, %v1602_v59, 2102212464 }
 0x1c8   :  { %v1409_v20 = vmul.f32 %v1408_v60, %v6668_v47  ;;  %v1418_v63 = vxor.u32 2147483648, %v1401_v43  ;;  %vm5403_vm2 = vcmp.lt.s32.totalorder %v5402_v36, 0  ;;  %v1624_v21 = vsel %vm1610_vm0, %v1621_v39, %v1623_v55 }
 0x1c9   :  { %v1531_v38 = vsel %vm5403_vm2, 0, %v5402_v36  ;;  %v1628_v11 = vand.u32 65535, %v1624_v21  ;;  %v1650_v47 = vand.u32 65535, %v1620_v15  ;;  %v1629_v6 = vshrl.u32 %v1624_v21, 16 }
 0x1ca   :  { %v1415_v13 = vxor.u32 2147483648, %v1409_v20  ;;  %v1532_v1 = vsub.s32 32, %v1531_v38  ;;  %v1536_v33 = vsub.s32 4294967266, %v1531_v38  ;;  %v1651_v28 = vshrl.u32 %v1620_v15, 16 }
 0x1cb   :  { %v1419_v42 = vsel %vm1417_vm15, %v1418_v63, %v1409_v20  ;;  %v1533_v34 = vshll.u32 %v6698_v44, %v1531_v38  ;;  %v1632_v59 = vmul.u32 %v1628_v11, %v6713_v41  ;;  %v1631_v32 = vmul.u32 %v1629_v6, %v6693_v23 }
 0x1cc   :  { %v1416_v35 = vsel %vm1414_vm14, %v1401_v43, %v1415_v13  ;;  %v1534_v62 = vshrl.u32 %v6663_v18, %v1532_v1  ;;  %v1537_v50 = vadd.s32 127, %v1536_v33  ;;  %v1615_v14 = vsel %vm1611_vm10, %v6696_v46, %v1614_v27 }
 0x1cd   :  { %v1420_v26 = vsel %vm1413_vm13, %v1416_v35, %v1419_v42  ;;  %v1630_v43 = vmul.u32 %v1628_v11, %v6693_v23  ;;  %v1652_v44 = vmul.u32 %v1650_v47, %v6693_v23  ;;  %v1633_v48 = vmul.u32 %v1629_v6, %v6713_v41 }
 0x1ce   :  { %v1421_v37 = vsel %vm1410_vm1, nan, %v1420_v26  ;;  %v1535_v60 = vor.u32 %v1534_v62, %v1533_v34  ;;  %v1538_v39 = vshll.u32 %v1537_v50, 23  ;;  %v1634_v25 = vshll.u32 %v1631_v32, 16 }
 0x1cf   :  { %5303 = vst [vmem:[#allocation2 + $0x30] sm:$0xff] %v1421_v37  ;;  %v1636_v18 = vshll.u32 %v1632_v59, 16  ;;  %v1653_v36 = vmul.u32 %v1651_v28, %v6693_v23  ;;  %v1654_v52 = vmul.u32 %v1650_v47, %v6713_v41  ;;  %v1742_v15 = vadd.s32 1, %v5407_v7 }
 0x1d0   :  { %v1539_v20 = vor.u32 4788187, %v1538_v39  ;;  %v1635_v63 = vshrl.u32 %v1631_v32, 16  ;;  %vm1638_vm5 = vc.u32 %v1630_v43, %v1634_v25  ;;  %v1640_v46 = vadd.s32 %v1634_v25, %v1630_v43 }
 0x1d1   :  { %v1542_v55 = vcvt.s32.f32 %v1535_v60  ;;  %v1639_v27 = vsel %vm1638_vm5, 1, %v9469_v2  ;;  %v1655_v21 = vmul.u32 %v1651_v28, %v6713_v41  ;;  %v1656_v13 = vshll.u32 %v1653_v36, 16 }
 0x1d2   :  { %v1540_v38 = vand.u32 2147483647, %v1539_v20  ;;  %v1641_v11 = vadd.s32 %v1639_v27, %v1633_v48  ;;  %vm1642_vm4 = vc.u32 %v1640_v46, %v1636_v18  ;;  %v1658_v1 = vshll.u32 %v1654_v52, 16 }
 0x1d3   :  { %v1643_v33 = vsel %vm1642_vm4, 1, %v9469_v2  ;;  %vm1660_vm3 = vc.u32 %v1652_v44, %v1656_v13  ;;  %v1662_v23 = vadd.s32 %v1656_v13, %v1652_v44  ;;  %vm1743_vm6 = vcmp.gt.s32.totalorder %v1742_v15, 0 }
 0x1d4   :  { %v1543_v7 = vmul.f32 %v1542_v55, %v1540_v38  ;;  %v1645_v47 = vadd.s32 %v1643_v33, %v1641_v11  ;;  %v1661_v6 = vsel %vm1660_vm3, 1, %v9469_v2  ;;  %v1744_v35 = vsel %vm1743_vm6, %v1742_v15, 0 }
 0x1d5   :  { %v1616_v42 = vsel %vm1610_vm0, %v1613_v30, %v1615_v14  ;;  %v1637_v34 = vshrl.u32 %v1632_v59, 16  ;;  %v1663_v41 = vadd.s32 %v1661_v6, %v1655_v21  ;;  %vm1664_vm9 = vc.u32 %v1662_v23, %v1658_v1 }
 0x1d6   :  { %v1544_v28 = vxor.u32 2147483648, %v1543_v7  ;;  %v1646_v26 = vadd.s32 %v1645_v47, %v1635_v63  ;;  %v1665_v62 = vsel %vm1664_vm9, 1, %v9469_v2  ;;  %v1746_v50 = vand.u32 31, %v1744_v35 }
 0x1d7   :  { %v1657_v32 = vshrl.u32 %v1653_v36, 16  ;;  %v1659_v37 = vshrl.u32 %v1654_v52, 16  ;;  %v6775_v43 = vadd.s32 %v1662_v23, %v1658_v1  ;;  %v1667_v44 = vadd.s32 %v1665_v62, %v1663_v41 }
 0x1d8   :  { %v1545_v60 = vsel %vm1424_vm7, %v1544_v28, %v1543_v7  ;;  %v6779_v39 = vadd.s32 %v1646_v26, %v1637_v34  ;;  %v6781_v9 = vshrl.u32 %v1744_v35, 5  ;;  %v6783_v30 = vsub.s32 32, %v1746_v50 }
 0x1d9   :  { %v1548_v59 = vsel %vm6684_vm8, %v5935_v24, %v1545_v60  ;;  %v1668_v14 = vadd.s32 %v1667_v44, %v1657_v32  ;;  %v1749_v48 = vshll.u32 %v9473_v31, %v1746_v50  ;;  %v1752_v25 = vshll.u32 %v9474_v45, %v1746_v50 }
 0x1da   :  { %v1550_v18 = vmul.f32 %v1548_v59, %v1548_v59  ;;  %v1670_v36 = vmul.u32 %v6672_v5, %v1616_v42  ;;  %vm1672_vm7 = vc.u32 %v6779_v39, %v6775_v43  ;;  %v1755_v52 = vshll.u32 %v9475_v3, %v1746_v50 }
 0x1db   :  { %v1669_v15 = vadd.s32 %v1668_v14, %v1659_v37  ;;  %v1750_v20 = vshrl.u32 %v9474_v45, %v6783_v30  ;;  %v1753_v17 = vshrl.u32 %v9475_v3, %v6783_v30  ;;  %v1756_v63 = vshrl.u32 %v9476_v8, %v6783_v30 }
 0x1dc   :  { %v1551_v46 = vmul.f32 -0.001358992, %v1550_v18  ;;  %v1558_v55 = vmul.f32 -0.00019511016, %v1550_v18  ;;  %v1758_v27 = vshll.u32 %v9476_v8, %v1746_v50  ;;  %v1759_v5 = vshrl.u32 %v9477_v4, %v6783_v30 }
 0x1dd   :  { %v1673_v21 = vadd.s32 1, %v1669_v15  ;;  %v6803_v13 = vor.u32 %v1750_v20, %v1749_v48  ;;  %v6805_v38 = vor.u32 %v1753_v17, %v1752_v25  ;;  %vm1764_vm8 = vcmp.lt.s32.totalorder %v6781_v9, 1 }
 0x1de   :  { %v1552_v11 = vadd.f32 0.041655596, %v1551_v46  ;;  %v1559_v1 = vadd.f32 0.008332121, %v1558_v55  ;;  %v1760_v33 = vor.u32 %v1759_v5, %v1758_v27  ;;  %v1761_v23 = vshll.u32 %v9477_v4, %v1746_v50 }
 0x1df   :  { %v1674_v7 = vsel %vm1672_vm7, %v1673_v21, %v1669_v15  ;;  %v6812_v47 = vor.u32 %v1756_v63, %v1755_v52  ;;  %v1762_v6 = vshrl.u32 %v9481_v10, %v6783_v30  ;;  %vm1767_vm10 = vcmp.lt.s32.totalorder %v6781_v9, 4 }
 0x1e0   :  { %v1553_v35 = vmul.f32 %v1552_v11, %v1550_v18  ;;  %v1560_v42 = vmul.f32 %v1559_v1, %v1550_v18  ;;  %v1675_v34 = vadd.s32 %v1674_v7, %v1670_v36  ;;  %vm1766_vm12 = vcmp.lt.s32.totalorder %v6781_v9, 3 }
 0x1e1   :  { %v1740_v41 = vor.u32 8388608, %v6735_v22  ;;  %v1763_v28 = vor.u32 %v1762_v6, %v1761_v23  ;;  %v1772_v26 = vsel %vm1764_vm8, %v6803_v13, %v6805_v38  ;;  %v1773_v62 = vsel %vm1767_vm10, %v1760_v33, 920167782 }
 0x1e2   :  { %v1554_v50 = vadd.f32 -0.4999988, %v1553_v35  ;;  %v1561_v32 = vadd.f32 -0.16666654, %v1560_v42  ;;  %v1567_v37 = vand.u32 3, %v6742_v16  ;;  %v1676_v44 = vadd.s32 536870912, %v1675_v34 }
 0x1e3   :  { %vm1765_vm11 = vcmp.lt.s32.totalorder %v6781_v9, 2  ;;  %v1774_v22 = vsel %vm1766_vm12, %v6812_v47, %v1773_v62  ;;  %v1776_v60 = vsel %vm1764_vm8, %v6805_v38, %v6812_v47  ;;  %v1777_v14 = vsel %vm1767_vm10, %v1763_v28, 1326507024 }
 0x1e4   :  { %v1555_v48 = vmul.f32 %v1554_v50, %v1550_v18  ;;  %v1562_v25 = vmul.f32 %v1561_v32, %v1550_v18  ;;  %v6836_v36 = vshrl.u32 %v1676_v44, 30  ;;  %v1775_v16 = vsel %vm1765_vm11, %v1772_v26, %v1774_v22 }
 0x1e5   :  { %v1778_v52 = vsel %vm1766_vm12, %v1760_v33, %v1777_v14  ;;  %v6842_v15 = vshll.u32 %v1740_v41, 8  ;;  %v1806_v55 = vshrl.u32 %v1775_v16, 16  ;;  %vm1568_vm14 = vcmp.lt.s32.totalorder %v1567_v37, 2 }
 0x1e6   :  { %v1556_v20 = vadd.f32 1.0, %v1555_v48  ;;  %v1563_v17 = vadd.f32 1.0, %v1562_v25  ;;  %v1678_v63 = vshll.u32 %v6836_v36, 30  ;;  %v1779_v46 = vsel %vm1765_vm11, %v1776_v60, %v1778_v52 }
 0x1e7   :  { %vm1569_vm15 = vcmp.eq.s32.totalorder %v1567_v37, 0  ;;  %v1781_v21 = vand.u32 65535, %v6842_v15  ;;  %v1783_v11 = vand.u32 65535, %v1779_v46  ;;  %v1784_v1 = vshrl.u32 %v1779_v46, 16 }
 0x1e8   :  { %v1564_v27 = vmul.f32 %v1563_v17, %v1548_v59  ;;  %v1573_v18 = vxor.u32 2147483648, %v1556_v20  ;;  %v1679_v5 = vsub.s32 %v1675_v34, %v1678_v63  ;;  %v1782_v7 = vshrl.u32 %v6842_v15, 16 }
 0x1e9   :  { %vm1572_vm1 = vcmp.eq.s32.totalorder %v1567_v37, 2  ;;  %v1786_v6 = vmul.u32 %v1784_v1, %v1781_v21  ;;  %v1805_v35 = vand.u32 65535, %v1775_v16  ;;  %v1808_v42 = vmul.u32 %v1806_v55, %v1781_v21 }
 0x1ea   :  { %v1570_v33 = vxor.u32 2147483648, %v1564_v27  ;;  %vm1680_vm13 = vcmp.lt.s32.totalorder %v1679_v5, 0  ;;  %v1681_v23 = vsub.s32 0, %v1679_v5  ;;  %v1574_v28 = vsel %vm1572_vm1, %v1573_v18, %v1564_v27 }
 0x1eb   :  { %v1787_v26 = vmul.u32 %v1783_v11, %v1782_v7  ;;  %vm1565_vm0 = vweird.f32 %v5935_v24  ;;  %v1789_v50 = vshll.u32 %v1786_v6, 16  ;;  %v1671_v44 = vadd.s32 %v6775_v43, %v6779_v39 }
 0x1ec   :  { %v1571_v41 = vsel %vm1569_vm15, %v1556_v20, %v1570_v33  ;;  %v1682_v59 = vsel %vm1680_vm13, %v1681_v23, %v1679_v5  ;;  %v1748_v22 = vshrl.u32 %v9473_v31, %v6783_v30  ;;  %v1785_v60 = vmul.u32 %v1783_v11, %v1781_v21 }
 0x1ed   :  { %v1575_v34 = vsel %vm1568_vm14, %v1571_v41, %v1574_v28  ;;  %v1683_v62 = vclz %v1682_v59  ;;  %v1788_v48 = vmul.u32 %v1784_v1, %v1782_v7  ;;  %v1807_v25 = vmul.u32 %v1805_v35, %v1781_v21 }
 0x1ee   :  { %v1576_v32 = vsel %vm1565_vm0, nan, %v1575_v34  ;;  %v1809_v16 = vmul.u32 %v1805_v35, %v1782_v7  ;;  %vm1579_vm2 = vcmp.lt.s32.totalorder %v5699_v40, 0  ;;  %v1791_v24 = vshll.u32 %v1787_v26, 16 }
 0x1ef   :  { %v5405_v14 = vadd.s32 4294967294, %v1683_v62  ;;  %5304 = vst [vmem:[#allocation2 + $0x38] sm:$0xff] %v1576_v32  ;;  %vm1793_vm5 = vc.u32 %v1785_v60, %v1789_v50  ;;  %v1795_v37 = vadd.s32 %v1789_v50, %v1785_v60  ;;  %v1811_v52 = vshll.u32 %v1808_v42, 16 }
 0x1f0   :  { %v1701_v20 = vsub.s32 4, %v6836_v36  ;;  %v1794_v43 = vsel %vm1793_vm5, 1, %v9469_v2  ;;  %v1810_v39 = vmul.u32 %v1806_v55, %v1782_v7  ;;  %v1790_v27 = vshrl.u32 %v1786_v6, 16 }
 0x1f1   :  { %vm5406_vm4 = vcmp.lt.s32.totalorder %v5405_v14, 0  ;;  %v1796_v30 = vadd.s32 %v1794_v43, %v1788_v48  ;;  %vm1797_vm3 = vc.u32 %v1795_v37, %v1791_v24  ;;  %vm1815_vm6 = vc.u32 %v1807_v25, %v1811_v52 }
 0x1f2   :  { %v1686_v17 = vsel %vm5406_vm4, 0, %v5405_v14  ;;  %v1798_v18 = vsel %vm1797_vm3, 1, %v9469_v2  ;;  %v1813_v11 = vshll.u32 %v1809_v16, 16  ;;  %v1816_v1 = vsel %vm1815_vm6, 1, %v9469_v2 }
 0x1f3   :  { %v1687_v63 = vsub.s32 32, %v1686_v17  ;;  %v1691_v46 = vsub.s32 4294967266, %v1686_v17  ;;  %v1800_v21 = vadd.s32 %v1798_v18, %v1796_v30  ;;  %v1817_v33 = vadd.s32 %v1811_v52, %v1807_v25 }
 0x1f4   :  { %v1688_v23 = vshll.u32 %v1679_v5, %v1686_v17  ;;  %v1818_v28 = vadd.s32 %v1816_v1, %v1810_v39  ;;  %v1769_v55 = vsel %vm1767_vm10, %v6812_v47, 2102212464  ;;  %v1887_v59 = vand.u32 2147483647, %v5745_v19 }
 0x1f5   :  { %v1689_v35 = vshrl.u32 %v1671_v44, %v1687_v63  ;;  %v1692_v41 = vadd.s32 127, %v1691_v46  ;;  %v1801_v7 = vadd.s32 %v1800_v21, %v1790_v27  ;;  %vm1819_vm9 = vc.u32 %v1817_v33, %v1813_v11 }
 0x1f6   :  { %v1792_v62 = vshrl.u32 %v1787_v26, 16  ;;  %v1820_v50 = vsel %vm1819_vm9, 1, %v9469_v2  ;;  %v1768_v5 = vsel %vm1764_vm8, %v1748_v22, %v6803_v13  ;;  %v1812_v32 = vshrl.u32 %v1808_v42, 16 }
 0x1f7   :  { %v1690_v6 = vor.u32 %v1689_v35, %v1688_v23  ;;  %v1693_v34 = vshll.u32 %v1692_v41, 23  ;;  %v1822_v44 = vadd.s32 %v1820_v50, %v1818_v28  ;;  %v1890_v60 = vand.u32 2139095040, %v5745_v19 }
 0x1f8   :  { %v1702_v47 = vsel %vm1579_vm2, %v1701_v20, %v6836_v36  ;;  %v1770_v48 = vsel %vm1766_vm12, %v6805_v38, %v1769_v55  ;;  %v1802_v26 = vadd.s32 %v1801_v7, %v1792_v62  ;;  %v1814_v25 = vshrl.u32 %v1809_v16, 16 }
 0x1f9   :  { %v1694_v14 = vor.u32 4788187, %v1693_v34  ;;  %v1823_v24 = vadd.s32 %v1822_v44, %v1812_v32  ;;  %v1891_v37 = vshrl.u32 %v1890_v60, 23  ;;  %v1894_v13 = vand.u32 8388607, %v1887_v59 }
 0x1fa   :  { %v1697_v22 = vcvt.s32.f32 %v1690_v6  ;;  %v1821_v52 = vadd.s32 %v1817_v33, %v1813_v11  ;;  %vm6879_vm7 = vcmp.le.f32.partialorder %v1577_v61, 0.7853982  ;;  %v1771_v36 = vsel %vm1765_vm11, %v1768_v5, %v1770_v48 }
 0x1fb   :  { %v1695_v42 = vand.u32 2147483647, %v1694_v14  ;;  %v1824_v38 = vadd.s32 %v1823_v24, %v1814_v25  ;;  %v5410_v20 = vadd.s32 4294967169, %v1891_v37  ;;  %v1704_v39 = vsel %vm6879_vm7, 0, %v1702_v47 }
 0x1fc   :  { %vm1827_vm8 = vc.u32 %v1802_v26, %v1821_v52  ;;  %v1895_v30 = vor.u32 8388608, %v1894_v13  ;;  %v1825_v27 = vmul.u32 %v6842_v15, %v1771_v36  ;;  %v1721_v61 = vadd.s32 3, %v1704_v39 }
 0x1fd   :  { %v1698_v16 = vmul.f32 %v1697_v22, %v1695_v42  ;;  %v1828_v17 = vadd.s32 1, %v1824_v38  ;;  %v1897_v63 = vadd.s32 1, %v5410_v20  ;;  %v2045_v35 = vand.u32 2139095040, %v5784_v0 }
 0x1fe   :  { %v6895_v23 = vshll.u32 %v1895_v30, 8  ;;  %v6900_v28 = vand.u32 3, %v1721_v61  ;;  %v2042_v7 = vand.u32 2147483647, %v5784_v0  ;;  %vm1734_vm12 = vcmp.lt.s32.totalorder %v5716_v57, 0 }
 0x1ff   :  { %v1699_v46 = vxor.u32 2147483648, %v1698_v16  ;;  %v1829_v18 = vsel %vm1827_vm8, %v1828_v17, %v1824_v38  ;;  %vm1898_vm10 = vcmp.gt.s32.totalorder %v1897_v63, 0  ;;  %v6904_v62 = vadd.s32 %v1821_v52, %v1802_v26 }
 0x200   :  { %v1830_v21 = vadd.s32 %v1829_v18, %v1825_v27  ;;  %v1899_v11 = vsel %vm1898_vm10, %v1897_v63, 0  ;;  %v6909_v44 = vand.u32 65535, %v6895_v23  ;;  %v2046_v60 = vshrl.u32 %v2045_v35, 23 }
 0x201   :  { %v1700_v9 = vsel %vm1579_vm2, %v1699_v46, %v1698_v16  ;;  %v1901_v33 = vand.u32 31, %v1899_v11  ;;  %v6912_v25 = vshrl.u32 %v6895_v23, 16  ;;  %vm6916_vm11 = vcmp.le.f32.partialorder %v1732_v58, 0.7853982 }
 0x202   :  { %v6893_v1 = vsel %vm6879_vm7, %v5699_v40, %v1700_v9  ;;  %v1831_v41 = vadd.s32 536870912, %v1830_v21  ;;  %v6926_v36 = vshrl.u32 %v1899_v11, 5  ;;  %vm1727_vm14 = vcmp.eq.s32.totalorder %v6900_v28, 2 }
 0x203   :  { %v1705_v15 = vmul.f32 %v6893_v1, %v6893_v1  ;;  %v1902_v55 = vsub.s32 32, %v1901_v33  ;;  %v1904_v5 = vshll.u32 %v9473_v31, %v1901_v33  ;;  %v1907_v24 = vshll.u32 %v9474_v45, %v1901_v33 }
 0x204   :  { %v1832_v50 = vshrl.u32 %v1831_v41, 30  ;;  %v1913_v13 = vshll.u32 %v9476_v8, %v1901_v33  ;;  %v1910_v20 = vshll.u32 %v9475_v3, %v1901_v33  ;;  %vm1724_vm13 = vcmp.eq.s32.totalorder %v6900_v28, 0 }
 0x205   :  { %v1706_v6 = vmul.f32 -0.001358992, %v1705_v15  ;;  %v1713_v34 = vmul.f32 -0.00019511016, %v1705_v15  ;;  %v1905_v32 = vshrl.u32 %v9474_v45, %v1902_v55  ;;  %v1908_v37 = vshrl.u32 %v9475_v3, %v1902_v55 }
 0x206   :  { %v1833_v48 = vshll.u32 %v1832_v50, 30  ;;  %v1914_v42 = vshrl.u32 %v9477_v4, %v1902_v55  ;;  %v1856_v58 = vsub.s32 4, %v1832_v50  ;;  %v1911_v16 = vshrl.u32 %v9476_v8, %v1902_v55 }
 0x207   :  { %v1707_v14 = vadd.f32 0.041655596, %v1706_v6  ;;  %v1714_v47 = vadd.f32 0.008332121, %v1713_v34  ;;  %v6929_v38 = vor.u32 %v1905_v32, %v1904_v5  ;;  %v6936_v63 = vor.u32 %v1908_v37, %v1907_v24 }
 0x208   :  { %v6924_v43 = vsub.s32 %v1830_v21, %v1833_v48  ;;  %v1915_v46 = vor.u32 %v1914_v42, %v1913_v13  ;;  %v1916_v27 = vshll.u32 %v9477_v4, %v1901_v33  ;;  %v1917_v61 = vshrl.u32 %v9481_v10, %v1902_v55 }
 0x209   :  { %v1708_v22 = vmul.f32 %v1707_v14, %v1705_v15  ;;  %v1715_v52 = vmul.f32 %v1714_v47, %v1705_v15  ;;  %vm1723_vm1 = vcmp.lt.s32.totalorder %v6900_v28, 2  ;;  %vm1919_vm0 = vcmp.lt.s32.totalorder %v6926_v36, 1 }
 0x20a   :  { %vm1835_vm15 = vcmp.lt.s32.totalorder %v6924_v43, 0  ;;  %v1836_v30 = vsub.s32 0, %v6924_v43  ;;  %vm1720_vm2 = vweird.f32 %v5699_v40  ;;  %v1857_v35 = vsel %vm1734_vm12, %v1856_v58, %v1832_v50 }
 0x20b   :  { %v1709_v39 = vadd.f32 -0.4999988, %v1708_v22  ;;  %v1716_v17 = vadd.f32 -0.16666654, %v1715_v52  ;;  %v6946_v41 = vor.u32 %v1911_v16, %v1910_v20  ;;  %vm1922_vm5 = vcmp.lt.s32.totalorder %v6926_v36, 4 }
 0x20c   :  { %v1837_v21 = vsel %vm1835_vm15, %v1836_v30, %v6924_v43  ;;  %vm1921_vm4 = vcmp.lt.s32.totalorder %v6926_v36, 3  ;;  %v1903_v5 = vshrl.u32 %v9473_v31, %v1902_v55  ;;  %v1918_v32 = vor.u32 %v1917_v61, %v1916_v27 }
 0x20d   :  { %v1710_v18 = vmul.f32 %v1709_v39, %v1705_v15  ;;  %v1717_v9 = vmul.f32 %v1716_v17, %v1705_v15  ;;  %v1838_v11 = vclz %v1837_v21  ;;  %v5413_v15 = vadd.s32 4294967169, %v2046_v60 }
 0x20e   :  { %v1927_v14 = vsel %vm1919_vm0, %v6929_v38, %v6936_v63  ;;  %v1859_v48 = vsel %vm6916_vm11, 0, %v1857_v35  ;;  %v1928_v24 = vsel %vm1922_vm5, %v1915_v46, 920167782  ;;  %vm1920_vm6 = vcmp.lt.s32.totalorder %v6926_v36, 2 }
 0x20f   :  { %v1711_v33 = vadd.f32 1.0, %v1710_v18  ;;  %v1718_v6 = vadd.f32 1.0, %v1717_v9  ;;  %v5408_v34 = vadd.s32 4294967294, %v1838_v11  ;;  %v1929_v55 = vsel %vm1921_vm4, %v6946_v41, %v1928_v24 }
 0x210   :  { %v1931_v60 = vsel %vm1919_vm0, %v6936_v63, %v6946_v41  ;;  %v1930_v42 = vsel %vm1920_vm6, %v1927_v14, %v1929_v55  ;;  %v1932_v20 = vsel %vm1922_vm5, %v1918_v32, 1326507024  ;;  %v6988_v35 = vand.u32 8388607, %v2042_v7 }
 0x211   :  { %v1719_v50 = vmul.f32 %v1718_v6, %v6893_v1  ;;  %v1728_v47 = vxor.u32 2147483648, %v1711_v33  ;;  %vm5409_vm3 = vcmp.lt.s32.totalorder %v5408_v34, 0  ;;  %v1933_v39 = vsel %vm1921_vm4, %v1915_v46, %v1932_v20 }
 0x212   :  { %v1841_v13 = vsel %vm5409_vm3, 0, %v5408_v34  ;;  %v1960_v17 = vand.u32 65535, %v1930_v42  ;;  %v1961_v30 = vshrl.u32 %v1930_v42, 16  ;;  %v2052_v40 = vadd.s32 1, %v5413_v15 }
 0x213   :  { %v1725_v1 = vxor.u32 2147483648, %v1719_v50  ;;  %v1729_v37 = vsel %vm1727_vm14, %v1728_v47, %v1719_v50  ;;  %v1842_v22 = vsub.s32 32, %v1841_v13  ;;  %v1843_v52 = vshll.u32 %v6924_v43, %v1841_v13 }
 0x214   :  { %v1846_v58 = vsub.s32 4294967266, %v1841_v13  ;;  %v1934_v43 = vsel %vm1920_vm6, %v1931_v60, %v1933_v39  ;;  %v1963_v28 = vmul.u32 %v1961_v30, %v6909_v44  ;;  %v1964_v6 = vmul.u32 %v1960_v17, %v6912_v25 }
 0x215   :  { %v1726_v16 = vsel %vm1724_vm13, %v1711_v33, %v1725_v1  ;;  %v1844_v61 = vshrl.u32 %v6904_v62, %v1842_v22  ;;  %v1938_v21 = vand.u32 65535, %v1934_v43  ;;  %v1939_v11 = vshrl.u32 %v1934_v43, 16 }
 0x216   :  { %v1730_v27 = vsel %vm1723_vm1, %v1726_v16, %v1729_v37  ;;  %v1847_v18 = vadd.s32 127, %v1846_v58  ;;  %v1876_v62 = vadd.s32 3, %v1859_v48  ;;  %v1923_v50 = vsel %vm1919_vm0, %v1903_v5, %v6929_v38 }
 0x217   :  { %v1731_v9 = vsel %vm1720_vm2, nan, %v1730_v27  ;;  %v1845_v46 = vor.u32 %v1844_v61, %v1843_v52  ;;  %v1941_v34 = vmul.u32 %v1939_v11, %v6909_v44  ;;  %v1942_v32 = vmul.u32 %v1938_v21, %v6912_v25 }
 0x218   :  { %v1848_v33 = vshll.u32 %v1847_v18, 23  ;;  %5305 = vst [vmem:[#allocation2 + $0x40] sm:$0xff] %v1731_v9  ;;  %v1962_v47 = vmul.u32 %v1960_v17, %v6909_v44  ;;  %v1966_v24 = vshll.u32 %v1963_v28, 16  ;;  %v1940_v60 = vmul.u32 %v1938_v21, %v6909_v44 }
 0x219   :  { %v1852_v55 = vcvt.s32.f32 %v1845_v46  ;;  %v1943_v1 = vmul.u32 %v1939_v11, %v6912_v25  ;;  %v1944_v37 = vshll.u32 %v1941_v34, 16  ;;  %v1946_v13 = vshll.u32 %v1942_v32, 16 }
 0x21a   :  { %v1849_v14 = vor.u32 4788187, %v1848_v33  ;;  %v1965_v42 = vmul.u32 %v1961_v30, %v6912_v25  ;;  %v1968_v22 = vshll.u32 %v1964_v6, 16  ;;  %vm1970_vm7 = vc.u32 %v1962_v47, %v1966_v24 }
 0x21b   :  { %vm1948_vm9 = vc.u32 %v1940_v60, %v1944_v37  ;;  %v1950_v15 = vadd.s32 %v1944_v37, %v1940_v60  ;;  %v1972_v52 = vadd.s32 %v1966_v24, %v1962_v47  ;;  %v1924_v38 = vsel %vm1922_vm5, %v6946_v41, 2102212464 }
 0x21c   :  { %v1850_v48 = vand.u32 2147483647, %v1849_v14  ;;  %v1949_v5 = vsel %vm1948_vm9, 1, %v9469_v2  ;;  %v1971_v44 = vsel %vm1970_vm7, 1, %v9469_v2  ;;  %v1945_v25 = vshrl.u32 %v1941_v34, 16 }
 0x21d   :  { %v1951_v20 = vadd.s32 %v1949_v5, %v1943_v1  ;;  %vm1952_vm8 = vc.u32 %v1950_v15, %v1946_v13  ;;  %v1973_v16 = vadd.s32 %v1971_v44, %v1965_v42  ;;  %vm1974_vm10 = vc.u32 %v1972_v52, %v1968_v22 }
 0x21e   :  { %v1853_v58 = vmul.f32 %v1852_v55, %v1850_v48  ;;  %v1953_v17 = vsel %vm1952_vm8, 1, %v9469_v2  ;;  %v1975_v30 = vsel %vm1974_vm10, 1, %v9469_v2  ;;  %v1967_v61 = vshrl.u32 %v1963_v28, 16 }
 0x21f   :  { %v1955_v27 = vadd.s32 %v1953_v17, %v1951_v20  ;;  %v1977_v18 = vadd.s32 %v1975_v30, %v1973_v16  ;;  %vm2053_vm14 = vcmp.gt.s32.totalorder %v2052_v40, 0  ;;  %v1925_v43 = vsel %vm1921_vm4, %v6936_v63, %v1924_v38 }
 0x220   :  { %v1854_v39 = vxor.u32 2147483648, %v1853_v58  ;;  %v1947_v9 = vshrl.u32 %v1942_v32, 16  ;;  %v2054_v21 = vsel %vm2053_vm14, %v2052_v40, 0  ;;  %v1969_v33 = vshrl.u32 %v1964_v6, 16 }
 0x221   :  { %v1956_v46 = vadd.s32 %v1955_v27, %v1945_v25  ;;  %v1978_v34 = vadd.s32 %v1977_v18, %v1967_v61  ;;  %v7016_v28 = vand.u32 3, %v1876_v62  ;;  %v2050_v47 = vor.u32 8388608, %v6988_v35 }
 0x222   :  { %v1855_v41 = vsel %vm1734_vm12, %v1854_v39, %v1853_v58  ;;  %v2056_v24 = vand.u32 31, %v2054_v21  ;;  %v1926_v55 = vsel %vm1920_vm6, %v1923_v50, %v1925_v43  ;;  %v7023_v63 = vadd.s32 %v1972_v52, %v1968_v22 }
 0x223   :  { %v1858_v11 = vsel %vm6916_vm11, %v5716_v57, %v1855_v41  ;;  %v7021_v60 = vadd.s32 %v1956_v46, %v1947_v9  ;;  %v1979_v32 = vadd.s32 %v1978_v34, %v1969_v33  ;;  %v7025_v1 = vshrl.u32 %v2054_v21, 5 }
 0x224   :  { %v1860_v14 = vmul.f32 %v1858_v11, %v1858_v11  ;;  %v7027_v6 = vsub.s32 32, %v2056_v24  ;;  %v2059_v35 = vshll.u32 %v9473_v31, %v2056_v24  ;;  %v2062_v36 = vshll.u32 %v9474_v45, %v2056_v24 }
 0x225   :  { %vm1982_vm12 = vc.u32 %v7021_v60, %v7023_v63  ;;  %v1983_v62 = vadd.s32 1, %v1979_v32  ;;  %v1980_v48 = vmul.u32 %v6895_v23, %v1926_v55  ;;  %v2065_v15 = vshll.u32 %v9475_v3, %v2056_v24 }
 0x226   :  { %v1861_v40 = vmul.f32 -0.001358992, %v1860_v14  ;;  %v1868_v26 = vmul.f32 -0.00019511016, %v1860_v14  ;;  %v2060_v13 = vshrl.u32 %v9474_v45, %v7027_v6  ;;  %v2063_v22 = vshrl.u32 %v9475_v3, %v7027_v6 }
 0x227   :  { %v1984_v42 = vsel %vm1982_vm12, %v1983_v62, %v1979_v32  ;;  %v2066_v52 = vshrl.u32 %v9476_v8, %v7027_v6  ;;  %vm2074_vm11 = vcmp.lt.s32.totalorder %v7025_v1, 1  ;;  %v2068_v20 = vshll.u32 %v9476_v8, %v2056_v24 }
 0x228   :  { %v1862_v50 = vadd.f32 0.041655596, %v1861_v40  ;;  %v1869_v37 = vadd.f32 0.008332121, %v1868_v26  ;;  %v1985_v5 = vadd.s32 %v1984_v42, %v1980_v48  ;;  %v7042_v44 = vor.u32 %v2060_v13, %v2059_v35 }
 0x229   :  { %v7044_v23 = vor.u32 %v2063_v22, %v2062_v36  ;;  %v2069_v16 = vshrl.u32 %v9477_v4, %v7027_v6  ;;  %v2071_v30 = vshll.u32 %v9477_v4, %v2056_v24  ;;  %v7050_v27 = vor.u32 %v2066_v52, %v2065_v15 }
 0x22a   :  { %v1863_v58 = vmul.f32 %v1862_v50, %v1860_v14  ;;  %v1870_v38 = vmul.f32 %v1869_v37, %v1860_v14  ;;  %v1986_v17 = vadd.s32 536870912, %v1985_v5  ;;  %v2072_v18 = vshrl.u32 %v9481_v10, %v7027_v6 }
 0x22b   :  { %v2070_v61 = vor.u32 %v2069_v16, %v2068_v20  ;;  %vm2077_vm15 = vcmp.lt.s32.totalorder %v7025_v1, 4  ;;  %vm2076_vm13 = vcmp.lt.s32.totalorder %v7025_v1, 3  ;;  %v7060_v33 = vshll.u32 %v2050_v47, 8 }
 0x22c   :  { %v1864_v39 = vadd.f32 -0.4999988, %v1863_v58  ;;  %v1871_v25 = vadd.f32 -0.16666654, %v1870_v38  ;;  %v7055_v9 = vshrl.u32 %v1986_v17, 30  ;;  %v2073_v21 = vor.u32 %v2072_v18, %v2071_v30 }
 0x22d   :  { %v2083_v46 = vsel %vm2077_vm15, %v2070_v61, 920167782  ;;  %v2082_v32 = vsel %vm2074_vm11, %v7042_v44, %v7044_v23  ;;  %vm1878_vm1 = vcmp.lt.s32.totalorder %v7016_v28, 2  ;;  %vm2075_vm0 = vcmp.lt.s32.totalorder %v7025_v1, 2 }
 0x22e   :  { %v1865_v41 = vmul.f32 %v1864_v39, %v1860_v14  ;;  %v1872_v43 = vmul.f32 %v1871_v25, %v1860_v14  ;;  %v1988_v55 = vshll.u32 %v7055_v9, 30  ;;  %v2084_v14 = vsel %vm2076_vm13, %v7050_v27, %v2083_v46 }
 0x22f   :  { %v2087_v47 = vsel %vm2077_vm15, %v2073_v21, 1326507024  ;;  %v2086_v35 = vsel %vm2074_vm11, %v7044_v23, %v7050_v27  ;;  %vm1879_vm2 = vcmp.eq.s32.totalorder %v7016_v28, 0  ;;  %vm1882_vm5 = vcmp.eq.s32.totalorder %v7016_v28, 2 }
 0x230   :  { %v1866_v34 = vadd.f32 1.0, %v1865_v41  ;;  %v1873_v24 = vadd.f32 1.0, %v1872_v43  ;;  %v1989_v62 = vsub.s32 %v1985_v5, %v1988_v55  ;;  %v2085_v36 = vsel %vm2075_vm0, %v2082_v32, %v2084_v14 }
 0x231   :  { %v2088_v50 = vsel %vm2076_vm13, %v2070_v61, %v2087_v47  ;;  %v2091_v48 = vand.u32 65535, %v7060_v33  ;;  %v2092_v22 = vshrl.u32 %v7060_v33, 16  ;;  %v2115_v15 = vand.u32 65535, %v2085_v36 }
 0x232   :  { %v1874_v40 = vmul.f32 %v1873_v24, %v1858_v11  ;;  %v1883_v26 = vxor.u32 2147483648, %v1866_v34  ;;  %vm1990_vm4 = vcmp.lt.s32.totalorder %v1989_v62, 0  ;;  %v1991_v11 = vsub.s32 0, %v1989_v62 }
 0x233   :  { %v2089_v42 = vsel %vm2075_vm0, %v2086_v35, %v2088_v50  ;;  %vm1875_vm3 = vweird.f32 %v5716_v57  ;;  %v2116_v39 = vshrl.u32 %v2085_v36, 16  ;;  %v1981_v61 = vadd.s32 %v7023_v63, %v7021_v60 }
 0x234   :  { %v1880_v37 = vxor.u32 2147483648, %v1874_v40  ;;  %v1884_v13 = vsel %vm1882_vm5, %v1883_v26, %v1874_v40  ;;  %v1992_v58 = vsel %vm1990_vm4, %v1991_v11, %v1989_v62  ;;  %v2093_v38 = vand.u32 65535, %v2089_v42 }
 0x235   :  { %v2094_v5 = vshrl.u32 %v2089_v42, 16  ;;  %v1993_v16 = vclz %v1992_v58  ;;  %v2058_v41 = vshrl.u32 %v9473_v31, %v7027_v6  ;;  %v2117_v46 = vmul.u32 %v2115_v15, %v2091_v48 }
 0x236   :  { %v1881_v52 = vsel %vm1879_vm2, %v1866_v34, %v1880_v37  ;;  %v2097_v30 = vmul.u32 %v2093_v38, %v2092_v22  ;;  %v2095_v43 = vmul.u32 %v2093_v38, %v2091_v48  ;;  %v2118_v34 = vmul.u32 %v2116_v39, %v2091_v48 }
 0x237   :  { %v1885_v20 = vsel %vm1878_vm1, %v1881_v52, %v1884_v13  ;;  %v2096_v17 = vmul.u32 %v2094_v5, %v2091_v48  ;;  %v5411_v18 = vadd.s32 4294967294, %v1993_v16  ;;  %v2098_v57 = vmul.u32 %v2094_v5, %v2092_v22 }
 0x238   :  { %v1886_v25 = vsel %vm1875_vm3, nan, %v1885_v20  ;;  %v2101_v28 = vshll.u32 %v2097_v30, 16  ;;  %v2119_v32 = vmul.u32 %v2115_v15, %v2092_v22  ;;  %vm1889_vm7 = vcmp.lt.s32.totalorder %v5745_v19, 0 }
 0x239   :  { %5306 = vst [vmem:[#allocation2 + $0x48] sm:$0xff] %v1886_v25  ;;  %v2099_v21 = vshll.u32 %v2096_v17, 16  ;;  %vm5412_vm6 = vcmp.lt.s32.totalorder %v5411_v18, 0  ;;  %v2100_v63 = vshrl.u32 %v2096_v17, 16  ;;  %v2120_v6 = vmul.u32 %v2116_v39, %v2092_v22 }
 0x23a   :  { %v1996_v24 = vsel %vm5412_vm6, 0, %v5411_v18  ;;  %v2121_v26 = vshll.u32 %v2118_v34, 16  ;;  %v2123_v48 = vshll.u32 %v2119_v32, 16  ;;  %v2079_v52 = vsel %vm2077_vm15, %v7050_v27, 2102212464 }
 0x23b   :  { %vm2103_vm9 = vc.u32 %v2095_v43, %v2099_v21  ;;  %v2105_v55 = vadd.s32 %v2099_v21, %v2095_v43  ;;  %v1997_v14 = vsub.s32 32, %v1996_v24  ;;  %v2001_v60 = vsub.s32 4294967266, %v1996_v24 }
 0x23c   :  { %v2104_v47 = vsel %vm2103_vm9, 1, %v9469_v2  ;;  %v1998_v35 = vshll.u32 %v1989_v62, %v1996_v24  ;;  %vm2125_vm10 = vc.u32 %v2117_v46, %v2121_v26  ;;  %v2127_v13 = vadd.s32 %v2121_v26, %v2117_v46 }
 0x23d   :  { %v2106_v40 = vadd.s32 %v2104_v47, %v2098_v57  ;;  %vm2107_vm8 = vc.u32 %v2105_v55, %v2101_v28  ;;  %v1999_v36 = vshrl.u32 %v1981_v61, %v1997_v14  ;;  %v2002_v50 = vadd.s32 127, %v2001_v60 }
 0x23e   :  { %v2108_v37 = vsel %vm2107_vm8, 1, %v9469_v2  ;;  %v2126_v58 = vsel %vm2125_vm10, 1, %v9469_v2  ;;  %v2011_v22 = vsub.s32 4, %v7055_v9  ;;  %vm2129_vm14 = vc.u32 %v2127_v13, %v2123_v48 }
 0x23f   :  { %v2110_v11 = vadd.s32 %v2108_v37, %v2106_v40  ;;  %v2000_v42 = vor.u32 %v1999_v36, %v1998_v35  ;;  %v2003_v15 = vshll.u32 %v2002_v50, 23  ;;  %v2128_v62 = vadd.s32 %v2126_v58, %v2120_v6 }
 0x240   :  { %v2102_v20 = vshrl.u32 %v2097_v30, 16  ;;  %v2130_v16 = vsel %vm2129_vm14, 1, %v9469_v2  ;;  %v2197_v39 = vand.u32 2147483647, %v5824_v49  ;;  %v2078_v25 = vsel %vm2074_vm11, %v2058_v41, %v7042_v44 }
 0x241   :  { %v2111_v38 = vadd.s32 %v2110_v11, %v2100_v63  ;;  %v2004_v5 = vor.u32 4788187, %v2003_v15  ;;  %v2122_v17 = vshrl.u32 %v2118_v34, 16  ;;  %v2132_v61 = vadd.s32 %v2130_v16, %v2128_v62 }
 0x242   :  { %v2200_v27 = vand.u32 2139095040, %v5824_v49  ;;  %v2007_v43 = vcvt.s32.f32 %v2000_v42  ;;  %v2080_v21 = vsel %vm2076_vm13, %v7044_v23, %v2079_v52  ;;  %v2012_v30 = vsel %vm1889_vm7, %v2011_v22, %v7055_v9 }
 0x243   :  { %v2005_v18 = vand.u32 2147483647, %v2004_v5  ;;  %v2112_v46 = vadd.s32 %v2111_v38, %v2102_v20  ;;  %v2124_v57 = vshrl.u32 %v2119_v32, 16  ;;  %v2133_v28 = vadd.s32 %v2132_v61, %v2122_v17 }
 0x244   :  { %v2201_v24 = vshrl.u32 %v2200_v27, 23  ;;  %v2131_v44 = vadd.s32 %v2127_v13, %v2123_v48  ;;  %vm1888_vm12 = vcmp.le.f32.partialorder %v1887_v59, 0.7853982  ;;  %v2081_v41 = vsel %vm2075_vm0, %v2078_v25, %v2080_v21 }
 0x245   :  { %v2008_v55 = vmul.f32 %v2007_v43, %v2005_v18  ;;  %v2134_v34 = vadd.s32 %v2133_v28, %v2124_v57  ;;  %v2014_v23 = vsel %vm1888_vm12, 0, %v2012_v30  ;;  %v2204_v63 = vand.u32 8388607, %v2197_v39 }
 0x246   :  { %v5416_v14 = vadd.s32 4294967169, %v2201_v24  ;;  %vm2137_vm11 = vc.u32 %v2112_v46, %v2131_v44  ;;  %v2135_v40 = vmul.u32 %v7060_v33, %v2081_v41  ;;  %v2031_v6 = vadd.s32 3, %v2014_v23 }
 0x247   :  { %v2009_v60 = vxor.u32 2147483648, %v2008_v55  ;;  %v2138_v9 = vadd.s32 1, %v2134_v34  ;;  %v2205_v36 = vor.u32 8388608, %v2204_v63  ;;  %v2355_v11 = vand.u32 2139095040, %v5847_v51 }
 0x248   :  { %v2207_v32 = vadd.s32 1, %v5416_v14  ;;  %v7126_v15 = vand.u32 3, %v2031_v6  ;;  %v7128_v52 = vadd.s32 %v2131_v44, %v2112_v46  ;;  %vm2030_vm5 = vweird.f32 %v5745_v19 }
 0x249   :  { %v2010_v47 = vsel %vm1889_vm7, %v2009_v60, %v2008_v55  ;;  %v2139_v1 = vsel %vm2137_vm11, %v2138_v9, %v2134_v34  ;;  %v7132_v62 = vshll.u32 %v2205_v36, 8  ;;  %v2356_v25 = vshrl.u32 %v2355_v11, 23 }
 0x24a   :  { %v2013_v59 = vsel %vm1888_vm12, %v5745_v19, %v2010_v47  ;;  %vm2208_vm15 = vcmp.gt.s32.totalorder %v2207_v32, 0  ;;  %v2140_v35 = vadd.s32 %v2139_v1, %v2135_v40  ;;  %vm2037_vm13 = vcmp.eq.s32.totalorder %v7126_v15, 2 }
 0x24b   :  { %v2015_v26 = vmul.f32 %v2013_v59, %v2013_v59  ;;  %v2209_v50 = vsel %vm2208_vm15, %v2207_v32, 0  ;;  %vm2034_vm1 = vcmp.eq.s32.totalorder %v7126_v15, 0  ;;  %v7153_v14 = vand.u32 65535, %v7132_v62 }
 0x24c   :  { %v2211_v37 = vand.u32 31, %v2209_v50  ;;  %v2141_v42 = vadd.s32 536870912, %v2140_v35  ;;  %v7146_v55 = vshrl.u32 %v2209_v50, 5  ;;  %vm2033_vm0 = vcmp.lt.s32.totalorder %v7126_v15, 2 }
 0x24d   :  { %v2016_v48 = vmul.f32 -0.001358992, %v2015_v26  ;;  %v2023_v13 = vmul.f32 -0.00019511016, %v2015_v26  ;;  %v5419_v50 = vadd.s32 4294967169, %v2356_v25  ;;  %vm2044_vm9 = vcmp.lt.s32.totalorder %v5784_v0, 0 }
 0x24e   :  { %v2212_v33 = vsub.s32 32, %v2211_v37  ;;  %v7130_v38 = vshrl.u32 %v2141_v42, 30  ;;  %v2214_v5 = vshll.u32 %v9473_v31, %v2211_v37  ;;  %v2217_v20 = vshll.u32 %v9474_v45, %v2211_v37 }
 0x24f   :  { %v2017_v58 = vadd.f32 0.041655596, %v2016_v48  ;;  %v2024_v22 = vadd.f32 0.008332121, %v2023_v13  ;;  %v2220_v16 = vshll.u32 %v9475_v3, %v2211_v37  ;;  %v2223_v18 = vshll.u32 %v9476_v8, %v2211_v37 }
 0x250   :  { %v2143_v27 = vshll.u32 %v7130_v38, 30  ;;  %v2215_v43 = vshrl.u32 %v9474_v45, %v2212_v33  ;;  %v2218_v21 = vshrl.u32 %v9475_v3, %v2212_v33  ;;  %v2221_v46 = vshrl.u32 %v9476_v8, %v2212_v33 }
 0x251   :  { %v2018_v17 = vmul.f32 %v2017_v58, %v2015_v26  ;;  %v2025_v61 = vmul.f32 %v2024_v22, %v2015_v26  ;;  %v2224_v30 = vshrl.u32 %v9477_v4, %v2212_v33  ;;  %v2213_v44 = vshrl.u32 %v9473_v31, %v2212_v33 }
 0x252   :  { %v7144_v24 = vsub.s32 %v2140_v35, %v2143_v27  ;;  %v2226_v41 = vshll.u32 %v9477_v4, %v2211_v37  ;;  %v2227_v34 = vshrl.u32 %v9481_v10, %v2212_v33  ;;  %v2216_v9 = vor.u32 %v2215_v43, %v2214_v5 }
 0x253   :  { %v2019_v57 = vadd.f32 -0.4999988, %v2018_v17  ;;  %v2026_v28 = vadd.f32 -0.16666654, %v2025_v61  ;;  %v2219_v32 = vor.u32 %v2218_v21, %v2217_v20  ;;  %v2222_v47 = vor.u32 %v2221_v46, %v2220_v16 }
 0x254   :  { %vm2145_vm2 = vcmp.lt.s32.totalorder %v7144_v24, 0  ;;  %v2146_v63 = vsub.s32 0, %v7144_v24  ;;  %v2225_v40 = vor.u32 %v2224_v30, %v2223_v18  ;;  %vm2229_vm4 = vcmp.lt.s32.totalorder %v7146_v55, 1 }
 0x255   :  { %v2020_v60 = vmul.f32 %v2019_v57, %v2015_v26  ;;  %v2027_v23 = vmul.f32 %v2026_v28, %v2015_v26  ;;  %vm2232_vm3 = vcmp.lt.s32.totalorder %v7146_v55, 4  ;;  %v2247_v26 = vshrl.u32 %v7132_v62, 16 }
 0x256   :  { %v2147_v35 = vsel %vm2145_vm2, %v2146_v63, %v7144_v24  ;;  %v2228_v48 = vor.u32 %v2227_v34, %v2226_v41  ;;  %vm2231_vm6 = vcmp.lt.s32.totalorder %v7146_v55, 3  ;;  %v2166_v42 = vsub.s32 4, %v7130_v38 }
 0x257   :  { %v2021_v6 = vadd.f32 1.0, %v2020_v60  ;;  %v2028_v1 = vadd.f32 1.0, %v2027_v23  ;;  %v2148_v36 = vclz %v2147_v35  ;;  %vm2230_vm7 = vcmp.lt.s32.totalorder %v7146_v55, 2 }
 0x258   :  { %v2237_v33 = vsel %vm2229_vm4, %v2216_v9, %v2219_v32  ;;  %v2233_v22 = vsel %vm2229_vm4, %v2213_v44, %v2216_v9  ;;  %v2238_v5 = vsel %vm2232_vm3, %v2225_v40, 920167782  ;;  %v2241_v25 = vsel %vm2229_vm4, %v2219_v32, %v2222_v47 }
 0x259   :  { %v2029_v37 = vmul.f32 %v2028_v1, %v2013_v59  ;;  %v2038_v11 = vxor.u32 2147483648, %v2021_v6  ;;  %v5414_v13 = vadd.s32 4294967294, %v2148_v36  ;;  %v2234_v59 = vsel %vm2232_vm3, %v2222_v47, 2102212464 }
 0x25a   :  { %v2239_v16 = vsel %vm2231_vm6, %v2222_v47, %v2238_v5  ;;  %v2242_v18 = vsel %vm2232_vm3, %v2228_v48, 1326507024  ;;  %v2235_v30 = vsel %vm2231_vm6, %v2219_v32, %v2234_v59  ;;  %v2352_v19 = vand.u32 2147483647, %v5847_v51 }
 0x25b   :  { %v2035_v58 = vxor.u32 2147483648, %v2029_v37  ;;  %v2039_v20 = vsel %vm2037_vm13, %v2038_v11, %v2029_v37  ;;  %vm5415_vm8 = vcmp.lt.s32.totalorder %v5414_v13, 0  ;;  %v2240_v27 = vsel %vm2230_vm7, %v2237_v33, %v2239_v16 }
 0x25c   :  { %v2151_v61 = vsel %vm5415_vm8, 0, %v5414_v13  ;;  %v2243_v28 = vsel %vm2231_vm6, %v2225_v40, %v2242_v18  ;;  %v2270_v44 = vand.u32 65535, %v2240_v27  ;;  %v2271_v41 = vshrl.u32 %v2240_v27, 16 }
 0x25d   :  { %v2036_v17 = vsel %vm2034_vm1, %v2021_v6, %v2035_v58  ;;  %v2152_v21 = vsub.s32 32, %v2151_v61  ;;  %v2156_v46 = vsub.s32 4294967266, %v2151_v61  ;;  %v2153_v34 = vshll.u32 %v7144_v24, %v2151_v61 }
 0x25e   :  { %v2040_v43 = vsel %vm2033_vm0, %v2036_v17, %v2039_v20  ;;  %v2244_v15 = vsel %vm2230_vm7, %v2241_v25, %v2243_v28  ;;  %v2273_v32 = vmul.u32 %v2271_v41, %v7153_v14  ;;  %v2274_v40 = vmul.u32 %v2270_v44, %v2247_v26 }
 0x25f   :  { %v2041_v57 = vsel %vm2030_vm5, nan, %v2040_v43  ;;  %v2154_v60 = vshrl.u32 %v7128_v52, %v2152_v21  ;;  %v2157_v23 = vadd.s32 127, %v2156_v46  ;;  %v2248_v63 = vand.u32 65535, %v2244_v15 }
 0x260   :  { %5307 = vst [vmem:[#allocation2 + $0x50] sm:$0xff] %v2041_v57  ;;  %v2249_v9 = vshrl.u32 %v2244_v15, 16  ;;  %v2362_v1 = vadd.s32 1, %v5419_v50  ;;  %v7204_v24 = vsel %vm2044_vm9, %v2166_v42, %v7130_v38  ;;  %v7208_v52 = vsel %vm2230_vm7, %v2233_v22, %v2235_v30 }
 0x261   :  { %v2155_v47 = vor.u32 %v2154_v60, %v2153_v34  ;;  %v2158_v6 = vshll.u32 %v2157_v23, 23  ;;  %v2252_v36 = vmul.u32 %v2248_v63, %v2247_v26  ;;  %v2272_v11 = vmul.u32 %v2270_v44, %v7153_v14 }
 0x262   :  { %v2251_v35 = vmul.u32 %v2249_v9, %v7153_v14  ;;  %v2275_v48 = vmul.u32 %v2271_v41, %v2247_v26  ;;  %v2276_v13 = vshll.u32 %v2273_v32, 16  ;;  %v2250_v50 = vmul.u32 %v2248_v63, %v7153_v14 }
 0x263   :  { %v2159_v37 = vor.u32 4788187, %v2158_v6  ;;  %v2162_v33 = vcvt.s32.f32 %v2155_v47  ;;  %v2253_v58 = vmul.u32 %v2249_v9, %v2247_v26  ;;  %v2256_v38 = vshll.u32 %v2252_v36, 16 }
 0x264   :  { %v2254_v59 = vshll.u32 %v2251_v35, 16  ;;  %v2278_v42 = vshll.u32 %v2274_v40, 16  ;;  %vm2280_vm10 = vc.u32 %v2272_v11, %v2276_v13  ;;  %v2282_v20 = vadd.s32 %v2276_v13, %v2272_v11 }
 0x265   :  { %v2160_v5 = vand.u32 2147483647, %v2159_v37  ;;  %v2281_v22 = vsel %vm2280_vm10, 1, %v9469_v2  ;;  %vm2363_vm12 = vcmp.gt.s32.totalorder %v2362_v1, 0  ;;  %v2277_v27 = vshrl.u32 %v2273_v32, 16 }
 0x266   :  { %vm2258_vm14 = vc.u32 %v2250_v50, %v2254_v59  ;;  %v2260_v55 = vadd.s32 %v2254_v59, %v2250_v50  ;;  %v2283_v17 = vadd.s32 %v2281_v22, %v2275_v48  ;;  %vm2284_vm15 = vc.u32 %v2282_v20, %v2278_v42 }
 0x267   :  { %v2163_v16 = vmul.f32 %v2162_v33, %v2160_v5  ;;  %v2259_v25 = vsel %vm2258_vm14, 1, %v9469_v2  ;;  %v2285_v18 = vsel %vm2284_vm15, 1, %v9469_v2  ;;  %v2364_v43 = vsel %vm2363_vm12, %v2362_v1, 0 }
 0x268   :  { %v2261_v61 = vadd.s32 %v2259_v25, %v2253_v58  ;;  %vm2262_vm11 = vc.u32 %v2260_v55, %v2256_v38  ;;  %v2255_v21 = vshrl.u32 %v2251_v35, 16  ;;  %v2287_v30 = vadd.s32 %v2285_v18, %v2283_v17 }
 0x269   :  { %v2164_v14 = vxor.u32 2147483648, %v2163_v16  ;;  %v2263_v26 = vsel %vm2262_vm11, 1, %v9469_v2  ;;  %v2366_v57 = vand.u32 31, %v2364_v43  ;;  %vm7219_vm13 = vcmp.le.f32.partialorder %v2042_v7, 0.7853982 }
 0x26a   :  { %v2265_v46 = vadd.s32 %v2263_v26, %v2261_v61  ;;  %v2257_v41 = vshrl.u32 %v2252_v36, 16  ;;  %v2279_v34 = vshrl.u32 %v2274_v40, 16  ;;  %v2288_v15 = vadd.s32 %v2287_v30, %v2277_v27 }
 0x26b   :  { %v2165_v44 = vsel %vm2044_vm9, %v2164_v14, %v2163_v16  ;;  %v7228_v63 = vsub.s32 32, %v2366_v57  ;;  %v2169_v7 = vsel %vm7219_vm13, 0, %v7204_v24  ;;  %v2290_v32 = vmul.u32 %v7132_v62, %v7208_v52 }
 0x26c   :  { %v2168_v60 = vsel %vm7219_vm13, %v5784_v0, %v2165_v44  ;;  %v2266_v23 = vadd.s32 %v2265_v46, %v2255_v21  ;;  %v2359_v47 = vand.u32 8388607, %v2352_v19  ;;  %v7239_v40 = vadd.s32 %v2282_v20, %v2278_v42 }
 0x26d   :  { %v2170_v9 = vmul.f32 %v2168_v60, %v2168_v60  ;;  %v2289_v1 = vadd.s32 %v2288_v15, %v2279_v34  ;;  %v7241_v35 = vshrl.u32 %v2364_v43, 5  ;;  %v2372_v11 = vshll.u32 %v9474_v45, %v2366_v57 }
 0x26e   :  { %v7237_v6 = vadd.s32 %v2266_v23, %v2257_v41  ;;  %v2375_v24 = vshll.u32 %v9475_v3, %v2366_v57  ;;  %v2373_v52 = vshrl.u32 %v9475_v3, %v7228_v63  ;;  %v2376_v48 = vshrl.u32 %v9476_v8, %v7228_v63 }
 0x26f   :  { %v2171_v36 = vmul.f32 -0.001358992, %v2170_v9  ;;  %v2178_v37 = vmul.f32 -0.00019511016, %v2170_v9  ;;  %v2293_v62 = vadd.s32 1, %v2289_v1  ;;  %v2369_v50 = vshll.u32 %v9473_v31, %v2366_v57 }
 0x270   :  { %vm2292_vm1 = vc.u32 %v7237_v6, %v7239_v40  ;;  %v2370_v58 = vshrl.u32 %v9474_v45, %v7228_v63  ;;  %v2378_v5 = vshll.u32 %v9476_v8, %v2366_v57  ;;  %v2379_v38 = vshrl.u32 %v9477_v4, %v7228_v63 }
 0x271   :  { %v2172_v13 = vadd.f32 0.041655596, %v2171_v36  ;;  %v2179_v33 = vadd.f32 0.008332121, %v2178_v37  ;;  %v2294_v59 = vsel %vm2292_vm1, %v2293_v62, %v2289_v1  ;;  %v2381_v42 = vshll.u32 %v9477_v4, %v2366_v57 }
 0x272   :  { %v2295_v20 = vadd.s32 %v2294_v59, %v2290_v32  ;;  %v2382_v16 = vshrl.u32 %v9481_v10, %v7228_v63  ;;  %v2186_v25 = vadd.s32 3, %v2169_v7  ;;  %v7260_v17 = vor.u32 %v2373_v52, %v2372_v11 }
 0x273   :  { %v2173_v55 = vmul.f32 %v2172_v13, %v2170_v9  ;;  %v2180_v22 = vmul.f32 %v2179_v33, %v2170_v9  ;;  %v2377_v61 = vor.u32 %v2376_v48, %v2375_v24  ;;  %v2380_v27 = vor.u32 %v2379_v38, %v2378_v5 }
 0x274   :  { %v2296_v18 = vadd.s32 536870912, %v2295_v20  ;;  %v2383_v43 = vor.u32 %v2382_v16, %v2381_v42  ;;  %v2360_v21 = vor.u32 8388608, %v2359_v47  ;;  %v7262_v46 = vor.u32 %v2370_v58, %v2369_v50 }
 0x275   :  { %v2174_v14 = vadd.f32 -0.4999988, %v2173_v55  ;;  %v2181_v26 = vadd.f32 -0.16666654, %v2180_v22  ;;  %vm2384_vm0 = vcmp.lt.s32.totalorder %v7241_v35, 1  ;;  %vm2387_vm2 = vcmp.lt.s32.totalorder %v7241_v35, 4 }
 0x276   :  { %v7266_v28 = vshrl.u32 %v2296_v18, 30  ;;  %vm2386_vm5 = vcmp.lt.s32.totalorder %v7241_v35, 3  ;;  %v2187_v44 = vand.u32 3, %v2186_v25  ;;  %v2393_v41 = vsel %vm2387_vm2, %v2380_v27, 920167782 }
 0x277   :  { %v2175_v30 = vmul.f32 %v2174_v14, %v2170_v9  ;;  %v2182_v57 = vmul.f32 %v2181_v26, %v2170_v9  ;;  %v2397_v34 = vsel %vm2387_vm2, %v2383_v43, 1326507024  ;;  %v2396_v32 = vsel %vm2384_vm0, %v7260_v17, %v2377_v61 }
 0x278   :  { %v2298_v7 = vshll.u32 %v7266_v28, 30  ;;  %v2392_v9 = vsel %vm2384_vm0, %v7262_v46, %v7260_v17  ;;  %v2394_v47 = vsel %vm2386_vm5, %v2377_v61, %v2393_v41  ;;  %v2398_v1 = vsel %vm2386_vm5, %v2380_v27, %v2397_v34 }
 0x279   :  { %v2176_v23 = vadd.f32 1.0, %v2175_v30  ;;  %v2183_v15 = vadd.f32 1.0, %v2182_v57  ;;  %v7285_v36 = vshll.u32 %v2360_v21, 8  ;;  %vm2385_vm4 = vcmp.lt.s32.totalorder %v7241_v35, 2 }
 0x27a   :  { %v2299_v24 = vsub.s32 %v2295_v20, %v2298_v7  ;;  %vm2185_vm3 = vweird.f32 %v5784_v0  ;;  %vm2188_vm6 = vcmp.lt.s32.totalorder %v2187_v44, 2  ;;  %vm2189_vm9 = vcmp.eq.s32.totalorder %v2187_v44, 0 }
 0x27b   :  { %v2184_v37 = vmul.f32 %v2183_v15, %v2168_v60  ;;  %v2193_v11 = vxor.u32 2147483648, %v2176_v23  ;;  %v2399_v62 = vsel %vm2385_vm4, %v2396_v32, %v2398_v1  ;;  %v2395_v13 = vsel %vm2385_vm4, %v2392_v9, %v2394_v47 }
 0x27c   :  { %vm2300_vm7 = vcmp.lt.s32.totalorder %v2299_v24, 0  ;;  %v2301_v48 = vsub.s32 0, %v2299_v24  ;;  %vm2192_vm8 = vcmp.eq.s32.totalorder %v2187_v44, 2  ;;  %v2401_v60 = vand.u32 65535, %v7285_v36 }
 0x27d   :  { %v2190_v52 = vxor.u32 2147483648, %v2184_v37  ;;  %v2403_v33 = vand.u32 65535, %v2399_v62  ;;  %v2404_v50 = vshrl.u32 %v2399_v62, 16  ;;  %v2194_v59 = vsel %vm2192_vm8, %v2193_v11, %v2184_v37 }
 0x27e   :  { %v2302_v5 = vsel %vm2300_vm7, %v2301_v48, %v2299_v24  ;;  %v2402_v38 = vshrl.u32 %v7285_v36, 16  ;;  %v2426_v22 = vshrl.u32 %v2395_v13, 16  ;;  %v2507_v20 = vand.u32 2147483647, %v5890_v53 }
 0x27f   :  { %v2191_v58 = vsel %vm2189_vm9, %v2176_v23, %v2190_v52  ;;  %v2303_v55 = vclz %v2302_v5  ;;  %v2406_v25 = vmul.u32 %v2404_v50, %v2401_v60  ;;  %v2425_v14 = vand.u32 65535, %v2395_v13 }
 0x280   :  { %v2195_v42 = vsel %vm2188_vm6, %v2191_v58, %v2194_v59  ;;  %v2407_v27 = vmul.u32 %v2403_v33, %v2402_v38  ;;  %v2291_v26 = vadd.s32 %v7239_v40, %v7237_v6  ;;  %v2368_v43 = vshrl.u32 %v9473_v31, %v7228_v63 }
 0x281   :  { %v2196_v16 = vsel %vm2185_vm3, nan, %v2195_v42  ;;  %v5417_v18 = vadd.s32 4294967294, %v2303_v55  ;;  %v2389_v21 = vsel %vm2387_vm2, %v2377_v61, 2102212464  ;;  %v2321_v30 = vsub.s32 4, %v7266_v28 }
 0x282   :  { %5308 = vst [vmem:[#allocation2 + $0x58] sm:$0xff] %v2196_v16  ;;  %v2405_v57 = vmul.u32 %v2403_v33, %v2401_v60  ;;  %v2408_v44 = vmul.u32 %v2404_v50, %v2402_v38  ;;  %v2409_v0 = vshll.u32 %v2406_v25, 16  ;;  %vm2199_vm10 = vcmp.lt.s32.totalorder %v5824_v49, 0 }
 0x283   :  { %vm5418_vm14 = vcmp.lt.s32.totalorder %v5417_v18, 0  ;;  %v2410_v41 = vshrl.u32 %v2406_v25, 16  ;;  %v2411_v34 = vshll.u32 %v2407_v27, 16  ;;  %v2428_v23 = vmul.u32 %v2426_v22, %v2401_v60 }
 0x284   :  { %v2306_v6 = vsel %vm5418_vm14, 0, %v5417_v18  ;;  %vm2413_vm12 = vc.u32 %v2405_v57, %v2409_v0  ;;  %v2415_v40 = vadd.s32 %v2409_v0, %v2405_v57  ;;  %v2429_v15 = vmul.u32 %v2425_v14, %v2402_v38 }
 0x285   :  { %v2307_v63 = vsub.s32 32, %v2306_v6  ;;  %v2311_v7 = vsub.s32 4294967266, %v2306_v6  ;;  %v2414_v61 = vsel %vm2413_vm12, 1, %v9469_v2  ;;  %v2427_v32 = vmul.u32 %v2425_v14, %v2401_v60 }
 0x286   :  { %v2416_v9 = vadd.s32 %v2414_v61, %v2408_v44  ;;  %vm2417_vm11 = vc.u32 %v2415_v40, %v2411_v34  ;;  %v2430_v47 = vmul.u32 %v2426_v22, %v2402_v38  ;;  %v2431_v1 = vshll.u32 %v2428_v23, 16 }
 0x287   :  { %v2308_v37 = vshll.u32 %v2299_v24, %v2306_v6  ;;  %v2309_v11 = vshrl.u32 %v2291_v26, %v2307_v63  ;;  %v2312_v62 = vadd.s32 127, %v2311_v7  ;;  %v2418_v52 = vsel %vm2417_vm11, 1, %v9469_v2 }
 0x288   :  { %v2420_v48 = vadd.s32 %v2418_v52, %v2416_v9  ;;  %v2433_v13 = vshll.u32 %v2429_v15, 16  ;;  %vm2435_vm15 = vc.u32 %v2427_v32, %v2431_v1  ;;  %v2437_v33 = vadd.s32 %v2431_v1, %v2427_v32 }
 0x289   :  { %v2310_v50 = vor.u32 %v2309_v11, %v2308_v37  ;;  %v2313_v58 = vshll.u32 %v2312_v62, 23  ;;  %v2388_v59 = vsel %vm2384_vm0, %v2368_v43, %v7262_v46  ;;  %v2436_v60 = vsel %vm2435_vm15, 1, %v9469_v2 }
 0x28a   :  { %v2390_v24 = vsel %vm2386_vm5, %v7260_v17, %v2389_v21  ;;  %v2421_v5 = vadd.s32 %v2420_v48, %v2410_v41  ;;  %v2438_v38 = vadd.s32 %v2436_v60, %v2430_v47  ;;  %vm2439_vm13 = vc.u32 %v2437_v33, %v2433_v13 }
 0x28b   :  { %v2314_v42 = vor.u32 4788187, %v2313_v58  ;;  %v2412_v55 = vshrl.u32 %v2407_v27, 16  ;;  %v2440_v22 = vsel %vm2439_vm13, 1, %v9469_v2  ;;  %v2510_v16 = vand.u32 2139095040, %v5890_v53 }
 0x28c   :  { %v2317_v25 = vcvt.s32.f32 %v2310_v50  ;;  %v2322_v46 = vsel %vm2199_vm10, %v2321_v30, %v7266_v28  ;;  %v2432_v14 = vshrl.u32 %v2428_v23, 16  ;;  %v2442_v26 = vadd.s32 %v2440_v22, %v2438_v38 }
 0x28d   :  { %v2315_v18 = vand.u32 2147483647, %v2314_v42  ;;  %v2422_v43 = vadd.s32 %v2421_v5, %v2412_v55  ;;  %v2511_v57 = vshrl.u32 %v2510_v16, 23  ;;  %v2514_v17 = vand.u32 8388607, %v2507_v20 }
 0x28e   :  { %vm7324_vm1 = vcmp.le.f32.partialorder %v2197_v39, 0.7853982  ;;  %v2434_v21 = vshrl.u32 %v2429_v15, 16  ;;  %v2443_v44 = vadd.s32 %v2442_v26, %v2432_v14  ;;  %v2391_v28 = vsel %vm2385_vm4, %v2388_v59, %v2390_v24 }
 0x28f   :  { %v2318_v0 = vmul.f32 %v2317_v25, %v2315_v18  ;;  %v2441_v30 = vadd.s32 %v2437_v33, %v2433_v13  ;;  %v5422_v41 = vadd.s32 4294967169, %v2511_v57  ;;  %v2324_v34 = vsel %vm7324_vm1, 0, %v2322_v46 }
 0x290   :  { %v2444_v23 = vadd.s32 %v2443_v44, %v2434_v21  ;;  %v2515_v40 = vor.u32 8388608, %v2514_v17  ;;  %v2445_v39 = vmul.u32 %v7285_v36, %v2391_v28  ;;  %v2341_v61 = vadd.s32 3, %v2324_v34 }
 0x291   :  { %v2319_v6 = vxor.u32 2147483648, %v2318_v0  ;;  %vm2447_vm0 = vc.u32 %v2422_v43, %v2441_v30  ;;  %v2517_v63 = vadd.s32 1, %v5422_v41  ;;  %v2662_v35 = vand.u32 2147483647, %v5938_v29 }
 0x292   :  { %v2448_v7 = vadd.s32 1, %v2444_v23  ;;  %v2665_v1 = vand.u32 2139095040, %v5938_v29  ;;  %v7340_v36 = vshll.u32 %v2515_v40, 8  ;;  %vm2354_vm5 = vcmp.lt.s32.totalorder %v5847_v51, 0 }
 0x293   :  { %v2320_v15 = vsel %vm2199_vm10, %v2319_v6, %v2318_v0  ;;  %vm2518_vm2 = vcmp.gt.s32.totalorder %v2517_v63, 0  ;;  %v7343_v50 = vand.u32 3, %v2341_v61  ;;  %v7345_v58 = vadd.s32 %v2441_v30, %v2422_v43 }
 0x294   :  { %v2323_v32 = vsel %vm7324_vm1, %v5824_v49, %v2320_v15  ;;  %v2449_v9 = vsel %vm2447_vm0, %v2448_v7, %v2444_v23  ;;  %v2519_v47 = vsel %vm2518_vm2, %v2517_v63, 0  ;;  %v2666_v59 = vshrl.u32 %v2665_v1, 23 }
 0x295   :  { %v2325_v37 = vmul.f32 %v2323_v32, %v2323_v32  ;;  %v2450_v11 = vadd.s32 %v2449_v9, %v2445_v39  ;;  %v2521_v62 = vand.u32 31, %v2519_v47  ;;  %v7349_v60 = vand.u32 8388607, %v2662_v35 }
 0x296   :  { %v7352_v42 = vand.u32 65535, %v7340_v36  ;;  %vm7360_vm4 = vcmp.le.f32.partialorder %v2352_v19, 0.7853982  ;;  %vm2347_vm3 = vcmp.eq.s32.totalorder %v7343_v50, 2  ;;  %v7371_v19 = vshrl.u32 %v2519_v47, 5 }
 0x297   :  { %v2326_v52 = vmul.f32 -0.001358992, %v2325_v37  ;;  %v2333_v48 = vmul.f32 -0.00019511016, %v2325_v37  ;;  %v2451_v13 = vadd.s32 536870912, %v2450_v11  ;;  %v2522_v33 = vsub.s32 32, %v2521_v62 }
 0x298   :  { %v2524_v55 = vshll.u32 %v9473_v31, %v2521_v62  ;;  %v2527_v16 = vshll.u32 %v9474_v45, %v2521_v62  ;;  %v2530_v25 = vshll.u32 %v9475_v3, %v2521_v62  ;;  %v2533_v43 = vshll.u32 %v9476_v8, %v2521_v62 }
 0x299   :  { %v2327_v24 = vadd.f32 0.041655596, %v2326_v52  ;;  %v2334_v5 = vadd.f32 0.008332121, %v2333_v48  ;;  %v2452_v38 = vshrl.u32 %v2451_v13, 30  ;;  %v2525_v22 = vshrl.u32 %v9474_v45, %v2522_v33 }
 0x29a   :  { %v2528_v17 = vshrl.u32 %v9475_v3, %v2522_v33  ;;  %v2531_v27 = vshrl.u32 %v9476_v8, %v2522_v33  ;;  %v2534_v21 = vshrl.u32 %v9477_v4, %v2522_v33  ;;  %vm2344_vm6 = vcmp.eq.s32.totalorder %v7343_v50, 0 }
 0x29b   :  { %v2328_v46 = vmul.f32 %v2327_v24, %v2325_v37  ;;  %v2335_v14 = vmul.f32 %v2334_v5, %v2325_v37  ;;  %v2453_v18 = vshll.u32 %v2452_v38, 30  ;;  %v2476_v57 = vsub.s32 4, %v2452_v38 }
 0x29c   :  { %v2526_v30 = vor.u32 %v2525_v22, %v2524_v55  ;;  %v2536_v41 = vshll.u32 %v9477_v4, %v2521_v62  ;;  %v2537_v34 = vshrl.u32 %v9481_v10, %v2522_v33  ;;  %v7377_v23 = vshrl.u32 %v7340_v36, 16 }
 0x29d   :  { %v2329_v44 = vadd.f32 -0.4999988, %v2328_v46  ;;  %v2336_v0 = vadd.f32 -0.16666654, %v2335_v14  ;;  %v7369_v28 = vsub.s32 %v2450_v11, %v2453_v18  ;;  %vm2343_vm9 = vcmp.lt.s32.totalorder %v7343_v50, 2 }
 0x29e   :  { %vm2340_vm8 = vweird.f32 %v5824_v49  ;;  %v2477_v39 = vsel %vm2354_vm5, %v2476_v57, %v2452_v38  ;;  %v2529_v7 = vor.u32 %v2528_v17, %v2527_v16  ;;  %v2532_v15 = vor.u32 %v2531_v27, %v2530_v25 }
 0x29f   :  { %v2330_v6 = vmul.f32 %v2329_v44, %v2325_v37  ;;  %v2337_v40 = vmul.f32 %v2336_v0, %v2325_v37  ;;  %vm2455_vm7 = vcmp.lt.s32.totalorder %v7369_v28, 0  ;;  %v2456_v63 = vsub.s32 0, %v7369_v28 }
 0x2a0   :  { %v2535_v61 = vor.u32 %v2534_v21, %v2533_v43  ;;  %vm2539_vm10 = vcmp.lt.s32.totalorder %v7371_v19, 1  ;;  %v2538_v11 = vor.u32 %v2537_v34, %v2536_v41  ;;  %vm2542_vm14 = vcmp.lt.s32.totalorder %v7371_v19, 4 }
 0x2a1   :  { %v2331_v9 = vadd.f32 1.0, %v2330_v6  ;;  %v2338_v47 = vadd.f32 1.0, %v2337_v40  ;;  %v2457_v1 = vsel %vm2455_vm7, %v2456_v63, %v7369_v28  ;;  %v5425_v62 = vadd.s32 4294967169, %v2666_v59 }
 0x2a2   :  { %v2458_v37 = vclz %v2457_v1  ;;  %v2523_v13 = vshrl.u32 %v9473_v31, %v2522_v33  ;;  %vm2541_vm12 = vcmp.lt.s32.totalorder %v7371_v19, 3  ;;  %v2479_v5 = vsel %vm7360_vm4, 0, %v2477_v39 }
 0x2a3   :  { %v2339_v52 = vmul.f32 %v2338_v47, %v2323_v32  ;;  %v2348_v48 = vxor.u32 2147483648, %v2331_v9  ;;  %vm2540_vm11 = vcmp.lt.s32.totalorder %v7371_v19, 2  ;;  %v2547_v38 = vsel %vm2539_vm10, %v2526_v30, %v2529_v7 }
 0x2a4   :  { %v5420_v24 = vadd.s32 4294967294, %v2458_v37  ;;  %v2544_v32 = vsel %vm2542_vm14, %v2532_v15, 2102212464  ;;  %v2548_v33 = vsel %vm2542_vm14, %v2535_v61, 920167782  ;;  %v2551_v16 = vsel %vm2539_vm10, %v2529_v7, %v2532_v15 }
 0x2a5   :  { %v2345_v55 = vxor.u32 2147483648, %v2339_v52  ;;  %v2349_v22 = vsel %vm2347_vm3, %v2348_v48, %v2339_v52  ;;  %v2549_v59 = vsel %vm2541_vm12, %v2532_v15, %v2548_v33  ;;  %v2552_v25 = vsel %vm2542_vm14, %v2538_v11, 1326507024 }
 0x2a6   :  { %vm5421_vm15 = vcmp.lt.s32.totalorder %v5420_v24, 0  ;;  %v2550_v18 = vsel %vm2540_vm11, %v2547_v38, %v2549_v59  ;;  %v2553_v43 = vsel %vm2541_vm12, %v2535_v61, %v2552_v25  ;;  %v7421_v50 = vadd.s32 3, %v2479_v5 }
 0x2a7   :  { %v2346_v46 = vsel %vm2344_vm6, %v2331_v9, %v2345_v55  ;;  %v2461_v14 = vsel %vm5421_vm15, 0, %v5420_v24  ;;  %v2554_v0 = vsel %vm2540_vm11, %v2551_v16, %v2553_v43  ;;  %v2580_v41 = vand.u32 65535, %v2550_v18 }
 0x2a8   :  { %v2350_v57 = vsel %vm2343_vm9, %v2346_v46, %v2349_v22  ;;  %v2462_v17 = vsub.s32 32, %v2461_v14  ;;  %v2463_v27 = vshll.u32 %v7369_v28, %v2461_v14  ;;  %v2466_v21 = vsub.s32 4294967266, %v2461_v14 }
 0x2a9   :  { %v2351_v44 = vsel %vm2340_vm8, nan, %v2350_v57  ;;  %v2581_v34 = vshrl.u32 %v2550_v18, 16  ;;  %v2558_v63 = vand.u32 65535, %v2554_v0  ;;  %v2559_v39 = vshrl.u32 %v2554_v0, 16 }
 0x2aa   :  { %v2464_v6 = vshrl.u32 %v7345_v58, %v2462_v17  ;;  %v2467_v40 = vadd.s32 127, %v2466_v21  ;;  %5309 = vst [vmem:[#allocation2 + $0x60] sm:$0xff] %v2351_v44  ;;  %v2672_v28 = vadd.s32 1, %v5425_v62  ;;  %v2820_v61 = vand.u32 2139095040, %v5709_v54 }
 0x2ab   :  { %v2583_v15 = vmul.u32 %v2581_v34, %v7352_v42  ;;  %v2543_v47 = vsel %vm2539_vm10, %v2523_v13, %v2526_v30  ;;  %v2561_v1 = vmul.u32 %v2559_v39, %v7352_v42  ;;  %v2545_v58 = vsel %vm2541_vm12, %v2529_v7, %v2544_v32 }
 0x2ac   :  { %v2465_v49 = vor.u32 %v2464_v6, %v2463_v27  ;;  %v2468_v9 = vshll.u32 %v2467_v40, 23  ;;  %v2562_v37 = vmul.u32 %v2558_v63, %v7377_v23  ;;  %v2584_v11 = vmul.u32 %v2580_v41, %v7377_v23 }
 0x2ad   :  { %v2586_v52 = vshll.u32 %v2583_v15, 16  ;;  %v2560_v62 = vmul.u32 %v2558_v63, %v7352_v42  ;;  %v2564_v24 = vshll.u32 %v2561_v1, 16  ;;  %v2582_v5 = vmul.u32 %v2580_v41, %v7352_v42 }
 0x2ae   :  { %v2469_v48 = vor.u32 4788187, %v2468_v9  ;;  %v2472_v38 = vcvt.s32.f32 %v2465_v49  ;;  %v2563_v55 = vmul.u32 %v2559_v39, %v7377_v23  ;;  %v2566_v30 = vshll.u32 %v2562_v37, 16 }
 0x2af   :  { %v2585_v13 = vmul.u32 %v2581_v34, %v7377_v23  ;;  %vm2568_vm13 = vc.u32 %v2560_v62, %v2564_v24  ;;  %v2570_v7 = vadd.s32 %v2564_v24, %v2560_v62  ;;  %vm2590_vm1 = vc.u32 %v2582_v5, %v2586_v52 }
 0x2b0   :  { %v2470_v22 = vand.u32 2147483647, %v2469_v48  ;;  %v2569_v32 = vsel %vm2568_vm13, 1, %v9469_v2  ;;  %v2588_v33 = vshll.u32 %v2584_v11, 16  ;;  %v2591_v59 = vsel %vm2590_vm1, 1, %v9469_v2 }
 0x2b1   :  { %v2592_v16 = vadd.s32 %v2586_v52, %v2582_v5  ;;  %v2571_v46 = vadd.s32 %v2569_v32, %v2563_v55  ;;  %vm2572_vm0 = vc.u32 %v2570_v7, %v2566_v30  ;;  %v2593_v42 = vadd.s32 %v2591_v59, %v2585_v13 }
 0x2b2   :  { %v2473_v25 = vmul.f32 %v2472_v38, %v2470_v22  ;;  %v2565_v14 = vshrl.u32 %v2561_v1, 16  ;;  %v2573_v18 = vsel %vm2572_vm0, 1, %v9469_v2  ;;  %vm2673_vm3 = vcmp.gt.s32.totalorder %v2672_v28, 0 }
 0x2b3   :  { %vm2594_vm2 = vc.u32 %v2592_v16, %v2588_v33  ;;  %v2575_v43 = vadd.s32 %v2573_v18, %v2571_v46  ;;  %v2674_v17 = vsel %vm2673_vm3, %v2672_v28, 0  ;;  %v2546_v27 = vsel %vm2540_vm11, %v2543_v47, %v2545_v58 }
 0x2b4   :  { %v2474_v23 = vxor.u32 2147483648, %v2473_v25  ;;  %v2595_v57 = vsel %vm2594_vm2, 1, %v9469_v2  ;;  %v2587_v21 = vshrl.u32 %v2583_v15, 16  ;;  %v2676_v0 = vand.u32 31, %v2674_v17 }
 0x2b5   :  { %v2597_v44 = vadd.s32 %v2595_v57, %v2593_v42  ;;  %v2567_v34 = vshrl.u32 %v2562_v37, 16  ;;  %v2576_v6 = vadd.s32 %v2575_v43, %v2565_v14  ;;  %v2589_v40 = vshrl.u32 %v2584_v11, 16 }
 0x2b6   :  { %v2475_v41 = vsel %vm2354_vm5, %v2474_v23, %v2473_v25  ;;  %v7447_v49 = vsub.s32 32, %v2676_v0  ;;  %v2679_v28 = vshll.u32 %v9473_v31, %v2676_v0  ;;  %v7452_v15 = vadd.s32 %v2592_v16, %v2588_v33 }
 0x2b7   :  { %v2478_v63 = vsel %vm7360_vm4, %v5847_v51, %v2475_v41  ;;  %v2598_v39 = vadd.s32 %v2597_v44, %v2587_v21  ;;  %v7450_v9 = vadd.s32 %v2576_v6, %v2567_v34  ;;  %v2600_v47 = vmul.u32 %v7340_v36, %v2546_v27 }
 0x2b8   :  { %v2480_v19 = vmul.f32 %v2478_v63, %v2478_v63  ;;  %v2680_v58 = vshrl.u32 %v9474_v45, %v7447_v49  ;;  %v2682_v37 = vshll.u32 %v9474_v45, %v2676_v0  ;;  %v2683_v26 = vshrl.u32 %v9475_v3, %v7447_v49 }
 0x2b9   :  { %v2599_v1 = vadd.s32 %v2598_v39, %v2589_v40  ;;  %vm2602_vm5 = vc.u32 %v7450_v9, %v7452_v15  ;;  %v7462_v48 = vshrl.u32 %v2674_v17, 5  ;;  %v2685_v36 = vshll.u32 %v9475_v3, %v2676_v0 }
 0x2ba   :  { %v2481_v11 = vmul.f32 -0.001358992, %v2480_v19  ;;  %v2488_v52 = vmul.f32 -0.00019511016, %v2480_v19  ;;  %v7464_v24 = vor.u32 %v2680_v58, %v2679_v28  ;;  %v2686_v5 = vshrl.u32 %v9476_v8, %v7447_v49 }
 0x2bb   :  { %v2603_v62 = vadd.s32 1, %v2599_v1  ;;  %v2688_v30 = vshll.u32 %v9476_v8, %v2676_v0  ;;  %v2689_v13 = vshrl.u32 %v9477_v4, %v7447_v49  ;;  %v7472_v7 = vor.u32 %v2683_v26, %v2682_v37 }
 0x2bc   :  { %v2482_v38 = vadd.f32 0.041655596, %v2481_v11  ;;  %v2489_v55 = vadd.f32 0.008332121, %v2488_v52  ;;  %v2691_v32 = vshll.u32 %v9477_v4, %v2676_v0  ;;  %v2692_v33 = vshrl.u32 %v9481_v10, %v7447_v49 }
 0x2bd   :  { %v2604_v22 = vsel %vm2602_vm5, %v2603_v62, %v2599_v1  ;;  %v2690_v46 = vor.u32 %v2689_v13, %v2688_v30  ;;  %v2687_v42 = vor.u32 %v2686_v5, %v2685_v36  ;;  %vm2694_vm4 = vcmp.lt.s32.totalorder %v7462_v48, 1 }
 0x2be   :  { %v2483_v59 = vmul.f32 %v2482_v38, %v2480_v19  ;;  %v2490_v16 = vmul.f32 %v2489_v55, %v2480_v19  ;;  %v2605_v25 = vadd.s32 %v2604_v22, %v2600_v47  ;;  %v2693_v14 = vor.u32 %v2692_v33, %v2691_v32 }
 0x2bf   :  { %vm2696_vm6 = vcmp.lt.s32.totalorder %v7462_v48, 3  ;;  %vm2697_vm9 = vcmp.lt.s32.totalorder %v7462_v48, 4  ;;  %v2497_v57 = vand.u32 3, %v7421_v50  ;;  %v2670_v17 = vor.u32 8388608, %v7349_v60 }
 0x2c0   :  { %v2484_v18 = vadd.f32 -0.4999988, %v2483_v59  ;;  %v2491_v23 = vadd.f32 -0.16666654, %v2490_v16  ;;  %v2606_v43 = vadd.s32 536870912, %v2605_v25  ;;  %v2702_v41 = vsel %vm2694_vm4, %v7464_v24, %v7472_v7 }
 0x2c1   :  { %v2703_v27 = vsel %vm2697_vm9, %v2690_v46, 920167782  ;;  %vm2495_vm7 = vweird.f32 %v5847_v51  ;;  %vm2695_vm8 = vcmp.lt.s32.totalorder %v7462_v48, 2  ;;  %v2707_v60 = vsel %vm2697_vm9, %v2693_v14, 1326507024 }
 0x2c2   :  { %v2485_v21 = vmul.f32 %v2484_v18, %v2480_v19  ;;  %v2492_v44 = vmul.f32 %v2491_v23, %v2480_v19  ;;  %v7484_v0 = vshrl.u32 %v2606_v43, 30  ;;  %v2704_v50 = vsel %vm2696_vm6, %v2687_v42, %v2703_v27 }
 0x2c3   :  { %v2821_v34 = vshrl.u32 %v2820_v61, 23  ;;  %v2706_v28 = vsel %vm2694_vm4, %v7472_v7, %v2687_v42  ;;  %vm2498_vm10 = vcmp.lt.s32.totalorder %v2497_v57, 2  ;;  %v2705_v19 = vsel %vm2695_vm8, %v2702_v41, %v2704_v50 }
 0x2c4   :  { %v2486_v6 = vadd.f32 1.0, %v2485_v21  ;;  %v2493_v40 = vadd.f32 1.0, %v2492_v44  ;;  %v2608_v39 = vshll.u32 %v7484_v0, 30  ;;  %v2708_v47 = vsel %vm2696_vm6, %v2690_v46, %v2707_v60 }
 0x2c5   :  { %v7506_v1 = vshll.u32 %v2670_v17, 8  ;;  %vm2499_vm14 = vcmp.eq.s32.totalorder %v2497_v57, 0  ;;  %vm2502_vm12 = vcmp.eq.s32.totalorder %v2497_v57, 2  ;;  %v2678_v26 = vshrl.u32 %v9473_v31, %v7447_v49 }
 0x2c6   :  { %v2494_v58 = vmul.f32 %v2493_v40, %v2478_v63  ;;  %v2503_v61 = vxor.u32 2147483648, %v2486_v6  ;;  %v2609_v37 = vsub.s32 %v2605_v25, %v2608_v39  ;;  %v2709_v11 = vsel %vm2695_vm8, %v2706_v28, %v2708_v47 }
 0x2c7   :  { %v2736_v52 = vshrl.u32 %v2705_v19, 16  ;;  %v2699_v5 = vsel %vm2697_vm9, %v2687_v42, 2102212464  ;;  %v2711_v38 = vand.u32 65535, %v7506_v1  ;;  %v2712_v63 = vshrl.u32 %v7506_v1, 16 }
 0x2c8   :  { %v2500_v62 = vxor.u32 2147483648, %v2494_v58  ;;  %vm2610_vm11 = vcmp.lt.s32.totalorder %v2609_v37, 0  ;;  %v2611_v36 = vsub.s32 0, %v2609_v37  ;;  %v2713_v55 = vand.u32 65535, %v2709_v11 }
 0x2c9   :  { %v2714_v30 = vshrl.u32 %v2709_v11, 16  ;;  %v2504_v22 = vsel %vm2502_vm12, %v2503_v61, %v2494_v58  ;;  %v2735_v49 = vand.u32 65535, %v2705_v19  ;;  %v2738_v16 = vmul.u32 %v2736_v52, %v2711_v38 }
 0x2ca   :  { %v2501_v13 = vsel %vm2499_vm14, %v2486_v6, %v2500_v62  ;;  %v2612_v32 = vsel %vm2610_vm11, %v2611_v36, %v2609_v37  ;;  %v5428_v25 = vadd.s32 4294967169, %v2821_v34  ;;  %v2601_v42 = vadd.s32 %v7452_v15, %v7450_v9 }
 0x2cb   :  { %v2505_v33 = vsel %vm2498_vm10, %v2501_v13, %v2504_v22  ;;  %v2613_v59 = vclz %v2612_v32  ;;  %v2716_v14 = vmul.u32 %v2714_v30, %v2711_v38  ;;  %v2717_v18 = vmul.u32 %v2713_v55, %v2712_v63 }
 0x2cc   :  { %v2506_v46 = vsel %vm2495_vm7, nan, %v2505_v33  ;;  %v2631_v43 = vsub.s32 4, %v7484_v0  ;;  %v2698_v17 = vsel %vm2694_vm4, %v2678_v26, %v7464_v24  ;;  %v2700_v57 = vsel %vm2696_vm6, %v7472_v7, %v2699_v5 }
 0x2cd   :  { %v5423_v23 = vadd.s32 4294967294, %v2613_v59  ;;  %5310 = vst [vmem:[#allocation2 + $0x68] sm:$0xff] %v2506_v46  ;;  %v2715_v27 = vmul.u32 %v2713_v55, %v2711_v38  ;;  %v2719_v51 = vshll.u32 %v2716_v14, 16  ;;  %v2737_v21 = vmul.u32 %v2735_v49, %v2711_v38 }
 0x2ce   :  { %v2739_v44 = vmul.u32 %v2735_v49, %v2712_v63  ;;  %v2718_v9 = vmul.u32 %v2714_v30, %v2712_v63  ;;  %v2720_v15 = vshrl.u32 %v2716_v14, 16  ;;  %v2741_v41 = vshll.u32 %v2738_v16, 16 }
 0x2cf   :  { %vm5424_vm15 = vcmp.lt.s32.totalorder %v5423_v23, 0  ;;  %v2721_v60 = vshll.u32 %v2717_v18, 16  ;;  %vm2723_vm13 = vc.u32 %v2715_v27, %v2719_v51  ;;  %v2725_v34 = vadd.s32 %v2719_v51, %v2715_v27 }
 0x2d0   :  { %v2616_v50 = vsel %vm5424_vm15, 0, %v5423_v23  ;;  %v2724_v24 = vsel %vm2723_vm13, 1, %v9469_v2  ;;  %v2740_v39 = vmul.u32 %v2736_v52, %v2712_v63  ;;  %vm2745_vm0 = vc.u32 %v2737_v21, %v2741_v41 }
 0x2d1   :  { %v2617_v6 = vsub.s32 32, %v2616_v50  ;;  %v2621_v40 = vsub.s32 4294967266, %v2616_v50  ;;  %v2618_v28 = vshll.u32 %v2609_v37, %v2616_v50  ;;  %v2726_v7 = vadd.s32 %v2724_v24, %v2718_v9 }
 0x2d2   :  { %vm2727_vm1 = vc.u32 %v2725_v34, %v2721_v60  ;;  %v2746_v61 = vsel %vm2745_vm0, 1, %v9469_v2  ;;  %v2743_v11 = vshll.u32 %v2739_v44, 16  ;;  %v2747_v62 = vadd.s32 %v2741_v41, %v2737_v21 }
 0x2d3   :  { %v2619_v19 = vshrl.u32 %v2601_v42, %v2617_v6  ;;  %v2622_v47 = vadd.s32 127, %v2621_v40  ;;  %v2728_v58 = vsel %vm2727_vm1, 1, %v9469_v2  ;;  %v2748_v36 = vadd.s32 %v2746_v61, %v2740_v39 }
 0x2d4   :  { %v2730_v26 = vadd.s32 %v2728_v58, %v2726_v7  ;;  %vm2509_vm2 = vcmp.lt.s32.totalorder %v5890_v53, 0  ;;  %v2827_v55 = vadd.s32 1, %v5428_v25  ;;  %v2701_v37 = vsel %vm2695_vm8, %v2698_v17, %v2700_v57 }
 0x2d5   :  { %v2620_v5 = vor.u32 %v2619_v19, %v2618_v28  ;;  %v2623_v38 = vshll.u32 %v2622_v47, 23  ;;  %vm2749_vm3 = vc.u32 %v2747_v62, %v2743_v11  ;;  %v2817_v63 = vand.u32 2147483647, %v5709_v54 }
 0x2d6   :  { %v2731_v52 = vadd.s32 %v2730_v26, %v2720_v15  ;;  %v2722_v13 = vshrl.u32 %v2717_v18, 16  ;;  %v2750_v22 = vsel %vm2749_vm3, 1, %v9469_v2  ;;  %vm2828_vm5 = vcmp.gt.s32.totalorder %v2827_v55, 0 }
 0x2d7   :  { %v2624_v30 = vor.u32 4788187, %v2623_v38  ;;  %v2632_v32 = vsel %vm2509_vm2, %v2631_v43, %v7484_v0  ;;  %v2742_v49 = vshrl.u32 %v2738_v16, 16  ;;  %v2752_v33 = vadd.s32 %v2750_v22, %v2748_v36 }
 0x2d8   :  { %v2829_v59 = vsel %vm2828_vm5, %v2827_v55, 0  ;;  %v2627_v46 = vcvt.s32.f32 %v2620_v5  ;;  %v7539_v48 = vadd.s32 %v2731_v52, %v2722_v13  ;;  %vm7543_vm4 = vcmp.le.f32.partialorder %v2507_v20, 0.7853982 }
 0x2d9   :  { %v2625_v25 = vand.u32 2147483647, %v2624_v30  ;;  %v2831_v42 = vand.u32 31, %v2829_v59  ;;  %v2744_v18 = vshrl.u32 %v2739_v44, 16  ;;  %v2753_v23 = vadd.s32 %v2752_v33, %v2742_v49 }
 0x2da   :  { %v7547_v57 = vadd.s32 %v2747_v62, %v2743_v11  ;;  %v2824_v0 = vand.u32 8388607, %v2817_v63  ;;  %v2634_v43 = vsel %vm7543_vm4, 0, %v2632_v32  ;;  %v2755_v51 = vmul.u32 %v7506_v1, %v2701_v37 }
 0x2db   :  { %v2628_v17 = vmul.f32 %v2627_v46, %v2625_v25  ;;  %v7551_v16 = vsub.s32 32, %v2831_v42  ;;  %v2754_v27 = vadd.s32 %v2753_v23, %v2744_v18  ;;  %v7556_v20 = vshrl.u32 %v2829_v59, 5 }
 0x2dc   :  { %vm2757_vm6 = vc.u32 %v7539_v48, %v7547_v57  ;;  %v2837_v44 = vshll.u32 %v9474_v45, %v2831_v42  ;;  %v2840_v34 = vshll.u32 %v9475_v3, %v2831_v42  ;;  %v2843_v6 = vshll.u32 %v9476_v8, %v2831_v42 }
 0x2dd   :  { %v2629_v21 = vxor.u32 2147483648, %v2628_v17  ;;  %v2838_v9 = vshrl.u32 %v9475_v3, %v7551_v16  ;;  %v2758_v15 = vadd.s32 1, %v2754_v27  ;;  %v2841_v41 = vshrl.u32 %v9476_v8, %v7551_v16 }
 0x2de   :  { %v2844_v50 = vshrl.u32 %v9477_v4, %v7551_v16  ;;  %v2847_v1 = vshrl.u32 %v9481_v10, %v7551_v16  ;;  %v2846_v40 = vshll.u32 %v9477_v4, %v2831_v42  ;;  %v2835_v28 = vshrl.u32 %v9474_v45, %v7551_v16 }
 0x2df   :  { %v2630_v60 = vsel %vm2509_vm2, %v2629_v21, %v2628_v17  ;;  %v2759_v39 = vsel %vm2757_vm6, %v2758_v15, %v2754_v27  ;;  %v7579_v7 = vor.u32 %v2838_v9, %v2837_v44  ;;  %v7581_v58 = vor.u32 %v2841_v41, %v2840_v34 }
 0x2e0   :  { %v2633_v24 = vsel %vm7543_vm4, %v5890_v53, %v2630_v60  ;;  %v2760_v47 = vadd.s32 %v2759_v39, %v2755_v51  ;;  %v2848_v61 = vor.u32 %v2847_v1, %v2846_v40  ;;  %v2651_v26 = vadd.s32 3, %v2634_v43 }
 0x2e1   :  { %v2635_v19 = vmul.f32 %v2633_v24, %v2633_v24  ;;  %v2825_v11 = vor.u32 8388608, %v2824_v0  ;;  %v2834_v62 = vshll.u32 %v9473_v31, %v2831_v42  ;;  %v2845_v36 = vor.u32 %v2844_v50, %v2843_v6 }
 0x2e2   :  { %v2761_v55 = vadd.s32 536870912, %v2760_v47  ;;  %vm2852_vm9 = vcmp.lt.s32.totalorder %v7556_v20, 4  ;;  %vm2849_vm7 = vcmp.lt.s32.totalorder %v7556_v20, 1  ;;  %vm2851_vm8 = vcmp.lt.s32.totalorder %v7556_v20, 3 }
 0x2e3   :  { %v2636_v5 = vmul.f32 -0.001358992, %v2635_v19  ;;  %v2643_v38 = vmul.f32 -0.00019511016, %v2635_v19  ;;  %v7585_v37 = vor.u32 %v2835_v28, %v2834_v62  ;;  %v2862_v52 = vsel %vm2852_vm9, %v2848_v61, 1326507024 }
 0x2e4   :  { %v7591_v22 = vshrl.u32 %v2761_v55, 30  ;;  %v2861_v32 = vsel %vm2849_vm7, %v7579_v7, %v7581_v58  ;;  %v2858_v49 = vsel %vm2852_vm9, %v2845_v36, 920167782  ;;  %v2863_v33 = vsel %vm2851_vm8, %v2845_v36, %v2862_v52 }
 0x2e5   :  { %v2637_v30 = vadd.f32 0.041655596, %v2636_v5  ;;  %v2644_v13 = vadd.f32 0.008332121, %v2643_v38  ;;  %v7601_v59 = vshll.u32 %v2825_v11, 8  ;;  %vm2850_vm10 = vcmp.lt.s32.totalorder %v7556_v20, 2 }
 0x2e6   :  { %v2763_v42 = vshll.u32 %v7591_v22, 30  ;;  %v2652_v14 = vand.u32 3, %v2651_v26  ;;  %v2857_v18 = vsel %vm2849_vm7, %v7585_v37, %v7579_v7  ;;  %v2864_v23 = vsel %vm2850_vm10, %v2861_v32, %v2863_v33 }
 0x2e7   :  { %v2638_v25 = vmul.f32 %v2637_v30, %v2635_v19  ;;  %v2645_v46 = vmul.f32 %v2644_v13, %v2635_v19  ;;  %v2859_v27 = vsel %vm2851_vm8, %v7581_v58, %v2858_v49  ;;  %v2866_v51 = vand.u32 65535, %v7601_v59 }
 0x2e8   :  { %v2764_v43 = vsub.s32 %v2760_v47, %v2763_v42  ;;  %v2867_v21 = vshrl.u32 %v7601_v59, 16  ;;  %v2868_v44 = vand.u32 65535, %v2864_v23  ;;  %v2869_v9 = vshrl.u32 %v2864_v23, 16 }
 0x2e9   :  { %v2639_v17 = vadd.f32 -0.4999988, %v2638_v25  ;;  %v2646_v0 = vadd.f32 -0.16666654, %v2645_v46  ;;  %vm2650_vm12 = vweird.f32 %v5890_v53  ;;  %vm2653_vm11 = vcmp.lt.s32.totalorder %v2652_v14, 2 }
 0x2ea   :  { %vm2765_vm14 = vcmp.lt.s32.totalorder %v2764_v43, 0  ;;  %v2766_v50 = vsub.s32 0, %v2764_v43  ;;  %v2860_v1 = vsel %vm2850_vm10, %v2857_v18, %v2859_v27  ;;  %v2871_v60 = vmul.u32 %v2869_v9, %v2866_v51 }
 0x2eb   :  { %v2640_v15 = vmul.f32 %v2639_v17, %v2635_v19  ;;  %v2647_v41 = vmul.f32 %v2646_v0, %v2635_v19  ;;  %v7619_v39 = vmul.u32 %v2868_v44, %v2867_v21  ;;  %vm2654_vm15 = vcmp.eq.s32.totalorder %v2652_v14, 0 }
 0x2ec   :  { %v2767_v40 = vsel %vm2765_vm14, %v2766_v50, %v2764_v43  ;;  %vm2657_vm13 = vcmp.eq.s32.totalorder %v2652_v14, 2  ;;  %v2874_v47 = vshll.u32 %v2871_v60, 16  ;;  %v2870_v26 = vmul.u32 %v2868_v44, %v2866_v51 }
 0x2ed   :  { %v2641_v34 = vadd.f32 1.0, %v2640_v15  ;;  %v2648_v6 = vadd.f32 1.0, %v2647_v41  ;;  %v2768_v28 = vclz %v2767_v40  ;;  %v2972_v11 = vand.u32 2147483647, %v5734_v12 }
 0x2ee   :  { %v2756_v62 = vadd.s32 %v7547_v57, %v7539_v48  ;;  %v2873_v5 = vmul.u32 %v2869_v9, %v2867_v21  ;;  %v2890_v38 = vand.u32 65535, %v2860_v1  ;;  %v2876_v52 = vshll.u32 %v7619_v39, 16 }
 0x2ef   :  { %v2649_v61 = vmul.f32 %v2648_v6, %v2633_v24  ;;  %v2658_v19 = vxor.u32 2147483648, %v2641_v34  ;;  %v5426_v36 = vadd.s32 4294967294, %v2768_v28  ;;  %vm2878_vm1 = vc.u32 %v2870_v26, %v2874_v47 }
 0x2f0   :  { %v2880_v30 = vadd.s32 %v2874_v47, %v2870_v26  ;;  %vm2664_vm0 = vcmp.lt.s32.totalorder %v5938_v29, 0  ;;  %v2879_v24 = vsel %vm2878_vm1, 1, %v9469_v2  ;;  %v2891_v32 = vshrl.u32 %v2860_v1, 16 }
 0x2f1   :  { %v2655_v55 = vxor.u32 2147483648, %v2649_v61  ;;  %v2659_v13 = vsel %vm2657_vm13, %v2658_v19, %v2649_v61  ;;  %vm5427_vm2 = vcmp.lt.s32.totalorder %v5426_v36, 0  ;;  %v2881_v25 = vadd.s32 %v2879_v24, %v2873_v5 }
 0x2f2   :  { %v2771_v33 = vsel %vm5427_vm2, 0, %v5426_v36  ;;  %vm2882_vm3 = vc.u32 %v2880_v30, %v2876_v52  ;;  %v2833_v42 = vshrl.u32 %v9473_v31, %v7551_v16  ;;  %vm7635_vm5 = vcmp.le.f32.partialorder %v2662_v35, 0.7853982 }
 0x2f3   :  { %v2656_v49 = vsel %vm2654_vm15, %v2641_v34, %v2655_v55  ;;  %v2772_v57 = vsub.s32 32, %v2771_v33  ;;  %v2776_v46 = vsub.s32 4294967266, %v2771_v33  ;;  %v2883_v17 = vsel %vm2882_vm3, 1, %v9469_v2 }
 0x2f4   :  { %v2660_v48 = vsel %vm2653_vm11, %v2656_v49, %v2659_v13  ;;  %v2893_v0 = vmul.u32 %v2891_v32, %v2866_v51  ;;  %v2894_v27 = vmul.u32 %v2890_v38, %v2867_v21  ;;  %v2773_v14 = vshll.u32 %v2764_v43, %v2771_v33 }
 0x2f5   :  { %v2661_v18 = vsel %vm2650_vm12, nan, %v2660_v48  ;;  %v2774_v44 = vshrl.u32 %v2756_v62, %v2772_v57  ;;  %v2777_v9 = vadd.s32 127, %v2776_v46  ;;  %v2885_v15 = vadd.s32 %v2883_v17, %v2881_v25 }
 0x2f6   :  { %5311 = vst [vmem:[#allocation2 + $0x70] sm:$0xff] %v2661_v18  ;;  %v2786_v16 = vsub.s32 4, %v7591_v22  ;;  %v2853_v53 = vsel %vm2849_vm7, %v2833_v42, %v7585_v37  ;;  %v2892_v41 = vmul.u32 %v2890_v38, %v2866_v51  ;;  %v2896_v35 = vshll.u32 %v2893_v0, 16 }
 0x2f7   :  { %v2775_v50 = vor.u32 %v2774_v44, %v2773_v14  ;;  %v2778_v1 = vshll.u32 %v2777_v9, 23  ;;  %v2875_v34 = vshrl.u32 %v2871_v60, 16  ;;  %v2895_v6 = vmul.u32 %v2891_v32, %v2867_v21 }
 0x2f8   :  { %v2898_v40 = vshll.u32 %v2894_v27, 16  ;;  %vm2900_vm4 = vc.u32 %v2892_v41, %v2896_v35  ;;  %v2902_v28 = vadd.s32 %v2896_v35, %v2892_v41  ;;  %v2975_v43 = vand.u32 2139095040, %v5734_v12 }
 0x2f9   :  { %v2779_v47 = vor.u32 4788187, %v2778_v1  ;;  %v2854_v61 = vsel %vm2852_vm9, %v7581_v58, 2102212464  ;;  %v2886_v19 = vadd.s32 %v2885_v15, %v2875_v34  ;;  %v2901_v26 = vsel %vm2900_vm4, 1, %v9469_v2 }
 0x2fa   :  { %v2787_v37 = vsel %vm2664_vm0, %v2786_v16, %v7591_v22  ;;  %v2903_v51 = vadd.s32 %v2901_v26, %v2895_v6  ;;  %vm2904_vm6 = vc.u32 %v2902_v28, %v2898_v40  ;;  %v2976_v21 = vshrl.u32 %v2975_v43, 23 }
 0x2fb   :  { %v2780_v60 = vand.u32 2147483647, %v2779_v47  ;;  %v2782_v62 = vcvt.s32.f32 %v2775_v50  ;;  %v2877_v36 = vshrl.u32 %v7619_v39, 16  ;;  %v2905_v5 = vsel %vm2904_vm6, 1, %v9469_v2 }
 0x2fc   :  { %v2855_v58 = vsel %vm2851_vm8, %v7579_v7, %v2854_v61  ;;  %v2897_v38 = vshrl.u32 %v2893_v0, 16  ;;  %v2907_v55 = vadd.s32 %v2905_v5, %v2903_v51  ;;  %v5431_v52 = vadd.s32 4294967169, %v2976_v21 }
 0x2fd   :  { %v2783_v30 = vmul.f32 %v2782_v62, %v2780_v60  ;;  %v2789_v22 = vsel %vm7635_vm5, 0, %v2787_v37  ;;  %v2887_v13 = vadd.s32 %v2886_v19, %v2877_v36  ;;  %v2899_v24 = vshrl.u32 %v2894_v27, 16 }
 0x2fe   :  { %v2908_v32 = vadd.s32 %v2907_v55, %v2897_v38  ;;  %v2982_v49 = vadd.s32 1, %v5431_v52  ;;  %v2856_v39 = vsel %vm2850_vm10, %v2853_v53, %v2855_v58  ;;  %v2906_v25 = vadd.s32 %v2902_v28, %v2898_v40 }
 0x2ff   :  { %v2784_v33 = vxor.u32 2147483648, %v2783_v30  ;;  %v2806_v48 = vadd.s32 3, %v2789_v22  ;;  %v2979_v7 = vand.u32 8388607, %v2972_v11  ;;  %v2910_v27 = vmul.u32 %v7601_v59, %v2856_v39 }
 0x300   :  { %v2909_v57 = vadd.s32 %v2908_v32, %v2899_v24  ;;  %vm2983_vm9 = vcmp.gt.s32.totalorder %v2982_v49, 0  ;;  %vm2912_vm7 = vc.u32 %v2887_v13, %v2906_v25  ;;  %v7673_v41 = vadd.s32 %v2906_v25, %v2887_v13 }
 0x301   :  { %v2785_v46 = vsel %vm2664_vm0, %v2784_v33, %v2783_v30  ;;  %v2984_v42 = vsel %vm2983_vm9, %v2982_v49, 0  ;;  %v7669_v14 = vand.u32 3, %v2806_v48  ;;  %v2980_v9 = vor.u32 8388608, %v2979_v7 }
 0x302   :  { %v2788_v18 = vsel %vm7635_vm5, %v5938_v29, %v2785_v46  ;;  %v2913_v17 = vadd.s32 1, %v2909_v57  ;;  %v2986_v0 = vand.u32 31, %v2984_v42  ;;  %v7675_v50 = vshrl.u32 %v2984_v42, 5 }
 0x303   :  { %v2790_v20 = vmul.f32 %v2788_v18, %v2788_v18  ;;  %v3130_v59 = vand.u32 2139095040, %v5771_v56  ;;  %v7697_v52 = vshll.u32 %v2980_v9, 8  ;;  %vm2809_vm8 = vcmp.eq.s32.totalorder %v7669_v14, 0 }
 0x304   :  { %v2914_v44 = vsel %vm2912_vm7, %v2913_v17, %v2909_v57  ;;  %v7671_v15 = vsub.s32 32, %v2986_v0  ;;  %v2989_v28 = vshll.u32 %v9473_v31, %v2986_v0  ;;  %v2992_v43 = vshll.u32 %v9474_v45, %v2986_v0 }
 0x305   :  { %v2791_v16 = vmul.f32 -0.001358992, %v2790_v20  ;;  %v2798_v53 = vmul.f32 -0.00019511016, %v2790_v20  ;;  %v2915_v35 = vadd.s32 %v2914_v44, %v2910_v27  ;;  %v2998_v61 = vshll.u32 %v9476_v8, %v2986_v0 }
 0x306   :  { %v2990_v23 = vshrl.u32 %v9474_v45, %v7671_v15  ;;  %v2993_v1 = vshrl.u32 %v9475_v3, %v7671_v15  ;;  %v2996_v47 = vshrl.u32 %v9476_v8, %v7671_v15  ;;  %v2999_v19 = vshrl.u32 %v9477_v4, %v7671_v15 }
 0x307   :  { %v2792_v34 = vadd.f32 0.041655596, %v2791_v16  ;;  %v2799_v6 = vadd.f32 0.008332121, %v2798_v53  ;;  %v2916_v40 = vadd.s32 536870912, %v2915_v35  ;;  %v2995_v21 = vshll.u32 %v9475_v3, %v2986_v0 }
 0x308   :  { %v2991_v60 = vor.u32 %v2990_v23, %v2989_v28  ;;  %v7692_v62 = vor.u32 %v2993_v1, %v2992_v43  ;;  %v3000_v36 = vor.u32 %v2999_v19, %v2998_v61  ;;  %v3002_v5 = vshrl.u32 %v9481_v10, %v7671_v15 }
 0x309   :  { %v2793_v26 = vmul.f32 %v2792_v34, %v2790_v20  ;;  %v2800_v37 = vmul.f32 %v2799_v6, %v2790_v20  ;;  %v7689_v51 = vshrl.u32 %v2916_v40, 30  ;;  %vm2812_vm10 = vcmp.eq.s32.totalorder %v7669_v14, 2 }
 0x30a   :  { %v2997_v30 = vor.u32 %v2996_v47, %v2995_v21  ;;  %v3001_v22 = vshll.u32 %v9477_v4, %v2986_v0  ;;  %vm3004_vm14 = vcmp.lt.s32.totalorder %v7675_v50, 1  ;;  %v3131_v13 = vshrl.u32 %v3130_v59, 23 }
 0x30b   :  { %v2794_v58 = vadd.f32 -0.4999988, %v2793_v26  ;;  %v2801_v38 = vadd.f32 -0.16666654, %v2800_v37  ;;  %v2918_v55 = vshll.u32 %v7689_v51, 30  ;;  %vm2808_vm12 = vcmp.lt.s32.totalorder %v7669_v14, 2 }
 0x30c   :  { %vm3007_vm11 = vcmp.lt.s32.totalorder %v7675_v50, 4  ;;  %vm2805_vm15 = vweird.f32 %v5938_v29  ;;  %v3003_v33 = vor.u32 %v3002_v5, %v3001_v22  ;;  %vm3006_vm13 = vcmp.lt.s32.totalorder %v7675_v50, 3 }
 0x30d   :  { %v2795_v24 = vmul.f32 %v2794_v58, %v2790_v20  ;;  %v2802_v32 = vmul.f32 %v2801_v38, %v2790_v20  ;;  %v7704_v49 = vsub.s32 %v2915_v35, %v2918_v55  ;;  %v3012_v39 = vsel %vm3004_vm14, %v2991_v60, %v7692_v62 }
 0x30e   :  { %v3013_v25 = vsel %vm3007_vm11, %v3000_v36, 920167782  ;;  %vm2819_vm1 = vcmp.lt.s32.totalorder %v5709_v54, 0  ;;  %v3021_v42 = vand.u32 65535, %v7697_v52  ;;  %v3022_v17 = vshrl.u32 %v7697_v52, 16 }
 0x30f   :  { %v2796_v48 = vadd.f32 1.0, %v2795_v24  ;;  %v2803_v57 = vadd.f32 1.0, %v2802_v32  ;;  %vm2920_vm0 = vcmp.lt.s32.totalorder %v7704_v49, 0  ;;  %v2921_v7 = vsub.s32 0, %v7704_v49 }
 0x310   :  { %v3014_v46 = vsel %vm3006_vm13, %v2997_v30, %v3013_v25  ;;  %v3127_v0 = vand.u32 2147483647, %v5771_v56  ;;  %vm3005_vm2 = vcmp.lt.s32.totalorder %v7675_v50, 2  ;;  %v3016_v53 = vsel %vm3004_vm14, %v7692_v62, %v2997_v30 }
 0x311   :  { %v2804_v20 = vmul.f32 %v2803_v57, %v2788_v18  ;;  %v2813_v27 = vxor.u32 2147483648, %v2796_v48  ;;  %v2922_v44 = vsel %vm2920_vm0, %v2921_v7, %v7704_v49  ;;  %v3015_v16 = vsel %vm3005_vm2, %v3012_v39, %v3014_v46 }
 0x312   :  { %v2923_v9 = vclz %v2922_v44  ;;  %v3017_v35 = vsel %vm3007_vm11, %v3003_v33, 1326507024  ;;  %v2988_v18 = vshrl.u32 %v9473_v31, %v7671_v15  ;;  %v5434_v59 = vadd.s32 4294967169, %v3131_v13 }
 0x313   :  { %v2810_v23 = vxor.u32 2147483648, %v2804_v20  ;;  %v3018_v1 = vsel %vm3006_vm13, %v3000_v36, %v3017_v35  ;;  %v2941_v6 = vsub.s32 4, %v7689_v51  ;;  %v3009_v40 = vsel %vm3007_vm11, %v2997_v30, 2102212464 }
 0x314   :  { %v5429_v34 = vadd.s32 4294967294, %v2923_v9  ;;  %v3045_v28 = vand.u32 65535, %v3015_v16  ;;  %v2814_v47 = vsel %vm2812_vm10, %v2813_v27, %v2804_v20  ;;  %v3019_v15 = vsel %vm3005_vm2, %v3016_v53, %v3018_v1 }
 0x315   :  { %v2811_v43 = vsel %vm2809_vm8, %v2796_v48, %v2810_v23  ;;  %v3046_v61 = vshrl.u32 %v3015_v16, 16  ;;  %v3023_v26 = vand.u32 65535, %v3019_v15  ;;  %v3024_v37 = vshrl.u32 %v3019_v15, 16 }
 0x316   :  { %v2815_v19 = vsel %vm2808_vm12, %v2811_v43, %v2814_v47  ;;  %vm5430_vm3 = vcmp.lt.s32.totalorder %v5429_v34, 0  ;;  %v3008_v5 = vsel %vm3004_vm14, %v2988_v18, %v2991_v60  ;;  %v2942_v30 = vsel %vm2819_vm1, %v2941_v6, %v7689_v51 }
 0x317   :  { %v2816_v21 = vsel %vm2805_vm15, nan, %v2815_v19  ;;  %v2926_v36 = vsel %vm5430_vm3, 0, %v5429_v34  ;;  %v3048_v58 = vmul.u32 %v3046_v61, %v3021_v42  ;;  %v3049_v22 = vmul.u32 %v3045_v28, %v3022_v17 }
 0x318   :  { %v2927_v38 = vsub.s32 32, %v2926_v36  ;;  %v2931_v55 = vsub.s32 4294967266, %v2926_v36  ;;  %5312 = vst [vmem:[#allocation2 + $0x78] sm:$0xff] %v2816_v21  ;;  %vm7755_vm5 = vcmp.le.f32.partialorder %v2817_v63, 0.7853982  ;;  %v3010_v29 = vsel %vm3006_vm13, %v7692_v62, %v3009_v40 }
 0x319   :  { %v3026_v60 = vmul.u32 %v3024_v37, %v3021_v42  ;;  %v3027_v13 = vmul.u32 %v3023_v26, %v3022_v17  ;;  %v3047_v24 = vmul.u32 %v3045_v28, %v3021_v42  ;;  %v2928_v32 = vshll.u32 %v7704_v49, %v2926_v36 }
 0x31a   :  { %v2929_v33 = vshrl.u32 %v7673_v41, %v2927_v38  ;;  %v2932_v51 = vadd.s32 127, %v2931_v55  ;;  %v3051_v39 = vshll.u32 %v3048_v58, 16  ;;  %v3025_v25 = vmul.u32 %v3023_v26, %v3021_v42 }
 0x31b   :  { %v3028_v48 = vmul.u32 %v3024_v37, %v3022_v17  ;;  %v3029_v57 = vshll.u32 %v3026_v60, 16  ;;  %v3050_v63 = vmul.u32 %v3046_v61, %v3022_v17  ;;  %v3031_v20 = vshll.u32 %v3027_v13, 16 }
 0x31c   :  { %v2930_v7 = vor.u32 %v2929_v33, %v2928_v32  ;;  %v2933_v46 = vshll.u32 %v2932_v51, 23  ;;  %v3053_v27 = vshll.u32 %v3049_v22, 16  ;;  %vm3055_vm6 = vc.u32 %v3047_v24, %v3051_v39 }
 0x31d   :  { %vm3033_vm4 = vc.u32 %v3025_v25, %v3029_v57  ;;  %v3035_v44 = vadd.s32 %v3029_v57, %v3025_v25  ;;  %v3057_v62 = vadd.s32 %v3051_v39, %v3047_v24  ;;  %v3052_v49 = vshrl.u32 %v3048_v58, 16 }
 0x31e   :  { %v2934_v9 = vor.u32 4788187, %v2933_v46  ;;  %v3034_v16 = vsel %vm3033_vm4, 1, %v9469_v2  ;;  %v3056_v41 = vsel %vm3055_vm6, 1, %v9469_v2  ;;  %v2937_v17 = vcvt.s32.f32 %v2930_v7 }
 0x31f   :  { %v3036_v53 = vadd.s32 %v3034_v16, %v3028_v48  ;;  %vm3037_vm9 = vc.u32 %v3035_v44, %v3031_v20  ;;  %v3058_v42 = vadd.s32 %v3056_v41, %v3050_v63  ;;  %vm3059_vm7 = vc.u32 %v3057_v62, %v3053_v27 }
 0x320   :  { %v2935_v35 = vand.u32 2147483647, %v2934_v9  ;;  %v3038_v23 = vsel %vm3037_vm9, 1, %v9469_v2  ;;  %v3060_v18 = vsel %vm3059_vm7, 1, %v9469_v2  ;;  %v3030_v1 = vshrl.u32 %v3026_v60, 16 }
 0x321   :  { %v3040_v34 = vadd.s32 %v3038_v23, %v3036_v53  ;;  %v3062_v6 = vadd.s32 %v3060_v18, %v3058_v42  ;;  %v3137_v40 = vadd.s32 1, %v5434_v59  ;;  %v2944_v43 = vsel %vm7755_vm5, 0, %v2942_v30 }
 0x322   :  { %v2938_v28 = vmul.f32 %v2937_v17, %v2935_v35  ;;  %v3032_v47 = vshrl.u32 %v3027_v13, 16  ;;  %v3054_v61 = vshrl.u32 %v3049_v22, 16  ;;  %v3011_v37 = vsel %vm3005_vm2, %v3008_v5, %v3010_v29 }
 0x323   :  { %v3041_v15 = vadd.s32 %v3040_v34, %v3030_v1  ;;  %v3063_v19 = vadd.s32 %v3062_v6, %v3052_v49  ;;  %vm3138_vm8 = vcmp.gt.s32.totalorder %v3137_v40, 0  ;;  %v3134_v21 = vand.u32 8388607, %v3127_v0 }
 0x324   :  { %v2939_v26 = vxor.u32 2147483648, %v2938_v28  ;;  %v3139_v36 = vsel %vm3138_vm8, %v3137_v40, 0  ;;  %v7776_v59 = vadd.s32 %v3057_v62, %v3053_v27  ;;  %v2961_v22 = vadd.s32 3, %v2944_v43 }
 0x325   :  { %v7774_v58 = vadd.s32 %v3041_v15, %v3032_v47  ;;  %v3064_v38 = vadd.s32 %v3063_v19, %v3054_v61  ;;  %v3141_v55 = vand.u32 31, %v3139_v36  ;;  %v3065_v29 = vmul.u32 %v7697_v52, %v3011_v37 }
 0x326   :  { %v2940_v30 = vsel %vm2819_vm1, %v2939_v26, %v2938_v28  ;;  %v3135_v32 = vor.u32 8388608, %v3134_v21  ;;  %v7788_v39 = vand.u32 3, %v2961_v22  ;;  %v7790_v48 = vshrl.u32 %v3139_v36, 5 }
 0x327   :  { %v2943_v60 = vsel %vm7755_vm5, %v5709_v54, %v2940_v30  ;;  %vm3067_vm10 = vc.u32 %v7774_v58, %v7776_v59  ;;  %v3068_v50 = vadd.s32 1, %v3064_v38  ;;  %v7786_v13 = vsub.s32 32, %v3141_v55 }
 0x328   :  { %v2945_v5 = vmul.f32 %v2943_v60, %v2943_v60  ;;  %v3153_v20 = vshll.u32 %v9476_v8, %v3141_v55  ;;  %v3147_v44 = vshll.u32 %v9474_v45, %v3141_v55  ;;  %v3150_v62 = vshll.u32 %v9475_v3, %v3141_v55 }
 0x329   :  { %v3069_v24 = vsel %vm3067_vm10, %v3068_v50, %v3064_v38  ;;  %v3148_v14 = vshrl.u32 %v9475_v3, %v7786_v13  ;;  %v3151_v57 = vshrl.u32 %v9476_v8, %v7786_v13  ;;  %v3154_v52 = vshrl.u32 %v9477_v4, %v7786_v13 }
 0x32a   :  { %v2946_v33 = vmul.f32 -0.001358992, %v2945_v5  ;;  %v2953_v51 = vmul.f32 -0.00019511016, %v2945_v5  ;;  %v3070_v25 = vadd.s32 %v3069_v24, %v3065_v29  ;;  %v3145_v27 = vshrl.u32 %v9474_v45, %v7786_v13 }
 0x32b   :  { %v3157_v9 = vshrl.u32 %v9481_v10, %v7786_v13  ;;  %v3155_v53 = vor.u32 %v3154_v52, %v3153_v20  ;;  %v3144_v42 = vshll.u32 %v9473_v31, %v3141_v55  ;;  %v7808_v35 = vor.u32 %v3148_v14, %v3147_v44 }
 0x32c   :  { %v2947_v63 = vadd.f32 0.041655596, %v2946_v33  ;;  %v2954_v7 = vadd.f32 0.008332121, %v2953_v51  ;;  %v3071_v46 = vadd.s32 536870912, %v3070_v25  ;;  %v7810_v17 = vor.u32 %v3151_v57, %v3150_v62 }
 0x32d   :  { %v3156_v23 = vshll.u32 %v9477_v4, %v3141_v55  ;;  %vm2964_vm14 = vcmp.eq.s32.totalorder %v7788_v39, 0  ;;  %v7815_v6 = vor.u32 %v3145_v27, %v3144_v42  ;;  %vm3159_vm12 = vcmp.lt.s32.totalorder %v7790_v48, 1 }
 0x32e   :  { %v2948_v16 = vmul.f32 %v2947_v63, %v2945_v5  ;;  %v2955_v49 = vmul.f32 %v2954_v7, %v2945_v5  ;;  %v7805_v41 = vshrl.u32 %v3071_v46, 30  ;;  %vm3162_vm11 = vcmp.lt.s32.totalorder %v7790_v48, 4  ;;  %v9511_v63 = vld [vmem:[#allocation8_spill] sm:$0xff] }
 0x32f   :  { %v3158_v40 = vor.u32 %v3157_v9, %v3156_v23  ;;  %vm2963_vm15 = vcmp.lt.s32.totalorder %v7788_v39, 2  ;;  %v3168_v15 = vsel %vm3162_vm11, %v3155_v53, 920167782  ;;  %vm2960_vm13 = vweird.f32 %v5709_v54 }
 0x330   :  { %v2949_v18 = vadd.f32 -0.4999988, %v2948_v16  ;;  %v2956_v1 = vadd.f32 -0.16666654, %v2955_v49  ;;  %v3073_v34 = vshll.u32 %v7805_v41, 30  ;;  %vm2967_vm1 = vcmp.eq.s32.totalorder %v7788_v39, 2 }
 0x331   :  { %vm3161_vm0 = vcmp.lt.s32.totalorder %v7790_v48, 3  ;;  %v3171_v61 = vsel %vm3159_vm12, %v7808_v35, %v7810_v17  ;;  %v7829_v19 = vshll.u32 %v3135_v32, 8  ;;  %vm3160_vm3 = vcmp.lt.s32.totalorder %v7790_v48, 2 }
 0x332   :  { %v2950_v28 = vmul.f32 %v2949_v18, %v2945_v5  ;;  %v2957_v43 = vmul.f32 %v2956_v1, %v2945_v5  ;;  %v3074_v47 = vsub.s32 %v3070_v25, %v3073_v34  ;;  %v3167_v36 = vsel %vm3159_vm12, %v7815_v6, %v7808_v35 }
 0x333   :  { %v3169_v38 = vsel %vm3161_vm0, %v7810_v17, %v3168_v15  ;;  %v3172_v55 = vsel %vm3162_vm11, %v3158_v40, 1326507024  ;;  %v3176_v32 = vand.u32 65535, %v7829_v19  ;;  %v3177_v33 = vshrl.u32 %v7829_v19, 16 }
 0x334   :  { %v2951_v26 = vadd.f32 1.0, %v2950_v28  ;;  %v2958_v37 = vadd.f32 1.0, %v2957_v43  ;;  %vm3075_vm2 = vcmp.lt.s32.totalorder %v3074_v47, 0  ;;  %v3076_v21 = vsub.s32 0, %v3074_v47 }
 0x335   :  { %v3173_v5 = vsel %vm3161_vm0, %v3155_v53, %v3172_v55  ;;  %v3170_v25 = vsel %vm3160_vm3, %v3167_v36, %v3169_v38  ;;  %v3282_v7 = vand.u32 2147483647, %v9511_v63  ;;  %v3285_v46 = vand.u32 2139095040, %v9511_v63 }
 0x336   :  { %v2959_v30 = vmul.f32 %v2958_v37, %v2943_v60  ;;  %v2968_v22 = vxor.u32 2147483648, %v2951_v26  ;;  %v3077_v50 = vsel %vm3075_vm2, %v3076_v21, %v3074_v47  ;;  %v3174_v24 = vsel %vm3160_vm3, %v3171_v61, %v3173_v5 }
 0x337   :  { %v3078_v29 = vclz %v3077_v50  ;;  %v3178_v14 = vand.u32 65535, %v3174_v24  ;;  %v3179_v57 = vshrl.u32 %v3174_v24, 16  ;;  %v3066_v60 = vadd.s32 %v7776_v59, %v7774_v58 }
 0x338   :  { %v2965_v51 = vxor.u32 2147483648, %v2959_v30  ;;  %v2969_v27 = vsel %vm2967_vm1, %v2968_v22, %v2959_v30  ;;  %v3200_v16 = vand.u32 65535, %v3170_v25  ;;  %v3201_v49 = vshrl.u32 %v3170_v25, 16 }
 0x339   :  { %v5432_v52 = vadd.s32 4294967294, %v3078_v29  ;;  %v3181_v44 = vmul.u32 %v3179_v57, %v3176_v32  ;;  %v3182_v62 = vmul.u32 %v3178_v14, %v3177_v33  ;;  %v3180_v53 = vmul.u32 %v3178_v14, %v3176_v32 }
 0x33a   :  { %v2966_v20 = vsel %vm2964_vm14, %v2951_v26, %v2965_v51  ;;  %vm2974_vm4 = vcmp.lt.s32.totalorder %v5734_v12, 0  ;;  %v3143_v1 = vshrl.u32 %v9473_v31, %v7786_v13  ;;  %v3183_v34 = vmul.u32 %v3179_v57, %v3177_v33 }
 0x33b   :  { %v2970_v9 = vsel %vm2963_vm15, %v2966_v20, %v2969_v27  ;;  %vm5433_vm5 = vcmp.lt.s32.totalorder %v5432_v52, 0  ;;  %v3184_v42 = vshll.u32 %v3181_v44, 16  ;;  %v3186_v40 = vshll.u32 %v3182_v62, 16 }
 0x33c   :  { %v2971_v58 = vsel %vm2960_vm13, nan, %v2970_v9  ;;  %v3081_v59 = vsel %vm5433_vm5, 0, %v5432_v52  ;;  %v3203_v61 = vmul.u32 %v3201_v49, %v3176_v32  ;;  %v3202_v37 = vmul.u32 %v3200_v16, %v3176_v32 }
 0x33d   :  { %v3082_v23 = vsub.s32 32, %v3081_v59  ;;  %v3086_v18 = vsub.s32 4294967266, %v3081_v59  ;;  %5313 = vst [vmem:[#allocation2 + $0x80] sm:$0xff] %v2971_v58  ;;  %v3083_v39 = vshll.u32 %v3074_v47, %v3081_v59  ;;  %vm3188_vm6 = vc.u32 %v3180_v53, %v3184_v42 }
 0x33e   :  { %v3190_v28 = vadd.s32 %v3184_v42, %v3180_v53  ;;  %v3189_v54 = vsel %vm3188_vm6, 1, %v9469_v2  ;;  %v3204_v21 = vmul.u32 %v3200_v16, %v3177_v33  ;;  %v3206_v13 = vshll.u32 %v3203_v61, 16 }
 0x33f   :  { %v3084_v43 = vshrl.u32 %v3066_v60, %v3082_v23  ;;  %v3087_v15 = vadd.s32 127, %v3086_v18  ;;  %v3191_v26 = vadd.s32 %v3189_v54, %v3183_v34  ;;  %v3096_v30 = vsub.s32 4, %v7805_v41 }
 0x340   :  { %vm3192_vm9 = vc.u32 %v3190_v28, %v3186_v40  ;;  %v3185_v47 = vshrl.u32 %v3181_v44, 16  ;;  %v3205_v50 = vmul.u32 %v3201_v49, %v3177_v33  ;;  %v3208_v29 = vshll.u32 %v3204_v21, 16 }
 0x341   :  { %v3085_v36 = vor.u32 %v3084_v43, %v3083_v39  ;;  %v3088_v38 = vshll.u32 %v3087_v15, 23  ;;  %v3193_v55 = vsel %vm3192_vm9, 1, %v9469_v2  ;;  %vm3210_vm7 = vc.u32 %v3202_v37, %v3206_v13 }
 0x342   :  { %v3195_v22 = vadd.s32 %v3193_v55, %v3191_v26  ;;  %v3212_v24 = vadd.s32 %v3206_v13, %v3202_v37  ;;  %v3164_v51 = vsel %vm3162_vm11, %v7810_v17, 2102212464  ;;  %v3211_v25 = vsel %vm3210_vm7, 1, %v9469_v2 }
 0x343   :  { %v3089_v5 = vor.u32 4788187, %v3088_v38  ;;  %v3286_v14 = vshrl.u32 %v3285_v46, 23  ;;  %v3092_v60 = vcvt.s32.f32 %v3085_v36  ;;  %v3213_v52 = vadd.s32 %v3211_v25, %v3205_v50 }
 0x344   :  { %v3196_v32 = vadd.s32 %v3195_v22, %v3185_v47  ;;  %vm3214_vm8 = vc.u32 %v3212_v24, %v3208_v29  ;;  %v3097_v33 = vsel %vm2974_vm4, %v3096_v30, %v7805_v41  ;;  %v3187_v20 = vshrl.u32 %v3182_v62, 16 }
 0x345   :  { %v3090_v57 = vand.u32 2147483647, %v3089_v5  ;;  %v3215_v27 = vsel %vm3214_vm8, 1, %v9469_v2  ;;  %v5437_v44 = vadd.s32 4294967169, %v3286_v14  ;;  %vm7877_vm10 = vcmp.le.f32.partialorder %v2972_v11, 0.7853982 }
 0x346   :  { %v3207_v46 = vshrl.u32 %v3203_v61, 16  ;;  %v3217_v16 = vadd.s32 %v3215_v27, %v3213_v52  ;;  %v3163_v49 = vsel %vm3159_vm12, %v3143_v1, %v7815_v6  ;;  %v3165_v41 = vsel %vm3161_vm0, %v7808_v35, %v3164_v51 }
 0x347   :  { %v3093_v9 = vmul.f32 %v3092_v60, %v3090_v57  ;;  %v3197_v62 = vadd.s32 %v3196_v32, %v3187_v20  ;;  %v3292_v58 = vadd.s32 1, %v5437_v44  ;;  %v3099_v11 = vsel %vm7877_vm10, 0, %v3097_v33 }
 0x348   :  { %v3209_v53 = vshrl.u32 %v3204_v21, 16  ;;  %v3218_v42 = vadd.s32 %v3217_v16, %v3207_v46  ;;  %v3216_v23 = vadd.s32 %v3212_v24, %v3208_v29  ;;  %v3289_v18 = vand.u32 8388607, %v3282_v7 }
 0x349   :  { %v3094_v59 = vxor.u32 2147483648, %v3093_v9  ;;  %vm3293_vm14 = vcmp.gt.s32.totalorder %v3292_v58, 0  ;;  %v3166_v1 = vsel %vm3160_vm3, %v3163_v49, %v3165_v41  ;;  %v3116_v40 = vadd.s32 3, %v3099_v11 }
 0x34a   :  { %v3219_v35 = vadd.s32 %v3218_v42, %v3209_v53  ;;  %v3294_v34 = vsel %vm3293_vm14, %v3292_v58, 0  ;;  %vm3222_vm12 = vc.u32 %v3197_v62, %v3216_v23  ;;  %v3220_v54 = vmul.u32 %v7829_v19, %v3166_v1  ;;  %v9514_v53 = vld [vmem:[#allocation10_spill] sm:$0xff] }
 0x34b   :  { %v3095_v6 = vsel %vm2974_vm4, %v3094_v59, %v3093_v9  ;;  %v3296_v28 = vand.u32 31, %v3294_v34  ;;  %v7901_v48 = vand.u32 3, %v3116_v40  ;;  %v3290_v38 = vor.u32 8388608, %v3289_v18 }
 0x34c   :  { %v3098_v39 = vsel %vm7877_vm10, %v5734_v12, %v3095_v6  ;;  %v3223_v15 = vadd.s32 1, %v3219_v35  ;;  %v7903_v55 = vshrl.u32 %v3294_v34, 5  ;;  %v7922_v27 = vadd.s32 %v3216_v23, %v3197_v62 }
 0x34d   :  { %v3100_v43 = vmul.f32 %v3098_v39, %v3098_v39  ;;  %v7899_v61 = vsub.s32 32, %v3296_v28  ;;  %v3308_v29 = vshll.u32 %v9476_v8, %v3296_v28  ;;  %v3299_v32 = vshll.u32 %v9473_v31, %v3296_v28 }
 0x34e   :  { %v3224_v21 = vsel %vm3222_vm12, %v3223_v15, %v3219_v35  ;;  %v3302_v25 = vshll.u32 %v9474_v45, %v3296_v28  ;;  %v3305_v57 = vshll.u32 %v9475_v3, %v3296_v28  ;;  %vm3122_vm11 = vcmp.eq.s32.totalorder %v7901_v48, 2 }
 0x34f   :  { %v3101_v26 = vmul.f32 -0.001358992, %v3100_v43  ;;  %v3108_v37 = vmul.f32 -0.00019511016, %v3100_v43  ;;  %v3225_v36 = vadd.s32 %v3224_v21, %v3220_v54  ;;  %v3300_v47 = vshrl.u32 %v9474_v45, %v7899_v61 }
 0x350   :  { %v3309_v22 = vshrl.u32 %v9477_v4, %v7899_v61  ;;  %v3303_v50 = vshrl.u32 %v9475_v3, %v7899_v61  ;;  %v3306_v5 = vshrl.u32 %v9476_v8, %v7899_v61  ;;  %v3312_v52 = vshrl.u32 %v9481_v10, %v7899_v61 }
 0x351   :  { %v3102_v13 = vadd.f32 0.041655596, %v3101_v26  ;;  %v3109_v30 = vadd.f32 0.008332121, %v3108_v37  ;;  %v3226_v19 = vadd.s32 536870912, %v3225_v36  ;;  %v7924_v44 = vor.u32 %v3300_v47, %v3299_v32 }
 0x352   :  { %v3310_v60 = vor.u32 %v3309_v22, %v3308_v29  ;;  %vm3119_vm15 = vcmp.eq.s32.totalorder %v7901_v48, 0  ;;  %v7928_v9 = vor.u32 %v3303_v50, %v3302_v25  ;;  %v3307_v46 = vor.u32 %v3306_v5, %v3305_v57 }
 0x353   :  { %v3103_v24 = vmul.f32 %v3102_v13, %v3100_v43  ;;  %v3110_v51 = vmul.f32 %v3109_v30, %v3100_v43  ;;  %v7916_v14 = vshrl.u32 %v3226_v19, 30  ;;  %v3311_v16 = vshll.u32 %v9477_v4, %v3296_v28 }
 0x354   :  { %vm3118_vm13 = vcmp.lt.s32.totalorder %v7901_v48, 2  ;;  %vm3317_vm1 = vcmp.lt.s32.totalorder %v7903_v55, 4  ;;  %v7933_v58 = vshll.u32 %v3290_v38, 8  ;;  %vm3115_vm0 = vweird.f32 %v5734_v12 }
 0x355   :  { %v3104_v33 = vadd.f32 -0.4999988, %v3103_v24  ;;  %v3111_v20 = vadd.f32 -0.16666654, %v3110_v51  ;;  %v3228_v17 = vshll.u32 %v7916_v14, 30  ;;  %v3313_v59 = vor.u32 %v3312_v52, %v3311_v16 }
 0x356   :  { %v3323_v11 = vsel %vm3317_vm1, %v3310_v60, 920167782  ;;  %v3440_v42 = vand.u32 2139095040, %v9514_v53  ;;  %vm3129_vm2 = vcmp.lt.s32.totalorder %v5771_v56, 0  ;;  %vm3314_vm3 = vcmp.lt.s32.totalorder %v7903_v55, 1 }
 0x357   :  { %v3105_v49 = vmul.f32 %v3104_v33, %v3100_v43  ;;  %v3112_v41 = vmul.f32 %v3111_v20, %v3100_v43  ;;  %v7936_v62 = vsub.s32 %v3225_v36, %v3228_v17  ;;  %vm3316_vm5 = vcmp.lt.s32.totalorder %v7903_v55, 3 }
 0x358   :  { %v3322_v1 = vsel %vm3314_vm3, %v7924_v44, %v7928_v9  ;;  %v3324_v35 = vsel %vm3316_vm5, %v3307_v46, %v3323_v11  ;;  %v3326_v28 = vsel %vm3314_vm3, %v7928_v9, %v3307_v46  ;;  %v3331_v43 = vand.u32 65535, %v7933_v58 }
 0x359   :  { %v3106_v23 = vadd.f32 1.0, %v3105_v49  ;;  %v3113_v18 = vadd.f32 1.0, %v3112_v41  ;;  %vm3230_vm4 = vcmp.lt.s32.totalorder %v7936_v62, 0  ;;  %v3231_v6 = vsub.s32 0, %v7936_v62 }
 0x35a   :  { %vm3315_vm6 = vcmp.lt.s32.totalorder %v7903_v55, 2  ;;  %v3327_v54 = vsel %vm3317_vm1, %v3313_v59, 1326507024  ;;  %v3332_v26 = vshrl.u32 %v7933_v58, 16  ;;  %v3251_v13 = vsub.s32 4, %v7916_v14 }
 0x35b   :  { %v3114_v34 = vmul.f32 %v3113_v18, %v3098_v39  ;;  %v3123_v40 = vxor.u32 2147483648, %v3106_v23  ;;  %v3232_v15 = vsel %vm3230_vm4, %v3231_v6, %v7936_v62  ;;  %v3325_v39 = vsel %vm3315_vm6, %v3322_v1, %v3324_v35 }
 0x35c   :  { %v3233_v21 = vclz %v3232_v15  ;;  %v3328_v36 = vsel %vm3316_vm5, %v3310_v60, %v3327_v54  ;;  %v3441_v47 = vshrl.u32 %v3440_v42, 23  ;;  %v3298_v24 = vshrl.u32 %v9473_v31, %v7899_v61 }
 0x35d   :  { %v3120_v37 = vxor.u32 2147483648, %v3114_v34  ;;  %v3124_v38 = vsel %vm3122_vm11, %v3123_v40, %v3114_v34  ;;  %v3329_v30 = vsel %vm3315_vm6, %v3326_v28, %v3328_v36  ;;  %v3355_v51 = vand.u32 65535, %v3325_v39 }
 0x35e   :  { %v5435_v19 = vadd.s32 4294967294, %v3233_v21  ;;  %v3333_v50 = vand.u32 65535, %v3329_v30  ;;  %v3334_v5 = vshrl.u32 %v3329_v30, 16  ;;  %v3356_v32 = vshrl.u32 %v3325_v39, 16 }
 0x35f   :  { %v3121_v22 = vsel %vm3119_vm15, %v3106_v23, %v3120_v37  ;;  %v3319_v57 = vsel %vm3317_vm1, %v3307_v46, 2102212464  ;;  %v3252_v33 = vsel %vm3129_vm2, %v3251_v13, %v7916_v14  ;;  %v3359_v11 = vmul.u32 %v3355_v51, %v3332_v26 }
 0x360   :  { %v3125_v29 = vsel %vm3118_vm13, %v3121_v22, %v3124_v38  ;;  %vm5436_vm9 = vcmp.lt.s32.totalorder %v5435_v19, 0  ;;  %v3336_v60 = vmul.u32 %v3334_v5, %v3331_v43  ;;  %v3337_v48 = vmul.u32 %v3333_v50, %v3332_v26 }
 0x361   :  { %v3126_v25 = vsel %vm3115_vm0, nan, %v3125_v29  ;;  %v3236_v52 = vsel %vm5436_vm9, 0, %v5435_v19  ;;  %v3358_v20 = vmul.u32 %v3356_v32, %v3331_v43  ;;  %v3335_v16 = vmul.u32 %v3333_v50, %v3331_v43 }
 0x362   :  { %5314 = vst [vmem:[#allocation2 + $0x88] sm:$0xff] %v3126_v25  ;;  %v3237_v17 = vsub.s32 32, %v3236_v52  ;;  %v3241_v61 = vsub.s32 4294967266, %v3236_v52  ;;  %v3339_v49 = vshll.u32 %v3336_v60, 16  ;;  %v3238_v12 = vshll.u32 %v7936_v62, %v3236_v52 }
 0x363   :  { %v3338_v41 = vmul.u32 %v3334_v5, %v3332_v26  ;;  %v3341_v59 = vshll.u32 %v3337_v48, 16  ;;  %vm7986_vm7 = vcmp.le.f32.partialorder %v3127_v0, 0.7853982  ;;  %v3357_v6 = vmul.u32 %v3355_v51, %v3331_v43 }
 0x364   :  { %v3239_v14 = vshrl.u32 %v7922_v27, %v3237_v17  ;;  %v3242_v42 = vadd.s32 127, %v3241_v61  ;;  %vm3343_vm8 = vc.u32 %v3335_v16, %v3339_v49  ;;  %v3345_v23 = vadd.s32 %v3339_v49, %v3335_v16 }
 0x365   :  { %v3344_v18 = vsel %vm3343_vm8, 1, %v9469_v2  ;;  %v3360_v1 = vmul.u32 %v3356_v32, %v3332_v26  ;;  %v3361_v35 = vshll.u32 %v3358_v20, 16  ;;  %v3363_v0 = vshll.u32 %v3359_v11, 16 }
 0x366   :  { %v3240_v62 = vor.u32 %v3239_v14, %v3238_v12  ;;  %v3243_v34 = vshll.u32 %v3242_v42, 23  ;;  %v3346_v40 = vadd.s32 %v3344_v18, %v3338_v41  ;;  %vm3347_vm10 = vc.u32 %v3345_v23, %v3341_v59 }
 0x367   :  { %v3348_v28 = vsel %vm3347_vm10, 1, %v9469_v2  ;;  %vm3365_vm14 = vc.u32 %v3357_v6, %v3361_v35  ;;  %v3367_v15 = vadd.s32 %v3361_v35, %v3357_v6  ;;  %v3340_v37 = vshrl.u32 %v3336_v60, 16 }
 0x368   :  { %v3244_v54 = vor.u32 4788187, %v3243_v34  ;;  %v3350_v27 = vadd.s32 %v3348_v28, %v3346_v40  ;;  %v3366_v21 = vsel %vm3365_vm14, 1, %v9469_v2  ;;  %v3247_v39 = vcvt.s32.f32 %v3240_v62 }
 0x369   :  { %v3342_v36 = vshrl.u32 %v3337_v48, 16  ;;  %v3368_v38 = vadd.s32 %v3366_v21, %v3360_v1  ;;  %vm3369_vm12 = vc.u32 %v3367_v15, %v3363_v0  ;;  %v5440_v30 = vadd.s32 4294967169, %v3441_v47 }
 0x36a   :  { %v3245_v43 = vand.u32 2147483647, %v3244_v54  ;;  %v3351_v26 = vadd.s32 %v3350_v27, %v3340_v37  ;;  %v3370_v13 = vsel %vm3369_vm12, 1, %v9469_v2  ;;  %v3318_v22 = vsel %vm3314_vm3, %v3298_v24, %v7924_v44 }
 0x36b   :  { %v3362_v19 = vshrl.u32 %v3358_v20, 16  ;;  %v3372_v50 = vadd.s32 %v3370_v13, %v3368_v38  ;;  %v3437_v5 = vand.u32 2147483647, %v9514_v53  ;;  %v3320_v51 = vsel %vm3316_vm5, %v7928_v9, %v3319_v57 }
 0x36c   :  { %v3248_v29 = vmul.f32 %v3247_v39, %v3245_v43  ;;  %v8002_v32 = vadd.s32 %v3351_v26, %v3342_v36  ;;  %v3447_v25 = vadd.s32 1, %v5440_v30  ;;  %v3254_v60 = vsel %vm7986_vm7, 0, %v3252_v33 }
 0x36d   :  { %v3364_v47 = vshrl.u32 %v3359_v11, 16  ;;  %v3373_v52 = vadd.s32 %v3372_v50, %v3362_v19  ;;  %v8006_v17 = vadd.s32 %v3367_v15, %v3363_v0  ;;  %v3321_v44 = vsel %vm3315_vm6, %v3318_v22, %v3320_v51 }
 0x36e   :  { %v3249_v48 = vxor.u32 2147483648, %v3248_v29  ;;  %vm3448_vm11 = vcmp.gt.s32.totalorder %v3447_v25, 0  ;;  %v3444_v20 = vand.u32 8388607, %v3437_v5  ;;  %v3271_v61 = vadd.s32 3, %v3254_v60 }
 0x36f   :  { %v3374_v24 = vadd.s32 %v3373_v52, %v3364_v47  ;;  %v3449_v9 = vsel %vm3448_vm11, %v3447_v25, 0  ;;  %vm3377_vm15 = vc.u32 %v8002_v32, %v8006_v17  ;;  %v3375_v12 = vmul.u32 %v7933_v58, %v3321_v44 }
 0x370   :  { %v3250_v57 = vsel %vm3129_vm2, %v3249_v48, %v3248_v29  ;;  %v3451_v33 = vand.u32 31, %v3449_v9  ;;  %v3445_v11 = vor.u32 8388608, %v3444_v20  ;;  %v8022_v23 = vand.u32 3, %v3271_v61  ;;  %v9517_v48 = vld [vmem:[#allocation12_spill] sm:$0xff] }
 0x371   :  { %v3253_v16 = vsel %vm7986_vm7, %v5771_v56, %v3250_v57  ;;  %v3378_v49 = vadd.s32 1, %v3374_v24  ;;  %v8024_v6 = vshrl.u32 %v3449_v9, 5  ;;  %vm3270_vm5 = vweird.f32 %v5771_v56 }
 0x372   :  { %v3255_v55 = vmul.f32 %v3253_v16, %v3253_v16  ;;  %v8020_v41 = vsub.s32 32, %v3451_v33  ;;  %v3463_v40 = vshll.u32 %v9476_v8, %v3451_v33  ;;  %v3457_v0 = vshll.u32 %v9474_v45, %v3451_v33 }
 0x373   :  { %v3379_v59 = vsel %vm3377_vm15, %v3378_v49, %v3374_v24  ;;  %v3460_v15 = vshll.u32 %v9475_v3, %v3451_v33  ;;  %v3454_v36 = vshll.u32 %v9473_v31, %v3451_v33  ;;  %v3466_v26 = vshll.u32 %v9477_v4, %v3451_v33 }
 0x374   :  { %v3256_v14 = vmul.f32 -0.001358992, %v3255_v55  ;;  %v3263_v42 = vmul.f32 -0.00019511016, %v3255_v55  ;;  %v3380_v18 = vadd.s32 %v3379_v59, %v3375_v12  ;;  %v3458_v1 = vshrl.u32 %v9475_v3, %v8020_v41 }
 0x375   :  { %v3461_v46 = vshrl.u32 %v9476_v8, %v8020_v41  ;;  %v3464_v58 = vshrl.u32 %v9477_v4, %v8020_v41  ;;  %v3455_v28 = vshrl.u32 %v9474_v45, %v8020_v41  ;;  %v3467_v54 = vshrl.u32 %v9481_v10, %v8020_v41 }
 0x376   :  { %v3257_v35 = vadd.f32 0.041655596, %v3256_v14  ;;  %v3264_v62 = vadd.f32 0.008332121, %v3263_v42  ;;  %v3381_v34 = vadd.s32 536870912, %v3380_v18  ;;  %v8042_v38 = vor.u32 %v3458_v1, %v3457_v0 }
 0x377   :  { %v3465_v39 = vor.u32 %v3464_v58, %v3463_v40  ;;  %v8044_v43 = vor.u32 %v3461_v46, %v3460_v15  ;;  %v8048_v19 = vshll.u32 %v3445_v11, 8  ;;  %vm3274_vm13 = vcmp.eq.s32.totalorder %v8022_v23, 0 }
 0x378   :  { %v3258_v37 = vmul.f32 %v3257_v35, %v3255_v55  ;;  %v3265_v27 = vmul.f32 %v3264_v62, %v3255_v55  ;;  %v8039_v21 = vshrl.u32 %v3381_v34, 30  ;;  %vm3277_vm1 = vcmp.eq.s32.totalorder %v8022_v23, 2 }
 0x379   :  { %v8052_v50 = vor.u32 %v3455_v28, %v3454_v36  ;;  %v3468_v29 = vor.u32 %v3467_v54, %v3466_v26  ;;  %vm3469_vm0 = vcmp.lt.s32.totalorder %v8024_v6, 1  ;;  %vm3472_vm2 = vcmp.lt.s32.totalorder %v8024_v6, 4 }
 0x37a   :  { %v3259_v13 = vadd.f32 -0.4999988, %v3258_v37  ;;  %v3266_v30 = vadd.f32 -0.16666654, %v3265_v27  ;;  %v3383_v22 = vshll.u32 %v8039_v21, 30  ;;  %vm3273_vm3 = vcmp.lt.s32.totalorder %v8022_v23, 2 }
 0x37b   :  { %v3478_v47 = vsel %vm3472_vm2, %v3465_v39, 920167782  ;;  %vm3471_vm4 = vcmp.lt.s32.totalorder %v8024_v6, 3  ;;  %v3481_v52 = vsel %vm3469_vm0, %v8042_v38, %v8044_v43  ;;  %v3592_v44 = vand.u32 2147483647, %v9517_v48 }
 0x37c   :  { %v3260_v51 = vmul.f32 %v3259_v13, %v3255_v55  ;;  %v3267_v25 = vmul.f32 %v3266_v30, %v3255_v55  ;;  %v8057_v60 = vsub.s32 %v3380_v18, %v3383_v22  ;;  %v3595_v24 = vand.u32 2139095040, %v9517_v48 }
 0x37d   :  { %vm3470_vm9 = vcmp.lt.s32.totalorder %v8024_v6, 2  ;;  %v3477_v61 = vsel %vm3469_vm0, %v8052_v50, %v8042_v38  ;;  %v3479_v33 = vsel %vm3471_vm4, %v8044_v43, %v3478_v47  ;;  %v3482_v49 = vsel %vm3472_vm2, %v3468_v29, 1326507024 }
 0x37e   :  { %v3261_v20 = vadd.f32 1.0, %v3260_v51  ;;  %v3268_v9 = vadd.f32 1.0, %v3267_v25  ;;  %vm3385_vm6 = vcmp.lt.s32.totalorder %v8057_v60, 0  ;;  %v3386_v57 = vsub.s32 0, %v8057_v60 }
 0x37f   :  { %v3483_v11 = vsel %vm3471_vm4, %v3465_v39, %v3482_v49  ;;  %v3486_v18 = vand.u32 65535, %v8048_v19  ;;  %v3487_v1 = vshrl.u32 %v8048_v19, 16  ;;  %v3480_v58 = vsel %vm3470_vm9, %v3477_v61, %v3479_v33 }
 0x380   :  { %v3269_v55 = vmul.f32 %v3268_v9, %v3253_v16  ;;  %v3278_v12 = vxor.u32 2147483648, %v3261_v20  ;;  %v3387_v59 = vsel %vm3385_vm6, %v3386_v57, %v8057_v60  ;;  %v3484_v42 = vsel %vm3470_vm9, %v3481_v52, %v3483_v11 }
 0x381   :  { %v3388_v14 = vclz %v3387_v59  ;;  %v3488_v35 = vand.u32 65535, %v3484_v42  ;;  %v3489_v16 = vshrl.u32 %v3484_v42, 16  ;;  %v3376_v62 = vadd.s32 %v8006_v17, %v8002_v32 }
 0x382   :  { %v3275_v46 = vxor.u32 2147483648, %v3269_v55  ;;  %v3453_v40 = vshrl.u32 %v9473_v31, %v8020_v41  ;;  %v3596_v28 = vshrl.u32 %v3595_v24, 23  ;;  %v3279_v15 = vsel %vm3277_vm1, %v3278_v12, %v3269_v55 }
 0x383   :  { %v5438_v34 = vadd.s32 4294967294, %v3388_v14  ;;  %v3491_v54 = vmul.u32 %v3489_v16, %v3486_v18  ;;  %v3492_v37 = vmul.u32 %v3488_v35, %v3487_v1  ;;  %vm3284_vm7 = vcmp.lt.s32.totalorder %v9511_v63, 0 }
 0x384   :  { %v3276_v0 = vsel %vm3274_vm13, %v3261_v20, %v3275_v46  ;;  %v3510_v32 = vand.u32 65535, %v3480_v58  ;;  %v3511_v17 = vshrl.u32 %v3480_v58, 16  ;;  %v3490_v36 = vmul.u32 %v3488_v35, %v3486_v18 }
 0x385   :  { %v3280_v27 = vsel %vm3273_vm3, %v3276_v0, %v3279_v15  ;;  %vm5439_vm8 = vcmp.lt.s32.totalorder %v5438_v34, 0  ;;  %v3494_v26 = vshll.u32 %v3491_v54, 16  ;;  %v3406_v22 = vsub.s32 4, %v8039_v21 }
 0x386   :  { %v3281_v41 = vsel %vm3270_vm5, nan, %v3280_v27  ;;  %v3391_v39 = vsel %vm5439_vm8, 0, %v5438_v34  ;;  %v3493_v29 = vmul.u32 %v3489_v16, %v3487_v1  ;;  %v3496_v51 = vshll.u32 %v3492_v37, 16 }
 0x387   :  { %v3392_v13 = vsub.s32 32, %v3391_v39  ;;  %v3396_v30 = vsub.s32 4294967266, %v3391_v39  ;;  %5315 = vst [vmem:[#allocation2 + $0x90] sm:$0xff] %v3281_v41  ;;  %v3393_v23 = vshll.u32 %v8057_v60, %v3391_v39  ;;  %vm3498_vm10 = vc.u32 %v3490_v36, %v3494_v26 }
 0x388   :  { %v3500_v25 = vadd.s32 %v3494_v26, %v3490_v36  ;;  %vm8107_vm14 = vcmp.le.f32.partialorder %v3282_v7, 0.7853982  ;;  %v3499_v24 = vsel %vm3498_vm10, 1, %v9469_v2  ;;  %v3513_v20 = vmul.u32 %v3511_v17, %v3486_v18 }
 0x389   :  { %v3394_v56 = vshrl.u32 %v3376_v62, %v3392_v13  ;;  %v3397_v52 = vadd.s32 127, %v3396_v30  ;;  %v3501_v9 = vadd.s32 %v3499_v24, %v3493_v29  ;;  %v3512_v57 = vmul.u32 %v3510_v32, %v3486_v18 }
 0x38a   :  { %vm3502_vm12 = vc.u32 %v3500_v25, %v3496_v51  ;;  %v3514_v61 = vmul.u32 %v3510_v32, %v3487_v1  ;;  %v3516_v55 = vshll.u32 %v3513_v20, 16  ;;  %v3474_v7 = vsel %vm3472_vm2, %v8044_v43, 2102212464 }
 0x38b   :  { %v3395_v33 = vor.u32 %v3394_v56, %v3393_v23  ;;  %v3398_v60 = vshll.u32 %v3397_v52, 23  ;;  %v3503_v49 = vsel %vm3502_vm12, 1, %v9469_v2  ;;  %v3495_v12 = vshrl.u32 %v3491_v54, 16 }
 0x38c   :  { %v3505_v59 = vadd.s32 %v3503_v49, %v3501_v9  ;;  %v3515_v11 = vmul.u32 %v3511_v17, %v3487_v1  ;;  %v3518_v42 = vshll.u32 %v3514_v61, 16  ;;  %vm3520_vm11 = vc.u32 %v3512_v57, %v3516_v55 }
 0x38d   :  { %v3399_v14 = vor.u32 4788187, %v3398_v60  ;;  %v3522_v46 = vadd.s32 %v3516_v55, %v3512_v57  ;;  %v3407_v18 = vsel %vm3284_vm7, %v3406_v22, %v8039_v21  ;;  %v3521_v35 = vsel %vm3520_vm11, 1, %v9469_v2 }
 0x38e   :  { %v3506_v58 = vadd.s32 %v3505_v59, %v3495_v12  ;;  %v5443_v16 = vadd.s32 4294967169, %v3596_v28  ;;  %v3402_v34 = vcvt.s32.f32 %v3395_v33  ;;  %v3523_v0 = vadd.s32 %v3521_v35, %v3515_v11 }
 0x38f   :  { %v3400_v62 = vand.u32 2147483647, %v3399_v14  ;;  %vm3524_vm15 = vc.u32 %v3522_v46, %v3518_v42  ;;  %v3473_v43 = vsel %vm3469_vm0, %v3453_v40, %v8052_v50  ;;  %v3497_v1 = vshrl.u32 %v3492_v37, 16 }
 0x390   :  { %v3525_v15 = vsel %vm3524_vm15, 1, %v9469_v2  ;;  %v3602_v54 = vadd.s32 1, %v5443_v16  ;;  %v3475_v21 = vsel %vm3471_vm4, %v8042_v38, %v3474_v7  ;;  %v3517_v32 = vshrl.u32 %v3513_v20, 16 }
 0x391   :  { %v3403_v27 = vmul.f32 %v3402_v34, %v3400_v62  ;;  %v3527_v17 = vadd.s32 %v3525_v15, %v3523_v0  ;;  %v3409_v28 = vsel %vm8107_vm14, 0, %v3407_v18  ;;  %v8129_v41 = vadd.s32 %v3506_v58, %v3497_v1 }
 0x392   :  { %vm3603_vm13 = vcmp.gt.s32.totalorder %v3602_v54, 0  ;;  %v3519_v36 = vshrl.u32 %v3514_v61, 16  ;;  %v3476_v37 = vsel %vm3470_vm9, %v3473_v43, %v3475_v21  ;;  %v8133_v26 = vadd.s32 %v3522_v46, %v3518_v42 }
 0x393   :  { %v3404_v39 = vxor.u32 2147483648, %v3403_v27  ;;  %v3528_v50 = vadd.s32 %v3527_v17, %v3517_v32  ;;  %v3604_v40 = vsel %vm3603_vm13, %v3602_v54, 0  ;;  %v3599_v22 = vand.u32 8388607, %v3592_v44 }
 0x394   :  { %v3606_v13 = vand.u32 31, %v3604_v40  ;;  %v3426_v23 = vadd.s32 3, %v3409_v28  ;;  %vm3532_vm1 = vc.u32 %v8129_v41, %v8133_v26  ;;  %v3530_v25 = vmul.u32 %v8048_v19, %v3476_v37 }
 0x395   :  { %v3405_v38 = vsel %vm3284_vm7, %v3404_v39, %v3403_v27  ;;  %v3529_v30 = vadd.s32 %v3528_v50, %v3519_v36  ;;  %v8157_v49 = vshrl.u32 %v3604_v40, 5  ;;  %v3600_v43 = vor.u32 8388608, %v3599_v22 }
 0x396   :  { %v3408_v29 = vsel %vm8107_vm14, %v9511_v63, %v3405_v38  ;;  %v8144_v6 = vsub.s32 32, %v3606_v13  ;;  %v3609_v52 = vshll.u32 %v9473_v31, %v3606_v13  ;;  %v3612_v20 = vshll.u32 %v9474_v45, %v3606_v13 }
 0x397   :  { %v3410_v51 = vmul.f32 %v3408_v29, %v3408_v29  ;;  %v3533_v56 = vadd.s32 1, %v3529_v30  ;;  %v3615_v55 = vshll.u32 %v9475_v3, %v3606_v13  ;;  %v3618_v7 = vshll.u32 %v9476_v8, %v3606_v13 }
 0x398   :  { %v3610_v24 = vshrl.u32 %v9474_v45, %v8144_v6  ;;  %v3613_v47 = vshrl.u32 %v9475_v3, %v8144_v6  ;;  %v3616_v9 = vshrl.u32 %v9476_v8, %v8144_v6  ;;  %v3619_v19 = vshrl.u32 %v9477_v4, %v8144_v6 }
 0x399   :  { %v3411_v57 = vmul.f32 -0.001358992, %v3410_v51  ;;  %v3418_v61 = vmul.f32 -0.00019511016, %v3410_v51  ;;  %v3534_v33 = vsel %vm3532_vm1, %v3533_v56, %v3529_v30  ;;  %v3621_v18 = vshll.u32 %v9477_v4, %v3606_v13 }
 0x39a   :  { %v3535_v60 = vadd.s32 %v3534_v33, %v3530_v25  ;;  %v8161_v11 = vor.u32 %v3610_v24, %v3609_v52  ;;  %v8163_v14 = vor.u32 %v3613_v47, %v3612_v20  ;;  %v3620_v46 = vor.u32 %v3619_v19, %v3618_v7 }
 0x39b   :  { %v3412_v12 = vadd.f32 0.041655596, %v3411_v57  ;;  %v3419_v59 = vadd.f32 0.008332121, %v3418_v61  ;;  %v3622_v58 = vshrl.u32 %v9481_v10, %v8144_v6  ;;  %v3427_v62 = vand.u32 3, %v3426_v23 }
 0x39c   :  { %v3536_v42 = vadd.s32 536870912, %v3535_v60  ;;  %v8168_v34 = vor.u32 %v3616_v9, %v3615_v55  ;;  %vm3624_vm0 = vcmp.lt.s32.totalorder %v8157_v49, 1  ;;  %vm3627_vm2 = vcmp.lt.s32.totalorder %v8157_v49, 4  ;;  %v9520_v9 = vld [vmem:[#allocation14_spill] sm:$0xff] }
 0x39d   :  { %v3413_v35 = vmul.f32 %v3412_v12, %v3410_v51  ;;  %v3420_v16 = vmul.f32 %v3419_v59, %v3410_v51  ;;  %v3623_v1 = vor.u32 %v3622_v58, %v3621_v18  ;;  %vm3626_vm3 = vcmp.lt.s32.totalorder %v8157_v49, 3 }
 0x39e   :  { %v8170_v0 = vshrl.u32 %v3536_v42, 30  ;;  %v3632_v21 = vsel %vm3624_vm0, %v8161_v11, %v8163_v14  ;;  %v3633_v32 = vsel %vm3627_vm2, %v3620_v46, 920167782  ;;  %vm3428_vm5 = vcmp.lt.s32.totalorder %v3427_v62, 2 }
 0x39f   :  { %v3414_v15 = vadd.f32 -0.4999988, %v3413_v35  ;;  %v3421_v54 = vadd.f32 -0.16666654, %v3420_v16  ;;  %v3634_v39 = vsel %vm3626_vm3, %v8168_v34, %v3633_v32  ;;  %v3636_v36 = vsel %vm3624_vm0, %v8163_v14, %v8168_v34 }
 0x3a0   :  { %v3538_v27 = vshll.u32 %v8170_v0, 30  ;;  %vm3425_vm4 = vweird.f32 %v9511_v63  ;;  %vm3429_vm6 = vcmp.eq.s32.totalorder %v3427_v62, 0  ;;  %v3637_v40 = vsel %vm3627_vm2, %v3623_v1, 1326507024 }
 0x3a1   :  { %v3415_v17 = vmul.f32 %v3414_v15, %v3410_v51  ;;  %v3422_v28 = vmul.f32 %v3421_v54, %v3410_v51  ;;  %v8194_v37 = vshll.u32 %v3600_v43, 8  ;;  %vm3625_vm9 = vcmp.lt.s32.totalorder %v8157_v49, 2 }
 0x3a2   :  { %v8190_v50 = vsub.s32 %v3535_v60, %v3538_v27  ;;  %v3638_v30 = vsel %vm3626_vm3, %v3620_v46, %v3637_v40  ;;  %v3635_v23 = vsel %vm3625_vm9, %v3632_v21, %v3634_v39  ;;  %vm3432_vm8 = vcmp.eq.s32.totalorder %v3427_v62, 2 }
 0x3a3   :  { %v3416_v13 = vadd.f32 1.0, %v3415_v17  ;;  %v3423_v38 = vadd.f32 1.0, %v3422_v28  ;;  %v3639_v51 = vsel %vm3625_vm9, %v3636_v36, %v3638_v30  ;;  %v3641_v47 = vand.u32 65535, %v8194_v37 }
 0x3a4   :  { %vm3540_vm7 = vcmp.lt.s32.totalorder %v8190_v50, 0  ;;  %v3541_v22 = vsub.s32 0, %v8190_v50  ;;  %v3643_v52 = vand.u32 65535, %v3639_v51  ;;  %v3644_v24 = vshrl.u32 %v3639_v51, 16 }
 0x3a5   :  { %v3424_v25 = vmul.f32 %v3423_v38, %v3408_v29  ;;  %v3433_v56 = vxor.u32 2147483648, %v3416_v13  ;;  %v3747_v57 = vand.u32 2147483647, %v9520_v9  ;;  %v3531_v33 = vadd.s32 %v8133_v26, %v8129_v41 }
 0x3a6   :  { %v3542_v20 = vsel %vm3540_vm7, %v3541_v22, %v8190_v50  ;;  %v3642_v60 = vshrl.u32 %v8194_v37, 16  ;;  %v3646_v55 = vmul.u32 %v3644_v24, %v3641_v47  ;;  %v3665_v7 = vand.u32 65535, %v3635_v23 }
 0x3a7   :  { %v3430_v61 = vxor.u32 2147483648, %v3424_v25  ;;  %v3543_v19 = vclz %v3542_v20  ;;  %v3666_v29 = vshrl.u32 %v3635_v23, 16  ;;  %v3750_v12 = vand.u32 2139095040, %v9520_v9 }
 0x3a8   :  { %v3434_v42 = vsel %vm3432_vm8, %v3433_v56, %v3424_v25  ;;  %v3647_v18 = vmul.u32 %v3643_v52, %v3642_v60  ;;  %v3561_v35 = vsub.s32 4, %v8170_v0  ;;  %v3645_v16 = vmul.u32 %v3643_v52, %v3641_v47 }
 0x3a9   :  { %v3431_v59 = vsel %vm3429_vm6, %v3416_v13, %v3430_v61  ;;  %v5441_v46 = vadd.s32 4294967294, %v3543_v19  ;;  %v3649_v43 = vshll.u32 %v3646_v55, 16  ;;  %vm3439_vm10 = vcmp.lt.s32.totalorder %v9514_v53, 0 }
 0x3aa   :  { %v3435_v58 = vsel %vm3428_vm5, %v3431_v59, %v3434_v42  ;;  %v3648_v26 = vmul.u32 %v3644_v24, %v3642_v60  ;;  %v3651_v1 = vshll.u32 %v3647_v18, 16  ;;  %v3668_v27 = vmul.u32 %v3666_v29, %v3641_v47 }
 0x3ab   :  { %v3436_v41 = vsel %vm3425_vm4, nan, %v3435_v58  ;;  %vm5442_vm14 = vcmp.lt.s32.totalorder %v5441_v46, 0  ;;  %vm3653_vm12 = vc.u32 %v3645_v16, %v3649_v43  ;;  %v3655_v54 = vadd.s32 %v3649_v43, %v3645_v16 }
 0x3ac   :  { %v3546_v15 = vsel %vm5442_vm14, 0, %v5441_v46  ;;  %5316 = vst [vmem:[#allocation2 + $0x98] sm:$0xff] %v3436_v41  ;;  %v3654_v32 = vsel %vm3653_vm12, 1, %v9469_v2  ;;  %v3667_v17 = vmul.u32 %v3665_v7, %v3641_v47  ;;  %vm8221_vm11 = vcmp.le.f32.partialorder %v3437_v5, 0.7853982 }
 0x3ad   :  { %v3547_v21 = vsub.s32 32, %v3546_v15  ;;  %v3551_v62 = vsub.s32 4294967266, %v3546_v15  ;;  %v3548_v28 = vshll.u32 %v8190_v50, %v3546_v15  ;;  %v3656_v39 = vadd.s32 %v3654_v32, %v3648_v26 }
 0x3ae   :  { %vm3657_vm15 = vc.u32 %v3655_v54, %v3651_v1  ;;  %v3669_v36 = vmul.u32 %v3665_v7, %v3642_v60  ;;  %v3671_v30 = vshll.u32 %v3668_v27, 16  ;;  %v3650_v22 = vshrl.u32 %v3646_v55, 16 }
 0x3af   :  { %v3549_v40 = vshrl.u32 %v3531_v33, %v3547_v21  ;;  %v3552_v13 = vadd.s32 127, %v3551_v62  ;;  %v3658_v38 = vsel %vm3657_vm15, 1, %v9469_v2  ;;  %v3670_v51 = vmul.u32 %v3666_v29, %v3642_v60 }
 0x3b0   :  { %v3660_v23 = vadd.s32 %v3658_v38, %v3656_v39  ;;  %v3673_v25 = vshll.u32 %v3669_v36, 16  ;;  %vm3675_vm13 = vc.u32 %v3667_v17, %v3671_v30  ;;  %v3677_v5 = vadd.s32 %v3671_v30, %v3667_v17 }
 0x3b1   :  { %v3550_v56 = vor.u32 %v3549_v40, %v3548_v28  ;;  %v3553_v52 = vshll.u32 %v3552_v13, 23  ;;  %v3608_v24 = vshrl.u32 %v9473_v31, %v8144_v6  ;;  %v3676_v20 = vsel %vm3675_vm13, 1, %v9469_v2 }
 0x3b2   :  { %v3661_v50 = vadd.s32 %v3660_v23, %v3650_v22  ;;  %v3751_v47 = vshrl.u32 %v3750_v12, 23  ;;  %v3629_v33 = vsel %vm3627_vm2, %v8168_v34, 2102212464  ;;  %v3678_v19 = vadd.s32 %v3676_v20, %v3670_v51 }
 0x3b3   :  { %v3554_v61 = vor.u32 4788187, %v3553_v52  ;;  %vm3679_vm1 = vc.u32 %v3677_v5, %v3673_v25  ;;  %v3562_v60 = vsel %vm3439_vm10, %v3561_v35, %v8170_v0  ;;  %v3652_v55 = vshrl.u32 %v3647_v18, 16 }
 0x3b4   :  { %v3680_v7 = vsel %vm3679_vm1, 1, %v9469_v2  ;;  %v5446_v29 = vadd.s32 4294967169, %v3751_v47  ;;  %v3557_v59 = vcvt.s32.f32 %v3550_v56  ;;  %v3672_v42 = vshrl.u32 %v3668_v27, 16 }
 0x3b5   :  { %v3555_v6 = vand.u32 2147483647, %v3554_v61  ;;  %v3682_v46 = vadd.s32 %v3680_v7, %v3678_v19  ;;  %v3628_v12 = vsel %vm3624_vm0, %v3608_v24, %v8161_v11  ;;  %v3630_v34 = vsel %vm3626_vm3, %v8163_v14, %v3629_v33 }
 0x3b6   :  { %v3662_v58 = vadd.s32 %v3661_v50, %v3652_v55  ;;  %v3757_v16 = vadd.s32 1, %v5446_v29  ;;  %v3564_v0 = vsel %vm8221_vm11, 0, %v3562_v60  ;;  %v3674_v18 = vshrl.u32 %v3669_v36, 16 }
 0x3b7   :  { %v3558_v43 = vmul.f32 %v3557_v59, %v3555_v6  ;;  %v3683_v35 = vadd.s32 %v3682_v46, %v3672_v42  ;;  %v3681_v41 = vadd.s32 %v3677_v5, %v3673_v25  ;;  %v3631_v1 = vsel %vm3625_vm9, %v3628_v12, %v3630_v34 }
 0x3b8   :  { %vm3758_vm2 = vcmp.gt.s32.totalorder %v3757_v16, 0  ;;  %v3581_v54 = vadd.s32 3, %v3564_v0  ;;  %v3754_v14 = vand.u32 8388607, %v3747_v57  ;;  %v3685_v17 = vmul.u32 %v8194_v37, %v3631_v1  ;;  %v9523_v1 = vld [vmem:[#allocation16_spill] sm:$0xff] }
 0x3b9   :  { %v3559_v26 = vxor.u32 2147483648, %v3558_v43  ;;  %v3684_v15 = vadd.s32 %v3683_v35, %v3674_v18  ;;  %v3759_v11 = vsel %vm3758_vm2, %v3757_v16, 0  ;;  %vm3687_vm0 = vc.u32 %v3662_v58, %v3681_v41 }
 0x3ba   :  { %v3761_v27 = vand.u32 31, %v3759_v11  ;;  %v8257_v36 = vand.u32 3, %v3581_v54  ;;  %v3755_v13 = vor.u32 8388608, %v3754_v14  ;;  %v8265_v51 = vshrl.u32 %v3759_v11, 5 }
 0x3bb   :  { %v3560_v21 = vsel %vm3439_vm10, %v3559_v26, %v3558_v43  ;;  %v3688_v62 = vadd.s32 1, %v3684_v15  ;;  %v8279_v29 = vadd.s32 %v3681_v41, %v3662_v58  ;;  %vm3580_vm8 = vweird.f32 %v9514_v53 }
 0x3bc   :  { %v3563_v32 = vsel %vm8221_vm11, %v9514_v53, %v3560_v21  ;;  %v8255_v49 = vsub.s32 32, %v3761_v27  ;;  %v3773_v56 = vshll.u32 %v9476_v8, %v3761_v27  ;;  %v3764_v24 = vshll.u32 %v9473_v31, %v3761_v27 }
 0x3bd   :  { %v3565_v28 = vmul.f32 %v3563_v32, %v3563_v32  ;;  %v3689_v39 = vsel %vm3687_vm0, %v3688_v62, %v3684_v15  ;;  %v3767_v50 = vshll.u32 %v9474_v45, %v3761_v27  ;;  %v3770_v47 = vshll.u32 %v9475_v3, %v3761_v27 }
 0x3be   :  { %v3690_v40 = vadd.s32 %v3689_v39, %v3685_v17  ;;  %v3765_v38 = vshrl.u32 %v9474_v45, %v8255_v49  ;;  %v3768_v23 = vshrl.u32 %v9475_v3, %v8255_v49  ;;  %v3774_v63 = vshrl.u32 %v9477_v4, %v8255_v49 }
 0x3bf   :  { %v3566_v30 = vmul.f32 -0.001358992, %v3565_v28  ;;  %v3573_v22 = vmul.f32 -0.00019511016, %v3565_v28  ;;  %v3771_v25 = vshrl.u32 %v9476_v8, %v8255_v49  ;;  %v3777_v33 = vshrl.u32 %v9481_v10, %v8255_v49 }
 0x3c0   :  { %v3691_v37 = vadd.s32 536870912, %v3690_v40  ;;  %v3775_v61 = vor.u32 %v3774_v63, %v3773_v56  ;;  %v3766_v55 = vor.u32 %v3765_v38, %v3764_v24  ;;  %v8277_v7 = vor.u32 %v3768_v23, %v3767_v50 }
 0x3c1   :  { %v3567_v52 = vadd.f32 0.041655596, %v3566_v30  ;;  %v3574_v5 = vadd.f32 0.008332121, %v3573_v22  ;;  %v3772_v59 = vor.u32 %v3771_v25, %v3770_v47  ;;  %v3776_v42 = vshll.u32 %v9477_v4, %v3761_v27 }
 0x3c2   :  { %v8272_v20 = vshrl.u32 %v3691_v37, 30  ;;  %vm3782_vm3 = vcmp.lt.s32.totalorder %v8265_v51, 4  ;;  %v8284_v34 = vshll.u32 %v3755_v13, 8  ;;  %vm3584_vm5 = vcmp.eq.s32.totalorder %v8257_v36, 0 }
 0x3c3   :  { %v3568_v19 = vmul.f32 %v3567_v52, %v3565_v28  ;;  %v3575_v60 = vmul.f32 %v3574_v5, %v3565_v28  ;;  %vm3587_vm4 = vcmp.eq.s32.totalorder %v8257_v36, 2  ;;  %v3778_v43 = vor.u32 %v3777_v33, %v3776_v42 }
 0x3c4   :  { %v3693_v6 = vshll.u32 %v8272_v20, 30  ;;  %vm3779_vm6 = vcmp.lt.s32.totalorder %v8265_v51, 1  ;;  %v3788_v58 = vsel %vm3782_vm3, %v3775_v61, 920167782  ;;  %vm3583_vm9 = vcmp.lt.s32.totalorder %v8257_v36, 2 }
 0x3c5   :  { %v3569_v46 = vadd.f32 -0.4999988, %v3568_v19  ;;  %v3576_v12 = vadd.f32 -0.16666654, %v3575_v60  ;;  %vm3781_vm7 = vcmp.lt.s32.totalorder %v8265_v51, 3  ;;  %v3787_v35 = vsel %vm3779_vm6, %v3766_v55, %v8277_v7 }
 0x3c6   :  { %v8288_v16 = vsub.s32 %v3690_v40, %v3693_v6  ;;  %vm3594_vm10 = vcmp.lt.s32.totalorder %v9517_v48, 0  ;;  %v3789_v26 = vsel %vm3781_vm7, %v3772_v59, %v3788_v58  ;;  %v3905_v15 = vand.u32 2139095040, %v9523_v1 }
 0x3c7   :  { %v3570_v0 = vmul.f32 %v3569_v46, %v3565_v28  ;;  %v3577_v18 = vmul.f32 %v3576_v12, %v3565_v28  ;;  %vm3780_vm12 = vcmp.lt.s32.totalorder %v8265_v51, 2  ;;  %v3791_v14 = vsel %vm3779_vm6, %v8277_v7, %v3772_v59 }
 0x3c8   :  { %vm3695_vm14 = vcmp.lt.s32.totalorder %v8288_v16, 0  ;;  %v3696_v41 = vsub.s32 0, %v8288_v16  ;;  %v3790_v21 = vsel %vm3780_vm12, %v3787_v35, %v3789_v26  ;;  %v3792_v62 = vsel %vm3782_vm3, %v3778_v43, 1326507024 }
 0x3c9   :  { %v3571_v11 = vadd.f32 1.0, %v3570_v0  ;;  %v3578_v54 = vadd.f32 1.0, %v3577_v18  ;;  %v3796_v17 = vand.u32 65535, %v8284_v34  ;;  %v3793_v13 = vsel %vm3781_vm7, %v3775_v61, %v3792_v62 }
 0x3ca   :  { %v3697_v27 = vsel %vm3695_vm14, %v3696_v41, %v8288_v16  ;;  %v3763_v38 = vshrl.u32 %v9473_v31, %v8255_v49  ;;  %v3794_v30 = vsel %vm3780_vm12, %v3791_v14, %v3793_v13  ;;  %v3797_v22 = vshrl.u32 %v8284_v34, 16 }
 0x3cb   :  { %v3579_v28 = vmul.f32 %v3578_v54, %v3563_v32  ;;  %v3588_v39 = vxor.u32 2147483648, %v3571_v11  ;;  %v3698_v40 = vclz %v3697_v27  ;;  %v3906_v23 = vshrl.u32 %v3905_v15, 23 }
 0x3cc   :  { %v3716_v25 = vsub.s32 4, %v8272_v20  ;;  %v3798_v56 = vand.u32 65535, %v3794_v30  ;;  %v8325_v32 = vsel %vm3779_vm6, %v3763_v38, %v3766_v55  ;;  %v3784_v52 = vsel %vm3782_vm3, %v3772_v59, 2102212464 }
 0x3cd   :  { %v3585_v63 = vxor.u32 2147483648, %v3579_v28  ;;  %v5444_v37 = vadd.s32 4294967294, %v3698_v40  ;;  %v3799_v5 = vshrl.u32 %v3794_v30, 16  ;;  %v3820_v49 = vand.u32 65535, %v3790_v21 }
 0x3ce   :  { %v3589_v50 = vsel %vm3587_vm4, %v3588_v39, %v3579_v28  ;;  %v3821_v47 = vshrl.u32 %v3790_v21, 16  ;;  %vm8337_vm15 = vcmp.le.f32.partialorder %v3592_v44, 0.7853982  ;;  %v3802_v55 = vmul.u32 %v3798_v56, %v3797_v22 }
 0x3cf   :  { %v3586_v24 = vsel %vm3584_vm5, %v3571_v11, %v3585_v63  ;;  %vm5445_vm11 = vcmp.lt.s32.totalorder %v5444_v37, 0  ;;  %v3801_v60 = vmul.u32 %v3799_v5, %v3796_v17  ;;  %v3717_v46 = vsel %vm3594_vm10, %v3716_v25, %v8272_v20 }
 0x3d0   :  { %v3590_v61 = vsel %vm3583_vm9, %v3586_v24, %v3589_v50  ;;  %v3701_v19 = vsel %vm5445_vm11, 0, %v5444_v37  ;;  %v3800_v36 = vmul.u32 %v3798_v56, %v3796_v17  ;;  %v3822_v43 = vmul.u32 %v3820_v49, %v3796_v17 }
 0x3d1   :  { %v3591_v6 = vsel %vm3580_vm8, nan, %v3590_v61  ;;  %v3702_v59 = vsub.s32 32, %v3701_v19  ;;  %v3706_v42 = vsub.s32 4294967266, %v3701_v19  ;;  %v3804_v12 = vshll.u32 %v3801_v60, 16 }
 0x3d2   :  { %v3824_v58 = vmul.u32 %v3820_v49, %v3797_v22  ;;  %5317 = vst [vmem:[#allocation2 + $0xa0] sm:$0xff] %v3591_v6  ;;  %v3703_v44 = vshll.u32 %v8288_v16, %v3701_v19  ;;  %v3823_v35 = vmul.u32 %v3821_v47, %v3796_v17  ;;  %v3803_v41 = vmul.u32 %v3799_v5, %v3797_v22 }
 0x3d3   :  { %v3704_v0 = vshrl.u32 %v8279_v29, %v3702_v59  ;;  %v3707_v18 = vadd.s32 127, %v3706_v42  ;;  %v3806_v53 = vshll.u32 %v3802_v55, 16  ;;  %vm3808_vm13 = vc.u32 %v3800_v36, %v3804_v12 }
 0x3d4   :  { %v3810_v26 = vadd.s32 %v3804_v12, %v3800_v36  ;;  %v3809_v54 = vsel %vm3808_vm13, 1, %v9469_v2  ;;  %v3826_v20 = vshll.u32 %v3823_v35, 16  ;;  %v3805_v14 = vshrl.u32 %v3801_v60, 16 }
 0x3d5   :  { %v3705_v15 = vor.u32 %v3704_v0, %v3703_v44  ;;  %v3708_v11 = vshll.u32 %v3707_v18, 23  ;;  %v3811_v27 = vadd.s32 %v3809_v54, %v3803_v41  ;;  %v3825_v21 = vmul.u32 %v3821_v47, %v3797_v22 }
 0x3d6   :  { %vm3812_vm1 = vc.u32 %v3810_v26, %v3806_v53  ;;  %v3828_v28 = vshll.u32 %v3824_v58, 16  ;;  %vm3830_vm2 = vc.u32 %v3822_v43, %v3826_v20  ;;  %v3832_v39 = vadd.s32 %v3826_v20, %v3822_v43 }
 0x3d7   :  { %v3709_v62 = vor.u32 4788187, %v3708_v11  ;;  %v3813_v16 = vsel %vm3812_vm1, 1, %v9469_v2  ;;  %v3831_v17 = vsel %vm3830_vm2, 1, %v9469_v2  ;;  %v5449_v40 = vadd.s32 4294967169, %v3906_v23 }
 0x3d8   :  { %v3815_v29 = vadd.s32 %v3813_v16, %v3811_v27  ;;  %v3712_v38 = vcvt.s32.f32 %v3705_v15  ;;  %v3719_v30 = vsel %vm8337_vm15, 0, %v3717_v46  ;;  %v3833_v63 = vadd.s32 %v3831_v17, %v3825_v21 }
 0x3d9   :  { %v3710_v13 = vand.u32 2147483647, %v3709_v62  ;;  %v3785_v22 = vsel %vm3781_vm7, %v8277_v7, %v3784_v52  ;;  %vm3834_vm0 = vc.u32 %v3832_v39, %v3828_v28  ;;  %v3912_v25 = vadd.s32 1, %v5449_v40 }
 0x3da   :  { %v3816_v37 = vadd.s32 %v3815_v29, %v3805_v14  ;;  %v3807_v5 = vshrl.u32 %v3802_v55, 16  ;;  %v3835_v49 = vsel %vm3834_vm0, 1, %v9469_v2  ;;  %v3902_v24 = vand.u32 2147483647, %v9523_v1 }
 0x3db   :  { %v3713_v56 = vmul.f32 %v3712_v38, %v3710_v13  ;;  %v3736_v23 = vadd.s32 3, %v3719_v30  ;;  %v3827_v50 = vshrl.u32 %v3823_v35, 16  ;;  %v3837_v47 = vadd.s32 %v3835_v49, %v3833_v63 }
 0x3dc   :  { %vm3913_vm3 = vcmp.gt.s32.totalorder %v3912_v25, 0  ;;  %v3786_v19 = vsel %vm3780_vm12, %v8325_v32, %v3785_v22  ;;  %v8361_v60 = vadd.s32 %v3816_v37, %v3807_v5  ;;  %v3829_v52 = vshrl.u32 %v3824_v58, 16 }
 0x3dd   :  { %v3714_v61 = vxor.u32 2147483648, %v3713_v56  ;;  %v3914_v7 = vsel %vm3913_vm3, %v3912_v25, 0  ;;  %v3838_v6 = vadd.s32 %v3837_v47, %v3827_v50  ;;  %v8365_v59 = vadd.s32 %v3832_v39, %v3828_v28 }
 0x3de   :  { %v3909_v42 = vand.u32 8388607, %v3902_v24  ;;  %v3916_v46 = vand.u32 31, %v3914_v7  ;;  %v8372_v51 = vand.u32 3, %v3736_v23  ;;  %v3840_v12 = vmul.u32 %v8284_v34, %v3786_v19 }
 0x3df   :  { %v3715_v55 = vsel %vm3594_vm10, %v3714_v61, %v3713_v56  ;;  %v3839_v32 = vadd.s32 %v3838_v6, %v3829_v52  ;;  %vm3842_vm5 = vc.u32 %v8361_v60, %v8365_v59  ;;  %v8377_v58 = vshrl.u32 %v3914_v7, 5  ;;  %v9526_v6 = vld [vmem:[#allocation5_spill] sm:$0xff] }
 0x3e0   :  { %v3718_v36 = vsel %vm8337_vm15, %v9517_v48, %v3715_v55  ;;  %v8379_v44 = vsub.s32 32, %v3916_v46  ;;  %v3919_v18 = vshll.u32 %v9473_v31, %v3916_v46  ;;  %v3922_v35 = vshll.u32 %v9474_v45, %v3916_v46 }
 0x3e1   :  { %v3720_v43 = vmul.f32 %v3718_v36, %v3718_v36  ;;  %v3843_v0 = vadd.s32 1, %v3839_v32  ;;  %v3925_v33 = vshll.u32 %v9475_v3, %v3916_v46  ;;  %v3928_v26 = vshll.u32 %v9476_v8, %v3916_v46 }
 0x3e2   :  { %v3920_v34 = vshrl.u32 %v9474_v45, %v8379_v44  ;;  %v3923_v11 = vshrl.u32 %v9475_v3, %v8379_v44  ;;  %v3926_v54 = vshrl.u32 %v9476_v8, %v8379_v44  ;;  %v3929_v20 = vshrl.u32 %v9477_v4, %v8379_v44 }
 0x3e3   :  { %v3721_v41 = vmul.f32 -0.001358992, %v3720_v43  ;;  %v3728_v53 = vmul.f32 -0.00019511016, %v3720_v43  ;;  %v3844_v15 = vsel %vm3842_vm5, %v3843_v0, %v3839_v32  ;;  %v3931_v62 = vshll.u32 %v9477_v4, %v3916_v46 }
 0x3e4   :  { %v3845_v21 = vadd.s32 %v3844_v15, %v3840_v12  ;;  %v8394_v16 = vor.u32 %v3920_v34, %v3919_v18  ;;  %v8396_v28 = vor.u32 %v3923_v11, %v3922_v35  ;;  %v3930_v29 = vor.u32 %v3929_v20, %v3928_v26 }
 0x3e5   :  { %v3722_v14 = vadd.f32 0.041655596, %v3721_v41  ;;  %v3729_v27 = vadd.f32 0.008332121, %v3728_v53  ;;  %v3932_v17 = vshrl.u32 %v9481_v10, %v8379_v44  ;;  %v3927_v38 = vor.u32 %v3926_v54, %v3925_v33 }
 0x3e6   :  { %v3846_v13 = vadd.s32 536870912, %v3845_v21  ;;  %v3910_v30 = vor.u32 8388608, %v3909_v42  ;;  %vm3934_vm4 = vcmp.lt.s32.totalorder %v8377_v58, 1  ;;  %vm3937_vm6 = vcmp.lt.s32.totalorder %v8377_v58, 4 }
 0x3e7   :  { %v3723_v39 = vmul.f32 %v3722_v14, %v3720_v43  ;;  %v3730_v40 = vmul.f32 %v3729_v27, %v3720_v43  ;;  %v3933_v63 = vor.u32 %v3932_v17, %v3931_v62  ;;  %vm3936_vm9 = vcmp.lt.s32.totalorder %v8377_v58, 3 }
 0x3e8   :  { %v8401_v25 = vshrl.u32 %v3846_v13, 30  ;;  %v3942_v56 = vsel %vm3934_vm4, %v8394_v16, %v8396_v28  ;;  %v3943_v5 = vsel %vm3937_vm6, %v3930_v29, 920167782  ;;  %vm3738_vm7 = vcmp.lt.s32.totalorder %v8372_v51, 2 }
 0x3e9   :  { %v3724_v22 = vadd.f32 -0.4999988, %v3723_v39  ;;  %v3731_v37 = vadd.f32 -0.16666654, %v3730_v40  ;;  %v3947_v49 = vsel %vm3937_vm6, %v3933_v63, 1326507024  ;;  %v3946_v61 = vsel %vm3934_vm4, %v8396_v28, %v3927_v38 }
 0x3ea   :  { %v3848_v47 = vshll.u32 %v8401_v25, 30  ;;  %vm3735_vm8 = vweird.f32 %v9517_v48  ;;  %v3944_v19 = vsel %vm3936_vm9, %v3927_v38, %v3943_v5  ;;  %v3948_v7 = vsel %vm3936_vm9, %v3930_v29, %v3947_v49 }
 0x3eb   :  { %v3725_v23 = vmul.f32 %v3724_v22, %v3720_v43  ;;  %v3732_v50 = vmul.f32 %v3731_v37, %v3720_v43  ;;  %v8423_v52 = vshll.u32 %v3910_v30, 8  ;;  %v4060_v55 = vand.u32 2139095040, %v9526_v6 }
 0x3ec   :  { %v3849_v32 = vsub.s32 %v3845_v21, %v3848_v47  ;;  %vm3935_vm10 = vcmp.lt.s32.totalorder %v8377_v58, 2  ;;  %vm3739_vm14 = vcmp.eq.s32.totalorder %v8372_v51, 0  ;;  %vm3742_vm12 = vcmp.eq.s32.totalorder %v8372_v51, 2 }
 0x3ed   :  { %v3726_v42 = vadd.f32 1.0, %v3725_v23  ;;  %v3733_v46 = vadd.f32 1.0, %v3732_v50  ;;  %v3945_v12 = vsel %vm3935_vm10, %v3942_v56, %v3944_v19  ;;  %v3949_v43 = vsel %vm3935_vm10, %v3946_v61, %v3948_v7 }
 0x3ee   :  { %vm3850_vm11 = vcmp.lt.s32.totalorder %v3849_v32, 0  ;;  %v3851_v35 = vsub.s32 0, %v3849_v32  ;;  %v3951_v33 = vand.u32 65535, %v8423_v52  ;;  %v3952_v41 = vshrl.u32 %v8423_v52, 16 }
 0x3ef   :  { %v3734_v0 = vmul.f32 %v3733_v46, %v3718_v36  ;;  %v3743_v18 = vxor.u32 2147483648, %v3726_v42  ;;  %v3953_v53 = vand.u32 65535, %v3949_v43  ;;  %v3954_v34 = vshrl.u32 %v3949_v43, 16 }
 0x3f0   :  { %v3841_v15 = vadd.s32 %v8365_v59, %v8361_v60  ;;  %v3852_v11 = vsel %vm3850_vm11, %v3851_v35, %v3849_v32  ;;  %v4061_v54 = vshrl.u32 %v4060_v55, 23  ;;  %v3918_v14 = vshrl.u32 %v9473_v31, %v8379_v44 }
 0x3f1   :  { %v3740_v26 = vxor.u32 2147483648, %v3734_v0  ;;  %v3853_v20 = vclz %v3852_v11  ;;  %v3956_v36 = vmul.u32 %v3954_v34, %v3951_v33  ;;  %v3976_v27 = vshrl.u32 %v3945_v12, 16 }
 0x3f2   :  { %v3744_v62 = vsel %vm3742_vm12, %v3743_v18, %v3734_v0  ;;  %v3957_v29 = vmul.u32 %v3953_v53, %v3952_v41  ;;  %v3975_v17 = vand.u32 65535, %v3945_v12  ;;  %v3871_v59 = vsub.s32 4, %v8401_v25 }
 0x3f3   :  { %v3741_v21 = vsel %vm3739_vm14, %v3726_v42, %v3740_v26  ;;  %v5447_v60 = vadd.s32 4294967294, %v3853_v20  ;;  %v3939_v40 = vsel %vm3937_vm6, %v3927_v38, 2102212464  ;;  %v3955_v13 = vmul.u32 %v3953_v53, %v3951_v33 }
 0x3f4   :  { %v3745_v39 = vsel %vm3738_vm7, %v3741_v21, %v3744_v62  ;;  %v3959_v30 = vshll.u32 %v3956_v36, 16  ;;  %v5452_v63 = vadd.s32 4294967169, %v4061_v54  ;;  %v3958_v22 = vmul.u32 %v3954_v34, %v3952_v41 }
 0x3f5   :  { %v3746_v44 = vsel %vm3735_vm8, nan, %v3745_v39  ;;  %vm5448_vm15 = vcmp.lt.s32.totalorder %v5447_v60, 0  ;;  %v3961_v37 = vshll.u32 %v3957_v29, 16  ;;  %v3978_v56 = vmul.u32 %v3976_v27, %v3951_v33 }
 0x3f6   :  { %5318 = vst [vmem:[#allocation2 + $0xa8] sm:$0xff] %v3746_v44  ;;  %v3856_v5 = vsel %vm5448_vm15, 0, %v5447_v60  ;;  %vm3963_vm13 = vc.u32 %v3955_v13, %v3959_v30  ;;  %v3965_v51 = vadd.s32 %v3959_v30, %v3955_v13  ;;  %v3979_v49 = vmul.u32 %v3975_v17, %v3952_v41 }
 0x3f7   :  { %v3857_v23 = vsub.s32 32, %v3856_v5  ;;  %v3861_v50 = vsub.s32 4294967266, %v3856_v5  ;;  %v3964_v47 = vsel %vm3963_vm13, 1, %v9469_v2  ;;  %v3977_v38 = vmul.u32 %v3975_v17, %v3951_v33 }
 0x3f8   :  { %v3960_v61 = vshrl.u32 %v3956_v36, 16  ;;  %v3966_v48 = vadd.s32 %v3964_v47, %v3958_v22  ;;  %vm3967_vm1 = vc.u32 %v3965_v51, %v3961_v37  ;;  %v3981_v19 = vshll.u32 %v3978_v56, 16 }
 0x3f9   :  { %v3858_v7 = vshll.u32 %v3849_v32, %v3856_v5  ;;  %v3859_v55 = vshrl.u32 %v3841_v15, %v3857_v23  ;;  %v3862_v42 = vadd.s32 127, %v3861_v50  ;;  %v3968_v46 = vsel %vm3967_vm1, 1, %v9469_v2 }
 0x3fa   :  { %v3970_v12 = vadd.s32 %v3968_v46, %v3966_v48  ;;  %v3980_v43 = vmul.u32 %v3976_v27, %v3952_v41  ;;  %v3983_v0 = vshll.u32 %v3979_v49, 16  ;;  %vm3985_vm2 = vc.u32 %v3977_v38, %v3981_v19 }
 0x3fb   :  { %v3860_v18 = vor.u32 %v3859_v55, %v3858_v7  ;;  %v3863_v35 = vshll.u32 %v3862_v42, 23  ;;  %v3986_v53 = vsel %vm3985_vm2, 1, %v9469_v2  ;;  %v3987_v34 = vadd.s32 %v3981_v19, %v3977_v38 }
 0x3fc   :  { %vm8455_vm0 = vcmp.le.f32.partialorder %v3747_v57, 0.7853982  ;;  %vm3749_vm3 = vcmp.lt.s32.totalorder %v9520_v9, 0  ;;  %v3971_v32 = vadd.s32 %v3970_v12, %v3960_v61  ;;  %v3988_v26 = vadd.s32 %v3986_v53, %v3980_v43 }
 0x3fd   :  { %v3864_v15 = vor.u32 4788187, %v3863_v35  ;;  %v3872_v41 = vsel %vm3749_vm3, %v3871_v59, %v8401_v25  ;;  %v3938_v11 = vsel %vm3934_vm4, %v3918_v14, %v8394_v16  ;;  %vm3989_vm5 = vc.u32 %v3987_v34, %v3983_v0 }
 0x3fe   :  { %v3940_v57 = vsel %vm3936_vm9, %v8396_v28, %v3939_v40  ;;  %v3962_v54 = vshrl.u32 %v3957_v29, 16  ;;  %v3990_v20 = vsel %vm3989_vm5, 1, %v9469_v2  ;;  %v4067_v36 = vadd.s32 1, %v5452_v63 }
 0x3ff   :  { %v3865_v27 = vand.u32 2147483647, %v3864_v15  ;;  %v3867_v21 = vcvt.s32.f32 %v3860_v18  ;;  %v3982_v62 = vshrl.u32 %v3978_v56, 16  ;;  %v3992_v17 = vadd.s32 %v3990_v20, %v3988_v26 }
 0x400   :  { %v3874_v25 = vsel %vm8455_vm0, 0, %v3872_v41  ;;  %v8472_v39 = vadd.s32 %v3971_v32, %v3962_v54  ;;  %v4057_v16 = vand.u32 2147483647, %v9526_v6  ;;  %vm4068_vm4 = vcmp.gt.s32.totalorder %v4067_v36, 0 }
 0x401   :  { %v3868_v14 = vmul.f32 %v3867_v21, %v3865_v27  ;;  %v3984_v60 = vshrl.u32 %v3979_v49, 16  ;;  %v3993_v59 = vadd.s32 %v3992_v17, %v3982_v62  ;;  %v4069_v28 = vsel %vm4068_vm4, %v4067_v36, 0 }
 0x402   :  { %v3941_v29 = vsel %vm3935_vm10, %v3938_v11, %v3940_v57  ;;  %v8477_v40 = vadd.s32 %v3987_v34, %v3983_v0  ;;  %v4071_v44 = vand.u32 31, %v4069_v28  ;;  %v3891_v63 = vadd.s32 3, %v3874_v25 }
 0x403   :  { %v3869_v13 = vxor.u32 2147483648, %v3868_v14  ;;  %v3994_v30 = vadd.s32 %v3993_v59, %v3984_v60  ;;  %v4064_v22 = vand.u32 8388607, %v4057_v16  ;;  %v3995_v58 = vmul.u32 %v8423_v52, %v3941_v29 }
 0x404   :  { %vm3997_vm6 = vc.u32 %v8472_v39, %v8477_v40  ;;  %v8483_v37 = vsub.s32 32, %v4071_v44  ;;  %v8488_v51 = vshrl.u32 %v4069_v28, 5  ;;  %v4083_v47 = vshll.u32 %v9476_v8, %v4071_v44 }
 0x405   :  { %v3870_v56 = vsel %vm3749_vm3, %v3869_v13, %v3868_v14  ;;  %v3998_v5 = vadd.s32 1, %v3994_v30  ;;  %v4074_v7 = vshll.u32 %v9473_v31, %v4071_v44  ;;  %v4077_v55 = vshll.u32 %v9474_v45, %v4071_v44 }
 0x406   :  { %v3873_v49 = vsel %vm8455_vm0, %v9520_v9, %v3870_v56  ;;  %v4075_v23 = vshrl.u32 %v9474_v45, %v8483_v37  ;;  %v4078_v50 = vshrl.u32 %v9475_v3, %v8483_v37  ;;  %v4081_v52 = vshrl.u32 %v9476_v8, %v8483_v37 }
 0x407   :  { %v3875_v38 = vmul.f32 %v3873_v49, %v3873_v49  ;;  %v3999_v61 = vsel %vm3997_vm6, %v3998_v5, %v3994_v30  ;;  %v4084_v48 = vshrl.u32 %v9477_v4, %v8483_v37  ;;  %v4087_v42 = vshrl.u32 %v9481_v10, %v8483_v37 }
 0x408   :  { %v4000_v19 = vadd.s32 %v3999_v61, %v3995_v58  ;;  %v4080_v43 = vshll.u32 %v9475_v3, %v4071_v44  ;;  %v8507_v35 = vor.u32 %v4075_v23, %v4074_v7  ;;  %v8509_v53 = vor.u32 %v4078_v50, %v4077_v55 }
 0x409   :  { %v3876_v46 = vmul.f32 -0.001358992, %v3875_v38  ;;  %v3883_v12 = vmul.f32 -0.00019511016, %v3875_v38  ;;  %v4085_v0 = vor.u32 %v4084_v48, %v4083_v47  ;;  %v4086_v34 = vshll.u32 %v9477_v4, %v4071_v44 }
 0x40a   :  { %v4001_v18 = vadd.s32 536870912, %v4000_v19  ;;  %v3892_v26 = vand.u32 3, %v3891_v63  ;;  %v8512_v15 = vor.u32 %v4081_v52, %v4080_v43  ;;  %v4065_v11 = vor.u32 8388608, %v4064_v22 }
 0x40b   :  { %v3877_v33 = vadd.f32 0.041655596, %v3876_v46  ;;  %v3884_v32 = vadd.f32 0.008332121, %v3883_v12  ;;  %v4088_v57 = vor.u32 %v4087_v42, %v4086_v34  ;;  %vm4092_vm9 = vcmp.lt.s32.totalorder %v8488_v51, 4  ;;  %v9529_v42 = vld [vmem:[#allocation6_spill] sm:$0xff] }
 0x40c   :  { %v8514_v41 = vshrl.u32 %v4001_v18, 30  ;;  %vm4089_vm7 = vcmp.lt.s32.totalorder %v8488_v51, 1  ;;  %v4098_v36 = vsel %vm4092_vm9, %v4085_v0, 920167782  ;;  %vm4091_vm8 = vcmp.lt.s32.totalorder %v8488_v51, 3 }
 0x40d   :  { %v3878_v54 = vmul.f32 %v3877_v33, %v3875_v38  ;;  %v3885_v20 = vmul.f32 %v3884_v32, %v3875_v38  ;;  %v4097_v21 = vsel %vm4089_vm7, %v8507_v35, %v8509_v53  ;;  %v4099_v25 = vsel %vm4091_vm8, %v8512_v15, %v4098_v36 }
 0x40e   :  { %v4003_v27 = vshll.u32 %v8514_v41, 30  ;;  %v4101_v14 = vsel %vm4089_vm7, %v8509_v53, %v8512_v15  ;;  %vm3894_vm10 = vcmp.eq.s32.totalorder %v3892_v26, 0  ;;  %v4102_v59 = vsel %vm4092_vm9, %v4088_v57, 1326507024 }
 0x40f   :  { %v3879_v62 = vadd.f32 -0.4999988, %v3878_v54  ;;  %v3886_v17 = vadd.f32 -0.16666654, %v3885_v20  ;;  %v8537_v28 = vshll.u32 %v4065_v11, 8  ;;  %vm3893_vm14 = vcmp.lt.s32.totalorder %v3892_v26, 2 }
 0x410   :  { %v8533_v60 = vsub.s32 %v4000_v19, %v4003_v27  ;;  %vm4090_vm12 = vcmp.lt.s32.totalorder %v8488_v51, 2  ;;  %v4103_v13 = vsel %vm4091_vm8, %v4085_v0, %v4102_v59  ;;  %vm3890_vm11 = vweird.f32 %v9520_v9 }
 0x411   :  { %v3880_v29 = vmul.f32 %v3879_v62, %v3875_v38  ;;  %v3887_v44 = vmul.f32 %v3886_v17, %v3875_v38  ;;  %v4100_v63 = vsel %vm4090_vm12, %v4097_v21, %v4099_v25  ;;  %v4104_v22 = vsel %vm4090_vm12, %v4101_v14, %v4103_v13 }
 0x412   :  { %vm4005_vm15 = vcmp.lt.s32.totalorder %v8533_v60, 0  ;;  %v4006_v30 = vsub.s32 0, %v8533_v60  ;;  %v4108_v5 = vand.u32 65535, %v4104_v22  ;;  %v4109_v23 = vshrl.u32 %v4104_v22, 16 }
 0x413   :  { %v3881_v56 = vadd.f32 1.0, %v3880_v29  ;;  %v3888_v58 = vadd.f32 1.0, %v3887_v44  ;;  %vm3897_vm13 = vcmp.eq.s32.totalorder %v3892_v26, 2  ;;  %v4106_v47 = vand.u32 65535, %v8537_v28 }
 0x414   :  { %v4007_v50 = vsel %vm4005_vm15, %v4006_v30, %v8533_v60  ;;  %v4107_v38 = vshrl.u32 %v8537_v28, 16  ;;  %v4131_v19 = vshrl.u32 %v4100_v63, 16  ;;  %v3996_v7 = vadd.s32 %v8477_v40, %v8472_v39 }
 0x415   :  { %v3889_v61 = vmul.f32 %v3888_v58, %v3873_v49  ;;  %v3898_v52 = vxor.u32 2147483648, %v3881_v56  ;;  %v4008_v48 = vclz %v4007_v50  ;;  %v4111_v55 = vmul.u32 %v4109_v23, %v4106_v47 }
 0x416   :  { %v4212_v46 = vand.u32 2147483647, %v9529_v42  ;;  %v4215_v12 = vand.u32 2139095040, %v9529_v42  ;;  %v4026_v18 = vsub.s32 4, %v8514_v41  ;;  %v4112_v34 = vmul.u32 %v4108_v5, %v4107_v38 }
 0x417   :  { %v3895_v43 = vxor.u32 2147483648, %v3889_v61  ;;  %v5450_v0 = vadd.s32 4294967294, %v4008_v48  ;;  %v3899_v33 = vsel %vm3897_vm13, %v3898_v52, %v3889_v61  ;;  %vm3904_vm1 = vcmp.lt.s32.totalorder %v9523_v1, 0 }
 0x418   :  { %v4110_v49 = vmul.u32 %v4108_v5, %v4106_v47  ;;  %v4114_v32 = vshll.u32 %v4111_v55, 16  ;;  %v4130_v11 = vand.u32 65535, %v4100_v63  ;;  %v4116_v39 = vshll.u32 %v4112_v34, 16 }
 0x419   :  { %v3896_v57 = vsel %vm3894_vm10, %v3881_v56, %v3895_v43  ;;  %vm5451_vm2 = vcmp.lt.s32.totalorder %v5450_v0, 0  ;;  %v4133_v40 = vmul.u32 %v4131_v19, %v4106_v47  ;;  %vm8565_vm3 = vcmp.le.f32.partialorder %v3902_v24, 0.7853982 }
 0x41a   :  { %v3900_v54 = vsel %vm3893_vm14, %v3896_v57, %v3899_v33  ;;  %v4011_v20 = vsel %vm5451_vm2, 0, %v5450_v0  ;;  %vm4118_vm0 = vc.u32 %v4110_v49, %v4114_v32  ;;  %v4120_v36 = vadd.s32 %v4114_v32, %v4110_v49 }
 0x41b   :  { %v3901_v27 = vsel %vm3890_vm11, nan, %v3900_v54  ;;  %v4012_v62 = vsub.s32 32, %v4011_v20  ;;  %v4016_v17 = vsub.s32 4294967266, %v4011_v20  ;;  %v4113_v25 = vmul.u32 %v4109_v23, %v4107_v38 }
 0x41c   :  { %v4013_v14 = vshll.u32 %v8533_v60, %v4011_v20  ;;  %v4119_v26 = vsel %vm4118_vm0, 1, %v9469_v2  ;;  %vm4122_vm5 = vc.u32 %v4120_v36, %v4116_v39  ;;  %v4134_v59 = vmul.u32 %v4130_v11, %v4107_v38  ;;  %5319 = vst [vmem:[#allocation2 + $0xb0] sm:$0xff] %v3901_v27 }
 0x41d   :  { %v4014_v29 = vshrl.u32 %v3996_v7, %v4012_v62  ;;  %v4017_v44 = vadd.s32 127, %v4016_v17  ;;  %v4121_v9 = vadd.s32 %v4119_v26, %v4113_v25  ;;  %v4123_v13 = vsel %vm4122_vm5, 1, %v9469_v2 }
 0x41e   :  { %v4073_v24 = vshrl.u32 %v9473_v31, %v8483_v37  ;;  %v4115_v30 = vshrl.u32 %v4111_v55, 16  ;;  %v4132_v63 = vmul.u32 %v4130_v11, %v4106_v47  ;;  %v4136_v22 = vshll.u32 %v4133_v40, 16 }
 0x41f   :  { %v4015_v56 = vor.u32 %v4014_v29, %v4013_v14  ;;  %v4018_v58 = vshll.u32 %v4017_v44, 23  ;;  %v4125_v5 = vadd.s32 %v4123_v13, %v4121_v9  ;;  %v4135_v60 = vmul.u32 %v4131_v19, %v4107_v38 }
 0x420   :  { %v4138_v23 = vshll.u32 %v4134_v59, 16  ;;  %vm4140_vm4 = vc.u32 %v4132_v63, %v4136_v22  ;;  %v4142_v50 = vadd.s32 %v4136_v22, %v4132_v63  ;;  %v4216_v61 = vshrl.u32 %v4215_v12, 23 }
 0x421   :  { %v4019_v52 = vor.u32 4788187, %v4018_v58  ;;  %v4027_v48 = vsel %vm3904_vm1, %v4026_v18, %v8514_v41  ;;  %v4126_v7 = vadd.s32 %v4125_v5, %v4115_v30  ;;  %v4141_v43 = vsel %vm4140_vm4, 1, %v9469_v2 }
 0x422   :  { %v4094_v37 = vsel %vm4092_vm9, %v8512_v15, 2102212464  ;;  %v4143_v47 = vadd.s32 %v4141_v43, %v4135_v60  ;;  %vm4144_vm6 = vc.u32 %v4142_v50, %v4138_v23  ;;  %v5455_v55 = vadd.s32 4294967169, %v4216_v61 }
 0x423   :  { %v4020_v38 = vand.u32 2147483647, %v4019_v52  ;;  %v4022_v19 = vcvt.s32.f32 %v4015_v56  ;;  %v4117_v0 = vshrl.u32 %v4112_v34, 16  ;;  %v4145_v12 = vsel %vm4144_vm6, 1, %v9469_v2 }
 0x424   :  { %v4029_v33 = vsel %vm8565_vm3, 0, %v4027_v48  ;;  %v4137_v49 = vshrl.u32 %v4133_v40, 16  ;;  %v4147_v41 = vadd.s32 %v4145_v12, %v4143_v47  ;;  %v4222_v18 = vadd.s32 1, %v5455_v55 }
 0x425   :  { %v4023_v32 = vmul.f32 %v4022_v19, %v4020_v38  ;;  %v4093_v11 = vsel %vm4089_vm7, %v4073_v24, %v8507_v35  ;;  %v4095_v15 = vsel %vm4091_vm8, %v8509_v53, %v4094_v37  ;;  %v8590_v57 = vadd.s32 %v4126_v7, %v4117_v0 }
 0x426   :  { %v4139_v34 = vshrl.u32 %v4134_v59, 16  ;;  %v4148_v39 = vadd.s32 %v4147_v41, %v4137_v49  ;;  %v4219_v54 = vand.u32 8388607, %v4212_v46  ;;  %vm4223_vm9 = vcmp.gt.s32.totalorder %v4222_v18, 0  ;;  %v9532_v49 = vld [vmem:[#allocation7_spill] sm:$0xff] }
 0x427   :  { %v4024_v40 = vxor.u32 2147483648, %v4023_v32  ;;  %v4046_v20 = vadd.s32 3, %v4029_v33  ;;  %v8594_v36 = vadd.s32 %v4142_v50, %v4138_v23  ;;  %v4224_v27 = vsel %vm4223_vm9, %v4222_v18, 0 }
 0x428   :  { %v4096_v35 = vsel %vm4090_vm12, %v4093_v11, %v4095_v15  ;;  %v4149_v62 = vadd.s32 %v4148_v39, %v4139_v34  ;;  %v4226_v17 = vand.u32 31, %v4224_v27  ;;  %v4220_v44 = vor.u32 8388608, %v4219_v54 }
 0x429   :  { %v4025_v53 = vsel %vm3904_vm1, %v4024_v40, %v4023_v32  ;;  %vm4152_vm7 = vc.u32 %v8590_v57, %v8594_v36  ;;  %v8607_v29 = vand.u32 3, %v4046_v20  ;;  %v4150_v51 = vmul.u32 %v8537_v28, %v4096_v35 }
 0x42a   :  { %v4028_v25 = vsel %vm8565_vm3, %v9523_v1, %v4025_v53  ;;  %v4153_v14 = vadd.s32 1, %v4149_v62  ;;  %v8605_v26 = vsub.s32 32, %v4226_v17  ;;  %v8610_v13 = vshrl.u32 %v4224_v27, 5 }
 0x42b   :  { %v4030_v59 = vmul.f32 %v4028_v25, %v4028_v25  ;;  %v4229_v24 = vshll.u32 %v9473_v31, %v4226_v17  ;;  %v4232_v28 = vshll.u32 %v9474_v45, %v4226_v17  ;;  %v4238_v5 = vshll.u32 %v9476_v8, %v4226_v17 }
 0x42c   :  { %v4154_v9 = vsel %vm4152_vm7, %v4153_v14, %v4149_v62  ;;  %v4233_v30 = vshrl.u32 %v9475_v3, %v8605_v26  ;;  %v4236_v56 = vshrl.u32 %v9476_v8, %v8605_v26  ;;  %v4230_v58 = vshrl.u32 %v9474_v45, %v8605_v26 }
 0x42d   :  { %v4031_v63 = vmul.f32 -0.001358992, %v4030_v59  ;;  %v4038_v21 = vmul.f32 -0.00019511016, %v4030_v59  ;;  %v4155_v22 = vadd.s32 %v4154_v9, %v4150_v51  ;;  %v4239_v60 = vshrl.u32 %v9477_v4, %v8605_v26 }
 0x42e   :  { %v4235_v52 = vshll.u32 %v9475_v3, %v4226_v17  ;;  %v8624_v48 = vor.u32 %v4233_v30, %v4232_v28  ;;  %v4241_v43 = vshll.u32 %v9477_v4, %v4226_v17  ;;  %v4242_v37 = vshrl.u32 %v9481_v10, %v8605_v26 }
 0x42f   :  { %v4032_v23 = vadd.f32 0.041655596, %v4031_v63  ;;  %v4039_v50 = vadd.f32 0.008332121, %v4038_v21  ;;  %v4156_v61 = vadd.s32 536870912, %v4155_v22  ;;  %v4240_v7 = vor.u32 %v4239_v60, %v4238_v5 }
 0x430   :  { %v8631_v19 = vor.u32 %v4236_v56, %v4235_v52  ;;  %v8633_v0 = vor.u32 %v4230_v58, %v4229_v24  ;;  %v4243_v12 = vor.u32 %v4242_v37, %v4241_v43  ;;  %v8635_v33 = vshll.u32 %v4220_v44, 8 }
 0x431   :  { %v4033_v47 = vmul.f32 %v4032_v23, %v4030_v59  ;;  %v4040_v55 = vmul.f32 %v4039_v50, %v4030_v59  ;;  %v8629_v38 = vshrl.u32 %v4156_v61, 30  ;;  %v4370_v41 = vand.u32 2139095040, %v9532_v49 }
 0x432   :  { %vm4247_vm8 = vcmp.lt.s32.totalorder %v8610_v13, 4  ;;  %vm4244_vm10 = vcmp.lt.s32.totalorder %v8610_v13, 1  ;;  %vm4246_vm14 = vcmp.lt.s32.totalorder %v8610_v13, 3  ;;  %vm4048_vm12 = vcmp.lt.s32.totalorder %v8607_v29, 2 }
 0x433   :  { %v4034_v18 = vadd.f32 -0.4999988, %v4033_v47  ;;  %v4041_v32 = vadd.f32 -0.16666654, %v4040_v55  ;;  %v4158_v11 = vshll.u32 %v8629_v38, 30  ;;  %v4256_v20 = vsel %vm4244_vm10, %v8624_v48, %v8631_v19 }
 0x434   :  { %v4253_v15 = vsel %vm4247_vm8, %v4240_v7, 920167782  ;;  %v4257_v34 = vsel %vm4247_vm8, %v4243_v12, 1326507024  ;;  %vm4045_vm11 = vweird.f32 %v9523_v1  ;;  %vm4245_vm15 = vcmp.lt.s32.totalorder %v8610_v13, 2 }
 0x435   :  { %v4035_v39 = vmul.f32 %v4034_v18, %v4030_v59  ;;  %v4042_v54 = vmul.f32 %v4041_v32, %v4030_v59  ;;  %v8647_v40 = vsub.s32 %v4155_v22, %v4158_v11  ;;  %v4252_v27 = vsel %vm4244_vm10, %v8633_v0, %v8624_v48 }
 0x436   :  { %v4254_v35 = vsel %vm4246_vm14, %v8631_v19, %v4253_v15  ;;  %v4258_v62 = vsel %vm4246_vm14, %v4240_v7, %v4257_v34  ;;  %vm4049_vm1 = vcmp.eq.s32.totalorder %v8607_v29, 0  ;;  %vm4052_vm2 = vcmp.eq.s32.totalorder %v8607_v29, 2 }
 0x437   :  { %v4036_v17 = vadd.f32 1.0, %v4035_v39  ;;  %v4043_v53 = vadd.f32 1.0, %v4042_v54  ;;  %vm4160_vm13 = vcmp.lt.s32.totalorder %v8647_v40, 0  ;;  %v4161_v14 = vsub.s32 0, %v8647_v40 }
 0x438   :  { %v4259_v59 = vsel %vm4245_vm15, %v4256_v20, %v4258_v62  ;;  %v4367_v51 = vand.u32 2147483647, %v9532_v49  ;;  %v4255_v21 = vsel %vm4245_vm15, %v4252_v27, %v4254_v35  ;;  %v4262_v22 = vshrl.u32 %v8635_v33, 16 }
 0x439   :  { %v4044_v44 = vmul.f32 %v4043_v53, %v4028_v25  ;;  %v4053_v9 = vxor.u32 2147483648, %v4036_v17  ;;  %v4162_v24 = vsel %vm4160_vm13, %v4161_v14, %v8647_v40  ;;  %v4263_v30 = vand.u32 65535, %v4259_v59 }
 0x43a   :  { %v4163_v63 = vclz %v4162_v24  ;;  %v4264_v56 = vshrl.u32 %v4259_v59, 16  ;;  %v4151_v28 = vadd.s32 %v8594_v36, %v8590_v57  ;;  %v4261_v5 = vand.u32 65535, %v8635_v33 }
 0x43b   :  { %v4050_v58 = vxor.u32 2147483648, %v4044_v44  ;;  %v4371_v60 = vshrl.u32 %v4370_v41, 23  ;;  %v4181_v25 = vsub.s32 4, %v8629_v38  ;;  %v4228_v50 = vshrl.u32 %v9473_v31, %v8605_v26 }
 0x43c   :  { %v5453_v23 = vadd.s32 4294967294, %v4163_v63  ;;  %v4267_v61 = vmul.u32 %v4263_v30, %v4262_v22  ;;  %v4054_v7 = vsel %vm4052_vm2, %v4053_v9, %v4044_v44  ;;  %vm4059_vm0 = vcmp.lt.s32.totalorder %v9526_v6, 0 }
 0x43d   :  { %v4051_v52 = vsel %vm4049_vm1, %v4036_v17, %v4050_v58  ;;  %v4266_v43 = vmul.u32 %v4264_v56, %v4261_v5  ;;  %v4285_v57 = vand.u32 65535, %v4255_v21  ;;  %v4265_v37 = vmul.u32 %v4263_v30, %v4261_v5 }
 0x43e   :  { %v4055_v36 = vsel %vm4048_vm12, %v4051_v52, %v4054_v7  ;;  %vm5454_vm3 = vcmp.lt.s32.totalorder %v5453_v23, 0  ;;  %v4286_v47 = vshrl.u32 %v4255_v21, 16  ;;  %v4268_v12 = vmul.u32 %v4264_v56, %v4262_v22 }
 0x43f   :  { %v4056_v26 = vsel %vm4045_vm11, nan, %v4055_v36  ;;  %v4166_v55 = vsel %vm5454_vm3, 0, %v5453_v23  ;;  %v4269_v41 = vshll.u32 %v4266_v43, 16  ;;  %vm8692_vm5 = vcmp.le.f32.partialorder %v4057_v16, 0.7853982 }
 0x440   :  { %v4167_v32 = vsub.s32 32, %v4166_v55  ;;  %v4171_v11 = vsub.s32 4294967266, %v4166_v55  ;;  %v4270_v15 = vshrl.u32 %v4266_v43, 16  ;;  %v4271_v29 = vshll.u32 %v4267_v61, 16  ;;  %5320 = vst [vmem:[#allocation2 + $0xb8] sm:$0xff] %v4056_v26 }
 0x441   :  { %vm4273_vm4 = vc.u32 %v4265_v37, %v4269_v41  ;;  %v4275_v34 = vadd.s32 %v4269_v41, %v4265_v37  ;;  %v4288_v39 = vmul.u32 %v4286_v47, %v4261_v5  ;;  %v4289_v54 = vmul.u32 %v4285_v57, %v4262_v22 }
 0x442   :  { %v4168_v1 = vshll.u32 %v8647_v40, %v4166_v55  ;;  %v4169_v20 = vshrl.u32 %v4151_v28, %v4167_v32  ;;  %v4172_v27 = vadd.s32 127, %v4171_v11  ;;  %v4274_v35 = vsel %vm4273_vm4, 1, %v9469_v2 }
 0x443   :  { %v4276_v62 = vadd.s32 %v4274_v35, %v4268_v12  ;;  %vm4277_vm6 = vc.u32 %v4275_v34, %v4271_v29  ;;  %v4287_v16 = vmul.u32 %v4285_v57, %v4261_v5  ;;  %v4291_v17 = vshll.u32 %v4288_v39, 16 }
 0x444   :  { %v4170_v53 = vor.u32 %v4169_v20, %v4168_v1  ;;  %v4173_v14 = vshll.u32 %v4172_v27, 23  ;;  %v4278_v59 = vsel %vm4277_vm6, 1, %v9469_v2  ;;  %v4290_v44 = vmul.u32 %v4286_v47, %v4262_v22 }
 0x445   :  { %v4280_v9 = vadd.s32 %v4278_v59, %v4276_v62  ;;  %v4293_v24 = vshll.u32 %v4289_v54, 16  ;;  %vm4295_vm9 = vc.u32 %v4287_v16, %v4291_v17  ;;  %v4297_v30 = vadd.s32 %v4291_v17, %v4287_v16  ;;  %v9535_v16 = vld [vmem:[#allocation9_spill] sm:$0xff] }
 0x446   :  { %v4174_v63 = vor.u32 4788187, %v4173_v14  ;;  %v4182_v40 = vsel %vm4059_vm0, %v4181_v25, %v8629_v38  ;;  %v4249_v21 = vsel %vm4247_vm8, %v8631_v19, 2102212464  ;;  %v4296_v56 = vsel %vm4295_vm9, 1, %v9469_v2 }
 0x447   :  { %v4272_v58 = vshrl.u32 %v4267_v61, 16  ;;  %v4281_v28 = vadd.s32 %v4280_v9, %v4270_v15  ;;  %v4298_v5 = vadd.s32 %v4296_v56, %v4290_v44  ;;  %vm4299_vm7 = vc.u32 %v4297_v30, %v4293_v24 }
 0x448   :  { %v4175_v22 = vand.u32 2147483647, %v4174_v63  ;;  %v4177_v23 = vcvt.s32.f32 %v4170_v53  ;;  %v4300_v52 = vsel %vm4299_vm7, 1, %v9469_v2  ;;  %v5458_v7 = vadd.s32 4294967169, %v4371_v60 }
 0x449   :  { %v4184_v43 = vsel %vm8692_vm5, 0, %v4182_v40  ;;  %v4248_v38 = vsel %vm4244_vm10, %v4228_v50, %v8633_v0  ;;  %v4292_v25 = vshrl.u32 %v4288_v39, 16  ;;  %v4302_v19 = vadd.s32 %v4300_v52, %v4298_v5 }
 0x44a   :  { %v4178_v57 = vmul.f32 %v4177_v23, %v4175_v22  ;;  %v4250_v61 = vsel %vm4246_vm14, %v8624_v48, %v4249_v21  ;;  %v8715_v36 = vadd.s32 %v4281_v28, %v4272_v58  ;;  %v4377_v37 = vadd.s32 1, %v5458_v7 }
 0x44b   :  { %v4294_v47 = vshrl.u32 %v4289_v54, 16  ;;  %v4303_v26 = vadd.s32 %v4302_v19, %v4292_v25  ;;  %v8717_v55 = vadd.s32 %v4297_v30, %v4293_v24  ;;  %v4374_v12 = vand.u32 8388607, %v4367_v51 }
 0x44c   :  { %v4179_v60 = vxor.u32 2147483648, %v4178_v57  ;;  %vm4378_vm8 = vcmp.gt.s32.totalorder %v4377_v37, 0  ;;  %v4201_v0 = vadd.s32 3, %v4184_v43  ;;  %v4251_v50 = vsel %vm4245_vm15, %v4248_v38, %v4250_v61 }
 0x44d   :  { %v4304_v41 = vadd.s32 %v4303_v26, %v4294_v47  ;;  %v4379_v32 = vsel %vm4378_vm8, %v4377_v37, 0  ;;  %vm4307_vm10 = vc.u32 %v8715_v36, %v8717_v55  ;;  %v4305_v39 = vmul.u32 %v8635_v33, %v4251_v50 }
 0x44e   :  { %v4180_v48 = vsel %vm4059_vm0, %v4179_v60, %v4178_v57  ;;  %v4381_v11 = vand.u32 31, %v4379_v32  ;;  %v8733_v13 = vand.u32 3, %v4201_v0  ;;  %v4375_v20 = vor.u32 8388608, %v4374_v12 }
 0x44f   :  { %v4183_v15 = vsel %vm8692_vm5, %v9526_v6, %v4180_v48  ;;  %v4308_v29 = vadd.s32 1, %v4304_v41  ;;  %v4522_v17 = vand.u32 2147483647, %v9535_v16  ;;  %v8736_v53 = vshrl.u32 %v4379_v32, 5 }
 0x450   :  { %v4185_v34 = vmul.f32 %v4183_v15, %v4183_v15  ;;  %v8731_v54 = vsub.s32 32, %v4381_v11  ;;  %v4393_v24 = vshll.u32 %v9476_v8, %v4381_v11  ;;  %v4387_v63 = vshll.u32 %v9474_v45, %v4381_v11 }
 0x451   :  { %v4309_v1 = vsel %vm4307_vm10, %v4308_v29, %v4304_v41  ;;  %v4390_v40 = vshll.u32 %v9475_v3, %v4381_v11  ;;  %v4384_v22 = vshll.u32 %v9473_v31, %v4381_v11  ;;  %v4396_v7 = vshll.u32 %v9477_v4, %v4381_v11 }
 0x452   :  { %v4186_v27 = vmul.f32 -0.001358992, %v4185_v34  ;;  %v4193_v35 = vmul.f32 -0.00019511016, %v4185_v34  ;;  %v4310_v62 = vadd.s32 %v4309_v1, %v4305_v39  ;;  %v4388_v18 = vshrl.u32 %v9475_v3, %v8731_v54 }
 0x453   :  { %v4391_v14 = vshrl.u32 %v9476_v8, %v8731_v54  ;;  %v4394_v33 = vshrl.u32 %v9477_v4, %v8731_v54  ;;  %v4385_v30 = vshrl.u32 %v9474_v45, %v8731_v54  ;;  %v4397_v21 = vshrl.u32 %v9481_v10, %v8731_v54 }
 0x454   :  { %v4187_v59 = vadd.f32 0.041655596, %v4186_v27  ;;  %v4194_v44 = vadd.f32 0.008332121, %v4193_v35  ;;  %v4311_v9 = vadd.s32 536870912, %v4310_v62  ;;  %v8754_v23 = vor.u32 %v4388_v18, %v4387_v63 }
 0x455   :  { %v4395_v5 = vor.u32 %v4394_v33, %v4393_v24  ;;  %v8756_v52 = vor.u32 %v4391_v14, %v4390_v40  ;;  %vm4204_vm14 = vcmp.eq.s32.totalorder %v8733_v13, 0  ;;  %vm4207_vm12 = vcmp.eq.s32.totalorder %v8733_v13, 2 }
 0x456   :  { %v4188_v56 = vmul.f32 %v4187_v59, %v4185_v34  ;;  %v4195_v58 = vmul.f32 %v4194_v44, %v4185_v34  ;;  %v8751_v28 = vshrl.u32 %v4311_v9, 30  ;;  %v8762_v19 = vor.u32 %v4385_v30, %v4384_v22 }
 0x457   :  { %v4398_v57 = vor.u32 %v4397_v21, %v4396_v7  ;;  %vm4399_vm11 = vcmp.lt.s32.totalorder %v8736_v53, 1  ;;  %vm4402_vm15 = vcmp.lt.s32.totalorder %v8736_v53, 4  ;;  %vm4203_vm13 = vcmp.lt.s32.totalorder %v8733_v13, 2 }
 0x458   :  { %v4189_v43 = vadd.f32 -0.4999988, %v4188_v56  ;;  %v4196_v38 = vadd.f32 -0.16666654, %v4195_v58  ;;  %v4313_v25 = vshll.u32 %v8751_v28, 30  ;;  %vm4200_vm1 = vweird.f32 %v9526_v6 }
 0x459   :  { %v4408_v26 = vsel %vm4402_vm15, %v4395_v5, 920167782  ;;  %vm4401_vm2 = vcmp.lt.s32.totalorder %v8736_v53, 3  ;;  %v4411_v60 = vsel %vm4399_vm11, %v8754_v23, %v8756_v52  ;;  %v8777_v12 = vshll.u32 %v4375_v20, 8 }
 0x45a   :  { %v4190_v61 = vmul.f32 %v4189_v43, %v4185_v34  ;;  %v4197_v37 = vmul.f32 %v4196_v38, %v4185_v34  ;;  %v8767_v47 = vsub.s32 %v4310_v62, %v4313_v25  ;;  %v4525_v0 = vand.u32 2139095040, %v9535_v16 }
 0x45b   :  { %vm4400_vm3 = vcmp.lt.s32.totalorder %v8736_v53, 2  ;;  %v4407_v48 = vsel %vm4399_vm11, %v8762_v19, %v8754_v23  ;;  %v4409_v11 = vsel %vm4401_vm2, %v8756_v52, %v4408_v26  ;;  %v4412_v29 = vsel %vm4402_vm15, %v4398_v57, 1326507024 }
 0x45c   :  { %v4191_v50 = vadd.f32 1.0, %v4190_v61  ;;  %v4198_v41 = vadd.f32 1.0, %v4197_v37  ;;  %vm4315_vm0 = vcmp.lt.s32.totalorder %v8767_v47, 0  ;;  %v4316_v32 = vsub.s32 0, %v8767_v47 }
 0x45d   :  { %v4413_v20 = vsel %vm4401_vm2, %v4395_v5, %v4412_v29  ;;  %v4416_v62 = vand.u32 65535, %v8777_v12  ;;  %v4417_v18 = vshrl.u32 %v8777_v12, 16  ;;  %v4410_v33 = vsel %vm4400_vm3, %v4407_v48, %v4409_v11 }
 0x45e   :  { %v4199_v34 = vmul.f32 %v4198_v41, %v4183_v15  ;;  %v4208_v39 = vxor.u32 2147483648, %v4191_v50  ;;  %v4317_v1 = vsel %vm4315_vm0, %v4316_v32, %v8767_v47  ;;  %v4414_v35 = vsel %vm4400_vm3, %v4411_v60, %v4413_v20 }
 0x45f   :  { %v4318_v27 = vclz %v4317_v1  ;;  %v4418_v59 = vand.u32 65535, %v4414_v35  ;;  %v4419_v15 = vshrl.u32 %v4414_v35, 16  ;;  %v4306_v44 = vadd.s32 %v8717_v55, %v8715_v36 }
 0x460   :  { %v4205_v14 = vxor.u32 2147483648, %v4199_v34  ;;  %v4383_v24 = vshrl.u32 %v9473_v31, %v8731_v54  ;;  %v4526_v30 = vshrl.u32 %v4525_v0, 23  ;;  %v4209_v40 = vsel %vm4207_vm12, %v4208_v39, %v4199_v34 }
 0x461   :  { %v5456_v9 = vadd.s32 4294967294, %v4318_v27  ;;  %v4421_v21 = vmul.u32 %v4419_v15, %v4416_v62  ;;  %v4422_v56 = vmul.u32 %v4418_v59, %v4417_v18  ;;  %vm4214_vm5 = vcmp.lt.s32.totalorder %v9529_v42, 0 }
 0x462   :  { %v4206_v63 = vsel %vm4204_vm14, %v4191_v50, %v4205_v14  ;;  %v4440_v36 = vand.u32 65535, %v4410_v33  ;;  %v4441_v55 = vshrl.u32 %v4410_v33, 16  ;;  %v4420_v22 = vmul.u32 %v4418_v59, %v4416_v62 }
 0x463   :  { %v4210_v58 = vsel %vm4203_vm13, %v4206_v63, %v4209_v40  ;;  %vm5457_vm4 = vcmp.lt.s32.totalorder %v5456_v9, 0  ;;  %v4424_v7 = vshll.u32 %v4421_v21, 16  ;;  %v4336_v25 = vsub.s32 4, %v8751_v28 }
 0x464   :  { %v4211_v54 = vsel %vm4200_vm1, nan, %v4210_v58  ;;  %v4321_v5 = vsel %vm5457_vm4, 0, %v5456_v9  ;;  %v4423_v57 = vmul.u32 %v4419_v15, %v4417_v18  ;;  %v4426_v61 = vshll.u32 %v4422_v56, 16 }
 0x465   :  { %v4322_v43 = vsub.s32 32, %v4321_v5  ;;  %v4326_v38 = vsub.s32 4294967266, %v4321_v5  ;;  %5321 = vst [vmem:[#allocation2 + $0xc0] sm:$0xff] %v4211_v54  ;;  %v4323_v13 = vshll.u32 %v8767_v47, %v4321_v5  ;;  %vm4428_vm6 = vc.u32 %v4420_v22, %v4424_v7 }
 0x466   :  { %v4430_v37 = vadd.s32 %v4424_v7, %v4420_v22  ;;  %vm8818_vm9 = vcmp.le.f32.partialorder %v4212_v46, 0.7853982  ;;  %v4429_v0 = vsel %vm4428_vm6, 1, %v9469_v2  ;;  %v4443_v50 = vmul.u32 %v4441_v55, %v4416_v62 }
 0x467   :  { %v4324_v6 = vshrl.u32 %v4306_v44, %v4322_v43  ;;  %v4327_v60 = vadd.s32 127, %v4326_v38  ;;  %v4431_v41 = vadd.s32 %v4429_v0, %v4423_v57  ;;  %v4442_v32 = vmul.u32 %v4440_v36, %v4416_v62 }
 0x468   :  { %vm4432_vm7 = vc.u32 %v4430_v37, %v4426_v61  ;;  %v4444_v48 = vmul.u32 %v4440_v36, %v4417_v18  ;;  %v4446_v34 = vshll.u32 %v4443_v50, 16  ;;  %v4404_v46 = vsel %vm4402_vm15, %v8756_v52, 2102212464 }
 0x469   :  { %v4325_v11 = vor.u32 %v4324_v6, %v4323_v13  ;;  %v4328_v47 = vshll.u32 %v4327_v60, 23  ;;  %v4433_v29 = vsel %vm4432_vm7, 1, %v9469_v2  ;;  %v4425_v39 = vshrl.u32 %v4421_v21, 16 }
 0x46a   :  { %v4435_v1 = vadd.s32 %v4433_v29, %v4431_v41  ;;  %v4445_v20 = vmul.u32 %v4441_v55, %v4417_v18  ;;  %v4448_v35 = vshll.u32 %v4444_v48, 16  ;;  %vm4450_vm8 = vc.u32 %v4442_v32, %v4446_v34 }
 0x46b   :  { %v4329_v27 = vor.u32 4788187, %v4328_v47  ;;  %v4452_v14 = vadd.s32 %v4446_v34, %v4442_v32  ;;  %v4337_v62 = vsel %vm4214_vm5, %v4336_v25, %v8751_v28  ;;  %v4451_v59 = vsel %vm4450_vm8, 1, %v9469_v2 }
 0x46c   :  { %v4436_v33 = vadd.s32 %v4435_v1, %v4425_v39  ;;  %v5461_v15 = vadd.s32 4294967169, %v4526_v30  ;;  %v4332_v9 = vcvt.s32.f32 %v4325_v11  ;;  %v4453_v63 = vadd.s32 %v4451_v59, %v4445_v20 }
 0x46d   :  { %v4330_v44 = vand.u32 2147483647, %v4329_v27  ;;  %vm4454_vm10 = vc.u32 %v4452_v14, %v4448_v35  ;;  %v4403_v52 = vsel %vm4399_vm11, %v4383_v24, %v8762_v19  ;;  %v4427_v18 = vshrl.u32 %v4422_v56, 16 }
 0x46e   :  { %v4455_v40 = vsel %vm4454_vm10, 1, %v9469_v2  ;;  %v4532_v21 = vadd.s32 1, %v5461_v15  ;;  %v4405_v28 = vsel %vm4401_vm2, %v8754_v23, %v4404_v46  ;;  %v4447_v36 = vshrl.u32 %v4443_v50, 16 }
 0x46f   :  { %v4333_v58 = vmul.f32 %v4332_v9, %v4330_v44  ;;  %v4457_v55 = vadd.s32 %v4455_v40, %v4453_v63  ;;  %v4339_v30 = vsel %vm8818_vm9, 0, %v4337_v62  ;;  %v8840_v54 = vadd.s32 %v4436_v33, %v4427_v18 }
 0x470   :  { %vm4533_vm14 = vcmp.gt.s32.totalorder %v4532_v21, 0  ;;  %v4449_v22 = vshrl.u32 %v4444_v48, 16  ;;  %v4406_v56 = vsel %vm4400_vm3, %v4403_v52, %v4405_v28  ;;  %v8844_v7 = vadd.s32 %v4452_v14, %v4448_v35 }
 0x471   :  { %v4334_v5 = vxor.u32 2147483648, %v4333_v58  ;;  %v4458_v19 = vadd.s32 %v4457_v55, %v4447_v36  ;;  %v4534_v24 = vsel %vm4533_vm14, %v4532_v21, 0  ;;  %v4529_v25 = vand.u32 8388607, %v4522_v17 }
 0x472   :  { %v4536_v43 = vand.u32 31, %v4534_v24  ;;  %v4356_v13 = vadd.s32 3, %v4339_v30  ;;  %vm4462_vm12 = vc.u32 %v8840_v54, %v8844_v7  ;;  %v4460_v37 = vmul.u32 %v8777_v12, %v4406_v56 }
 0x473   :  { %v4335_v23 = vsel %vm4214_vm5, %v4334_v5, %v4333_v58  ;;  %v4459_v38 = vadd.s32 %v4458_v19, %v4449_v22  ;;  %v8868_v29 = vshrl.u32 %v4534_v24, 5  ;;  %v4530_v52 = vor.u32 8388608, %v4529_v25 }
 0x474   :  { %v4338_v57 = vsel %vm8818_vm9, %v9529_v42, %v4335_v23  ;;  %v8855_v53 = vsub.s32 32, %v4536_v43  ;;  %v4539_v60 = vshll.u32 %v9473_v31, %v4536_v43  ;;  %v4542_v50 = vshll.u32 %v9474_v45, %v4536_v43 }
 0x475   :  { %v4340_v61 = vmul.f32 %v4338_v57, %v4338_v57  ;;  %v4463_v6 = vadd.s32 1, %v4459_v38  ;;  %v4545_v34 = vshll.u32 %v9475_v3, %v4536_v43  ;;  %v4548_v46 = vshll.u32 %v9476_v8, %v4536_v43 }
 0x476   :  { %v4540_v0 = vshrl.u32 %v9474_v45, %v8855_v53  ;;  %v4543_v26 = vshrl.u32 %v9475_v3, %v8855_v53  ;;  %v4546_v41 = vshrl.u32 %v9476_v8, %v8855_v53  ;;  %v4549_v12 = vshrl.u32 %v9477_v4, %v8855_v53 }
 0x477   :  { %v4341_v32 = vmul.f32 -0.001358992, %v4340_v61  ;;  %v4348_v48 = vmul.f32 -0.00019511016, %v4340_v61  ;;  %v4464_v11 = vsel %vm4462_vm12, %v4463_v6, %v4459_v38  ;;  %v4551_v62 = vshll.u32 %v9477_v4, %v4536_v43 }
 0x478   :  { %v4465_v47 = vadd.s32 %v4464_v11, %v4460_v37  ;;  %v8872_v20 = vor.u32 %v4540_v0, %v4539_v60  ;;  %v8874_v27 = vor.u32 %v4543_v26, %v4542_v50  ;;  %v4550_v14 = vor.u32 %v4549_v12, %v4548_v46 }
 0x479   :  { %v4342_v39 = vadd.f32 0.041655596, %v4341_v32  ;;  %v4349_v1 = vadd.f32 0.008332121, %v4348_v48  ;;  %v4552_v33 = vshrl.u32 %v9481_v10, %v8855_v53  ;;  %v4357_v44 = vand.u32 3, %v4356_v13 }
 0x47a   :  { %v4466_v35 = vadd.s32 536870912, %v4465_v47  ;;  %v8879_v9 = vor.u32 %v4546_v41, %v4545_v34  ;;  %vm4554_vm11 = vcmp.lt.s32.totalorder %v8868_v29, 1  ;;  %vm4557_vm15 = vcmp.lt.s32.totalorder %v8868_v29, 4  ;;  %v9538_v41 = vld [vmem:[#allocation11_spill] sm:$0xff] }
 0x47b   :  { %v4343_v59 = vmul.f32 %v4342_v39, %v4340_v61  ;;  %v4350_v15 = vmul.f32 %v4349_v1, %v4340_v61  ;;  %v4553_v18 = vor.u32 %v4552_v33, %v4551_v62  ;;  %vm4556_vm13 = vcmp.lt.s32.totalorder %v8868_v29, 3 }
 0x47c   :  { %v8881_v63 = vshrl.u32 %v4466_v35, 30  ;;  %v4562_v28 = vsel %vm4554_vm11, %v8872_v20, %v8874_v27  ;;  %v4563_v36 = vsel %vm4557_vm15, %v4550_v14, 920167782  ;;  %vm4358_vm1 = vcmp.lt.s32.totalorder %v4357_v44, 2 }
 0x47d   :  { %v4344_v40 = vadd.f32 -0.4999988, %v4343_v59  ;;  %v4351_v21 = vadd.f32 -0.16666654, %v4350_v15  ;;  %v4564_v5 = vsel %vm4556_vm13, %v8879_v9, %v4563_v36  ;;  %v4566_v22 = vsel %vm4554_vm11, %v8874_v27, %v8879_v9 }
 0x47e   :  { %v4468_v58 = vshll.u32 %v8881_v63, 30  ;;  %vm4355_vm2 = vweird.f32 %v9529_v42  ;;  %vm4359_vm0 = vcmp.eq.s32.totalorder %v4357_v44, 0  ;;  %v4567_v24 = vsel %vm4557_vm15, %v4553_v18, 1326507024 }
 0x47f   :  { %v4345_v55 = vmul.f32 %v4344_v40, %v4340_v61  ;;  %v4352_v30 = vmul.f32 %v4351_v21, %v4340_v61  ;;  %v8905_v56 = vshll.u32 %v4530_v52, 8  ;;  %vm4555_vm3 = vcmp.lt.s32.totalorder %v8868_v29, 2 }
 0x480   :  { %v8901_v19 = vsub.s32 %v4465_v47, %v4468_v58  ;;  %v4568_v38 = vsel %vm4556_vm13, %v4550_v14, %v4567_v24  ;;  %v4565_v13 = vsel %vm4555_vm3, %v4562_v28, %v4564_v5  ;;  %vm4362_vm4 = vcmp.eq.s32.totalorder %v4357_v44, 2 }
 0x481   :  { %v4346_v43 = vadd.f32 1.0, %v4345_v55  ;;  %v4353_v23 = vadd.f32 1.0, %v4352_v30  ;;  %v4569_v61 = vsel %vm4555_vm3, %v4566_v22, %v4568_v38  ;;  %v4571_v26 = vand.u32 65535, %v8905_v56 }
 0x482   :  { %vm4470_vm5 = vcmp.lt.s32.totalorder %v8901_v19, 0  ;;  %v4471_v25 = vsub.s32 0, %v8901_v19  ;;  %v4573_v60 = vand.u32 65535, %v4569_v61  ;;  %v4574_v0 = vshrl.u32 %v4569_v61, 16 }
 0x483   :  { %v4354_v37 = vmul.f32 %v4353_v23, %v4338_v57  ;;  %v4363_v6 = vxor.u32 2147483648, %v4346_v43  ;;  %v4677_v32 = vand.u32 2147483647, %v9538_v41  ;;  %v4461_v11 = vadd.s32 %v8844_v7, %v8840_v54 }
 0x484   :  { %v4472_v50 = vsel %vm4470_vm5, %v4471_v25, %v8901_v19  ;;  %v4572_v47 = vshrl.u32 %v8905_v56, 16  ;;  %v4576_v34 = vmul.u32 %v4574_v0, %v4571_v26  ;;  %v4595_v46 = vand.u32 65535, %v4565_v13 }
 0x485   :  { %v4360_v48 = vxor.u32 2147483648, %v4354_v37  ;;  %v4473_v12 = vclz %v4472_v50  ;;  %v4596_v57 = vshrl.u32 %v4565_v13, 16  ;;  %v4680_v39 = vand.u32 2139095040, %v9538_v41 }
 0x486   :  { %v4364_v35 = vsel %vm4362_vm4, %v4363_v6, %v4354_v37  ;;  %v4577_v62 = vmul.u32 %v4573_v60, %v4572_v47  ;;  %v4491_v59 = vsub.s32 4, %v8881_v63  ;;  %v4575_v15 = vmul.u32 %v4573_v60, %v4571_v26 }
 0x487   :  { %v4361_v1 = vsel %vm4359_vm0, %v4346_v43, %v4360_v48  ;;  %v5459_v14 = vadd.s32 4294967294, %v4473_v12  ;;  %v4579_v52 = vshll.u32 %v4576_v34, 16  ;;  %vm4369_vm6 = vcmp.lt.s32.totalorder %v9532_v49, 0 }
 0x488   :  { %v4365_v33 = vsel %vm4358_vm1, %v4361_v1, %v4364_v35  ;;  %v4578_v7 = vmul.u32 %v4574_v0, %v4572_v47  ;;  %v4581_v18 = vshll.u32 %v4577_v62, 16  ;;  %v4598_v58 = vmul.u32 %v4596_v57, %v4571_v26 }
 0x489   :  { %v4366_v54 = vsel %vm4355_vm2, nan, %v4365_v33  ;;  %vm5460_vm9 = vcmp.lt.s32.totalorder %v5459_v14, 0  ;;  %vm4583_vm7 = vc.u32 %v4575_v15, %v4579_v52  ;;  %v4585_v21 = vadd.s32 %v4579_v52, %v4575_v15 }
 0x48a   :  { %v4476_v40 = vsel %vm5460_vm9, 0, %v5459_v14  ;;  %5322 = vst [vmem:[#allocation2 + $0xc8] sm:$0xff] %v4366_v54  ;;  %v4584_v36 = vsel %vm4583_vm7, 1, %v9469_v2  ;;  %v4597_v55 = vmul.u32 %v4595_v46, %v4571_v26  ;;  %vm8932_vm8 = vcmp.le.f32.partialorder %v4367_v51, 0.7853982 }
 0x48b   :  { %v4477_v28 = vsub.s32 32, %v4476_v40  ;;  %v4481_v44 = vsub.s32 4294967266, %v4476_v40  ;;  %v4478_v30 = vshll.u32 %v8901_v19, %v4476_v40  ;;  %v4586_v5 = vadd.s32 %v4584_v36, %v4578_v7 }
 0x48c   :  { %vm4587_vm10 = vc.u32 %v4585_v21, %v4581_v18  ;;  %v4599_v22 = vmul.u32 %v4595_v46, %v4572_v47  ;;  %v4601_v38 = vshll.u32 %v4598_v58, 16  ;;  %v4580_v25 = vshrl.u32 %v4576_v34, 16 }
 0x48d   :  { %v4479_v24 = vshrl.u32 %v4461_v11, %v4477_v28  ;;  %v4482_v43 = vadd.s32 127, %v4481_v44  ;;  %v4588_v23 = vsel %vm4587_vm10, 1, %v9469_v2  ;;  %v4600_v61 = vmul.u32 %v4596_v57, %v4572_v47 }
 0x48e   :  { %v4590_v13 = vadd.s32 %v4588_v23, %v4586_v5  ;;  %v4603_v37 = vshll.u32 %v4599_v22, 16  ;;  %vm4605_vm14 = vc.u32 %v4597_v55, %v4601_v38  ;;  %v4607_v51 = vadd.s32 %v4601_v38, %v4597_v55 }
 0x48f   :  { %v4480_v6 = vor.u32 %v4479_v24, %v4478_v30  ;;  %v4483_v60 = vshll.u32 %v4482_v43, 23  ;;  %v4538_v0 = vshrl.u32 %v9473_v31, %v8855_v53  ;;  %v4606_v50 = vsel %vm4605_vm14, 1, %v9469_v2 }
 0x490   :  { %v4591_v19 = vadd.s32 %v4590_v13, %v4580_v25  ;;  %v4681_v26 = vshrl.u32 %v4680_v39, 23  ;;  %v4559_v11 = vsel %vm4557_vm15, %v8879_v9, 2102212464  ;;  %v4608_v12 = vadd.s32 %v4606_v50, %v4600_v61 }
 0x491   :  { %v4484_v48 = vor.u32 4788187, %v4483_v60  ;;  %vm4609_vm12 = vc.u32 %v4607_v51, %v4603_v37  ;;  %v4492_v47 = vsel %vm4369_vm6, %v4491_v59, %v8881_v63  ;;  %v4582_v34 = vshrl.u32 %v4577_v62, 16 }
 0x492   :  { %v4610_v46 = vsel %vm4609_vm12, 1, %v9469_v2  ;;  %v5464_v57 = vadd.s32 4294967169, %v4681_v26  ;;  %v4487_v1 = vcvt.s32.f32 %v4480_v6  ;;  %v4602_v35 = vshrl.u32 %v4598_v58, 16 }
 0x493   :  { %v4485_v53 = vand.u32 2147483647, %v4484_v48  ;;  %v4612_v14 = vadd.s32 %v4610_v46, %v4608_v12  ;;  %v4558_v39 = vsel %vm4554_vm11, %v4538_v0, %v8872_v20  ;;  %v4560_v9 = vsel %vm4556_vm13, %v8874_v27, %v4559_v11 }
 0x494   :  { %v4592_v33 = vadd.s32 %v4591_v19, %v4582_v34  ;;  %v4687_v15 = vadd.s32 1, %v5464_v57  ;;  %v4494_v63 = vsel %vm8932_vm8, 0, %v4492_v47  ;;  %v4604_v62 = vshrl.u32 %v4599_v22, 16 }
 0x495   :  { %v4488_v52 = vmul.f32 %v4487_v1, %v4485_v53  ;;  %v4613_v59 = vadd.s32 %v4612_v14, %v4602_v35  ;;  %v4611_v54 = vadd.s32 %v4607_v51, %v4603_v37  ;;  %v4561_v18 = vsel %vm4555_vm3, %v4558_v39, %v4560_v9 }
 0x496   :  { %vm4688_vm15 = vcmp.gt.s32.totalorder %v4687_v15, 0  ;;  %v4511_v21 = vadd.s32 3, %v4494_v63  ;;  %v4684_v27 = vand.u32 8388607, %v4677_v32  ;;  %v4615_v55 = vmul.u32 %v8905_v56, %v4561_v18  ;;  %v9541_v18 = vld [vmem:[#allocation13_spill] sm:$0xff] }
 0x497   :  { %v4489_v7 = vxor.u32 2147483648, %v4488_v52  ;;  %v4614_v40 = vadd.s32 %v4613_v59, %v4604_v62  ;;  %v4689_v20 = vsel %vm4688_vm15, %v4687_v15, 0  ;;  %vm4617_vm11 = vc.u32 %v4592_v33, %v4611_v54 }
 0x498   :  { %v4691_v58 = vand.u32 31, %v4689_v20  ;;  %v8968_v22 = vand.u32 3, %v4511_v21  ;;  %v4685_v43 = vor.u32 8388608, %v4684_v27  ;;  %v8976_v61 = vshrl.u32 %v4689_v20, 5 }
 0x499   :  { %v4490_v28 = vsel %vm4369_vm6, %v4489_v7, %v4488_v52  ;;  %v4618_v44 = vadd.s32 1, %v4614_v40  ;;  %v8990_v57 = vadd.s32 %v4611_v54, %v4592_v33  ;;  %vm4510_vm4 = vweird.f32 %v9532_v49 }
 0x49a   :  { %v4493_v36 = vsel %vm8932_vm8, %v9532_v49, %v4490_v28  ;;  %v8966_v29 = vsub.s32 32, %v4691_v58  ;;  %v4703_v6 = vshll.u32 %v9476_v8, %v4691_v58  ;;  %v4694_v0 = vshll.u32 %v9473_v31, %v4691_v58 }
 0x49b   :  { %v4495_v30 = vmul.f32 %v4493_v36, %v4493_v36  ;;  %v4619_v5 = vsel %vm4617_vm11, %v4618_v44, %v4614_v40  ;;  %v4697_v19 = vshll.u32 %v9474_v45, %v4691_v58  ;;  %v4700_v26 = vshll.u32 %v9475_v3, %v4691_v58 }
 0x49c   :  { %v4620_v24 = vadd.s32 %v4619_v5, %v4615_v55  ;;  %v4695_v23 = vshrl.u32 %v9474_v45, %v8966_v29  ;;  %v4698_v13 = vshrl.u32 %v9475_v3, %v8966_v29  ;;  %v4704_v42 = vshrl.u32 %v9477_v4, %v8966_v29 }
 0x49d   :  { %v4496_v38 = vmul.f32 -0.001358992, %v4495_v30  ;;  %v4503_v25 = vmul.f32 -0.00019511016, %v4495_v30  ;;  %v4701_v37 = vshrl.u32 %v9476_v8, %v8966_v29  ;;  %v4707_v11 = vshrl.u32 %v9481_v10, %v8966_v29 }
 0x49e   :  { %v4621_v56 = vadd.s32 536870912, %v4620_v24  ;;  %v4705_v48 = vor.u32 %v4704_v42, %v4703_v6  ;;  %v4696_v34 = vor.u32 %v4695_v23, %v4694_v0  ;;  %v8988_v46 = vor.u32 %v4698_v13, %v4697_v19 }
 0x49f   :  { %v4497_v60 = vadd.f32 0.041655596, %v4496_v38  ;;  %v4504_v51 = vadd.f32 0.008332121, %v4503_v25  ;;  %v4702_v1 = vor.u32 %v4701_v37, %v4700_v26  ;;  %v4706_v35 = vshll.u32 %v9477_v4, %v4691_v58 }
 0x4a0   :  { %v8983_v50 = vshrl.u32 %v4621_v56, 30  ;;  %vm4712_vm13 = vcmp.lt.s32.totalorder %v8976_v61, 4  ;;  %v8995_v9 = vshll.u32 %v4685_v43, 8  ;;  %vm4514_vm1 = vcmp.eq.s32.totalorder %v8968_v22, 0 }
 0x4a1   :  { %v4498_v12 = vmul.f32 %v4497_v60, %v4495_v30  ;;  %v4505_v47 = vmul.f32 %v4504_v51, %v4495_v30  ;;  %vm4517_vm2 = vcmp.eq.s32.totalorder %v8968_v22, 2  ;;  %v4708_v52 = vor.u32 %v4707_v11, %v4706_v35 }
 0x4a2   :  { %v4623_v53 = vshll.u32 %v8983_v50, 30  ;;  %vm4709_vm0 = vcmp.lt.s32.totalorder %v8976_v61, 1  ;;  %v4718_v33 = vsel %vm4712_vm13, %v4705_v48, 920167782  ;;  %vm4513_vm3 = vcmp.lt.s32.totalorder %v8968_v22, 2 }
 0x4a3   :  { %v4499_v14 = vadd.f32 -0.4999988, %v4498_v12  ;;  %v4506_v39 = vadd.f32 -0.16666654, %v4505_v47  ;;  %vm4711_vm5 = vcmp.lt.s32.totalorder %v8976_v61, 3  ;;  %v4717_v59 = vsel %vm4709_vm0, %v4696_v34, %v8988_v46 }
 0x4a4   :  { %v8999_v15 = vsub.s32 %v4620_v24, %v4623_v53  ;;  %vm4524_vm6 = vcmp.lt.s32.totalorder %v9535_v16, 0  ;;  %v4719_v7 = vsel %vm4711_vm5, %v4702_v1, %v4718_v33  ;;  %v4835_v40 = vand.u32 2139095040, %v9541_v18 }
 0x4a5   :  { %v4500_v63 = vmul.f32 %v4499_v14, %v4495_v30  ;;  %v4507_v62 = vmul.f32 %v4506_v39, %v4495_v30  ;;  %vm4710_vm7 = vcmp.lt.s32.totalorder %v8976_v61, 2  ;;  %v4721_v27 = vsel %vm4709_vm0, %v8988_v46, %v4702_v1 }
 0x4a6   :  { %vm4625_vm9 = vcmp.lt.s32.totalorder %v8999_v15, 0  ;;  %v4626_v54 = vsub.s32 0, %v8999_v15  ;;  %v4720_v28 = vsel %vm4710_vm7, %v4717_v59, %v4719_v7  ;;  %v4722_v44 = vsel %vm4712_vm13, %v4708_v52, 1326507024 }
 0x4a7   :  { %v4501_v20 = vadd.f32 1.0, %v4500_v63  ;;  %v4508_v21 = vadd.f32 1.0, %v4507_v62  ;;  %v4726_v55 = vand.u32 65535, %v8995_v9  ;;  %v4723_v43 = vsel %vm4711_vm5, %v4705_v48, %v4722_v44 }
 0x4a8   :  { %v4627_v58 = vsel %vm4625_vm9, %v4626_v54, %v8999_v15  ;;  %v4693_v23 = vshrl.u32 %v9473_v31, %v8966_v29  ;;  %v4724_v38 = vsel %vm4710_vm7, %v4721_v27, %v4723_v43  ;;  %v4727_v25 = vshrl.u32 %v8995_v9, 16 }
 0x4a9   :  { %v4509_v30 = vmul.f32 %v4508_v21, %v4493_v36  ;;  %v4518_v5 = vxor.u32 2147483648, %v4501_v20  ;;  %v4628_v24 = vclz %v4627_v58  ;;  %v4836_v13 = vshrl.u32 %v4835_v40, 23 }
 0x4aa   :  { %v4646_v37 = vsub.s32 4, %v8983_v50  ;;  %v4728_v6 = vand.u32 65535, %v4724_v38  ;;  %v9036_v36 = vsel %vm4709_vm0, %v4693_v23, %v4696_v34  ;;  %v4714_v60 = vsel %vm4712_vm13, %v4702_v1, 2102212464 }
 0x4ab   :  { %v4515_v42 = vxor.u32 2147483648, %v4509_v30  ;;  %v5462_v56 = vadd.s32 4294967294, %v4628_v24  ;;  %v4729_v51 = vshrl.u32 %v4724_v38, 16  ;;  %v4750_v29 = vand.u32 65535, %v4720_v28 }
 0x4ac   :  { %v4519_v19 = vsel %vm4517_vm2, %v4518_v5, %v4509_v30  ;;  %v4751_v26 = vshrl.u32 %v4720_v28, 16  ;;  %vm9048_vm10 = vcmp.le.f32.partialorder %v4522_v17, 0.7853982  ;;  %v4732_v34 = vmul.u32 %v4728_v6, %v4727_v25 }
 0x4ad   :  { %v4516_v0 = vsel %vm4514_vm1, %v4501_v20, %v4515_v42  ;;  %vm5463_vm8 = vcmp.lt.s32.totalorder %v5462_v56, 0  ;;  %v4731_v47 = vmul.u32 %v4729_v51, %v4726_v55  ;;  %v4647_v14 = vsel %vm4524_vm6, %v4646_v37, %v8983_v50 }
 0x4ae   :  { %v4520_v48 = vsel %vm4513_vm3, %v4516_v0, %v4519_v19  ;;  %v4631_v12 = vsel %vm5463_vm8, 0, %v5462_v56  ;;  %v4730_v22 = vmul.u32 %v4728_v6, %v4726_v55  ;;  %v4752_v52 = vmul.u32 %v4750_v29, %v4726_v55 }
 0x4af   :  { %v4521_v53 = vsel %vm4510_vm4, nan, %v4520_v48  ;;  %v4632_v1 = vsub.s32 32, %v4631_v12  ;;  %v4636_v35 = vsub.s32 4294967266, %v4631_v12  ;;  %v4734_v39 = vshll.u32 %v4731_v47, 16 }
 0x4b0   :  { %v4754_v33 = vmul.u32 %v4750_v29, %v4727_v25  ;;  %5323 = vst [vmem:[#allocation2 + $0xd0] sm:$0xff] %v4521_v53  ;;  %v4633_v17 = vshll.u32 %v8999_v15, %v4631_v12  ;;  %v4753_v59 = vmul.u32 %v4751_v26, %v4726_v55  ;;  %v4733_v54 = vmul.u32 %v4729_v51, %v4727_v25 }
 0x4b1   :  { %v4634_v63 = vshrl.u32 %v8990_v57, %v4632_v1  ;;  %v4637_v62 = vadd.s32 127, %v4636_v35  ;;  %v4736_v49 = vshll.u32 %v4732_v34, 16  ;;  %vm4738_vm14 = vc.u32 %v4730_v22, %v4734_v39 }
 0x4b2   :  { %v4740_v7 = vadd.s32 %v4734_v39, %v4730_v22  ;;  %v4739_v21 = vsel %vm4738_vm14, 1, %v9469_v2  ;;  %v4756_v50 = vshll.u32 %v4753_v59, 16  ;;  %v4735_v27 = vshrl.u32 %v4731_v47, 16 }
 0x4b3   :  { %v4635_v40 = vor.u32 %v4634_v63, %v4633_v17  ;;  %v4638_v20 = vshll.u32 %v4637_v62, 23  ;;  %v4741_v58 = vadd.s32 %v4739_v21, %v4733_v54  ;;  %v4755_v28 = vmul.u32 %v4751_v26, %v4727_v25 }
 0x4b4   :  { %vm4742_vm12 = vc.u32 %v4740_v7, %v4736_v49  ;;  %v4758_v30 = vshll.u32 %v4754_v33, 16  ;;  %vm4760_vm15 = vc.u32 %v4752_v52, %v4756_v50  ;;  %v4762_v5 = vadd.s32 %v4756_v50, %v4752_v52 }
 0x4b5   :  { %v4639_v44 = vor.u32 4788187, %v4638_v20  ;;  %v4743_v15 = vsel %vm4742_vm12, 1, %v9469_v2  ;;  %v4761_v55 = vsel %vm4760_vm15, 1, %v9469_v2  ;;  %v5467_v24 = vadd.s32 4294967169, %v4836_v13 }
 0x4b6   :  { %v4745_v57 = vadd.s32 %v4743_v15, %v4741_v58  ;;  %v4642_v23 = vcvt.s32.f32 %v4635_v40  ;;  %v4649_v38 = vsel %vm9048_vm10, 0, %v4647_v14  ;;  %v4763_v42 = vadd.s32 %v4761_v55, %v4755_v28 }
 0x4b7   :  { %v4640_v43 = vand.u32 2147483647, %v4639_v44  ;;  %v4715_v25 = vsel %vm4711_vm5, %v8988_v46, %v4714_v60  ;;  %vm4764_vm11 = vc.u32 %v4762_v5, %v4758_v30  ;;  %v4842_v37 = vadd.s32 1, %v5467_v24 }
 0x4b8   :  { %v4746_v56 = vadd.s32 %v4745_v57, %v4735_v27  ;;  %v4737_v51 = vshrl.u32 %v4732_v34, 16  ;;  %v4765_v29 = vsel %vm4764_vm11, 1, %v9469_v2  ;;  %v4832_v0 = vand.u32 2147483647, %v9541_v18 }
 0x4b9   :  { %v4643_v6 = vmul.f32 %v4642_v23, %v4640_v43  ;;  %v4666_v13 = vadd.s32 3, %v4649_v38  ;;  %v4757_v19 = vshrl.u32 %v4753_v59, 16  ;;  %v4767_v26 = vadd.s32 %v4765_v29, %v4763_v42 }
 0x4ba   :  { %vm4843_vm13 = vcmp.gt.s32.totalorder %v4842_v37, 0  ;;  %v4716_v12 = vsel %vm4710_vm7, %v9036_v36, %v4715_v25  ;;  %v9072_v47 = vadd.s32 %v4746_v56, %v4737_v51  ;;  %v4759_v60 = vshrl.u32 %v4754_v33, 16 }
 0x4bb   :  { %v4644_v48 = vxor.u32 2147483648, %v4643_v6  ;;  %v4844_v46 = vsel %vm4843_vm13, %v4842_v37, 0  ;;  %v4768_v53 = vadd.s32 %v4767_v26, %v4757_v19  ;;  %v9076_v1 = vadd.s32 %v4762_v5, %v4758_v30 }
 0x4bc   :  { %v4839_v35 = vand.u32 8388607, %v4832_v0  ;;  %v4846_v14 = vand.u32 31, %v4844_v46  ;;  %v9083_v61 = vand.u32 3, %v4666_v13  ;;  %v4770_v39 = vmul.u32 %v8995_v9, %v4716_v12 }
 0x4bd   :  { %v4645_v34 = vsel %vm4524_vm6, %v4644_v48, %v4643_v6  ;;  %v4769_v36 = vadd.s32 %v4768_v53, %v4759_v60  ;;  %vm4772_vm1 = vc.u32 %v9072_v47, %v9076_v1  ;;  %v9088_v33 = vshrl.u32 %v4844_v46, 5  ;;  %v9544_v53 = vld [vmem:[#allocation15_spill] sm:$0xff] }
 0x4be   :  { %v4648_v22 = vsel %vm9048_vm10, %v9535_v16, %v4645_v34  ;;  %v9090_v17 = vsub.s32 32, %v4846_v14  ;;  %v4849_v62 = vshll.u32 %v9473_v31, %v4846_v14  ;;  %v4852_v59 = vshll.u32 %v9474_v45, %v4846_v14 }
 0x4bf   :  { %v4650_v52 = vmul.f32 %v4648_v22, %v4648_v22  ;;  %v4773_v63 = vadd.s32 1, %v4769_v36  ;;  %v4855_v11 = vshll.u32 %v9475_v3, %v4846_v14  ;;  %v4858_v7 = vshll.u32 %v9476_v8, %v4846_v14 }
 0x4c0   :  { %v4850_v9 = vshrl.u32 %v9474_v45, %v9090_v17  ;;  %v4853_v20 = vshrl.u32 %v9475_v3, %v9090_v17  ;;  %v4856_v21 = vshrl.u32 %v9476_v8, %v9090_v17  ;;  %v4859_v50 = vshrl.u32 %v9477_v4, %v9090_v17 }
 0x4c1   :  { %v4651_v54 = vmul.f32 -0.001358992, %v4650_v52  ;;  %v4658_v49 = vmul.f32 -0.00019511016, %v4650_v52  ;;  %v4774_v40 = vsel %vm4772_vm1, %v4773_v63, %v4769_v36  ;;  %v4861_v44 = vshll.u32 %v9477_v4, %v4846_v14 }
 0x4c2   :  { %v4775_v28 = vadd.s32 %v4774_v40, %v4770_v39  ;;  %v9105_v15 = vor.u32 %v4850_v9, %v4849_v62  ;;  %v9107_v30 = vor.u32 %v4853_v20, %v4852_v59  ;;  %v4860_v57 = vor.u32 %v4859_v50, %v4858_v7 }
 0x4c3   :  { %v4652_v27 = vadd.f32 0.041655596, %v4651_v54  ;;  %v4659_v58 = vadd.f32 0.008332121, %v4658_v49  ;;  %v4862_v55 = vshrl.u32 %v9481_v10, %v9090_v17  ;;  %v4857_v23 = vor.u32 %v4856_v21, %v4855_v11 }
 0x4c4   :  { %v4776_v43 = vadd.s32 536870912, %v4775_v28  ;;  %v4840_v38 = vor.u32 8388608, %v4839_v35  ;;  %vm4864_vm2 = vcmp.lt.s32.totalorder %v9088_v33, 1  ;;  %vm4867_vm0 = vcmp.lt.s32.totalorder %v9088_v33, 4 }
 0x4c5   :  { %v4653_v5 = vmul.f32 %v4652_v27, %v4650_v52  ;;  %v4660_v24 = vmul.f32 %v4659_v58, %v4650_v52  ;;  %v4863_v42 = vor.u32 %v4862_v55, %v4861_v44  ;;  %vm4866_vm3 = vcmp.lt.s32.totalorder %v9088_v33, 3 }
 0x4c6   :  { %v9112_v37 = vshrl.u32 %v4776_v43, 30  ;;  %v4872_v6 = vsel %vm4864_vm2, %v9105_v15, %v9107_v30  ;;  %v4873_v51 = vsel %vm4867_vm0, %v4860_v57, 920167782  ;;  %vm4668_vm5 = vcmp.lt.s32.totalorder %v9083_v61, 2 }
 0x4c7   :  { %v4654_v25 = vadd.f32 -0.4999988, %v4653_v5  ;;  %v4661_v56 = vadd.f32 -0.16666654, %v4660_v24  ;;  %v4877_v29 = vsel %vm4867_vm0, %v4863_v42, 1326507024  ;;  %v4876_v48 = vsel %vm4864_vm2, %v9107_v30, %v4857_v23 }
 0x4c8   :  { %v4778_v26 = vshll.u32 %v9112_v37, 30  ;;  %vm4665_vm4 = vweird.f32 %v9535_v16  ;;  %v4874_v12 = vsel %vm4866_vm3, %v4857_v23, %v4873_v51  ;;  %v4878_v46 = vsel %vm4866_vm3, %v4860_v57, %v4877_v29 }
 0x4c9   :  { %v4655_v13 = vmul.f32 %v4654_v25, %v4650_v52  ;;  %v4662_v19 = vmul.f32 %v4661_v56, %v4650_v52  ;;  %v9134_v60 = vshll.u32 %v4840_v38, 8  ;;  %v4990_v34 = vand.u32 2139095040, %v9544_v53 }
 0x4ca   :  { %v4779_v36 = vsub.s32 %v4775_v28, %v4778_v26  ;;  %vm4865_vm6 = vcmp.lt.s32.totalorder %v9088_v33, 2  ;;  %vm4669_vm9 = vcmp.eq.s32.totalorder %v9083_v61, 0  ;;  %vm4672_vm7 = vcmp.eq.s32.totalorder %v9083_v61, 2 }
 0x4cb   :  { %v4656_v35 = vadd.f32 1.0, %v4655_v13  ;;  %v4663_v14 = vadd.f32 1.0, %v4662_v19  ;;  %v4875_v39 = vsel %vm4865_vm6, %v4872_v6, %v4874_v12  ;;  %v4879_v52 = vsel %vm4865_vm6, %v4876_v48, %v4878_v46 }
 0x4cc   :  { %vm4780_vm8 = vcmp.lt.s32.totalorder %v4779_v36, 0  ;;  %v4781_v59 = vsub.s32 0, %v4779_v36  ;;  %v4881_v11 = vand.u32 65535, %v9134_v60  ;;  %v4882_v54 = vshrl.u32 %v9134_v60, 16 }
 0x4cd   :  { %v4664_v63 = vmul.f32 %v4663_v14, %v4648_v22  ;;  %v4673_v62 = vxor.u32 2147483648, %v4656_v35  ;;  %v4883_v49 = vand.u32 65535, %v4879_v52  ;;  %v4884_v9 = vshrl.u32 %v4879_v52, 16 }
 0x4ce   :  { %v4771_v40 = vadd.s32 %v9076_v1, %v9072_v47  ;;  %v4782_v20 = vsel %vm4780_vm8, %v4781_v59, %v4779_v36  ;;  %v4991_v21 = vshrl.u32 %v4990_v34, 23  ;;  %v4848_v27 = vshrl.u32 %v9473_v31, %v9090_v17 }
 0x4cf   :  { %v4670_v7 = vxor.u32 2147483648, %v4664_v63  ;;  %v4783_v50 = vclz %v4782_v20  ;;  %v4886_v22 = vmul.u32 %v4884_v9, %v4881_v11  ;;  %v4906_v58 = vshrl.u32 %v4875_v39, 16 }
 0x4d0   :  { %v4674_v44 = vsel %vm4672_vm7, %v4673_v62, %v4664_v63  ;;  %v4887_v57 = vmul.u32 %v4883_v49, %v4882_v54  ;;  %v4905_v55 = vand.u32 65535, %v4875_v39  ;;  %v4801_v1 = vsub.s32 4, %v9112_v37 }
 0x4d1   :  { %v4671_v28 = vsel %vm4669_vm9, %v4656_v35, %v4670_v7  ;;  %v5465_v47 = vadd.s32 4294967294, %v4783_v50  ;;  %v4869_v24 = vsel %vm4867_vm0, %v4857_v23, 2102212464  ;;  %v4885_v43 = vmul.u32 %v4883_v49, %v4881_v11 }
 0x4d2   :  { %v4675_v5 = vsel %vm4668_vm5, %v4671_v28, %v4674_v44  ;;  %v4889_v38 = vshll.u32 %v4886_v22, 16  ;;  %v5470_v42 = vadd.s32 4294967169, %v4991_v21  ;;  %v4888_v25 = vmul.u32 %v4884_v9, %v4882_v54 }
 0x4d3   :  { %v4676_v17 = vsel %vm4665_vm4, nan, %v4675_v5  ;;  %vm5466_vm10 = vcmp.lt.s32.totalorder %v5465_v47, 0  ;;  %v4891_v56 = vshll.u32 %v4887_v57, 16  ;;  %v4908_v6 = vmul.u32 %v4906_v58, %v4881_v11 }
 0x4d4   :  { %5324 = vst [vmem:[#allocation2 + $0xd8] sm:$0xff] %v4676_v17  ;;  %v4786_v51 = vsel %vm5466_vm10, 0, %v5465_v47  ;;  %vm4893_vm14 = vc.u32 %v4885_v43, %v4889_v38  ;;  %v4895_v61 = vadd.s32 %v4889_v38, %v4885_v43  ;;  %v4909_v29 = vmul.u32 %v4905_v55, %v4882_v54 }
 0x4d5   :  { %vm9163_vm12 = vcmp.le.f32.partialorder %v4677_v32, 0.7853982  ;;  %v4787_v16 = vsub.s32 32, %v4786_v51  ;;  %v4791_v23 = vsub.s32 4294967266, %v4786_v51  ;;  %v4894_v19 = vsel %vm4893_vm14, 1, %v9469_v2 }
 0x4d6   :  { %v4907_v26 = vmul.u32 %v4905_v55, %v4881_v11  ;;  %v4890_v48 = vshrl.u32 %v4886_v22, 16  ;;  %v4896_v12 = vadd.s32 %v4894_v19, %v4888_v25  ;;  %vm4897_vm15 = vc.u32 %v4895_v61, %v4891_v56 }
 0x4d7   :  { %v4911_v46 = vshll.u32 %v4908_v6, 16  ;;  %v4788_v34 = vshll.u32 %v4779_v36, %v4786_v51  ;;  %v4789_v35 = vshrl.u32 %v4771_v40, %v4787_v16  ;;  %v4792_v14 = vadd.s32 127, %v4791_v23 }
 0x4d8   :  { %v4898_v39 = vsel %vm4897_vm15, 1, %v9469_v2  ;;  %v4910_v63 = vmul.u32 %v4906_v58, %v4882_v54  ;;  %v4913_v32 = vshll.u32 %v4909_v29, 16  ;;  %vm4679_vm13 = vcmp.lt.s32.totalorder %v9538_v41, 0 }
 0x4d9   :  { %v4900_v52 = vadd.s32 %v4898_v39, %v4896_v12  ;;  %vm4915_vm11 = vc.u32 %v4907_v26, %v4911_v46  ;;  %v4790_v62 = vor.u32 %v4789_v35, %v4788_v34  ;;  %v4793_v59 = vshll.u32 %v4792_v14, 23 }
 0x4da   :  { %v4916_v49 = vsel %vm4915_vm11, 1, %v9469_v2  ;;  %v4917_v9 = vadd.s32 %v4911_v46, %v4907_v26  ;;  %v4868_v11 = vsel %vm4864_vm2, %v4848_v27, %v9105_v15  ;;  %v4802_v54 = vsel %vm4679_vm13, %v4801_v1, %v9112_v37 }
 0x4db   :  { %v4901_v36 = vadd.s32 %v4900_v52, %v4890_v48  ;;  %v4918_v7 = vadd.s32 %v4916_v49, %v4910_v63  ;;  %v4794_v40 = vor.u32 4788187, %v4793_v59  ;;  %v4870_v20 = vsel %vm4866_vm3, %v9107_v30, %v4869_v24 }
 0x4dc   :  { %vm4919_vm1 = vc.u32 %v4917_v9, %v4913_v32  ;;  %v4892_v21 = vshrl.u32 %v4887_v57, 16  ;;  %v4987_v22 = vand.u32 2147483647, %v9544_v53  ;;  %v4997_v58 = vadd.s32 1, %v5470_v42 }
 0x4dd   :  { %v4920_v50 = vsel %vm4919_vm1, 1, %v9469_v2  ;;  %v4795_v28 = vand.u32 2147483647, %v4794_v40  ;;  %v4797_v15 = vcvt.s32.f32 %v4790_v62  ;;  %v4912_v27 = vshrl.u32 %v4908_v6, 16 }
 0x4de   :  { %v4922_v44 = vadd.s32 %v4920_v50, %v4918_v7  ;;  %v4804_v55 = vsel %vm9163_vm12, 0, %v4802_v54  ;;  %v4871_v37 = vsel %vm4865_vm6, %v4868_v11, %v4870_v20  ;;  %v9186_v5 = vadd.s32 %v4901_v36, %v4892_v21 }
 0x4df   :  { %vm4998_vm2 = vcmp.gt.s32.totalorder %v4997_v58, 0  ;;  %v4798_v30 = vmul.f32 %v4797_v15, %v4795_v28  ;;  %v4914_v57 = vshrl.u32 %v4909_v29, 16  ;;  %v9188_v24 = vadd.s32 %v4917_v9, %v4913_v32 }
 0x4e0   :  { %v4923_v47 = vadd.s32 %v4922_v44, %v4912_v27  ;;  %v4999_v1 = vsel %vm4998_vm2, %v4997_v58, 0  ;;  %v4821_v42 = vadd.s32 3, %v4804_v55  ;;  %v4925_v25 = vmul.u32 %v9134_v60, %v4871_v37 }
 0x4e1   :  { %v5001_v17 = vand.u32 31, %v4999_v1  ;;  %v4799_v43 = vxor.u32 2147483648, %v4798_v30  ;;  %vm4927_vm0 = vc.u32 %v9186_v5, %v9188_v24  ;;  %v4994_v51 = vand.u32 8388607, %v4987_v22 }
 0x4e2   :  { %v4924_v38 = vadd.s32 %v4923_v47, %v4914_v57  ;;  %v9199_v61 = vshrl.u32 %v4999_v1, 5  ;;  %v4822_v36 = vand.u32 3, %v4821_v42  ;;  %vm4820_vm7 = vweird.f32 %v9538_v41 }
 0x4e3   :  { %v9193_v33 = vsub.s32 32, %v5001_v17  ;;  %v4800_v56 = vsel %vm4679_vm13, %v4799_v43, %v4798_v30  ;;  %v5013_v23 = vshll.u32 %v9476_v8, %v5001_v17  ;;  %v5004_v13 = vshll.u32 %v9473_v31, %v5001_v17 }
 0x4e4   :  { %v4928_v6 = vadd.s32 1, %v4924_v38  ;;  %v4803_v29 = vsel %vm9163_vm12, %v9538_v41, %v4800_v56  ;;  %v5007_v34 = vshll.u32 %v9474_v45, %v5001_v17  ;;  %v5010_v52 = vshll.u32 %v9475_v3, %v5001_v17 }
 0x4e5   :  { %v5005_v60 = vshrl.u32 %v9474_v45, %v9193_v33  ;;  %v5008_v16 = vshrl.u32 %v9475_v3, %v9193_v33  ;;  %v4805_v19 = vmul.f32 %v4803_v29, %v4803_v29  ;;  %v5011_v48 = vshrl.u32 %v9476_v8, %v9193_v33 }
 0x4e6   :  { %v4929_v26 = vsel %vm4927_vm0, %v4928_v6, %v4924_v38  ;;  %v5014_v12 = vshrl.u32 %v9477_v4, %v9193_v33  ;;  %v5017_v35 = vshrl.u32 %v9481_v10, %v9193_v33  ;;  %v5016_v49 = vshll.u32 %v9477_v4, %v5001_v17 }
 0x4e7   :  { %v4930_v46 = vadd.s32 %v4929_v26, %v4925_v25  ;;  %v4806_v14 = vmul.f32 -0.001358992, %v4805_v19  ;;  %v4813_v39 = vmul.f32 -0.00019511016, %v4805_v19  ;;  %v9218_v62 = vor.u32 %v5005_v60, %v5004_v13 }
 0x4e8   :  { %v5015_v63 = vor.u32 %v5014_v12, %v5013_v23  ;;  %v9220_v59 = vor.u32 %v5008_v16, %v5007_v34  ;;  %v9223_v7 = vor.u32 %v5011_v48, %v5010_v52  ;;  %v4995_v54 = vor.u32 8388608, %v4994_v51 }
 0x4e9   :  { %v4931_v32 = vadd.s32 536870912, %v4930_v46  ;;  %v4807_v9 = vadd.f32 0.041655596, %v4806_v14  ;;  %v4814_v11 = vadd.f32 0.008332121, %v4813_v39  ;;  %v5018_v20 = vor.u32 %v5017_v35, %v5016_v49  ;;  %v9547_v35 = vld [vmem:[#allocation17_spill] sm:$0xff] }
 0x4ea   :  { %vm5022_vm3 = vcmp.lt.s32.totalorder %v9199_v61, 4  ;;  %vm5019_vm5 = vcmp.lt.s32.totalorder %v9199_v61, 1  ;;  %vm5021_vm4 = vcmp.lt.s32.totalorder %v9199_v61, 3  ;;  %v9248_v47 = vshll.u32 %v4995_v54, 8 }
 0x4eb   :  { %v9225_v40 = vshrl.u32 %v4931_v32, 30  ;;  %v4808_v21 = vmul.f32 %v4807_v9, %v4805_v19  ;;  %v4815_v50 = vmul.f32 %v4814_v11, %v4805_v19  ;;  %v5028_v58 = vsel %vm5022_vm3, %v5015_v63, 920167782 }
 0x4ec   :  { %v5027_v15 = vsel %vm5019_vm5, %v9218_v62, %v9220_v59  ;;  %v5029_v55 = vsel %vm5021_vm4, %v9223_v7, %v5028_v58  ;;  %v5031_v37 = vsel %vm5019_vm5, %v9220_v59, %v9223_v7  ;;  %v5032_v57 = vsel %vm5022_vm3, %v5018_v20, 1326507024 }
 0x4ed   :  { %v4933_v28 = vshll.u32 %v9225_v40, 30  ;;  %v4809_v27 = vadd.f32 -0.4999988, %v4808_v21  ;;  %v4816_v44 = vadd.f32 -0.16666654, %v4815_v50  ;;  %vm4823_vm6 = vcmp.lt.s32.totalorder %v4822_v36, 2 }
 0x4ee   :  { %vm5020_vm9 = vcmp.lt.s32.totalorder %v9199_v61, 2  ;;  %v5033_v43 = vsel %vm5021_vm4, %v5015_v63, %v5032_v57  ;;  %vm4824_vm10 = vcmp.eq.s32.totalorder %v4822_v36, 0  ;;  %v5036_v23 = vand.u32 65535, %v9248_v47 }
 0x4ef   :  { %v9244_v30 = vsub.s32 %v4930_v46, %v4933_v28  ;;  %v4810_v1 = vmul.f32 %v4809_v27, %v4805_v19  ;;  %v4817_v17 = vmul.f32 %v4816_v44, %v4805_v19  ;;  %v5030_v42 = vsel %vm5020_vm9, %v5027_v15, %v5029_v55 }
 0x4f0   :  { %v5034_v25 = vsel %vm5020_vm9, %v5031_v37, %v5033_v43  ;;  %v5037_v19 = vshrl.u32 %v9248_v47, 16  ;;  %v5061_v46 = vshrl.u32 %v5030_v42, 16  ;;  %vm4827_vm14 = vcmp.eq.s32.totalorder %v4822_v36, 2 }
 0x4f1   :  { %vm4935_vm8 = vcmp.lt.s32.totalorder %v9244_v30, 0  ;;  %v4936_v38 = vsub.s32 0, %v9244_v30  ;;  %v4811_v56 = vadd.f32 1.0, %v4810_v1  ;;  %v4818_v6 = vadd.f32 1.0, %v4817_v17 }
 0x4f2   :  { %v5038_v51 = vand.u32 65535, %v5034_v25  ;;  %v5039_v60 = vshrl.u32 %v5034_v25, 16  ;;  %v4926_v13 = vadd.s32 %v9188_v24, %v9186_v5  ;;  %v5142_v14 = vand.u32 2147483647, %v9547_v35 }
 0x4f3   :  { %v4937_v16 = vsel %vm4935_vm8, %v4936_v38, %v9244_v30  ;;  %v4819_v26 = vmul.f32 %v4818_v6, %v4803_v29  ;;  %v4828_v48 = vxor.u32 2147483648, %v4811_v56  ;;  %v5145_v32 = vand.u32 2139095040, %v9547_v35 }
 0x4f4   :  { %v4938_v12 = vclz %v4937_v16  ;;  %v5041_v34 = vmul.u32 %v5039_v60, %v5036_v23  ;;  %v5042_v63 = vmul.u32 %v5038_v51, %v5037_v19  ;;  %v5040_v9 = vmul.u32 %v5038_v51, %v5036_v23 }
 0x4f5   :  { %v4825_v39 = vxor.u32 2147483648, %v4819_v26  ;;  %v4829_v49 = vsel %vm4827_vm14, %v4828_v48, %v4819_v26  ;;  %v5060_v54 = vand.u32 65535, %v5030_v42  ;;  %v5063_v21 = vmul.u32 %v5061_v46, %v5036_v23 }
 0x4f6   :  { %v5468_v52 = vadd.s32 4294967294, %v4938_v12  ;;  %v5044_v11 = vshll.u32 %v5041_v34, 16  ;;  %v5046_v20 = vshll.u32 %v5042_v63, 16  ;;  %v5043_v27 = vmul.u32 %v5039_v60, %v5037_v19 }
 0x4f7   :  { %v4826_v29 = vsel %vm4824_vm10, %v4811_v56, %v4825_v39  ;;  %vm4834_vm11 = vcmp.lt.s32.totalorder %v9541_v18, 0  ;;  %v5064_v37 = vmul.u32 %v5060_v54, %v5037_v19  ;;  %v5003_v41 = vshrl.u32 %v9473_v31, %v9193_v33 }
 0x4f8   :  { %vm5469_vm12 = vcmp.lt.s32.totalorder %v5468_v52, 0  ;;  %v4830_v50 = vsel %vm4823_vm6, %v4826_v29, %v4829_v49  ;;  %vm5048_vm15 = vc.u32 %v5040_v9, %v5044_v11  ;;  %v5050_v24 = vadd.s32 %v5044_v11, %v5040_v9 }
 0x4f9   :  { %v4941_v5 = vsel %vm5469_vm12, 0, %v5468_v52  ;;  %v4831_v58 = vsel %vm4820_vm7, nan, %v4830_v50  ;;  %v5049_v55 = vsel %vm5048_vm15, 1, %v9469_v2  ;;  %v5045_v43 = vshrl.u32 %v5041_v34, 16 }
 0x4fa   :  { %v4942_v28 = vsub.s32 32, %v4941_v5  ;;  %v4946_v15 = vsub.s32 4294967266, %v4941_v5  ;;  %v4943_v44 = vshll.u32 %v9244_v30, %v4941_v5  ;;  %vm5052_vm13 = vc.u32 %v5050_v24, %v5046_v20  ;;  %5325 = vst [vmem:[#allocation2 + $0xe0] sm:$0xff] %v4831_v58 }
 0x4fb   :  { %v5051_v1 = vadd.s32 %v5049_v55, %v5043_v27  ;;  %v5053_v17 = vsel %vm5052_vm13, 1, %v9469_v2  ;;  %v5062_v38 = vmul.u32 %v5060_v54, %v5036_v23  ;;  %v5066_v42 = vshll.u32 %v5063_v21, 16 }
 0x4fc   :  { %v4944_v36 = vshrl.u32 %v4926_v13, %v4942_v28  ;;  %v4947_v57 = vadd.s32 127, %v4946_v15  ;;  %v5065_v30 = vmul.u32 %v5061_v46, %v5037_v19  ;;  %v5068_v51 = vshll.u32 %v5064_v37, 16 }
 0x4fd   :  { %v5055_v6 = vadd.s32 %v5053_v17, %v5051_v1  ;;  %vm5070_vm1 = vc.u32 %v5062_v38, %v5066_v42  ;;  %v5072_v60 = vadd.s32 %v5066_v42, %v5062_v38  ;;  %v5146_v16 = vshrl.u32 %v5145_v32, 23 }
 0x4fe   :  { %v4945_v25 = vor.u32 %v4944_v36, %v4943_v44  ;;  %v4948_v56 = vshll.u32 %v4947_v57, 23  ;;  %v4956_v48 = vsub.s32 4, %v9225_v40  ;;  %v5071_v13 = vsel %vm5070_vm1, 1, %v9469_v2 }
 0x4ff   :  { %v5056_v12 = vadd.s32 %v5055_v6, %v5045_v43  ;;  %v5024_v33 = vsel %vm5022_vm3, %v9223_v7, 2102212464  ;;  %v5073_v23 = vadd.s32 %v5071_v13, %v5065_v30  ;;  %vm5074_vm2 = vc.u32 %v5072_v60, %v5068_v51 }
 0x500   :  { %v4949_v26 = vor.u32 4788187, %v4948_v56  ;;  %v5473_v34 = vadd.s32 4294967169, %v5146_v16  ;;  %v4952_v52 = vcvt.s32.f32 %v4945_v25  ;;  %v5047_v19 = vshrl.u32 %v5042_v63, 16 }
 0x501   :  { %v5075_v46 = vsel %vm5074_vm2, 1, %v9469_v2  ;;  %v5023_v32 = vsel %vm5019_vm5, %v5003_v41, %v9218_v62  ;;  %v5067_v49 = vshrl.u32 %v5063_v21, 16  ;;  %v4957_v7 = vsel %vm4834_vm11, %v4956_v48, %v9225_v40 }
 0x502   :  { %v4950_v39 = vand.u32 2147483647, %v4949_v26  ;;  %v5077_v9 = vadd.s32 %v5075_v46, %v5073_v23  ;;  %v5152_v11 = vadd.s32 1, %v5473_v34  ;;  %v5025_v29 = vsel %vm5021_vm4, %v9220_v59, %v5024_v33 }
 0x503   :  { %v9292_v20 = vadd.s32 %v5056_v12, %v5047_v19  ;;  %vm9296_vm0 = vcmp.le.f32.partialorder %v4832_v0, 0.7853982  ;;  %v5069_v62 = vshrl.u32 %v5064_v37, 16  ;;  %v9300_v5 = vadd.s32 %v5072_v60, %v5068_v51 }
 0x504   :  { %v4953_v54 = vmul.f32 %v4952_v52, %v4950_v39  ;;  %v5078_v21 = vadd.s32 %v5077_v9, %v5067_v49  ;;  %vm5153_vm3 = vcmp.gt.s32.totalorder %v5152_v11, 0  ;;  %v5149_v40 = vand.u32 8388607, %v5142_v14 }
 0x505   :  { %v5154_v24 = vsel %vm5153_vm3, %v5152_v11, 0  ;;  %v4959_v59 = vsel %vm9296_vm0, 0, %v4957_v7  ;;  %v5026_v58 = vsel %vm5020_vm9, %v5023_v32, %v5025_v29  ;;  %vm5082_vm5 = vc.u32 %v9292_v20, %v9300_v5 }
 0x506   :  { %v4954_v50 = vxor.u32 2147483648, %v4953_v54  ;;  %v5079_v0 = vadd.s32 %v5078_v21, %v5069_v62  ;;  %v5156_v28 = vand.u32 31, %v5154_v24  ;;  %v4976_v36 = vadd.s32 3, %v4959_v59 }
 0x507   :  { %v5080_v61 = vmul.u32 %v9248_v47, %v5026_v58  ;;  %v5150_v57 = vor.u32 8388608, %v5149_v40  ;;  %v9318_v17 = vshrl.u32 %v5154_v24, 5  ;;  %vm4975_vm10 = vweird.f32 %v9541_v18 }
 0x508   :  { %v4955_v15 = vsel %vm4834_vm11, %v4954_v50, %v4953_v54  ;;  %v5083_v44 = vadd.s32 1, %v5079_v0  ;;  %v9315_v55 = vsub.s32 32, %v5156_v28  ;;  %v5159_v41 = vshll.u32 %v9473_v31, %v5156_v28 }
 0x509   :  { %v4958_v27 = vsel %vm9296_vm0, %v9541_v18, %v4955_v15  ;;  %v5162_v47 = vshll.u32 %v9474_v45, %v5156_v28  ;;  %v5168_v30 = vshll.u32 %v9476_v8, %v5156_v28  ;;  %v5165_v48 = vshll.u32 %v9475_v3, %v5156_v28 }
 0x50a   :  { %v4960_v37 = vmul.f32 %v4958_v27, %v4958_v27  ;;  %v5084_v1 = vsel %vm5082_vm5, %v5083_v44, %v5079_v0  ;;  %v5163_v43 = vshrl.u32 %v9475_v3, %v9315_v55  ;;  %v5166_v56 = vshrl.u32 %v9476_v8, %v9315_v55 }
 0x50b   :  { %v5085_v25 = vadd.s32 %v5084_v1, %v5080_v61  ;;  %v5160_v6 = vshrl.u32 %v9474_v45, %v9315_v55  ;;  %v5169_v51 = vshrl.u32 %v9477_v4, %v9315_v55  ;;  %v5171_v33 = vshll.u32 %v9477_v4, %v5156_v28 }
 0x50c   :  { %v4961_v38 = vmul.f32 -0.001358992, %v4960_v37  ;;  %v4968_v42 = vmul.f32 -0.00019511016, %v4960_v37  ;;  %v9332_v12 = vor.u32 %v5163_v43, %v5162_v47  ;;  %v5172_v23 = vshrl.u32 %v9481_v10, %v9315_v55 }
 0x50d   :  { %v5086_v26 = vadd.s32 536870912, %v5085_v25  ;;  %v5170_v13 = vor.u32 %v5169_v51, %v5168_v30  ;;  %v9339_v8 = vor.u32 %v5166_v56, %v5165_v48  ;;  %v4977_v52 = vand.u32 3, %v4976_v36 }
 0x50e   :  { %v4962_v60 = vadd.f32 0.041655596, %v4961_v38  ;;  %v4969_v16 = vadd.f32 0.008332121, %v4968_v42  ;;  %v9341_v19 = vor.u32 %v5160_v6, %v5159_v41  ;;  %v5173_v46 = vor.u32 %v5172_v23, %v5171_v33 }
 0x50f   :  { %v9337_v39 = vshrl.u32 %v5086_v26, 30  ;;  %v9343_v32 = vshll.u32 %v5150_v57, 8  ;;  %vm5177_vm4 = vcmp.lt.s32.totalorder %v9318_v17, 4  ;;  %vm5174_vm6 = vcmp.lt.s32.totalorder %v9318_v17, 1 }
 0x510   :  { %v4963_v34 = vmul.f32 %v4962_v60, %v4960_v37  ;;  %v4970_v45 = vmul.f32 %v4969_v16, %v4960_v37  ;;  %vm5176_vm9 = vcmp.lt.s32.totalorder %v9318_v17, 3  ;;  %v5183_v4 = vsel %vm5177_vm4, %v5170_v13, 920167782 }
 0x511   :  { %v5088_v9 = vshll.u32 %v9337_v39, 30  ;;  %v5187_v10 = vsel %vm5177_vm4, %v5173_v46, 1326507024  ;;  %v5186_v29 = vsel %vm5174_vm6, %v9332_v12, %v9339_v8  ;;  %vm5175_vm7 = vcmp.lt.s32.totalorder %v9318_v17, 2 }
 0x512   :  { %v4964_v3 = vadd.f32 -0.4999988, %v4963_v34  ;;  %v4971_v49 = vadd.f32 -0.16666654, %v4970_v45  ;;  %v5182_v63 = vsel %vm5174_vm6, %v9341_v19, %v9332_v12  ;;  %v5184_v62 = vsel %vm5176_vm9, %v9339_v8, %v5183_v4 }
 0x513   :  { %v5089_v7 = vsub.s32 %v5085_v25, %v5088_v9  ;;  %v5188_v21 = vsel %vm5176_vm9, %v5170_v13, %v5187_v10  ;;  %v5192_v36 = vshrl.u32 %v9343_v32, 16  ;;  %vm4978_vm14 = vcmp.lt.s32.totalorder %v4977_v52, 2 }
 0x514   :  { %v4965_v11 = vmul.f32 %v4964_v3, %v4960_v37  ;;  %v4972_v54 = vmul.f32 %v4971_v49, %v4960_v37  ;;  %v5189_v59 = vsel %vm5175_vm7, %v5186_v29, %v5188_v21  ;;  %v5185_v37 = vsel %vm5175_vm7, %v5182_v63, %v5184_v62 }
 0x515   :  { %vm5090_vm8 = vcmp.lt.s32.totalorder %v5089_v7, 0  ;;  %v5091_v24 = vsub.s32 0, %v5089_v7  ;;  %v5193_v15 = vand.u32 65535, %v5189_v59  ;;  %v5194_v61 = vshrl.u32 %v5189_v59, 16 }
 0x516   :  { %v4966_v50 = vadd.f32 1.0, %v4965_v11  ;;  %v4973_v40 = vadd.f32 1.0, %v4972_v54  ;;  %vm4979_vm12 = vcmp.eq.s32.totalorder %v4977_v52, 0  ;;  %v5191_v1 = vand.u32 65535, %v9343_v32 }
 0x517   :  { %v5092_v28 = vsel %vm5090_vm8, %v5091_v24, %v5089_v7  ;;  %vm4982_vm15 = vcmp.eq.s32.totalorder %v4977_v52, 2  ;;  %v5081_v41 = vadd.s32 %v9300_v5, %v9292_v20  ;;  %v5197_v43 = vmul.u32 %v5193_v15, %v5192_v36 }
 0x518   :  { %v4974_v58 = vmul.f32 %v4973_v40, %v4958_v27  ;;  %v4983_v0 = vxor.u32 2147483648, %v4966_v50  ;;  %v5093_v44 = vclz %v5092_v28  ;;  %v5196_v25 = vmul.u32 %v5194_v61, %v5191_v1 }
 0x519   :  { %v5215_v56 = vand.u32 65535, %v5185_v37  ;;  %v5195_v47 = vmul.u32 %v5193_v15, %v5191_v1  ;;  %v5216_v30 = vshrl.u32 %v5185_v37, 16  ;;  %v5198_v16 = vmul.u32 %v5194_v61, %v5192_v36 }
 0x51a   :  { %v4980_v57 = vxor.u32 2147483648, %v4974_v58  ;;  %v5471_v27 = vadd.s32 4294967294, %v5093_v44  ;;  %v4984_v42 = vsel %vm4982_vm15, %v4983_v0, %v4974_v58  ;;  %v5199_v26 = vshll.u32 %v5196_v25, 16 }
 0x51b   :  { %v5200_v33 = vshrl.u32 %v5196_v25, 16  ;;  %v5201_v20 = vshll.u32 %v5197_v43, 16  ;;  %v5218_v23 = vmul.u32 %v5216_v30, %v5191_v1  ;;  %v5219_v34 = vmul.u32 %v5215_v56, %v5192_v36 }
 0x51c   :  { %v4981_v38 = vsel %vm4979_vm12, %v4966_v50, %v4980_v57  ;;  %vm5472_vm11 = vcmp.lt.s32.totalorder %v5471_v27, 0  ;;  %vm5203_vm13 = vc.u32 %v5195_v47, %v5199_v26  ;;  %v5205_v5 = vadd.s32 %v5199_v26, %v5195_v47 }
 0x51d   :  { %v4985_v6 = vsel %vm4978_vm14, %v4981_v38, %v4984_v42  ;;  %v5096_v60 = vsel %vm5472_vm11, 0, %v5471_v27  ;;  %v5204_v3 = vsel %vm5203_vm13, 1, %v9469_v2  ;;  %v5217_v18 = vmul.u32 %v5215_v56, %v5191_v1 }
 0x51e   :  { %v4986_v51 = vsel %vm4975_vm10, nan, %v4985_v6  ;;  %v5097_v48 = vsub.s32 32, %v5096_v60  ;;  %v5101_v13 = vsub.s32 4294967266, %v5096_v60  ;;  %v5098_v45 = vshll.u32 %v5089_v7, %v5096_v60 }
 0x51f   :  { %5326 = vst [vmem:[#allocation2 + $0xe8] sm:$0xff] %v4986_v51  ;;  %v5206_v49 = vadd.s32 %v5204_v3, %v5198_v16  ;;  %vm5207_vm1 = vc.u32 %v5205_v5, %v5201_v20  ;;  %v5221_v9 = vshll.u32 %v5218_v23, 16  ;;  %v5220_v54 = vmul.u32 %v5216_v30, %v5192_v36 }
 0x520   :  { %v5099_v52 = vshrl.u32 %v5081_v41, %v5097_v48  ;;  %v5102_v46 = vadd.s32 127, %v5101_v13  ;;  %v5208_v11 = vsel %vm5207_vm1, 1, %v9469_v2  ;;  %v5223_v63 = vshll.u32 %v5219_v34, 16 }
 0x521   :  { %v5210_v29 = vadd.s32 %v5208_v11, %v5206_v49  ;;  %vm5225_vm2 = vc.u32 %v5217_v18, %v5221_v9  ;;  %v5227_v62 = vadd.s32 %v5221_v9, %v5217_v18  ;;  %v5158_v7 = vshrl.u32 %v9473_v31, %v9315_v55 }
 0x522   :  { %v5100_v4 = vor.u32 %v5099_v52, %v5098_v45  ;;  %v5103_v10 = vshll.u32 %v5102_v46, 23  ;;  %v5226_v50 = vsel %vm5225_vm2, 1, %v9469_v2  ;;  %v5179_v40 = vsel %vm5177_vm4, %v9339_v8, 2102212464 }
 0x523   :  { %v5211_v24 = vadd.s32 %v5210_v29, %v5200_v33  ;;  %v5228_v59 = vadd.s32 %v5226_v50, %v5220_v54  ;;  %vm5229_vm0 = vc.u32 %v5227_v62, %v5223_v63  ;;  %v5202_v28 = vshrl.u32 %v5197_v43, 16 }
 0x524   :  { %v5104_v21 = vor.u32 4788187, %v5103_v10  ;;  %v5107_v0 = vcvt.s32.f32 %v5100_v4  ;;  %v5230_v15 = vsel %vm5229_vm0, 1, %v9469_v2  ;;  %v5222_v44 = vshrl.u32 %v5218_v23, 16 }
 0x525   :  { %v5232_v37 = vadd.s32 %v5230_v15, %v5228_v59  ;;  %v5178_v31 = vsel %vm5174_vm6, %v5158_v7, %v9341_v19  ;;  %v5180_v55 = vsel %vm5176_vm9, %v9332_v12, %v5179_v40  ;;  %v5212_v8 = vadd.s32 %v5211_v24, %v5202_v28 }
 0x526   :  { %v5105_v58 = vand.u32 2147483647, %v5104_v21  ;;  %v5224_v61 = vshrl.u32 %v5219_v34, 16  ;;  %v5231_v41 = vadd.s32 %v5227_v62, %v5223_v63  ;;  %vm4989_vm3 = vcmp.lt.s32.totalorder %v9544_v53, 0 }
 0x527   :  { %v5233_v57 = vadd.s32 %v5232_v37, %v5222_v44  ;;  %v5181_v2 = vsel %vm5175_vm7, %v5178_v31, %v5180_v55  ;;  %vm9398_vm5 = vcmp.le.f32.partialorder %v4987_v22, 0.7853982  ;;  %v5111_v12 = vsub.s32 4, %v9337_v39 }
 0x528   :  { %v5108_v36 = vmul.f32 %v5107_v0, %v5105_v58  ;;  %vm5237_vm4 = vc.u32 %v5212_v8, %v5231_v41  ;;  %v5235_v17 = vmul.u32 %v9343_v32, %v5181_v2  ;;  %vm5130_vm10 = vweird.f32 %v9544_v53 }
 0x529   :  { %v5234_v27 = vadd.s32 %v5233_v57, %v5224_v61  ;;  %v5112_v22 = vsel %vm4989_vm3, %v5111_v12, %v9337_v39  ;;  %v5236_v50 = vadd.s32 %v5231_v41, %v5212_v8  ;;  %vm5144_vm12 = vcmp.lt.s32.totalorder %v9547_v35, 0 }
 0x52a   :  { %v5109_v1 = vxor.u32 2147483648, %v5108_v36  ;;  %v5114_v26 = vsel %vm9398_vm5, 0, %v5112_v22  ;;  %vm5143_vm15 = vcmp.le.f32.partialorder %v5142_v14, 0.7853982  ;;  %vm5285_vm2 = vweird.f32 %v9547_v35 }
 0x52b   :  { %v5238_v42 = vadd.s32 1, %v5234_v27  ;;  %v5131_v34 = vadd.s32 3, %v5114_v26 }
 0x52c   :  { %v5110_v19 = vsel %vm4989_vm3, %v5109_v1, %v5108_v36 }
 0x52d   :  { %v5113_v38 = vsel %vm9398_vm5, %v9544_v53, %v5110_v19  ;;  %v5239_v56 = vsel %vm5237_vm4, %v5238_v42, %v5234_v27  ;;  %v5132_v49 = vand.u32 3, %v5131_v34 }
 0x52e   :  { %v5115_v25 = vmul.f32 %v5113_v38, %v5113_v38  ;;  %v5240_v30 = vadd.s32 %v5239_v56, %v5235_v17 }
 0x52f   :  { %vm5134_vm9 = vcmp.eq.s32.totalorder %v5132_v49, 0  ;;  %vm5137_vm7 = vcmp.eq.s32.totalorder %v5132_v49, 2  ;;  %vm5133_vm8 = vcmp.lt.s32.totalorder %v5132_v49, 2 }
 0x530   :  { %v5116_v6 = vmul.f32 -0.001358992, %v5115_v25  ;;  %v5123_v47 = vmul.f32 -0.00019511016, %v5115_v25  ;;  %v5241_v16 = vadd.s32 536870912, %v5240_v30 }
 0x532   :  { %v5117_v51 = vadd.f32 0.041655596, %v5116_v6  ;;  %v5124_v60 = vadd.f32 0.008332121, %v5123_v47  ;;  %v5242_v33 = vshrl.u32 %v5241_v16, 30 }
 0x534   :  { %v5118_v48 = vmul.f32 %v5117_v51, %v5115_v25  ;;  %v5125_v13 = vmul.f32 %v5124_v60, %v5115_v25  ;;  %v5243_v23 = vshll.u32 %v5242_v33, 30  ;;  %v5266_v8 = vsub.s32 4, %v5242_v33 }
 0x536   :  { %v5119_v20 = vadd.f32 -0.4999988, %v5118_v48  ;;  %v5126_v5 = vadd.f32 -0.16666654, %v5125_v13  ;;  %v5244_v52 = vsub.s32 %v5240_v30, %v5243_v23  ;;  %v5267_v2 = vsel %vm5144_vm12, %v5266_v8, %v5242_v33 }
 0x537   :  { %v5269_v19 = vsel %vm5143_vm15, 0, %v5267_v2 }
 0x538   :  { %v5120_v32 = vmul.f32 %v5119_v20, %v5115_v25  ;;  %v5127_v45 = vmul.f32 %v5126_v5, %v5115_v25  ;;  %vm5245_vm6 = vcmp.lt.s32.totalorder %v5244_v52, 0  ;;  %v5246_v39 = vsub.s32 0, %v5244_v52 }
 0x539   :  { %v5286_v17 = vadd.s32 3, %v5269_v19 }
 0x53a   :  { %v5121_v46 = vadd.f32 1.0, %v5120_v32  ;;  %v5128_v3 = vadd.f32 1.0, %v5127_v45  ;;  %v5247_v4 = vsel %vm5245_vm6, %v5246_v39, %v5244_v52 }
 0x53b   :  { %v5248_v10 = vclz %v5247_v4  ;;  %v5287_v30 = vand.u32 3, %v5286_v17 }
 0x53c   :  { %v5129_v18 = vmul.f32 %v5128_v3, %v5113_v38  ;;  %v5138_v9 = vxor.u32 2147483648, %v5121_v46 }
 0x53d   :  { %v5474_v54 = vadd.s32 4294967294, %v5248_v10  ;;  %vm5289_vm11 = vcmp.eq.s32.totalorder %v5287_v30, 0  ;;  %vm5292_vm13 = vcmp.eq.s32.totalorder %v5287_v30, 2  ;;  %vm5288_vm1 = vcmp.lt.s32.totalorder %v5287_v30, 2 }
 0x53e   :  { %v5135_v11 = vxor.u32 2147483648, %v5129_v18  ;;  %v5139_v63 = vsel %vm5137_vm7, %v5138_v9, %v5129_v18 }
 0x53f   :  { %vm5475_vm14 = vcmp.lt.s32.totalorder %v5474_v54, 0 }
 0x540   :  { %v5136_v29 = vsel %vm5134_vm9, %v5121_v46, %v5135_v11  ;;  %v5251_v7 = vsel %vm5475_vm14, 0, %v5474_v54 }
 0x541   :  { %v5140_v62 = vsel %vm5133_vm8, %v5136_v29, %v5139_v63  ;;  %v5252_v40 = vsub.s32 32, %v5251_v7  ;;  %v5256_v24 = vsub.s32 4294967266, %v5251_v7  ;;  %v5253_v59 = vshll.u32 %v5244_v52, %v5251_v7 }
 0x542   :  { %v5141_v21 = vsel %vm5130_vm10, nan, %v5140_v62 }
 0x543   :  { %5327 = vst [vmem:[#allocation2 + $0xf0] sm:$0xff] %v5141_v21  ;;  %v5254_v58 = vshrl.u32 %v5236_v50, %v5252_v40  ;;  %v5257_v0 = vadd.s32 127, %v5256_v24 }
 0x545   :  { %v5255_v28 = vor.u32 %v5254_v58, %v5253_v59  ;;  %v5258_v15 = vshll.u32 %v5257_v0, 23 }
 0x547   :  { %v5259_v44 = vor.u32 4788187, %v5258_v15  ;;  %v5262_v36 = vcvt.s32.f32 %v5255_v28 }
 0x549   :  { %v5260_v37 = vand.u32 2147483647, %v5259_v44 }
 0x54b   :  { %v5263_v31 = vmul.f32 %v5262_v36, %v5260_v37 }
 0x54d   :  { %v5264_v55 = vxor.u32 2147483648, %v5263_v31 }
 0x54f   :  { %v5265_v53 = vsel %vm5144_vm12, %v5264_v55, %v5263_v31 }
 0x550   :  { %v5268_v61 = vsel %vm5143_vm15, %v9547_v35, %v5265_v53 }
 0x551   :  { %v5270_v57 = vmul.f32 %v5268_v61, %v5268_v61 }
 0x553   :  { %v5271_v1 = vmul.f32 -0.001358992, %v5270_v57  ;;  %v5278_v41 = vmul.f32 -0.00019511016, %v5270_v57 }
 0x555   :  { %v5272_v27 = vadd.f32 0.041655596, %v5271_v1  ;;  %v5279_v43 = vadd.f32 0.008332121, %v5278_v41 }
 0x557   :  { %v5273_v12 = vmul.f32 %v5272_v27, %v5270_v57  ;;  %v5280_v38 = vmul.f32 %v5279_v43, %v5270_v57 }
 0x559   :  { %v5274_v42 = vadd.f32 -0.4999988, %v5273_v12  ;;  %v5281_v25 = vadd.f32 -0.16666654, %v5280_v38 }
 0x55b   :  { %v5275_v56 = vmul.f32 %v5274_v42, %v5270_v57  ;;  %v5282_v6 = vmul.f32 %v5281_v25, %v5270_v57 }
 0x55d   :  { %v5276_v47 = vadd.f32 1.0, %v5275_v56  ;;  %v5283_v14 = vadd.f32 1.0, %v5282_v6 }
 0x55f   :  { %v5284_v22 = vmul.f32 %v5283_v14, %v5268_v61  ;;  %v5293_v51 = vxor.u32 2147483648, %v5276_v47 }
 0x561   :  { %v5290_v60 = vxor.u32 2147483648, %v5284_v22  ;;  %v5294_v26 = vsel %vm5292_vm13, %v5293_v51, %v5284_v22 }
 0x563   :  { %v5291_v16 = vsel %vm5289_vm11, %v5276_v47, %v5290_v60 }
 0x564   :  { %v5295_v48 = vsel %vm5288_vm1, %v5291_v16, %v5294_v26 }
 0x565   :  { %v5296_v13 = vsel %vm5285_vm2, nan, %v5295_v48 }
 0x566   :  { %5328 = vst [vmem:[#allocation2 + $0xf8] sm:$0xff] %v5296_v13 }
 0x567   :  { %5341 = dma.vmem_to_hbm [thread:$0]  %s5334_s5, 4096, %s5336_s3, [#allocation3], %s5525_s6, %s5525_s6, %s5526_s7  }
 0x568   :  { %5515 = dma.done.wait [#allocation3], 4096  }
 0x569   :  { %5516 = vsyncadd [#allocation3], 4294963200 }
 0x56a   :  { %5346 = vsyncpa [#allocation3], 1 }

</bundles_post_ra>
